<compile_context>
chip_gen: v6e
topology: v6e:2x2x1
jax: 0.10.0
libtpu: 0.0.40
codegen_flags: <defaults>
</compile_context>

<pallas_src>
import functools

import jax
import jax.numpy as jnp
from jax.experimental import pallas as pl
from jax.experimental.pallas import tpu as pltpu


_BBLK = 128   # batch block: lane width of every stage; multiple of 128 keeps every
              # in-kernel lane slice 128-aligned and the final store lane-dense.


# ---------------------------------------------------------------------------
# Fused kernel: Conv(6->16,5x5)+ReLU+MaxPool2x2+flatten+Linear(400,1024)+ReLU
#               +Linear(1024,128)+ReLU+Linear(128,10 padded to 128)
# All tensors are "transposed": features on sublanes, samples on lanes.
# ---------------------------------------------------------------------------
def _fused_lenet_head_kernel(p_ref, wc_ref, bc_ref, w1g_ref, w1l_ref, b1_ref,
                             w2_ref, b2_ref, w3_ref, b3_ref, o_ref):
    # p_ref : (150, 100*B) bf16  im2col patches, lanes ordered (quadrant q, pool pos s, b)
    # wc_ref: (16, 150) bf16     conv weight (cout, cin*kh*kw)     bc_ref: (16, 1) f32
    # w1g_ref: (3, 1024, 128) bf16  fc1 regrouped: [group, out, pos_in_group*16 + channel]
    # w1l_ref: (1024, 16) bf16      fc1 weight for leftover pooled position 24 (K=16)
    # b1_ref: (1024, 1) f32   w2_ref: (128, 1024) bf16   b2_ref: (128, 1) f32
    # w3_ref: (128, 128) bf16 (rows >= num_classes zero)  b3_ref: (128, 1) f32
    # o_ref : (128, B) f32    transposed logits (first num_classes rows valid)
    f32 = jnp.float32
    bf16 = jnp.bfloat16
    B = o_ref.shape[1]
    sb = 25 * B                                   # lanes per 2x2-window quadrant slab

    # --- conv as 4 "weights-as-LHS" MXU matmuls: N axis = (25 positions x B samples) ---
    wc = wc_ref[...]
    c0 = jnp.dot(wc, p_ref[:, 0 * sb:1 * sb], preferred_element_type=f32)
    c1 = jnp.dot(wc, p_ref[:, 1 * sb:2 * sb], preferred_element_type=f32)
    c2 = jnp.dot(wc, p_ref[:, 2 * sb:3 * sb], preferred_element_type=f32)
    c3 = jnp.dot(wc, p_ref[:, 3 * sb:4 * sb], preferred_element_type=f32)
    # 2x2 max-pool == elementwise max of the 4 quadrants; bias + ReLU after the max is
    # equivalent to PyTorch's (conv+bias)->ReLU->pool (per-channel bias, monotone ReLU).
    pooled = jnp.maximum(jnp.maximum(c0, c1), jnp.maximum(c2, c3))        # (16, 25*B)
    pooled = jnp.maximum(pooled + bc_ref[...], 0.0)

    # --- fc1 (400 -> 1024): pack 8 positions x 16 channels onto sublanes (aligned,
    #     relayout-free concat) so 3 of 4 matmuls run at K=128 instead of K=16. ---
    h = b1_ref[...] + jnp.dot(w1l_ref[...],
                              pooled[:, 24 * B:25 * B].astype(bf16),
                              preferred_element_type=f32)                 # leftover pos 24
    for g in range(3):
        packed = jnp.concatenate(
            [pooled[:, (8 * g + p) * B:(8 * g + p + 1) * B] for p in range(8)],
            axis=0)                                                       # (128, B)
        h = h + jnp.dot(w1g_ref[g], packed.astype(bf16), preferred_element_type=f32)
    h = jnp.maximum(h, 0.0)                                               # (1024, B)

    # --- fc2 (1024 -> 128) + ReLU, fc3 (128 -> num_classes, zero-padded rows) ---
    h2 = jnp.dot(w2_ref[...], h.astype(bf16), preferred_element_type=f32) + b2_ref[...]
    h2 = jnp.maximum(h2, 0.0)
    o_ref[...] = jnp.dot(w3_ref[...], h2.astype(bf16),
                         preferred_element_type=f32) + b3_ref[...]


def _fused_forward(patches, prep, n_padded, bblk):
    def full(shape):
        return pl.BlockSpec(shape, lambda i, _nd=len(shape): (0,) * _nd)

    return pl.pallas_call(
        _fused_lenet_head_kernel,
        out_shape=jax.ShapeDtypeStruct((128, n_padded), jnp.float32),
        grid=(n_padded // bblk,),
        in_specs=[
            pl.BlockSpec((150, 100 * bblk), lambda i: (0, i)),   # patches (batch-blocked)
            full((16, 150)),          # conv weight
            full((16, 1)),            # conv bias
            full((3, 1024, 128)),     # fc1 grouped (K=128)
            full((1024, 16)),         # fc1 leftover position
            full((1024, 1)),          # fc1 bias
            full((128, 1024)),        # fc2 weight
            full((128, 1)),           # fc2 bias
            full((128, 128)),         # fc3 weight (padded)
            full((128, 1)),           # fc3 bias (padded)
        ],
        out_specs=pl.BlockSpec((128, bblk), lambda i: (0, i)),
        compiler_params=pltpu.CompilerParams(
            dimension_semantics=("parallel",),      # megacore/2-TC sharding when N > 128
            vmem_limit_bytes=48 * 1024 * 1024,      # ~14 MiB used; fits v7x's 64 MiB
        ),
    )(patches, prep["wc"], prep["bc"], prep["w1g"], prep["w1l"], prep["b1"],
      prep["w2"], prep["b2"], prep["w3p"], prep["b3p"])


# ---------------------------------------------------------------------------
# Glue: transposed pool-grouped im2col, one-time weight prep, forward wrapper
# ---------------------------------------------------------------------------
def _build_patches(x_padded, bblk):
    # (Np, 6, 14, 14) -> (150, (Np//bblk)*4*25*bblk) bf16.
    # row   f = c*25 + kh*5 + kw                       (matches conv_w.reshape(16,150))
    # lane    = ((blk*4 + q)*25 + s)*bblk + b,   q = di*2+dj,  s = ph*5+pw
    # TODO(synk): move this im2col expansion into the kernel (DMA raw x) to cut HBM traffic.
    npad = x_padded.shape[0]
    g = npad // bblk
    feats = []
    for c in range(6):
        for kh in range(5):
            for kw in range(5):
                feats.append(x_padded[:, c, kh:kh + 10, kw:kw + 10])   # (Np, 10, 10)
    f = jnp.stack(feats, axis=0)                    # (150, Np, 10, 10) over (oh, ow)
    f = f.reshape(150, g, bblk, 5, 2, 5, 2)         # (f, blk, b, ph, di, pw, dj)
    f = f.transpose(0, 1, 4, 6, 3, 5, 2)            # (f, blk, di, dj, ph, pw, b)
    return f.reshape(150, g * 100 * bblk).astype(jnp.bfloat16)


def prepare_params(params):
    """One-time (outside the hot path) weight layout prep for the fused kernel."""
    bf16 = jnp.bfloat16
    nc = params["fc3_w"].shape[0]
    assert nc <= 128
    w1_cs = params["fc1_w"].reshape(1024, 16, 25)                  # [out, c, s] s = ph*5+pw
    w1g = (w1_cs[:, :, :24].reshape(1024, 16, 3, 8)
           .transpose(2, 0, 3, 1).reshape(3, 1024, 128))           # [g, out, p*16 + c]
    w1l = w1_cs[:, :, 24]                                          # [out, c] (position 24)
    w3p = jnp.zeros((128, 128), jnp.float32).at[:nc, :].set(params["fc3_w"])
    b3p = jnp.zeros((128, 1), jnp.float32).at[:nc, 0].set(params["fc3_b"])
    return {
        "wc": params["conv_w"].reshape(16, 150).astype(bf16),
        "bc": params["conv_b"].reshape(16, 1).astype(jnp.float32),
        "w1g": w1g.astype(bf16),
        "w1l": w1l.astype(bf16),
        "b1": params["fc1_b"].reshape(1024, 1).astype(jnp.float32),
        "w2": params["fc2_w"].astype(bf16),
        "b2": params["fc2_b"].reshape(128, 1).astype(jnp.float32),
        "w3p": w3p.astype(bf16),
        "b3p": b3p,
    }


@functools.partial(jax.jit, static_argnames=("num_classes",))
def feature_classifier_forward(x, prep, num_classes=10):
    # x: (N, 6, 14, 14) float32 NCHW (Lenet5 activation after its first conv/pool block)
    n = x.shape[0]
    bblk = _BBLK
    n_padded = ((n + bblk - 1) // bblk) * bblk       # pad batch to a multiple of 128
    x_p = jnp.pad(x, ((0, n_padded - n), (0, 0), (0, 0), (0, 0)))
    patches = _build_patches(x_p, bblk)
    out_t = _fused_forward(patches, prep, n_padded, bblk)   # (128, n_padded) transposed
    return out_t.T[:n, :num_classes]


def init_params(key, num_classes=10):
    ks = jax.random.split(key, 8)
    return {
        "conv_w": jax.random.normal(ks[0], (16, 6, 5, 5), jnp.float32) / jnp.sqrt(150.0),
        "conv_b": jax.random.normal(ks[1], (16,), jnp.float32) * 0.01,
        "fc1_w": jax.random.normal(ks[2], (1024, 400), jnp.float32) / jnp.sqrt(400.0),
        "fc1_b": jax.random.normal(ks[3], (1024,), jnp.float32) * 0.01,
        "fc2_w": jax.random.normal(ks[4], (128, 1024), jnp.float32) / jnp.sqrt(1024.0),
        "fc2_b": jax.random.normal(ks[5], (128,), jnp.float32) * 0.01,
        "fc3_w": jax.random.normal(ks[6], (num_classes, 128), jnp.float32) / jnp.sqrt(128.0),
        "fc3_b": jax.random.normal(ks[7], (num_classes,), jnp.float32) * 0.01,
    }


# ---------------------------------------------------------------------------
# Pure-JAX reference (correctness check, f32 HIGHEST precision)
# ---------------------------------------------------------------------------
def reference_forward(x, params):
    hi = jax.lax.Precision.HIGHEST
    y = jax.lax.conv_general_dilated(
        x, params["conv_w"], (1, 1), "VALID",
        dimension_numbers=("NCHW", "OIHW", "NCHW"), precision=hi)
    y = jnp.maximum(y + params["conv_b"].reshape(1, -1, 1, 1), 0.0)
    y = jax.lax.reduce_window(y, -jnp.inf, jax.lax.max, (1, 1, 2, 2), (1, 1, 2, 2), "VALID")
    f = y.reshape(y.shape[0], -1)
    h = jnp.maximum(jnp.dot(f, params["fc1_w"].T, precision=hi) + params["fc1_b"], 0.0)
    h = jnp.maximum(jnp.dot(h, params["fc2_w"].T, precision=hi) + params["fc2_b"], 0.0)
    return jnp.dot(h, params["fc3_w"].T, precision=hi) + params["fc3_b"]


if __name__ == "__main__":
    key = jax.random.PRNGKey(0)
    pkey, xkey = jax.random.split(key)
    params = init_params(pkey, num_classes=10)
    prep = prepare_params(params)   # one-time weight layout prep (not in the hot path)

    # Input is the Lenet5 post-first-block activation: (N, 6, 14, 14)
    x = jax.random.normal(xkey, (2, 6, 14, 14), jnp.float32)

    out = feature_classifier_forward(x, prep, num_classes=10)
    out = jax.block_until_ready(out)

    ref = reference_forward(x, params)
    assert out.shape == (2, 10), out.shape
    err = float(jnp.max(jnp.abs(out - ref)))
    # bf16 inputs with f32 accumulation vs an f32 HIGHEST reference -> loosened tolerance.
    assert jnp.allclose(out, ref, rtol=5e-2, atol=5e-2), err
    print("KERNEL_OK")
</pallas_src>

<mosaic_0001>
module attributes {stable_mosaic.version = 11 : i64} {
  func.func @_fused_lenet_head_kernel(%arg0: i32, %arg1: memref<150x12800xbf16, #tpu.memory_space<vmem>>, %arg2: memref<16x150xbf16, #tpu.memory_space<vmem>>, %arg3: memref<16x1xf32, #tpu.memory_space<vmem>>, %arg4: memref<3x1024x128xbf16, #tpu.memory_space<vmem>>, %arg5: memref<1024x16xbf16, #tpu.memory_space<vmem>>, %arg6: memref<1024x1xf32, #tpu.memory_space<vmem>>, %arg7: memref<128x1024xbf16, #tpu.memory_space<vmem>>, %arg8: memref<128x1xf32, #tpu.memory_space<vmem>>, %arg9: memref<128x128xbf16, #tpu.memory_space<vmem>>, %arg10: memref<128x1xf32, #tpu.memory_space<vmem>>, %arg11: memref<128x128xf32, #tpu.memory_space<vmem>>) attributes {dimension_semantics = [#tpu.dimension_semantics<parallel>], iteration_bounds = array<i64: 1>, scalar_prefetch = 0 : i64, scratch_operands = 0 : i64, tpu.core_type = #tpu.core_type<tc>, window_params = [{transform_indices = @transform_0, window_bounds = array<i64: 150, 12800>}, {pipeline_mode = #tpu.pipeline_mode<synchronous>, transform_indices = @transform_1, window_bounds = array<i64: 16, 150>}, {pipeline_mode = #tpu.pipeline_mode<synchronous>, transform_indices = @transform_2, window_bounds = array<i64: 16, 1>}, {pipeline_mode = #tpu.pipeline_mode<synchronous>, transform_indices = @transform_3, window_bounds = array<i64: 3, 1024, 128>}, {pipeline_mode = #tpu.pipeline_mode<synchronous>, transform_indices = @transform_4, window_bounds = array<i64: 1024, 16>}, {pipeline_mode = #tpu.pipeline_mode<synchronous>, transform_indices = @transform_5, window_bounds = array<i64: 1024, 1>}, {pipeline_mode = #tpu.pipeline_mode<synchronous>, transform_indices = @transform_6, window_bounds = array<i64: 128, 1024>}, {pipeline_mode = #tpu.pipeline_mode<synchronous>, transform_indices = @transform_7, window_bounds = array<i64: 128, 1>}, {pipeline_mode = #tpu.pipeline_mode<synchronous>, transform_indices = @transform_8, window_bounds = array<i64: 128, 128>}, {pipeline_mode = #tpu.pipeline_mode<synchronous>, transform_indices = @transform_9, window_bounds = array<i64: 128, 1>}, {transform_indices = @transform_10, window_bounds = array<i64: 128, 128>}]} {
    %c0 = arith.constant 0 : index
    %c0_0 = arith.constant 0 : index
    %0 = vector.load %arg2[%c0, %c0_0] : memref<16x150xbf16, #tpu.memory_space<vmem>>, vector<16x150xbf16>
    %c0_1 = arith.constant 0 : index
    %c0_2 = arith.constant 0 : index
    %1 = vector.load %arg1[%c0_1, %c0_2] : memref<150x12800xbf16, #tpu.memory_space<vmem>>, vector<150x3200xbf16>
    %cst = arith.constant dense<0.000000e+00> : vector<16x3200xf32>
    %2 = tpu.matmul %0, %1, %cst {dimension_numbers = #tpu.dot_dimension_numbers<[1], [0], [0], [1], [0, 0, 1, 1], [], []>} : vector<16x150xbf16>, vector<150x3200xbf16>, vector<16x3200xf32> -> vector<16x3200xf32>
    %c0_3 = arith.constant 0 : index
    %c3200 = arith.constant 3200 : index
    %3 = vector.load %arg1[%c0_3, %c3200] : memref<150x12800xbf16, #tpu.memory_space<vmem>>, vector<150x3200xbf16>
    %cst_4 = arith.constant dense<0.000000e+00> : vector<16x3200xf32>
    %4 = tpu.matmul %0, %3, %cst_4 {dimension_numbers = #tpu.dot_dimension_numbers<[1], [0], [0], [1], [0, 0, 1, 1], [], []>} : vector<16x150xbf16>, vector<150x3200xbf16>, vector<16x3200xf32> -> vector<16x3200xf32>
    %c0_5 = arith.constant 0 : index
    %c6400 = arith.constant 6400 : index
    %5 = vector.load %arg1[%c0_5, %c6400] : memref<150x12800xbf16, #tpu.memory_space<vmem>>, vector<150x3200xbf16>
    %cst_6 = arith.constant dense<0.000000e+00> : vector<16x3200xf32>
    %6 = tpu.matmul %0, %5, %cst_6 {dimension_numbers = #tpu.dot_dimension_numbers<[1], [0], [0], [1], [0, 0, 1, 1], [], []>} : vector<16x150xbf16>, vector<150x3200xbf16>, vector<16x3200xf32> -> vector<16x3200xf32>
    %c0_7 = arith.constant 0 : index
    %c9600 = arith.constant 9600 : index
    %7 = vector.load %arg1[%c0_7, %c9600] : memref<150x12800xbf16, #tpu.memory_space<vmem>>, vector<150x3200xbf16>
    %cst_8 = arith.constant dense<0.000000e+00> : vector<16x3200xf32>
    %8 = tpu.matmul %0, %7, %cst_8 {dimension_numbers = #tpu.dot_dimension_numbers<[1], [0], [0], [1], [0, 0, 1, 1], [], []>} : vector<16x150xbf16>, vector<150x3200xbf16>, vector<16x3200xf32> -> vector<16x3200xf32>
    %9 = arith.maximumf %2, %4 : vector<16x3200xf32>
    %10 = arith.maximumf %6, %8 : vector<16x3200xf32>
    %11 = arith.maximumf %9, %10 : vector<16x3200xf32>
    %c0_9 = arith.constant 0 : index
    %c0_10 = arith.constant 0 : index
    %12 = vector.load %arg3[%c0_9, %c0_10] : memref<16x1xf32, #tpu.memory_space<vmem>>, vector<16x1xf32>
    %13 = vector.broadcast %12 : vector<16x1xf32> to vector<16x3200xf32>
    %14 = arith.addf %11, %13 : vector<16x3200xf32>
    %cst_11 = arith.constant 0.000000e+00 : f32
    %15 = vector.broadcast %cst_11 : f32 to vector<16x3200xf32>
    %16 = arith.maximumf %14, %15 : vector<16x3200xf32>
    %c0_12 = arith.constant 0 : index
    %c0_13 = arith.constant 0 : index
    %17 = vector.load %arg6[%c0_12, %c0_13] : memref<1024x1xf32, #tpu.memory_space<vmem>>, vector<1024x1xf32>
    %c0_14 = arith.constant 0 : index
    %c0_15 = arith.constant 0 : index
    %18 = vector.load %arg5[%c0_14, %c0_15] : memref<1024x16xbf16, #tpu.memory_space<vmem>>, vector<1024x16xbf16>
    %19 = vector.extract_strided_slice %16 {offsets = [0, 3072], sizes = [16, 128], strides = [1, 1]} : vector<16x3200xf32> to vector<16x128xf32>
    %20 = arith.truncf %19 : vector<16x128xf32> to vector<16x128xbf16>
    %cst_16 = arith.constant dense<0.000000e+00> : vector<1024x128xf32>
    %21 = tpu.matmul %18, %20, %cst_16 {dimension_numbers = #tpu.dot_dimension_numbers<[1], [0], [0], [1], [0, 0, 1, 1], [], []>} : vector<1024x16xbf16>, vector<16x128xbf16>, vector<1024x128xf32> -> vector<1024x128xf32>
    %22 = vector.broadcast %17 : vector<1024x1xf32> to vector<1024x128xf32>
    %23 = arith.addf %22, %21 : vector<1024x128xf32>
    %24 = vector.extract_strided_slice %16 {offsets = [0, 0], sizes = [16, 128], strides = [1, 1]} : vector<16x3200xf32> to vector<16x128xf32>
    %25 = vector.extract_strided_slice %16 {offsets = [0, 128], sizes = [16, 128], strides = [1, 1]} : vector<16x3200xf32> to vector<16x128xf32>
    %26 = vector.extract_strided_slice %16 {offsets = [0, 256], sizes = [16, 128], strides = [1, 1]} : vector<16x3200xf32> to vector<16x128xf32>
    %27 = vector.extract_strided_slice %16 {offsets = [0, 384], sizes = [16, 128], strides = [1, 1]} : vector<16x3200xf32> to vector<16x128xf32>
    %28 = vector.extract_strided_slice %16 {offsets = [0, 512], sizes = [16, 128], strides = [1, 1]} : vector<16x3200xf32> to vector<16x128xf32>
    %29 = vector.extract_strided_slice %16 {offsets = [0, 640], sizes = [16, 128], strides = [1, 1]} : vector<16x3200xf32> to vector<16x128xf32>
    %30 = vector.extract_strided_slice %16 {offsets = [0, 768], sizes = [16, 128], strides = [1, 1]} : vector<16x3200xf32> to vector<16x128xf32>
    %31 = vector.extract_strided_slice %16 {offsets = [0, 896], sizes = [16, 128], strides = [1, 1]} : vector<16x3200xf32> to vector<16x128xf32>
    %32 = tpu.concatenate %24, %25, %26, %27, %28, %29, %30, %31 in 0 : vector<16x128xf32>, vector<16x128xf32>, vector<16x128xf32>, vector<16x128xf32>, vector<16x128xf32>, vector<16x128xf32>, vector<16x128xf32>, vector<16x128xf32> -> vector<128x128xf32>
    %c0_17 = arith.constant 0 : index
    %c0_18 = arith.constant 0 : index
    %c0_19 = arith.constant 0 : index
    %33 = vector.load %arg4[%c0_17, %c0_18, %c0_19] : memref<3x1024x128xbf16, #tpu.memory_space<vmem>>, vector<1x1024x128xbf16>
    %34 = vector.shape_cast %33 : vector<1x1024x128xbf16> to vector<1024x128xbf16>
    %35 = arith.truncf %32 : vector<128x128xf32> to vector<128x128xbf16>
    %cst_20 = arith.constant dense<0.000000e+00> : vector<1024x128xf32>
    %36 = tpu.matmul %34, %35, %cst_20 {dimension_numbers = #tpu.dot_dimension_numbers<[1], [0], [0], [1], [0, 0, 1, 1], [], []>} : vector<1024x128xbf16>, vector<128x128xbf16>, vector<1024x128xf32> -> vector<1024x128xf32>
    %37 = arith.addf %23, %36 : vector<1024x128xf32>
    %38 = vector.extract_strided_slice %16 {offsets = [0, 1024], sizes = [16, 128], strides = [1, 1]} : vector<16x3200xf32> to vector<16x128xf32>
    %39 = vector.extract_strided_slice %16 {offsets = [0, 1152], sizes = [16, 128], strides = [1, 1]} : vector<16x3200xf32> to vector<16x128xf32>
    %40 = vector.extract_strided_slice %16 {offsets = [0, 1280], sizes = [16, 128], strides = [1, 1]} : vector<16x3200xf32> to vector<16x128xf32>
    %41 = vector.extract_strided_slice %16 {offsets = [0, 1408], sizes = [16, 128], strides = [1, 1]} : vector<16x3200xf32> to vector<16x128xf32>
    %42 = vector.extract_strided_slice %16 {offsets = [0, 1536], sizes = [16, 128], strides = [1, 1]} : vector<16x3200xf32> to vector<16x128xf32>
    %43 = vector.extract_strided_slice %16 {offsets = [0, 1664], sizes = [16, 128], strides = [1, 1]} : vector<16x3200xf32> to vector<16x128xf32>
    %44 = vector.extract_strided_slice %16 {offsets = [0, 1792], sizes = [16, 128], strides = [1, 1]} : vector<16x3200xf32> to vector<16x128xf32>
    %45 = vector.extract_strided_slice %16 {offsets = [0, 1920], sizes = [16, 128], strides = [1, 1]} : vector<16x3200xf32> to vector<16x128xf32>
    %46 = tpu.concatenate %38, %39, %40, %41, %42, %43, %44, %45 in 0 : vector<16x128xf32>, vector<16x128xf32>, vector<16x128xf32>, vector<16x128xf32>, vector<16x128xf32>, vector<16x128xf32>, vector<16x128xf32>, vector<16x128xf32> -> vector<128x128xf32>
    %c1 = arith.constant 1 : index
    %c0_21 = arith.constant 0 : index
    %c0_22 = arith.constant 0 : index
    %47 = vector.load %arg4[%c1, %c0_21, %c0_22] : memref<3x1024x128xbf16, #tpu.memory_space<vmem>>, vector<1x1024x128xbf16>
    %48 = vector.shape_cast %47 : vector<1x1024x128xbf16> to vector<1024x128xbf16>
    %49 = arith.truncf %46 : vector<128x128xf32> to vector<128x128xbf16>
    %cst_23 = arith.constant dense<0.000000e+00> : vector<1024x128xf32>
    %50 = tpu.matmul %48, %49, %cst_23 {dimension_numbers = #tpu.dot_dimension_numbers<[1], [0], [0], [1], [0, 0, 1, 1], [], []>} : vector<1024x128xbf16>, vector<128x128xbf16>, vector<1024x128xf32> -> vector<1024x128xf32>
    %51 = arith.addf %37, %50 : vector<1024x128xf32>
    %52 = vector.extract_strided_slice %16 {offsets = [0, 2048], sizes = [16, 128], strides = [1, 1]} : vector<16x3200xf32> to vector<16x128xf32>
    %53 = vector.extract_strided_slice %16 {offsets = [0, 2176], sizes = [16, 128], strides = [1, 1]} : vector<16x3200xf32> to vector<16x128xf32>
    %54 = vector.extract_strided_slice %16 {offsets = [0, 2304], sizes = [16, 128], strides = [1, 1]} : vector<16x3200xf32> to vector<16x128xf32>
    %55 = vector.extract_strided_slice %16 {offsets = [0, 2432], sizes = [16, 128], strides = [1, 1]} : vector<16x3200xf32> to vector<16x128xf32>
    %56 = vector.extract_strided_slice %16 {offsets = [0, 2560], sizes = [16, 128], strides = [1, 1]} : vector<16x3200xf32> to vector<16x128xf32>
    %57 = vector.extract_strided_slice %16 {offsets = [0, 2688], sizes = [16, 128], strides = [1, 1]} : vector<16x3200xf32> to vector<16x128xf32>
    %58 = vector.extract_strided_slice %16 {offsets = [0, 2816], sizes = [16, 128], strides = [1, 1]} : vector<16x3200xf32> to vector<16x128xf32>
    %59 = vector.extract_strided_slice %16 {offsets = [0, 2944], sizes = [16, 128], strides = [1, 1]} : vector<16x3200xf32> to vector<16x128xf32>
    %60 = tpu.concatenate %52, %53, %54, %55, %56, %57, %58, %59 in 0 : vector<16x128xf32>, vector<16x128xf32>, vector<16x128xf32>, vector<16x128xf32>, vector<16x128xf32>, vector<16x128xf32>, vector<16x128xf32>, vector<16x128xf32> -> vector<128x128xf32>
    %c2 = arith.constant 2 : index
    %c0_24 = arith.constant 0 : index
    %c0_25 = arith.constant 0 : index
    %61 = vector.load %arg4[%c2, %c0_24, %c0_25] : memref<3x1024x128xbf16, #tpu.memory_space<vmem>>, vector<1x1024x128xbf16>
    %62 = vector.shape_cast %61 : vector<1x1024x128xbf16> to vector<1024x128xbf16>
    %63 = arith.truncf %60 : vector<128x128xf32> to vector<128x128xbf16>
    %cst_26 = arith.constant dense<0.000000e+00> : vector<1024x128xf32>
    %64 = tpu.matmul %62, %63, %cst_26 {dimension_numbers = #tpu.dot_dimension_numbers<[1], [0], [0], [1], [0, 0, 1, 1], [], []>} : vector<1024x128xbf16>, vector<128x128xbf16>, vector<1024x128xf32> -> vector<1024x128xf32>
    %65 = arith.addf %51, %64 : vector<1024x128xf32>
    %cst_27 = arith.constant 0.000000e+00 : f32
    %66 = vector.broadcast %cst_27 : f32 to vector<1024x128xf32>
    %67 = arith.maximumf %65, %66 : vector<1024x128xf32>
    %c0_28 = arith.constant 0 : index
    %c0_29 = arith.constant 0 : index
    %68 = vector.load %arg7[%c0_28, %c0_29] : memref<128x1024xbf16, #tpu.memory_space<vmem>>, vector<128x1024xbf16>
    %69 = arith.truncf %67 : vector<1024x128xf32> to vector<1024x128xbf16>
    %cst_30 = arith.constant dense<0.000000e+00> : vector<128x128xf32>
    %70 = tpu.matmul %68, %69, %cst_30 {dimension_numbers = #tpu.dot_dimension_numbers<[1], [0], [0], [1], [0, 0, 1, 1], [], []>} : vector<128x1024xbf16>, vector<1024x128xbf16>, vector<128x128xf32> -> vector<128x128xf32>
    %c0_31 = arith.constant 0 : index
    %c0_32 = arith.constant 0 : index
    %71 = vector.load %arg8[%c0_31, %c0_32] : memref<128x1xf32, #tpu.memory_space<vmem>>, vector<128x1xf32>
    %72 = vector.broadcast %71 : vector<128x1xf32> to vector<128x128xf32>
    %73 = arith.addf %70, %72 : vector<128x128xf32>
    %cst_33 = arith.constant 0.000000e+00 : f32
    %74 = vector.broadcast %cst_33 : f32 to vector<128x128xf32>
    %75 = arith.maximumf %73, %74 : vector<128x128xf32>
    %c0_34 = arith.constant 0 : index
    %c0_35 = arith.constant 0 : index
    %76 = vector.load %arg9[%c0_34, %c0_35] : memref<128x128xbf16, #tpu.memory_space<vmem>>, vector<128x128xbf16>
    %77 = arith.truncf %75 : vector<128x128xf32> to vector<128x128xbf16>
    %cst_36 = arith.constant dense<0.000000e+00> : vector<128x128xf32>
    %78 = tpu.matmul %76, %77, %cst_36 {dimension_numbers = #tpu.dot_dimension_numbers<[1], [0], [0], [1], [0, 0, 1, 1], [], []>} : vector<128x128xbf16>, vector<128x128xbf16>, vector<128x128xf32> -> vector<128x128xf32>
    %c0_37 = arith.constant 0 : index
    %c0_38 = arith.constant 0 : index
    %79 = vector.load %arg10[%c0_37, %c0_38] : memref<128x1xf32, #tpu.memory_space<vmem>>, vector<128x1xf32>
    %80 = vector.broadcast %79 : vector<128x1xf32> to vector<128x128xf32>
    %81 = arith.addf %78, %80 : vector<128x128xf32>
    %c0_39 = arith.constant 0 : index
    %c0_40 = arith.constant 0 : index
    %82 = vector.load %arg11[%c0_39, %c0_40] : memref<128x128xf32, #tpu.memory_space<vmem>>, vector<128x128xf32>
    tpu.vector_store %arg11[%c0_39, %c0_40], %81 {strides = array<i32>} : memref<128x128xf32, #tpu.memory_space<vmem>>, vector<128x128xf32>,
    return
  }
  func.func @transform_0(%arg0: i32) -> (i32, i32) {
    %c0_i32 = arith.constant 0 : i32
    %c0_i32_0 = arith.constant 0 : i32
    return %c0_i32, %arg0 : i32, i32
  }
  func.func @transform_1(%arg0: i32) -> (i32, i32) {
    %c0_i32 = arith.constant 0 : i32
    %c0_i32_0 = arith.constant 0 : i32
    %c0_i32_1 = arith.constant 0 : i32
    return %c0_i32, %c0_i32_0 : i32, i32
  }
  func.func @transform_2(%arg0: i32) -> (i32, i32) {
    %c0_i32 = arith.constant 0 : i32
    %c0_i32_0 = arith.constant 0 : i32
    %c0_i32_1 = arith.constant 0 : i32
    return %c0_i32, %c0_i32_0 : i32, i32
  }
  func.func @transform_3(%arg0: i32) -> (i32, i32, i32) {
    %c0_i32 = arith.constant 0 : i32
    %c0_i32_0 = arith.constant 0 : i32
    %c0_i32_1 = arith.constant 0 : i32
    %c0_i32_2 = arith.constant 0 : i32
    return %c0_i32, %c0_i32_0, %c0_i32_1 : i32, i32, i32
  }
  func.func @transform_4(%arg0: i32) -> (i32, i32) {
    %c0_i32 = arith.constant 0 : i32
    %c0_i32_0 = arith.constant 0 : i32
    %c0_i32_1 = arith.constant 0 : i32
    return %c0_i32, %c0_i32_0 : i32, i32
  }
  func.func @transform_5(%arg0: i32) -> (i32, i32) {
    %c0_i32 = arith.constant 0 : i32
    %c0_i32_0 = arith.constant 0 : i32
    %c0_i32_1 = arith.constant 0 : i32
    return %c0_i32, %c0_i32_0 : i32, i32
  }
  func.func @transform_6(%arg0: i32) -> (i32, i32) {
    %c0_i32 = arith.constant 0 : i32
    %c0_i32_0 = arith.constant 0 : i32
    %c0_i32_1 = arith.constant 0 : i32
    return %c0_i32, %c0_i32_0 : i32, i32
  }
  func.func @transform_7(%arg0: i32) -> (i32, i32) {
    %c0_i32 = arith.constant 0 : i32
    %c0_i32_0 = arith.constant 0 : i32
    %c0_i32_1 = arith.constant 0 : i32
    return %c0_i32, %c0_i32_0 : i32, i32
  }
  func.func @transform_8(%arg0: i32) -> (i32, i32) {
    %c0_i32 = arith.constant 0 : i32
    %c0_i32_0 = arith.constant 0 : i32
    %c0_i32_1 = arith.constant 0 : i32
    return %c0_i32, %c0_i32_0 : i32, i32
  }
  func.func @transform_9(%arg0: i32) -> (i32, i32) {
    %c0_i32 = arith.constant 0 : i32
    %c0_i32_0 = arith.constant 0 : i32
    %c0_i32_1 = arith.constant 0 : i32
    return %c0_i32, %c0_i32_0 : i32, i32
  }
  func.func @transform_10(%arg0: i32) -> (i32, i32) {
    %c0_i32 = arith.constant 0 : i32
    %c0_i32_0 = arith.constant 0 : i32
    return %c0_i32, %arg0 : i32, i32
  }
}

</mosaic_0001>

<bundles_post_ra>
// kernel: feature_classifier_forward.1
= control target key start
LH: loop header
LB: loop body
LE: loop exit
PB: predicated region body
PF: predicated region fallthrough
CT: control target
= control target key end

     0   :  { %vm1491_vm0 = vcmask 179200   ;;  %vm1495_vm1 = vcmask 1042432   ;;  %vm9195_vm2 = vcmask 130048   ;;  %s27626_s0 = inlined_call_operand.vmem [shape: bf16[150,12800], index: 0, kind: input, shape index: {}]   ;;  %s27627_s1 = inlined_call_operand.vmem [shape: bf16[16,150], index: 1, kind: input, shape index: {}]   ;;  %s27628_s2 = inlined_call_operand.vmem [shape: f32[16,1], index: 2, kind: input, shape index: {}]   ;;  %s27629_s5 = inlined_call_operand.vmem [shape: f32[1024,1], index: 5, kind: input, shape index: {}]   ;;  %s27630_s7 = inlined_call_operand.vmem [shape: f32[128,1], index: 7, kind: input, shape index: {}]   ;;  %s27631_s9 = inlined_call_operand.vmem [shape: f32[128,1], index: 9, kind: input, shape index: {}]   ;;  %s27632_s3 = inlined_call_operand.vmem [shape: bf16[3,1024,128], index: 3, kind: input, shape index: {}]   ;;  %s27633_s4 = inlined_call_operand.vmem [shape: bf16[1024,16], index: 4, kind: input, shape index: {}]   ;;  %s27634_s6 = inlined_call_operand.vmem [shape: bf16[128,1024], index: 6, kind: input, shape index: {}]   ;;  %s27635_s8 = inlined_call_operand.vmem [shape: bf16[128,128], index: 8, kind: input, shape index: {}]   ;;  %s27636_s10 = inlined_call_operand.vmem [shape: f32[128,128], index: 10, kind: output, shape index: {}]  }
   0x1   :  { %v18543_v0 = vld [vmem:[%s27626_s0 + $0x15e4] ss:$400 sps:$4 sm:$0xff]   ;;  %v18545_v1 = vld [vmem:[%s27626_s0 + $0x15ec] ss:$400 sps:$4 sm:$0xff]   ;;  %v18547_v2 = vld [vmem:[%s27626_s0 + $0x15e0] ss:$400 sps:$4 sm:$0xff]  }
   0x2   :  { %1571 = vmatprep.subr.bf16.mxu0 %v18543_v0  ;;  %v18548_v3 = vld [vmem:[%s27626_s0 + $0x15e8] ss:$400 sps:$4 sm:$0xff]   ;;  %1614 = vmatprep.subr.bf16.mxu1 %v18545_v1  ;;  %v18549_v4 = vld [vmem:[%s27626_s0 + $0x12c4] ss:$400 sps:$4 sm:$0xff]   ;;  %v18551_v5 = vld [vmem:[%s27626_s0 + $0x12cc] ss:$400 sps:$4 sm:$0xff]  }
   0x3   :  { %1572 = vmatpush1.bf16.msra.mxu0 %v18547_v2  ;;  %1615 = vmatpush1.bf16.msra.mxu1 %v18548_v3  ;;  %v18553_v6 = vld [vmem:[%s27626_s0 + $0x12c0] ss:$400 sps:$4 sm:$0xff]   ;;  %v18554_v7 = vld [vmem:[%s27626_s0 + $0x12c8] ss:$400 sps:$4 sm:$0xff]   ;;  %v18555_v8 = vld [vmem:[%s27626_s0 + $0xfa4] ss:$400 sps:$4 sm:$0xff]  }
   0x4   :  { %1573 = vmatprep.subr.bf16.mxu0 %v18549_v4  ;;  %1616 = vmatprep.subr.bf16.mxu1 %v18551_v5  ;;  %v18557_v9 = vld [vmem:[%s27626_s0 + $0xfac] ss:$400 sps:$4 sm:$0xff]   ;;  %v18559_v10 = vld [vmem:[%s27626_s0 + $0xfa0] ss:$400 sps:$4 sm:$0xff]   ;;  %v18560_v11 = vld [vmem:[%s27626_s0 + $0xfa8] ss:$400 sps:$4 sm:$0xff]  }
   0x5   :  { %v18561_v12 = vld [vmem:[%s27626_s0 + $0xc84] ss:$400 sps:$4 sm:$0xff]   ;;  %v18563_v13 = vld [vmem:[%s27626_s0 + $0xc8c] ss:$400 sps:$4 sm:$0xff]   ;;  %v18565_v14 = vld [vmem:[%s27626_s0 + $0xc80] ss:$400 sps:$4 sm:$0xff]  }
   0x6   :  { %v18566_v15 = vld [vmem:[%s27626_s0 + $0xc88] ss:$400 sps:$4 sm:$0xff]   ;;  %v18567_v16 = vld [vmem:[%s27626_s0 + $0x964] ss:$400 sps:$4 sm:$0xff]   ;;  %v18569_v17 = vld [vmem:[%s27626_s0 + $0x96c] ss:$400 sps:$4 sm:$0xff]  }
   0x7   :  { %1574 = vmatpush1.bf16.msra.mxu0 %v18553_v6  ;;  %1617 = vmatpush1.bf16.msra.mxu1 %v18554_v7  ;;  %v18571_v18 = vld [vmem:[%s27626_s0 + $0x960] ss:$400 sps:$4 sm:$0xff]   ;;  %v18572_v19 = vld [vmem:[%s27626_s0 + $0x968] ss:$400 sps:$4 sm:$0xff]   ;;  %v18573_v20 = vld [vmem:[%s27626_s0 + $0x644] ss:$400 sps:$4 sm:$0xff]  }
   0x8   :  { %1575 = vmatprep.subr.bf16.mxu0 %v18555_v8  ;;  %1618 = vmatprep.subr.bf16.mxu1 %v18557_v9  ;;  %v18575_v21 = vld [vmem:[%s27626_s0 + $0x64c] ss:$400 sps:$4 sm:$0xff]   ;;  %v18577_v22 = vld [vmem:[%s27626_s0 + $0x640] ss:$400 sps:$4 sm:$0xff]   ;;  %v18578_v23 = vld [vmem:[%s27626_s0 + $0x648] ss:$400 sps:$4 sm:$0xff]  }
   0x9   :  { %v18579_v24 = vld [vmem:[%s27626_s0 + $0x324] ss:$400 sps:$4 sm:$0xff]   ;;  %v18581_v25 = vld [vmem:[%s27626_s0 + $0x32c] ss:$400 sps:$4 sm:$0xff]   ;;  %v18583_v26 = vld [vmem:[%s27626_s0 + $0x320] ss:$400 sps:$4 sm:$0xff]  }
   0xa   :  { %v18584_v27 = vld [vmem:[%s27626_s0 + $0x328] ss:$400 sps:$4 sm:$0xff]   ;;  %v18585_v28 = vld [vmem:[%s27626_s0 + $0x4] ss:$400 sps:$4 sm:$0xff]   ;;  %v18587_v29 = vld [vmem:[%s27626_s0 + $0xc] ss:$400 sps:$4 sm:$0xff]  }
   0xb   :  { %1576 = vmatpush1.bf16.msra.mxu0 %v18559_v10  ;;  %1619 = vmatpush1.bf16.msra.mxu1 %v18560_v11  ;;  %v272_v30 = vld [vmem:[%s27626_s0 + $0x1c20] sm:$0x77]  ;;  %v273_v32 = vld [vmem:[%s27626_s0 + $0x1c28] sm:$0x77] }
   0xc   :  { %1577 = vmatprep.subr.bf16.mxu0 %v18561_v12  ;;  %1620 = vmatprep.subr.bf16.mxu1 %v18563_v13  ;;  %v20405_v31 = vld [vmem:[%s27627_s1 + $0x4] ss:$8 sps:$4 sm:$0xff]   ;;  %v18589_v33 = vld [vmem:[%s27626_s0] ss:$400 sps:$4 sm:$0xff]   ;;  %v18590_v34 = vld [vmem:[%s27626_s0 + $0x8] ss:$400 sps:$4 sm:$0xff]   ;;  %v15871_v35 = vcombine.high %v272_v30, %v272_v30  ;;  %v15873_v36 = vcombine.high %v273_v32, %v273_v32  ;;  %v15870_v37 = vcombine.low %v272_v30, %v272_v30 }
   0xd   :  { %15898 = vmatprep.mubr.msk.bf16.mxu1 %vm1491_vm0, %v20405_v31  ;;  %15896 = vmatprep.mubr.msk.bf16.mxu0 %vm1491_vm0, %v20405_v31  ;;  %v15872_v38 = vcombine.low %v273_v32, %v273_v32  ;;  %v18595_v39 = vld [vmem:[%s27626_s0 + $0x1904] ss:$400 sps:$4 sm:$0xff]   ;;  %v18597_v42 = vld [vmem:[%s27626_s0 + $0x190c] ss:$400 sps:$4 sm:$0xff]   ;;  %v18599_v43 = vld [vmem:[%s27626_s0 + $0x1900] ss:$400 sps:$4 sm:$0xff]  }
   0xe   :  { %v1497_v40 = vsel %vm1495_vm1, %v15870_v37, 0  ;;  %v18600_v44 = vld [vmem:[%s27626_s0 + $0x1908] ss:$400 sps:$4 sm:$0xff]   ;;  %v18606_v45 = vld [vmem:[%s27626_s0 + $0x15f4] ss:$400 sps:$4 sm:$0xff]  }
   0xf   :  { %1578 = vmatpush1.bf16.msra.mxu0 %v18565_v14  ;;  %1621 = vmatpush1.bf16.msra.mxu1 %v18566_v15  ;;  %v1503_v41 = vsel %vm1495_vm1, %v15872_v38, 0  ;;  %v18609_v46 = vld [vmem:[%s27626_s0 + $0x15fc] ss:$400 sps:$4 sm:$0xff]   ;;  %v20445_v47 = vld [vmem:[%s27627_s1] ss:$8 sps:$4 sm:$0xff]  }
  0x10   :  { %1579 = vmatprep.subr.bf16.mxu0 %v18567_v16  ;;  %1622 = vmatprep.subr.bf16.mxu1 %v18569_v17  ;;  %v18604_v48 = vld [vmem:[%s27626_s0 + $0x15f0] ss:$400 sps:$4 sm:$0xff]   ;;  %v18607_v49 = vld [vmem:[%s27626_s0 + $0x15f8] ss:$400 sps:$4 sm:$0xff]   ;;  %v18612_v50 = vld [vmem:[%s27626_s0 + $0x12d4] ss:$400 sps:$4 sm:$0xff]  }
  0x11   :  { %v18615_v51 = vld [vmem:[%s27626_s0 + $0x12dc] ss:$400 sps:$4 sm:$0xff]   ;;  %v18610_v52 = vld [vmem:[%s27626_s0 + $0x12d0] ss:$400 sps:$4 sm:$0xff]   ;;  %v18613_v53 = vld [vmem:[%s27626_s0 + $0x12d8] ss:$400 sps:$4 sm:$0xff]  }
  0x12   :  { %v18618_v54 = vld [vmem:[%s27626_s0 + $0xfb4] ss:$400 sps:$4 sm:$0xff]   ;;  %v18621_v55 = vld [vmem:[%s27626_s0 + $0xfbc] ss:$400 sps:$4 sm:$0xff]   ;;  %v18616_v56 = vld [vmem:[%s27626_s0 + $0xfb0] ss:$400 sps:$4 sm:$0xff]  }
  0x13   :  { %1580 = vmatpush1.bf16.msra.mxu0 %v18571_v18  ;;  %1623 = vmatpush1.bf16.msra.mxu1 %v18572_v19  ;;  %v18619_v57 = vld [vmem:[%s27626_s0 + $0xfb8] ss:$400 sps:$4 sm:$0xff]   ;;  %v18624_v58 = vld [vmem:[%s27626_s0 + $0xc94] ss:$400 sps:$4 sm:$0xff]   ;;  %v18627_v59 = vld [vmem:[%s27626_s0 + $0xc9c] ss:$400 sps:$4 sm:$0xff]  }
  0x14   :  { %1581 = vmatprep.subr.bf16.mxu0 %v18573_v20  ;;  %1624 = vmatprep.subr.bf16.mxu1 %v18575_v21  ;;  %v18622_v60 = vld [vmem:[%s27626_s0 + $0xc90] ss:$400 sps:$4 sm:$0xff]   ;;  %v18625_v61 = vld [vmem:[%s27626_s0 + $0xc98] ss:$400 sps:$4 sm:$0xff]   ;;  %v18630_v62 = vld [vmem:[%s27626_s0 + $0x974] ss:$400 sps:$4 sm:$0xff]  }
  0x15   :  { %v18633_v63 = vld [vmem:[%s27626_s0 + $0x97c] ss:$400 sps:$4 sm:$0xff]   ;;  %v18628_v0 = vld [vmem:[%s27626_s0 + $0x970] ss:$400 sps:$4 sm:$0xff]   ;;  %v18631_v1 = vld [vmem:[%s27626_s0 + $0x978] ss:$400 sps:$4 sm:$0xff]  }
  0x16   :  { %v18636_v2 = vld [vmem:[%s27626_s0 + $0x654] ss:$400 sps:$4 sm:$0xff]   ;;  %v18639_v3 = vld [vmem:[%s27626_s0 + $0x65c] ss:$400 sps:$4 sm:$0xff]   ;;  %v18634_v4 = vld [vmem:[%s27626_s0 + $0x650] ss:$400 sps:$4 sm:$0xff]  }
  0x17   :  { %1582 = vmatpush1.bf16.msra.mxu0 %v18577_v22  ;;  %1625 = vmatpush1.bf16.msra.mxu1 %v18578_v23  ;;  %v18637_v5 = vld [vmem:[%s27626_s0 + $0x658] ss:$400 sps:$4 sm:$0xff]   ;;  %v18642_v6 = vld [vmem:[%s27626_s0 + $0x334] ss:$400 sps:$4 sm:$0xff]   ;;  %v18645_v7 = vld [vmem:[%s27626_s0 + $0x33c] ss:$400 sps:$4 sm:$0xff]  }
  0x18   :  { %1583 = vmatprep.subr.bf16.mxu0 %v18579_v24  ;;  %1626 = vmatprep.subr.bf16.mxu1 %v18581_v25  ;;  %v18640_v8 = vld [vmem:[%s27626_s0 + $0x330] ss:$400 sps:$4 sm:$0xff]   ;;  %v18643_v9 = vld [vmem:[%s27626_s0 + $0x338] ss:$400 sps:$4 sm:$0xff]   ;;  %v18648_v10 = vld [vmem:[%s27626_s0 + $0x14] ss:$400 sps:$4 sm:$0xff]  }
  0x19   :  { %v18651_v11 = vld [vmem:[%s27626_s0 + $0x1c] ss:$400 sps:$4 sm:$0xff]   ;;  %v274_v12 = vld [vmem:[%s27626_s0 + $0x1c30] sm:$0x77]  ;;  %v18649_v15 = vld [vmem:[%s27626_s0 + $0x18] ss:$400 sps:$4 sm:$0xff]  }
  0x1a   :  { %v275_v13 = vld [vmem:[%s27626_s0 + $0x1c38] sm:$0x77]  ;;  %v18646_v14 = vld [vmem:[%s27626_s0 + $0x10] ss:$400 sps:$4 sm:$0xff]   ;;  %v15875_v16 = vcombine.high %v274_v12, %v274_v12  ;;  %v15874_v18 = vcombine.low %v274_v12, %v274_v12  ;;  %v18658_v20 = vld [vmem:[%s27626_s0 + $0x1914] ss:$400 sps:$4 sm:$0xff]  }
  0x1b   :  { %1584 = vmatpush1.bf16.msra.mxu0 %v18583_v26  ;;  %1627 = vmatpush1.bf16.msra.mxu1 %v18584_v27  ;;  %v15877_v17 = vcombine.high %v275_v13, %v275_v13  ;;  %v15876_v19 = vcombine.low %v275_v13, %v275_v13  ;;  %v18661_v23 = vld [vmem:[%s27626_s0 + $0x191c] ss:$400 sps:$4 sm:$0xff]   ;;  %v18656_v24 = vld [vmem:[%s27626_s0 + $0x1910] ss:$400 sps:$4 sm:$0xff]   ;;  %v18659_v25 = vld [vmem:[%s27626_s0 + $0x1918] ss:$400 sps:$4 sm:$0xff]  }
  0x1c   :  { %1585 = vmatprep.subr.bf16.mxu0 %v18585_v28  ;;  %1628 = vmatprep.subr.bf16.mxu1 %v18587_v29  ;;  %v1509_v21 = vsel %vm1495_vm1, %v15874_v18, 0  ;;  %v18664_v26 = vld [vmem:[%s27626_s0 + $0x1604] ss:$400 sps:$4 sm:$0xff]   ;;  %v18667_v27 = vld [vmem:[%s27626_s0 + $0x160c] ss:$400 sps:$4 sm:$0xff]  }
  0x1d   :  { %v1515_v22 = vsel %vm1495_vm1, %v15876_v19, 0  ;;  %v18662_v28 = vld [vmem:[%s27626_s0 + $0x1600] ss:$400 sps:$4 sm:$0xff]   ;;  %v18665_v29 = vld [vmem:[%s27626_s0 + $0x1608] ss:$400 sps:$4 sm:$0xff]  }
  0x1e   :  { %v18670_v30 = vld [vmem:[%s27626_s0 + $0x12e4] ss:$400 sps:$4 sm:$0xff]   ;;  %v18673_v32 = vld [vmem:[%s27626_s0 + $0x12ec] ss:$400 sps:$4 sm:$0xff]   ;;  %v18674_v37 = vld [vmem:[%s27626_s0 + $0xfc0] ss:$400 sps:$4 sm:$0xff]  }
  0x1f   :  { %1586 = vmatpush1.bf16.msra.mxu0 %v18589_v33  ;;  %1629 = vmatpush1.bf16.msra.mxu1 %v18590_v34  ;;  %v18668_v33 = vld [vmem:[%s27626_s0 + $0x12e0] ss:$400 sps:$4 sm:$0xff]   ;;  %v18671_v34 = vld [vmem:[%s27626_s0 + $0x12e8] ss:$400 sps:$4 sm:$0xff]   ;;  %v18728_v13 = vld [vmem:[%s27626_s0 + $0x12f4] ss:$400 sps:$4 sm:$0xff]  }
  0x20   :  { %15895 = vmatprep.subr.msk.bf16.mxu0 %vm1495_vm1, %v15871_v35  ;;  %15897 = vmatprep.subr.msk.bf16.mxu1 %vm1495_vm1, %v15873_v36  ;;  %v18676_v35 = vld [vmem:[%s27626_s0 + $0xfc4] ss:$400 sps:$4 sm:$0xff]   ;;  %v18679_v36 = vld [vmem:[%s27626_s0 + $0xfcc] ss:$400 sps:$4 sm:$0xff]   ;;  %v18677_v38 = vld [vmem:[%s27626_s0 + $0xfc8] ss:$400 sps:$4 sm:$0xff]  }
  0x21   :  { %v18723_v12 = vld [vmem:[%s27626_s0 + $0x1618] ss:$400 sps:$4 sm:$0xff]   ;;  %v18737_v18 = vld [vmem:[%s27626_s0 + $0xfdc] ss:$400 sps:$4 sm:$0xff]   ;;  %v18732_v19 = vld [vmem:[%s27626_s0 + $0xfd0] ss:$400 sps:$4 sm:$0xff]  }
  0x23   :  { %1600 = vmatpush2.bf16.msra.mxu0 %v1497_v40  ;;  %1643 = vmatpush2.bf16.msra.mxu1 %v1503_v41  ;;  %v18685_v40 = vld [vmem:[%s27626_s0 + $0xcac] ss:$400 sps:$4 sm:$0xff]   ;;  %v18680_v41 = vld [vmem:[%s27626_s0 + $0xca0] ss:$400 sps:$4 sm:$0xff]  }
  0x24   :  { %1601 = vmatprep.subr.bf16.mxu0 %v18595_v39  ;;  %1644 = vmatprep.subr.bf16.mxu1 %v18597_v42  ;;  %v18682_v39 = vld [vmem:[%s27626_s0 + $0xca4] ss:$400 sps:$4 sm:$0xff]   ;;  %v18683_v42 = vld [vmem:[%s27626_s0 + $0xca8] ss:$400 sps:$4 sm:$0xff]  }
  0x27   :  { %1602 = vmatpush2.bf16.msra.mxu0 %v18599_v43  ;;  %1645 = vmatpush2.bf16.msra.mxu1 %v18600_v44  ;;  %v18688_v43 = vld [vmem:[%s27626_s0 + $0x984] ss:$400 sps:$4 sm:$0xff]   ;;  %v18691_v44 = vld [vmem:[%s27626_s0 + $0x98c] ss:$400 sps:$4 sm:$0xff]  }
  0x28   :  { %1657 = vmatprep.subr.bf16.mxu0 %v18606_v45  ;;  %1700 = vmatprep.subr.bf16.mxu1 %v18609_v46  ;;  %v18686_v45 = vld [vmem:[%s27626_s0 + $0x980] ss:$400 sps:$4 sm:$0xff]   ;;  %v18689_v46 = vld [vmem:[%s27626_s0 + $0x988] ss:$400 sps:$4 sm:$0xff]  }
  0x2a   :  { %1647 = vmatmul.mubr.bf16.vlgmr.msra.gmra.mxu1 %v20445_v47  ;;  %1604 = vmatmul.mubr.bf16.vlgmr.msra.gmra.mxu0 %v20445_v47 }
  0x2b   :  { %1658 = vmatpush1.bf16.msra.mxu0 %v18604_v48  ;;  %1701 = vmatpush1.bf16.msra.mxu1 %v18607_v49  ;;  %v18694_v48 = vld [vmem:[%s27626_s0 + $0x664] ss:$400 sps:$4 sm:$0xff]   ;;  %v18697_v49 = vld [vmem:[%s27626_s0 + $0x66c] ss:$400 sps:$4 sm:$0xff]  }
  0x2c   :  { %1659 = vmatprep.subr.bf16.mxu0 %v18612_v50  ;;  %1702 = vmatprep.subr.bf16.mxu1 %v18615_v51  ;;  %v18692_v50 = vld [vmem:[%s27626_s0 + $0x660] ss:$400 sps:$4 sm:$0xff]   ;;  %v18695_v51 = vld [vmem:[%s27626_s0 + $0x668] ss:$400 sps:$4 sm:$0xff]  }
  0x2d   :  { %15902 = vmatprep.mubr.msk.bf16.mxu1 %vm1491_vm0, %v20405_v31  ;;  %15900 = vmatprep.mubr.msk.bf16.mxu0 %vm1491_vm0, %v20405_v31 }
  0x2f   :  { %1660 = vmatpush1.bf16.msra.mxu0 %v18610_v52  ;;  %1703 = vmatpush1.bf16.msra.mxu1 %v18613_v53  ;;  %v18700_v52 = vld [vmem:[%s27626_s0 + $0x344] ss:$400 sps:$4 sm:$0xff]   ;;  %v18703_v53 = vld [vmem:[%s27626_s0 + $0x34c] ss:$400 sps:$4 sm:$0xff]  }
  0x30   :  { %1661 = vmatprep.subr.bf16.mxu0 %v18618_v54  ;;  %1704 = vmatprep.subr.bf16.mxu1 %v18621_v55  ;;  %v18698_v54 = vld [vmem:[%s27626_s0 + $0x340] ss:$400 sps:$4 sm:$0xff]   ;;  %v18701_v55 = vld [vmem:[%s27626_s0 + $0x348] ss:$400 sps:$4 sm:$0xff]  }
  0x33   :  { %1662 = vmatpush1.bf16.msra.mxu0 %v18616_v56  ;;  %1705 = vmatpush1.bf16.msra.mxu1 %v18619_v57  ;;  %v18706_v56 = vld [vmem:[%s27626_s0 + $0x24] ss:$400 sps:$4 sm:$0xff]   ;;  %v18709_v57 = vld [vmem:[%s27626_s0 + $0x2c] ss:$400 sps:$4 sm:$0xff]  }
  0x34   :  { %1663 = vmatprep.subr.bf16.mxu0 %v18624_v58  ;;  %1706 = vmatprep.subr.bf16.mxu1 %v18627_v59  ;;  %v276_v58 = vld [vmem:[%s27626_s0 + $0x1c40] sm:$0x77]  ;;  %v277_v59 = vld [vmem:[%s27626_s0 + $0x1c48] sm:$0x77] }
  0x37   :  { %1664 = vmatpush1.bf16.msra.mxu0 %v18622_v60  ;;  %1707 = vmatpush1.bf16.msra.mxu1 %v18625_v61  ;;  %v18704_v60 = vld [vmem:[%s27626_s0 + $0x20] ss:$400 sps:$4 sm:$0xff]   ;;  %v18707_v61 = vld [vmem:[%s27626_s0 + $0x28] ss:$400 sps:$4 sm:$0xff]  }
  0x38   :  { %1665 = vmatprep.subr.bf16.mxu0 %v18630_v62  ;;  %1708 = vmatprep.subr.bf16.mxu1 %v18633_v63  ;;  %v15879_v62 = vcombine.high %v276_v58, %v276_v58  ;;  %v15881_v63 = vcombine.high %v277_v59, %v277_v59 }
  0x3b   :  { %1666 = vmatpush1.bf16.msra.mxu0 %v18628_v0  ;;  %1709 = vmatpush1.bf16.msra.mxu1 %v18631_v1  ;;  %v15878_v0 = vcombine.low %v276_v58, %v276_v58  ;;  %v15880_v1 = vcombine.low %v277_v59, %v277_v59  ;;  %v18786_v58 = vld [vmem:[%s27626_s0 + $0x1304] ss:$400 sps:$4 sm:$0xff]   ;;  %v18789_v59 = vld [vmem:[%s27626_s0 + $0x130c] ss:$400 sps:$4 sm:$0xff]  }
  0x3c   :  { %1667 = vmatprep.subr.bf16.mxu0 %v18636_v2  ;;  %1710 = vmatprep.subr.bf16.mxu1 %v18639_v3  ;;  %v18716_v2 = vld [vmem:[%s27626_s0 + $0x1924] ss:$400 sps:$4 sm:$0xff]  }
  0x3d   :  { %v1521_v3 = vsel %vm1495_vm1, %v15878_v0, 0  ;;  %v18790_v0 = vld [vmem:[%s27626_s0 + $0xfe0] ss:$400 sps:$4 sm:$0xff]  }
  0x3f   :  { %1668 = vmatpush1.bf16.msra.mxu0 %v18634_v4  ;;  %1711 = vmatpush1.bf16.msra.mxu1 %v18637_v5  ;;  %v1527_v4 = vsel %vm1495_vm1, %v15880_v1, 0  ;;  %v18719_v5 = vld [vmem:[%s27626_s0 + $0x192c] ss:$400 sps:$4 sm:$0xff]   ;;  %v18793_v1 = vld [vmem:[%s27626_s0 + $0xfe8] ss:$400 sps:$4 sm:$0xff]  }
  0x40   :  { %1669 = vmatprep.subr.bf16.mxu0 %v18642_v6  ;;  %1712 = vmatprep.subr.bf16.mxu1 %v18645_v7  ;;  %v18714_v6 = vld [vmem:[%s27626_s0 + $0x1920] ss:$400 sps:$4 sm:$0xff]   ;;  %v27637_v7 = vmov 0  }
  0x41   :  { %18541 = vset.pattern.permute.xlu0 %v27637_v7  ;;  %18542 = vset.pattern.permute.xlu1 %v27637_v7 }
  0x43   :  { %1670 = vmatpush1.bf16.msra.mxu0 %v18640_v8  ;;  %1713 = vmatpush1.bf16.msra.mxu1 %v18643_v9  ;;  %v18717_v8 = vld [vmem:[%s27626_s0 + $0x1928] ss:$400 sps:$4 sm:$0xff]   ;;  %v18722_v9 = vld [vmem:[%s27626_s0 + $0x1614] ss:$400 sps:$4 sm:$0xff]  }
  0x44   :  { %1671 = vmatprep.subr.bf16.mxu0 %v18648_v10  ;;  %1714 = vmatprep.subr.bf16.mxu1 %v18651_v11  ;;  %v18725_v10 = vld [vmem:[%s27626_s0 + $0x161c] ss:$400 sps:$4 sm:$0xff]   ;;  %v18720_v11 = vld [vmem:[%s27626_s0 + $0x1610] ss:$400 sps:$4 sm:$0xff]  }
  0x47   :  { %1672 = vmatpush1.bf16.msra.mxu0 %v18646_v14  ;;  %1715 = vmatpush1.bf16.msra.mxu1 %v18649_v15  ;;  %v18731_v14 = vld [vmem:[%s27626_s0 + $0x12fc] ss:$400 sps:$4 sm:$0xff]   ;;  %v18726_v15 = vld [vmem:[%s27626_s0 + $0x12f0] ss:$400 sps:$4 sm:$0xff]  }
  0x48   :  { %15899 = vmatprep.subr.msk.bf16.mxu0 %vm1495_vm1, %v15875_v16  ;;  %15901 = vmatprep.subr.msk.bf16.mxu1 %vm1495_vm1, %v15877_v17  ;;  %v18729_v16 = vld [vmem:[%s27626_s0 + $0x12f8] ss:$400 sps:$4 sm:$0xff]   ;;  %v18734_v17 = vld [vmem:[%s27626_s0 + $0xfd4] ss:$400 sps:$4 sm:$0xff]  }
  0x4b   :  { %1686 = vmatpush2.bf16.msra.mxu0 %v1509_v21  ;;  %1729 = vmatpush2.bf16.msra.mxu1 %v1515_v22  ;;  %v18740_v21 = vld [vmem:[%s27626_s0 + $0xcb4] ss:$400 sps:$4 sm:$0xff]   ;;  %v18738_v22 = vld [vmem:[%s27626_s0 + $0xcb0] ss:$400 sps:$4 sm:$0xff]  }
  0x4c   :  { %1687 = vmatprep.subr.bf16.mxu0 %v18658_v20  ;;  %1730 = vmatprep.subr.bf16.mxu1 %v18661_v23  ;;  %v18735_v20 = vld [vmem:[%s27626_s0 + $0xfd8] ss:$400 sps:$4 sm:$0xff]  }
  0x4d   :  { %v18741_v23 = vld [vmem:[%s27626_s0 + $0xcb8] ss:$400 sps:$4 sm:$0xff]  }
  0x4f   :  { %1688 = vmatpush2.bf16.msra.mxu0 %v18656_v24  ;;  %1731 = vmatpush2.bf16.msra.mxu1 %v18659_v25  ;;  %v18746_v24 = vld [vmem:[%s27626_s0 + $0x994] ss:$400 sps:$4 sm:$0xff]   ;;  %v18749_v25 = vld [vmem:[%s27626_s0 + $0x99c] ss:$400 sps:$4 sm:$0xff]  }
  0x50   :  { %1743 = vmatprep.subr.bf16.mxu0 %v18664_v26  ;;  %1786 = vmatprep.subr.bf16.mxu1 %v18667_v27  ;;  %v18744_v26 = vld [vmem:[%s27626_s0 + $0x990] ss:$400 sps:$4 sm:$0xff]   ;;  %v18747_v27 = vld [vmem:[%s27626_s0 + $0x998] ss:$400 sps:$4 sm:$0xff]  }
  0x52   :  { %1733 = vmatmul.mubr.bf16.vlgmr.msra.gmra.mxu1 %v20445_v47  ;;  %1690 = vmatmul.mubr.bf16.vlgmr.msra.gmra.mxu0 %v20445_v47 }
  0x53   :  { %1744 = vmatpush1.bf16.msra.mxu0 %v18662_v28  ;;  %1787 = vmatpush1.bf16.msra.mxu1 %v18665_v29  ;;  %v18752_v28 = vld [vmem:[%s27626_s0 + $0x674] ss:$400 sps:$4 sm:$0xff]   ;;  %v18755_v29 = vld [vmem:[%s27626_s0 + $0x67c] ss:$400 sps:$4 sm:$0xff]  }
  0x54   :  { %1745 = vmatprep.subr.bf16.mxu0 %v18670_v30  ;;  %1788 = vmatprep.subr.bf16.mxu1 %v18673_v32  ;;  %v18750_v30 = vld [vmem:[%s27626_s0 + $0x670] ss:$400 sps:$4 sm:$0xff]   ;;  %v18753_v32 = vld [vmem:[%s27626_s0 + $0x678] ss:$400 sps:$4 sm:$0xff]  }
  0x55   :  { %15906 = vmatprep.mubr.msk.bf16.mxu1 %vm1491_vm0, %v20405_v31  ;;  %15904 = vmatprep.mubr.msk.bf16.mxu0 %vm1491_vm0, %v20405_v31 }
  0x57   :  { %1746 = vmatpush1.bf16.msra.mxu0 %v18668_v33  ;;  %1789 = vmatpush1.bf16.msra.mxu1 %v18671_v34  ;;  %v18758_v33 = vld [vmem:[%s27626_s0 + $0x354] ss:$400 sps:$4 sm:$0xff]   ;;  %v18761_v34 = vld [vmem:[%s27626_s0 + $0x35c] ss:$400 sps:$4 sm:$0xff]  }
  0x58   :  { %1747 = vmatprep.subr.bf16.mxu0 %v18676_v35  ;;  %1790 = vmatprep.subr.bf16.mxu1 %v18679_v36  ;;  %v18756_v35 = vld [vmem:[%s27626_s0 + $0x350] ss:$400 sps:$4 sm:$0xff]   ;;  %v18759_v36 = vld [vmem:[%s27626_s0 + $0x358] ss:$400 sps:$4 sm:$0xff]  }
  0x5b   :  { %1748 = vmatpush1.bf16.msra.mxu0 %v18674_v37  ;;  %1791 = vmatpush1.bf16.msra.mxu1 %v18677_v38  ;;  %v18764_v37 = vld [vmem:[%s27626_s0 + $0x34] ss:$400 sps:$4 sm:$0xff]   ;;  %v18767_v38 = vld [vmem:[%s27626_s0 + $0x3c] ss:$400 sps:$4 sm:$0xff]  }
  0x5c   :  { %1749 = vmatprep.subr.bf16.mxu0 %v18682_v39  ;;  %1792 = vmatprep.subr.bf16.mxu1 %v18685_v40  ;;  %v278_v39 = vld [vmem:[%s27626_s0 + $0x1c50] sm:$0x77]  ;;  %v279_v40 = vld [vmem:[%s27626_s0 + $0x1c58] sm:$0x77] }
  0x5f   :  { %1750 = vmatpush1.bf16.msra.mxu0 %v18680_v41  ;;  %1793 = vmatpush1.bf16.msra.mxu1 %v18683_v42  ;;  %v18762_v41 = vld [vmem:[%s27626_s0 + $0x30] ss:$400 sps:$4 sm:$0xff]   ;;  %v18765_v42 = vld [vmem:[%s27626_s0 + $0x38] ss:$400 sps:$4 sm:$0xff]  }
  0x60   :  { %1751 = vmatprep.subr.bf16.mxu0 %v18688_v43  ;;  %1794 = vmatprep.subr.bf16.mxu1 %v18691_v44  ;;  %v15883_v43 = vcombine.high %v278_v39, %v278_v39  ;;  %v15885_v44 = vcombine.high %v279_v40, %v279_v40 }
  0x63   :  { %1752 = vmatpush1.bf16.msra.mxu0 %v18686_v45  ;;  %1795 = vmatpush1.bf16.msra.mxu1 %v18689_v46  ;;  %v15882_v45 = vcombine.low %v278_v39, %v278_v39  ;;  %v15884_v46 = vcombine.low %v279_v40, %v279_v40  ;;  %v18844_v39 = vld [vmem:[%s27626_s0 + $0x1314] ss:$400 sps:$4 sm:$0xff]   ;;  %v18847_v40 = vld [vmem:[%s27626_s0 + $0x131c] ss:$400 sps:$4 sm:$0xff]  }
  0x64   :  { %1753 = vmatprep.subr.bf16.mxu0 %v18694_v48  ;;  %1796 = vmatprep.subr.bf16.mxu1 %v18697_v49  ;;  %v18774_v48 = vld [vmem:[%s27626_s0 + $0x1934] ss:$400 sps:$4 sm:$0xff]  }
  0x65   :  { %v1533_v49 = vsel %vm1495_vm1, %v15882_v45, 0  ;;  %v18853_v45 = vld [vmem:[%s27626_s0 + $0xffc] ss:$400 sps:$4 sm:$0xff]  }
  0x67   :  { %1754 = vmatpush1.bf16.msra.mxu0 %v18692_v50  ;;  %1797 = vmatpush1.bf16.msra.mxu1 %v18695_v51  ;;  %v1539_v50 = vsel %vm1495_vm1, %v15884_v46, 0  ;;  %v18777_v51 = vld [vmem:[%s27626_s0 + $0x193c] ss:$400 sps:$4 sm:$0xff]   ;;  %v18848_v46 = vld [vmem:[%s27626_s0 + $0xff0] ss:$400 sps:$4 sm:$0xff]  }
  0x68   :  { %1755 = vmatprep.subr.bf16.mxu0 %v18700_v52  ;;  %1798 = vmatprep.subr.bf16.mxu1 %v18703_v53  ;;  %v18772_v52 = vld [vmem:[%s27626_s0 + $0x1930] ss:$400 sps:$4 sm:$0xff]   ;;  %v18775_v53 = vld [vmem:[%s27626_s0 + $0x1938] ss:$400 sps:$4 sm:$0xff]  }
  0x6b   :  { %1756 = vmatpush1.bf16.msra.mxu0 %v18698_v54  ;;  %1799 = vmatpush1.bf16.msra.mxu1 %v18701_v55  ;;  %v18780_v54 = vld [vmem:[%s27626_s0 + $0x1624] ss:$400 sps:$4 sm:$0xff]   ;;  %v18783_v55 = vld [vmem:[%s27626_s0 + $0x162c] ss:$400 sps:$4 sm:$0xff]  }
  0x6c   :  { %1757 = vmatprep.subr.bf16.mxu0 %v18706_v56  ;;  %1800 = vmatprep.subr.bf16.mxu1 %v18709_v57  ;;  %v18778_v56 = vld [vmem:[%s27626_s0 + $0x1620] ss:$400 sps:$4 sm:$0xff]   ;;  %v18781_v57 = vld [vmem:[%s27626_s0 + $0x1628] ss:$400 sps:$4 sm:$0xff]  }
  0x6f   :  { %1758 = vmatpush1.bf16.msra.mxu0 %v18704_v60  ;;  %1801 = vmatpush1.bf16.msra.mxu1 %v18707_v61  ;;  %v18784_v60 = vld [vmem:[%s27626_s0 + $0x1300] ss:$400 sps:$4 sm:$0xff]   ;;  %v18787_v61 = vld [vmem:[%s27626_s0 + $0x1308] ss:$400 sps:$4 sm:$0xff]  }
  0x70   :  { %15903 = vmatprep.subr.msk.bf16.mxu0 %vm1495_vm1, %v15879_v62  ;;  %15905 = vmatprep.subr.msk.bf16.mxu1 %vm1495_vm1, %v15881_v63  ;;  %v18792_v62 = vld [vmem:[%s27626_s0 + $0xfe4] ss:$400 sps:$4 sm:$0xff]   ;;  %v18795_v63 = vld [vmem:[%s27626_s0 + $0xfec] ss:$400 sps:$4 sm:$0xff]  }
  0x73   :  { %1772 = vmatpush2.bf16.msra.mxu0 %v1521_v3  ;;  %1815 = vmatpush2.bf16.msra.mxu1 %v1527_v4  ;;  %v18801_v3 = vld [vmem:[%s27626_s0 + $0xccc] ss:$400 sps:$4 sm:$0xff]   ;;  %v18796_v4 = vld [vmem:[%s27626_s0 + $0xcc0] ss:$400 sps:$4 sm:$0xff]  }
  0x74   :  { %1773 = vmatprep.subr.bf16.mxu0 %v18716_v2  ;;  %1816 = vmatprep.subr.bf16.mxu1 %v18719_v5  ;;  %v18798_v2 = vld [vmem:[%s27626_s0 + $0xcc4] ss:$400 sps:$4 sm:$0xff]   ;;  %v18799_v5 = vld [vmem:[%s27626_s0 + $0xcc8] ss:$400 sps:$4 sm:$0xff]  }
  0x77   :  { %1774 = vmatpush2.bf16.msra.mxu0 %v18714_v6  ;;  %1817 = vmatpush2.bf16.msra.mxu1 %v18717_v8  ;;  %v18804_v6 = vld [vmem:[%s27626_s0 + $0x9a4] ss:$400 sps:$4 sm:$0xff]   ;;  %v18807_v8 = vld [vmem:[%s27626_s0 + $0x9ac] ss:$400 sps:$4 sm:$0xff]  }
  0x78   :  { %1829 = vmatprep.subr.bf16.mxu0 %v18722_v9  ;;  %1872 = vmatprep.subr.bf16.mxu1 %v18725_v10  ;;  %v18802_v9 = vld [vmem:[%s27626_s0 + $0x9a0] ss:$400 sps:$4 sm:$0xff]   ;;  %v18805_v10 = vld [vmem:[%s27626_s0 + $0x9a8] ss:$400 sps:$4 sm:$0xff]  }
  0x7a   :  { %1819 = vmatmul.mubr.bf16.vlgmr.msra.gmra.mxu1 %v20445_v47  ;;  %1776 = vmatmul.mubr.bf16.vlgmr.msra.gmra.mxu0 %v20445_v47 }
  0x7b   :  { %1830 = vmatpush1.bf16.msra.mxu0 %v18720_v11  ;;  %1873 = vmatpush1.bf16.msra.mxu1 %v18723_v12  ;;  %v18810_v11 = vld [vmem:[%s27626_s0 + $0x684] ss:$400 sps:$4 sm:$0xff]   ;;  %v18813_v12 = vld [vmem:[%s27626_s0 + $0x68c] ss:$400 sps:$4 sm:$0xff]  }
  0x7c   :  { %1831 = vmatprep.subr.bf16.mxu0 %v18728_v13  ;;  %1874 = vmatprep.subr.bf16.mxu1 %v18731_v14  ;;  %v18808_v13 = vld [vmem:[%s27626_s0 + $0x680] ss:$400 sps:$4 sm:$0xff]   ;;  %v18811_v14 = vld [vmem:[%s27626_s0 + $0x688] ss:$400 sps:$4 sm:$0xff]  }
  0x7d   :  { %15910 = vmatprep.mubr.msk.bf16.mxu1 %vm1491_vm0, %v20405_v31  ;;  %15908 = vmatprep.mubr.msk.bf16.mxu0 %vm1491_vm0, %v20405_v31  ;;  %v18743_v31 = vld [vmem:[%s27626_s0 + $0xcbc] ss:$400 sps:$4 sm:$0xff]  }
  0x7f   :  { %1832 = vmatpush1.bf16.msra.mxu0 %v18726_v15  ;;  %1875 = vmatpush1.bf16.msra.mxu1 %v18729_v16  ;;  %v18816_v15 = vld [vmem:[%s27626_s0 + $0x364] ss:$400 sps:$4 sm:$0xff]   ;;  %v18819_v16 = vld [vmem:[%s27626_s0 + $0x36c] ss:$400 sps:$4 sm:$0xff]  }
  0x80   :  { %1833 = vmatprep.subr.bf16.mxu0 %v18734_v17  ;;  %1876 = vmatprep.subr.bf16.mxu1 %v18737_v18  ;;  %v18814_v17 = vld [vmem:[%s27626_s0 + $0x360] ss:$400 sps:$4 sm:$0xff]   ;;  %v18817_v18 = vld [vmem:[%s27626_s0 + $0x368] ss:$400 sps:$4 sm:$0xff]  }
  0x83   :  { %1834 = vmatpush1.bf16.msra.mxu0 %v18732_v19  ;;  %1877 = vmatpush1.bf16.msra.mxu1 %v18735_v20  ;;  %v18822_v19 = vld [vmem:[%s27626_s0 + $0x44] ss:$400 sps:$4 sm:$0xff]   ;;  %v18825_v20 = vld [vmem:[%s27626_s0 + $0x4c] ss:$400 sps:$4 sm:$0xff]  }
  0x84   :  { %1835 = vmatprep.subr.bf16.mxu0 %v18740_v21  ;;  %1878 = vmatprep.subr.bf16.mxu1 %v18743_v31  ;;  %v280_v21 = vld [vmem:[%s27626_s0 + $0x1c60] sm:$0x77]  ;;  %v281_v31 = vld [vmem:[%s27626_s0 + $0x1c68] sm:$0x77] }
  0x87   :  { %1836 = vmatpush1.bf16.msra.mxu0 %v18738_v22  ;;  %1879 = vmatpush1.bf16.msra.mxu1 %v18741_v23  ;;  %v18820_v22 = vld [vmem:[%s27626_s0 + $0x40] ss:$400 sps:$4 sm:$0xff]   ;;  %v18823_v23 = vld [vmem:[%s27626_s0 + $0x48] ss:$400 sps:$4 sm:$0xff]  }
  0x88   :  { %1837 = vmatprep.subr.bf16.mxu0 %v18746_v24  ;;  %1880 = vmatprep.subr.bf16.mxu1 %v18749_v25  ;;  %v15887_v24 = vcombine.high %v280_v21, %v280_v21  ;;  %v15889_v25 = vcombine.high %v281_v31, %v281_v31 }
  0x8b   :  { %1838 = vmatpush1.bf16.msra.mxu0 %v18744_v26  ;;  %1881 = vmatpush1.bf16.msra.mxu1 %v18747_v27  ;;  %v15886_v26 = vcombine.low %v280_v21, %v280_v21  ;;  %v15888_v27 = vcombine.low %v281_v31, %v281_v31  ;;  %v18900_v21 = vld [vmem:[%s27626_s0 + $0x1328] ss:$400 sps:$4 sm:$0xff]   ;;  %v18898_v31 = vld [vmem:[%s27626_s0 + $0x1324] ss:$400 sps:$4 sm:$0xff]  }
  0x8c   :  { %1839 = vmatprep.subr.bf16.mxu0 %v18752_v28  ;;  %1882 = vmatprep.subr.bf16.mxu1 %v18755_v29 }
  0x8d   :  { %v1545_v28 = vsel %vm1495_vm1, %v15886_v26, 0  ;;  %v1551_v29 = vsel %vm1495_vm1, %v15888_v27, 0  ;;  %v18908_v26 = vld [vmem:[%s27626_s0 + $0xce8] ss:$400 sps:$4 sm:$0xff]   ;;  %v18906_v27 = vld [vmem:[%s27626_s0 + $0xce4] ss:$400 sps:$4 sm:$0xff]  }
  0x8f   :  { %1840 = vmatpush1.bf16.msra.mxu0 %v18750_v30  ;;  %1883 = vmatpush1.bf16.msra.mxu1 %v18753_v32  ;;  %v18832_v30 = vld [vmem:[%s27626_s0 + $0x1944] ss:$400 sps:$4 sm:$0xff]   ;;  %v18835_v32 = vld [vmem:[%s27626_s0 + $0x194c] ss:$400 sps:$4 sm:$0xff]  }
  0x90   :  { %1841 = vmatprep.subr.bf16.mxu0 %v18758_v33  ;;  %1884 = vmatprep.subr.bf16.mxu1 %v18761_v34  ;;  %v18830_v33 = vld [vmem:[%s27626_s0 + $0x1940] ss:$400 sps:$4 sm:$0xff]   ;;  %v18833_v34 = vld [vmem:[%s27626_s0 + $0x1948] ss:$400 sps:$4 sm:$0xff]  }
  0x93   :  { %1842 = vmatpush1.bf16.msra.mxu0 %v18756_v35  ;;  %1885 = vmatpush1.bf16.msra.mxu1 %v18759_v36  ;;  %v18838_v35 = vld [vmem:[%s27626_s0 + $0x1634] ss:$400 sps:$4 sm:$0xff]   ;;  %v18841_v36 = vld [vmem:[%s27626_s0 + $0x163c] ss:$400 sps:$4 sm:$0xff]  }
  0x94   :  { %1843 = vmatprep.subr.bf16.mxu0 %v18764_v37  ;;  %1886 = vmatprep.subr.bf16.mxu1 %v18767_v38  ;;  %v18836_v37 = vld [vmem:[%s27626_s0 + $0x1630] ss:$400 sps:$4 sm:$0xff]   ;;  %v18839_v38 = vld [vmem:[%s27626_s0 + $0x1638] ss:$400 sps:$4 sm:$0xff]  }
  0x97   :  { %1844 = vmatpush1.bf16.msra.mxu0 %v18762_v41  ;;  %1887 = vmatpush1.bf16.msra.mxu1 %v18765_v42  ;;  %v20965_v41 = vld [vmem:[%s27627_s1] ss:$8 sps:$4 sm:$0xff]  }
  0x98   :  { %15907 = vmatprep.subr.msk.bf16.mxu0 %vm1495_vm1, %v15883_v43  ;;  %15909 = vmatprep.subr.msk.bf16.mxu1 %vm1495_vm1, %v15885_v44  ;;  %v18842_v42 = vld [vmem:[%s27626_s0 + $0x1310] ss:$400 sps:$4 sm:$0xff]   ;;  %v18845_v43 = vld [vmem:[%s27626_s0 + $0x1318] ss:$400 sps:$4 sm:$0xff]   ;;  %v18850_v44 = vld [vmem:[%s27626_s0 + $0xff4] ss:$400 sps:$4 sm:$0xff]  }
  0x9b   :  { %1858 = vmatpush2.bf16.msra.mxu0 %v1533_v49  ;;  %1901 = vmatpush2.bf16.msra.mxu1 %v1539_v50  ;;  %v18856_v49 = vld [vmem:[%s27626_s0 + $0xcd4] ss:$400 sps:$4 sm:$0xff]   ;;  %v18859_v50 = vld [vmem:[%s27626_s0 + $0xcdc] ss:$400 sps:$4 sm:$0xff]  }
  0x9c   :  { %1859 = vmatprep.subr.bf16.mxu0 %v18774_v48  ;;  %1902 = vmatprep.subr.bf16.mxu1 %v18777_v51  ;;  %v18851_v48 = vld [vmem:[%s27626_s0 + $0xff8] ss:$400 sps:$4 sm:$0xff]   ;;  %v18854_v51 = vld [vmem:[%s27626_s0 + $0xcd0] ss:$400 sps:$4 sm:$0xff]  }
  0x9f   :  { %1860 = vmatpush2.bf16.msra.mxu0 %v18772_v52  ;;  %1903 = vmatpush2.bf16.msra.mxu1 %v18775_v53  ;;  %v18857_v52 = vld [vmem:[%s27626_s0 + $0xcd8] ss:$400 sps:$4 sm:$0xff]   ;;  %v18862_v53 = vld [vmem:[%s27626_s0 + $0x9b4] ss:$400 sps:$4 sm:$0xff]  }
  0xa0   :  { %1915 = vmatprep.subr.bf16.mxu0 %v18780_v54  ;;  %1958 = vmatprep.subr.bf16.mxu1 %v18783_v55  ;;  %v18865_v54 = vld [vmem:[%s27626_s0 + $0x9bc] ss:$400 sps:$4 sm:$0xff]   ;;  %v18860_v55 = vld [vmem:[%s27626_s0 + $0x9b0] ss:$400 sps:$4 sm:$0xff]  }
  0xa2   :  { %1905 = vmatmul.mubr.bf16.vlgmr.msra.gmra.mxu1 %v20445_v47  ;;  %1862 = vmatmul.mubr.bf16.vlgmr.msra.gmra.mxu0 %v20445_v47  ;;  %v20850_v47 = vld [vmem:[%s27627_s1 + $0x4] ss:$8 sps:$4 sm:$0xff]  }
  0xa3   :  { %1916 = vmatpush1.bf16.msra.mxu0 %v18778_v56  ;;  %1959 = vmatpush1.bf16.msra.mxu1 %v18781_v57  ;;  %v18863_v56 = vld [vmem:[%s27626_s0 + $0x9b8] ss:$400 sps:$4 sm:$0xff]   ;;  %v18868_v57 = vld [vmem:[%s27626_s0 + $0x694] ss:$400 sps:$4 sm:$0xff]  }
  0xa4   :  { %1917 = vmatprep.subr.bf16.mxu0 %v18786_v58  ;;  %1960 = vmatprep.subr.bf16.mxu1 %v18789_v59  ;;  %v18871_v58 = vld [vmem:[%s27626_s0 + $0x69c] ss:$400 sps:$4 sm:$0xff]   ;;  %v18866_v59 = vld [vmem:[%s27626_s0 + $0x690] ss:$400 sps:$4 sm:$0xff]  }
  0xa5   :  { %15914 = vmatprep.mubr.msk.bf16.mxu1 %vm1491_vm0, %v20850_v47  ;;  %15912 = vmatprep.mubr.msk.bf16.mxu0 %vm1491_vm0, %v20850_v47 }
  0xa7   :  { %1918 = vmatpush1.bf16.msra.mxu0 %v18784_v60  ;;  %1961 = vmatpush1.bf16.msra.mxu1 %v18787_v61  ;;  %v18869_v60 = vld [vmem:[%s27626_s0 + $0x698] ss:$400 sps:$4 sm:$0xff]   ;;  %v18874_v61 = vld [vmem:[%s27626_s0 + $0x374] ss:$400 sps:$4 sm:$0xff]  }
  0xa8   :  { %1919 = vmatprep.subr.bf16.mxu0 %v18792_v62  ;;  %1962 = vmatprep.subr.bf16.mxu1 %v18795_v63  ;;  %v18877_v62 = vld [vmem:[%s27626_s0 + $0x37c] ss:$400 sps:$4 sm:$0xff]   ;;  %v18872_v63 = vld [vmem:[%s27626_s0 + $0x370] ss:$400 sps:$4 sm:$0xff]  }
  0xab   :  { %1920 = vmatpush1.bf16.msra.mxu0 %v18790_v0  ;;  %1963 = vmatpush1.bf16.msra.mxu1 %v18793_v1  ;;  %v18875_v0 = vld [vmem:[%s27626_s0 + $0x378] ss:$400 sps:$4 sm:$0xff]   ;;  %v18880_v1 = vld [vmem:[%s27626_s0 + $0x54] ss:$400 sps:$4 sm:$0xff]  }
  0xac   :  { %1921 = vmatprep.subr.bf16.mxu0 %v18798_v2  ;;  %1964 = vmatprep.subr.bf16.mxu1 %v18801_v3  ;;  %v18883_v2 = vld [vmem:[%s27626_s0 + $0x5c] ss:$400 sps:$4 sm:$0xff]   ;;  %v282_v3 = vld [vmem:[%s27626_s0 + $0x1c70] sm:$0x77] }
  0xaf   :  { %1922 = vmatpush1.bf16.msra.mxu0 %v18796_v4  ;;  %1965 = vmatpush1.bf16.msra.mxu1 %v18799_v5  ;;  %v283_v4 = vld [vmem:[%s27626_s0 + $0x1c78] sm:$0x77]  ;;  %v18878_v5 = vld [vmem:[%s27626_s0 + $0x50] ss:$400 sps:$4 sm:$0xff]  }
  0xb0   :  { %1923 = vmatprep.subr.bf16.mxu0 %v18804_v6  ;;  %1966 = vmatprep.subr.bf16.mxu1 %v18807_v8  ;;  %v18881_v6 = vld [vmem:[%s27626_s0 + $0x58] ss:$400 sps:$4 sm:$0xff]   ;;  %v15891_v8 = vcombine.high %v282_v3, %v282_v3 }
  0xb3   :  { %1924 = vmatpush1.bf16.msra.mxu0 %v18802_v9  ;;  %1967 = vmatpush1.bf16.msra.mxu1 %v18805_v10  ;;  %v15893_v9 = vcombine.high %v283_v4, %v283_v4  ;;  %v15890_v10 = vcombine.low %v282_v3, %v282_v3  ;;  %v18954_v3 = vld [vmem:[%s27626_s0 + $0xcf4] ss:$400 sps:$4 sm:$0xff]  }
  0xb4   :  { %1925 = vmatprep.subr.bf16.mxu0 %v18810_v11  ;;  %1968 = vmatprep.subr.bf16.mxu1 %v18813_v12  ;;  %v15892_v11 = vcombine.low %v283_v4, %v283_v4  ;;  %v18890_v12 = vld [vmem:[%s27626_s0 + $0x1954] ss:$400 sps:$4 sm:$0xff]   ;;  %v18959_v4 = vld [vmem:[%s27626_s0 + $0x9d0] ss:$400 sps:$4 sm:$0xff]  }
  0xb7   :  { %1926 = vmatpush1.bf16.msra.mxu0 %v18808_v13  ;;  %1969 = vmatpush1.bf16.msra.mxu1 %v18811_v14  ;;  %v1557_v13 = vsel %vm1495_vm1, %v15890_v10, 0  ;;  %v1563_v14 = vsel %vm1495_vm1, %v15892_v11, 0  ;;  %v18968_v10 = vld [vmem:[%s27626_s0 + $0x6b8] ss:$400 sps:$4 sm:$0xff]   ;;  %v18963_v11 = vld [vmem:[%s27626_s0 + $0x6ac] ss:$400 sps:$4 sm:$0xff]  }
  0xb8   :  { %1927 = vmatprep.subr.bf16.mxu0 %v18816_v15  ;;  %1970 = vmatprep.subr.bf16.mxu1 %v18819_v16  ;;  %v18893_v15 = vld [vmem:[%s27626_s0 + $0x195c] ss:$400 sps:$4 sm:$0xff]   ;;  %v18888_v16 = vld [vmem:[%s27626_s0 + $0x1950] ss:$400 sps:$4 sm:$0xff]  }
  0xbb   :  { %1928 = vmatpush1.bf16.msra.mxu0 %v18814_v17  ;;  %1971 = vmatpush1.bf16.msra.mxu1 %v18817_v18  ;;  %v18891_v17 = vld [vmem:[%s27626_s0 + $0x1958] ss:$400 sps:$4 sm:$0xff]  }
  0xbc   :  { %1929 = vmatprep.subr.bf16.mxu0 %v18822_v19  ;;  %1972 = vmatprep.subr.bf16.mxu1 %v18825_v20  ;;  %v18896_v18 = vld [vmem:[%s27626_s0 + $0x1648] ss:$400 sps:$4 sm:$0xff]   ;;  %v18894_v19 = vld [vmem:[%s27626_s0 + $0x1644] ss:$400 sps:$4 sm:$0xff]   ;;  %v18897_v20 = vld [vmem:[%s27626_s0 + $0x1640] ss:$400 sps:$4 sm:$0xff]  }
  0xbf   :  { %1930 = vmatpush1.bf16.msra.mxu0 %v18820_v22  ;;  %1973 = vmatpush1.bf16.msra.mxu1 %v18823_v23  ;;  %v18901_v22 = vld [vmem:[%s27626_s0 + $0x1320] ss:$400 sps:$4 sm:$0xff]   ;;  %v18904_v23 = vld [vmem:[%s27626_s0 + $0x1008] ss:$400 sps:$4 sm:$0xff]  }
  0xc0   :  { %15911 = vmatprep.subr.msk.bf16.mxu0 %vm1495_vm1, %v15887_v24  ;;  %15913 = vmatprep.subr.msk.bf16.mxu1 %vm1495_vm1, %v15889_v25  ;;  %v18902_v24 = vld [vmem:[%s27626_s0 + $0x1004] ss:$400 sps:$4 sm:$0xff]   ;;  %v18905_v25 = vld [vmem:[%s27626_s0 + $0x1000] ss:$400 sps:$4 sm:$0xff]  }
  0xc3   :  { %1944 = vmatpush2.bf16.msra.mxu0 %v1545_v28  ;;  %1987 = vmatpush2.bf16.msra.mxu1 %v1551_v29  ;;  %v18909_v28 = vld [vmem:[%s27626_s0 + $0xce0] ss:$400 sps:$4 sm:$0xff]   ;;  %v18912_v29 = vld [vmem:[%s27626_s0 + $0x9c8] ss:$400 sps:$4 sm:$0xff]  }
  0xc4   :  { %1945 = vmatprep.subr.bf16.mxu0 %v18832_v30  ;;  %1988 = vmatprep.subr.bf16.mxu1 %v18835_v32  ;;  %v18910_v30 = vld [vmem:[%s27626_s0 + $0x9c4] ss:$400 sps:$4 sm:$0xff]   ;;  %v18913_v32 = vld [vmem:[%s27626_s0 + $0x9c0] ss:$400 sps:$4 sm:$0xff]  }
  0xc7   :  { %1946 = vmatpush2.bf16.msra.mxu0 %v18830_v33  ;;  %1989 = vmatpush2.bf16.msra.mxu1 %v18833_v34  ;;  %v18916_v33 = vld [vmem:[%s27626_s0 + $0x6a8] ss:$400 sps:$4 sm:$0xff]   ;;  %v18914_v34 = vld [vmem:[%s27626_s0 + $0x6a4] ss:$400 sps:$4 sm:$0xff]  }
  0xc8   :  { %2001 = vmatprep.subr.bf16.mxu0 %v18838_v35  ;;  %2044 = vmatprep.subr.bf16.mxu1 %v18841_v36  ;;  %v18917_v35 = vld [vmem:[%s27626_s0 + $0x6a0] ss:$400 sps:$4 sm:$0xff]   ;;  %v18920_v36 = vld [vmem:[%s27626_s0 + $0x388] ss:$400 sps:$4 sm:$0xff]  }
  0xca   :  { %1991 = vmatmul.mubr.bf16.vlgmr.msra.gmra.mxu1 %v20965_v41  ;;  %1948 = vmatmul.mubr.bf16.vlgmr.msra.gmra.mxu0 %v20965_v41 }
  0xcb   :  { %2002 = vmatpush1.bf16.msra.mxu0 %v18836_v37  ;;  %2045 = vmatpush1.bf16.msra.mxu1 %v18839_v38  ;;  %v18918_v37 = vld [vmem:[%s27626_s0 + $0x384] ss:$400 sps:$4 sm:$0xff]   ;;  %v18921_v38 = vld [vmem:[%s27626_s0 + $0x380] ss:$400 sps:$4 sm:$0xff]  }
  0xcc   :  { %2003 = vmatprep.subr.bf16.mxu0 %v18844_v39  ;;  %2046 = vmatprep.subr.bf16.mxu1 %v18847_v40  ;;  %v18924_v39 = vld [vmem:[%s27626_s0 + $0x68] ss:$400 sps:$4 sm:$0xff]  }
  0xcd   :  { %15918 = vmatprep.mubr.msk.bf16.mxu1 %vm1491_vm0, %v20850_v47  ;;  %15916 = vmatprep.mubr.msk.bf16.mxu0 %vm1491_vm0, %v20850_v47  ;;  %v2362_v40 = vld [vmem:[%s27626_s0 + $0x1c84] sm:$0x77] }
  0xcf   :  { %2004 = vmatpush1.bf16.msra.mxu0 %v18842_v42  ;;  %2047 = vmatpush1.bf16.msra.mxu1 %v18845_v43  ;;  %v18922_v42 = vld [vmem:[%s27626_s0 + $0x64] ss:$400 sps:$4 sm:$0xff]   ;;  %v18925_v43 = vld [vmem:[%s27626_s0 + $0x60] ss:$400 sps:$4 sm:$0xff]  }
  0xd0   :  { %2005 = vmatprep.subr.bf16.mxu0 %v18850_v44  ;;  %2048 = vmatprep.subr.bf16.mxu1 %v18853_v45  ;;  %v16146_v44 = vcombine.high %v2362_v40, %v2362_v40  ;;  %v18927_v45 = vld [vmem:[%s27626_s0 + $0x1c80] ss:$0 sps:$4 sm:$0x77]  }
  0xd3   :  { %2006 = vmatpush1.bf16.msra.mxu0 %v18848_v46  ;;  %2049 = vmatpush1.bf16.msra.mxu1 %v18851_v48  ;;  %v16145_v46 = vcombine.low %v2362_v40, %v2362_v40  ;;  %v1569_v48 = vsel %vm1495_vm1, %v18927_v45, 0  ;;  %v19000_v40 = vld [vmem:[%s27626_s0 + $0x1344] ss:$400 sps:$4 sm:$0xff]  }
  0xd4   :  { %2007 = vmatprep.subr.bf16.mxu0 %v18856_v49  ;;  %2050 = vmatprep.subr.bf16.mxu1 %v18859_v50  ;;  %v18931_v50 = vld [vmem:[%s27626_s0 + $0x1968] ss:$400 sps:$4 sm:$0xff]   ;;  %v19006_v45 = vld [vmem:[%s27626_s0 + $0x1024] ss:$400 sps:$4 sm:$0xff]  }
  0xd5   :  { %v3573_v49 = vsel %vm1495_vm1, %v16145_v46, 0  ;;  %v19011_v46 = vld [vmem:[%s27626_s0 + $0xd00] ss:$400 sps:$4 sm:$0xff]  }
  0xd7   :  { %2008 = vmatpush1.bf16.msra.mxu0 %v18854_v51  ;;  %2051 = vmatpush1.bf16.msra.mxu1 %v18857_v52  ;;  %v18929_v51 = vld [vmem:[%s27626_s0 + $0x1964] ss:$400 sps:$4 sm:$0xff]   ;;  %v18932_v52 = vld [vmem:[%s27626_s0 + $0x1960] ss:$400 sps:$4 sm:$0xff]  }
  0xd8   :  { %2009 = vmatprep.subr.bf16.mxu0 %v18862_v53  ;;  %2052 = vmatprep.subr.bf16.mxu1 %v18865_v54  ;;  %v18935_v53 = vld [vmem:[%s27626_s0 + $0x1650] ss:$400 sps:$4 sm:$0xff]   ;;  %v18938_v54 = vld [vmem:[%s27626_s0 + $0x1658] ss:$400 sps:$4 sm:$0xff]  }
  0xdb   :  { %2010 = vmatpush1.bf16.msra.mxu0 %v18860_v55  ;;  %2053 = vmatpush1.bf16.msra.mxu1 %v18863_v56  ;;  %v18933_v55 = vld [vmem:[%s27626_s0 + $0x164c] ss:$400 sps:$4 sm:$0xff]   ;;  %v18936_v56 = vld [vmem:[%s27626_s0 + $0x1654] ss:$400 sps:$4 sm:$0xff]  }
  0xdc   :  { %2011 = vmatprep.subr.bf16.mxu0 %v18868_v57  ;;  %2054 = vmatprep.subr.bf16.mxu1 %v18871_v58  ;;  %v18941_v57 = vld [vmem:[%s27626_s0 + $0x1330] ss:$400 sps:$4 sm:$0xff]   ;;  %v18944_v58 = vld [vmem:[%s27626_s0 + $0x1338] ss:$400 sps:$4 sm:$0xff]  }
  0xdf   :  { %2012 = vmatpush1.bf16.msra.mxu0 %v18866_v59  ;;  %2055 = vmatpush1.bf16.msra.mxu1 %v18869_v60  ;;  %v18939_v59 = vld [vmem:[%s27626_s0 + $0x132c] ss:$400 sps:$4 sm:$0xff]   ;;  %v18942_v60 = vld [vmem:[%s27626_s0 + $0x1334] ss:$400 sps:$4 sm:$0xff]  }
  0xe0   :  { %2013 = vmatprep.subr.bf16.mxu0 %v18874_v61  ;;  %2056 = vmatprep.subr.bf16.mxu1 %v18877_v62  ;;  %v18947_v61 = vld [vmem:[%s27626_s0 + $0x1010] ss:$400 sps:$4 sm:$0xff]   ;;  %v18950_v62 = vld [vmem:[%s27626_s0 + $0x1018] ss:$400 sps:$4 sm:$0xff]  }
  0xe3   :  { %2014 = vmatpush1.bf16.msra.mxu0 %v18872_v63  ;;  %2057 = vmatpush1.bf16.msra.mxu1 %v18875_v0  ;;  %v18945_v63 = vld [vmem:[%s27626_s0 + $0x100c] ss:$400 sps:$4 sm:$0xff]   ;;  %v18948_v0 = vld [vmem:[%s27626_s0 + $0x1014] ss:$400 sps:$4 sm:$0xff]  }
  0xe4   :  { %2015 = vmatprep.subr.bf16.mxu0 %v18880_v1  ;;  %2058 = vmatprep.subr.bf16.mxu1 %v18883_v2  ;;  %v18953_v1 = vld [vmem:[%s27626_s0 + $0xcf0] ss:$400 sps:$4 sm:$0xff]   ;;  %v18951_v2 = vld [vmem:[%s27626_s0 + $0xcec] ss:$400 sps:$4 sm:$0xff]  }
  0xe7   :  { %2016 = vmatpush1.bf16.msra.mxu0 %v18878_v5  ;;  %2059 = vmatpush1.bf16.msra.mxu1 %v18881_v6  ;;  %v18962_v5 = vld [vmem:[%s27626_s0 + $0x9d8] ss:$400 sps:$4 sm:$0xff]   ;;  %v18957_v6 = vld [vmem:[%s27626_s0 + $0x9cc] ss:$400 sps:$4 sm:$0xff]  }
  0xe8   :  { %15915 = vmatprep.subr.msk.bf16.mxu0 %vm1495_vm1, %v15891_v8  ;;  %15917 = vmatprep.subr.msk.bf16.mxu1 %vm1495_vm1, %v15893_v9  ;;  %v18960_v8 = vld [vmem:[%s27626_s0 + $0x9d4] ss:$400 sps:$4 sm:$0xff]   ;;  %v18965_v9 = vld [vmem:[%s27626_s0 + $0x6b0] ss:$400 sps:$4 sm:$0xff]  }
  0xeb   :  { %2030 = vmatpush2.bf16.msra.mxu0 %v1557_v13  ;;  %2073 = vmatpush2.bf16.msra.mxu1 %v1563_v14  ;;  %v18971_v13 = vld [vmem:[%s27626_s0 + $0x390] ss:$400 sps:$4 sm:$0xff]   ;;  %v18974_v14 = vld [vmem:[%s27626_s0 + $0x398] ss:$400 sps:$4 sm:$0xff]  }
  0xec   :  { %2031 = vmatprep.subr.bf16.mxu0 %v18890_v12  ;;  %2074 = vmatprep.subr.bf16.mxu1 %v18893_v15  ;;  %v18966_v12 = vld [vmem:[%s27626_s0 + $0x6b4] ss:$400 sps:$4 sm:$0xff]   ;;  %v18969_v15 = vld [vmem:[%s27626_s0 + $0x38c] ss:$400 sps:$4 sm:$0xff]  }
  0xef   :  { %2032 = vmatpush2.bf16.msra.mxu0 %v18888_v16  ;;  %2075 = vmatpush2.bf16.msra.mxu1 %v18891_v17  ;;  %v18972_v16 = vld [vmem:[%s27626_s0 + $0x394] ss:$400 sps:$4 sm:$0xff]   ;;  %v18977_v17 = vld [vmem:[%s27626_s0 + $0x70] ss:$400 sps:$4 sm:$0xff]  }
  0xf0   :  { %2087 = vmatprep.subr.bf16.mxu0 %v27637_v7  ;;  %3647 = vmatprep.subr.bf16.mxu1 %v18896_v18  ;;  %v18980_v18 = vld [vmem:[%s27626_s0 + $0x78] ss:$400 sps:$4 sm:$0xff]  }
  0xf2   :  { %2077 = vmatmul.mubr.bf16.vlgmr.msra.gmra.mxu1 %v20965_v41  ;;  %2034 = vmatmul.mubr.bf16.vlgmr.msra.gmra.mxu0 %v20965_v41 }
  0xf3   :  { %2088 = vmatpush1.bf16.msra.mxu0 %v18897_v20  ;;  %3648 = vmatpush1.bf16.msra.mxu1 %v18894_v19  ;;  %v2363_v19 = vld [vmem:[%s27626_s0 + $0x1c8c] sm:$0x77]  ;;  %v2364_v20 = vld [vmem:[%s27626_s0 + $0x1c94] sm:$0x77] }
  0xf4   :  { %2089 = vmatprep.subr.bf16.mxu0 %v27637_v7  ;;  %3649 = vmatprep.subr.bf16.mxu1 %v18900_v21  ;;  %v18975_v21 = vld [vmem:[%s27626_s0 + $0x6c] ss:$400 sps:$4 sm:$0xff]  }
  0xf5   :  { %16171 = vmatprep.mubr.msk.bf16.mxu1 %vm1491_vm0, %v20850_v47  ;;  %15919 = vmatprep.mubr.msk.bf16.mxu0 %vm1491_vm0, %v20850_v47 }
  0xf7   :  { %2090 = vmatpush1.bf16.msra.mxu0 %v18901_v22  ;;  %3650 = vmatpush1.bf16.msra.mxu1 %v18898_v31  ;;  %v18978_v31 = vld [vmem:[%s27626_s0 + $0x74] ss:$400 sps:$4 sm:$0xff]   ;;  %v16148_v22 = vcombine.high %v2363_v19, %v2363_v19 }
  0xf8   :  { %2091 = vmatprep.subr.bf16.mxu0 %v27637_v7  ;;  %3651 = vmatprep.subr.bf16.mxu1 %v18904_v23  ;;  %v16150_v23 = vcombine.high %v2364_v20, %v2364_v20 }
  0xfb   :  { %2092 = vmatpush1.bf16.msra.mxu0 %v18905_v25  ;;  %3652 = vmatpush1.bf16.msra.mxu1 %v18902_v24  ;;  %v16147_v24 = vcombine.low %v2363_v19, %v2363_v19  ;;  %v16149_v25 = vcombine.low %v2364_v20, %v2364_v20  ;;  %v19057_v19 = vld [vmem:[%s27626_s0 + $0x1350] ss:$400 sps:$4 sm:$0xff]   ;;  %v19060_v20 = vld [vmem:[%s27626_s0 + $0x1358] ss:$400 sps:$4 sm:$0xff]  }
  0xfc   :  { %2093 = vmatprep.subr.bf16.mxu0 %v27637_v7  ;;  %3653 = vmatprep.subr.bf16.mxu1 %v18908_v26  ;;  %v18987_v26 = vld [vmem:[%s27626_s0 + $0x1970] ss:$400 sps:$4 sm:$0xff]  }
  0xff   :  { %2094 = vmatpush1.bf16.msra.mxu0 %v18909_v28  ;;  %3654 = vmatpush1.bf16.msra.mxu1 %v18906_v27  ;;  %v3579_v27 = vsel %vm1495_vm1, %v16147_v24, 0  ;;  %v3585_v28 = vsel %vm1495_vm1, %v16149_v25, 0  ;;  %v19066_v24 = vld [vmem:[%s27626_s0 + $0x1038] ss:$400 sps:$4 sm:$0xff]   ;;  %v19061_v25 = vld [vmem:[%s27626_s0 + $0x102c] ss:$400 sps:$4 sm:$0xff]  }
 0x100   :  { %2095 = vmatprep.subr.bf16.mxu0 %v27637_v7  ;;  %3655 = vmatprep.subr.bf16.mxu1 %v18912_v29  ;;  %v18990_v29 = vld [vmem:[%s27626_s0 + $0x1978] ss:$400 sps:$4 sm:$0xff]  }
 0x103   :  { %2096 = vmatpush1.bf16.msra.mxu0 %v18913_v32  ;;  %3656 = vmatpush1.bf16.msra.mxu1 %v18910_v30  ;;  %v18985_v30 = vld [vmem:[%s27626_s0 + $0x196c] ss:$400 sps:$4 sm:$0xff]   ;;  %v18988_v32 = vld [vmem:[%s27626_s0 + $0x1974] ss:$400 sps:$4 sm:$0xff]  }
 0x104   :  { %2097 = vmatprep.subr.bf16.mxu0 %v27637_v7  ;;  %3657 = vmatprep.subr.bf16.mxu1 %v18916_v33  ;;  %v18993_v33 = vld [vmem:[%s27626_s0 + $0x1660] ss:$400 sps:$4 sm:$0xff]  }
 0x107   :  { %2098 = vmatpush1.bf16.msra.mxu0 %v18917_v35  ;;  %3658 = vmatpush1.bf16.msra.mxu1 %v18914_v34  ;;  %v18996_v34 = vld [vmem:[%s27626_s0 + $0x1668] ss:$400 sps:$4 sm:$0xff]   ;;  %v18991_v35 = vld [vmem:[%s27626_s0 + $0x165c] ss:$400 sps:$4 sm:$0xff]  }
 0x108   :  { %2099 = vmatprep.subr.bf16.mxu0 %v27637_v7  ;;  %3659 = vmatprep.subr.bf16.mxu1 %v18920_v36  ;;  %v18994_v36 = vld [vmem:[%s27626_s0 + $0x1664] ss:$400 sps:$4 sm:$0xff]  }
 0x10b   :  { %2100 = vmatpush1.bf16.msra.mxu0 %v18921_v38  ;;  %3660 = vmatpush1.bf16.msra.mxu1 %v18918_v37  ;;  %v18999_v37 = vld [vmem:[%s27626_s0 + $0x1340] ss:$400 sps:$4 sm:$0xff]   ;;  %v19002_v38 = vld [vmem:[%s27626_s0 + $0x1348] ss:$400 sps:$4 sm:$0xff]  }
 0x10c   :  { %2101 = vmatprep.subr.bf16.mxu0 %v27637_v7  ;;  %3661 = vmatprep.subr.bf16.mxu1 %v18924_v39  ;;  %v18997_v39 = vld [vmem:[%s27626_s0 + $0x133c] ss:$400 sps:$4 sm:$0xff]  }
 0x10f   :  { %2102 = vmatpush1.bf16.msra.mxu0 %v18925_v43  ;;  %3662 = vmatpush1.bf16.msra.mxu1 %v18922_v42  ;;  %v19005_v42 = vld [vmem:[%s27626_s0 + $0x1020] ss:$400 sps:$4 sm:$0xff]   ;;  %v21338_v43 = vld [vmem:[%s27627_s1 + $0x4] ss:$8 sps:$4 sm:$0xff]  }
 0x110   :  { %2115 = vmatprep.subr.bf16.mxu0 %v27637_v7  ;;  %16170 = vmatprep.subr.msk.bf16.mxu1 %vm1495_vm1, %v16146_v44  ;;  %v19003_v44 = vld [vmem:[%s27626_s0 + $0x101c] ss:$400 sps:$4 sm:$0xff]  }
 0x113   :  { %2116 = vmatpush2.bf16.msra.mxu0 %v1569_v48  ;;  %3676 = vmatpush2.bf16.msra.mxu1 %v3573_v49  ;;  %v19014_v48 = vld [vmem:[%s27626_s0 + $0xd08] ss:$400 sps:$4 sm:$0xff]   ;;  %v19009_v49 = vld [vmem:[%s27626_s0 + $0xcfc] ss:$400 sps:$4 sm:$0xff]  }
 0x114   :  { %2117 = vmatprep.subr.bf16.mxu0 %v27637_v7  ;;  %3677 = vmatprep.subr.bf16.mxu1 %v18931_v50  ;;  %v19012_v50 = vld [vmem:[%s27626_s0 + $0xd04] ss:$400 sps:$4 sm:$0xff]  }
 0x117   :  { %2118 = vmatpush2.bf16.msra.mxu0 %v18932_v52  ;;  %3678 = vmatpush2.bf16.msra.mxu1 %v18929_v51  ;;  %v19017_v51 = vld [vmem:[%s27626_s0 + $0x9e0] ss:$400 sps:$4 sm:$0xff]   ;;  %v19020_v52 = vld [vmem:[%s27626_s0 + $0x9e8] ss:$400 sps:$4 sm:$0xff]  }
 0x118   :  { %3690 = vmatprep.subr.bf16.mxu0 %v18935_v53  ;;  %3733 = vmatprep.subr.bf16.mxu1 %v18938_v54  ;;  %v19015_v53 = vld [vmem:[%s27626_s0 + $0x9dc] ss:$400 sps:$4 sm:$0xff]   ;;  %v19018_v54 = vld [vmem:[%s27626_s0 + $0x9e4] ss:$400 sps:$4 sm:$0xff]  }
 0x11a   :  { %3680 = vmatmul.mubr.bf16.vlgmr.msra.gmra.mxu1 %v20965_v41  ;;  %2120 = vmatmul.mubr.bf16.vlgmr.msra.gmra.mxu0 %v20965_v41 }
 0x11b   :  { %3691 = vmatpush1.bf16.msra.mxu0 %v18933_v55  ;;  %3734 = vmatpush1.bf16.msra.mxu1 %v18936_v56  ;;  %v19023_v55 = vld [vmem:[%s27626_s0 + $0x6c0] ss:$400 sps:$4 sm:$0xff]   ;;  %v19026_v56 = vld [vmem:[%s27626_s0 + $0x6c8] ss:$400 sps:$4 sm:$0xff]  }
 0x11c   :  { %3692 = vmatprep.subr.bf16.mxu0 %v18941_v57  ;;  %3735 = vmatprep.subr.bf16.mxu1 %v18944_v58  ;;  %v19021_v57 = vld [vmem:[%s27626_s0 + $0x6bc] ss:$400 sps:$4 sm:$0xff]   ;;  %v19024_v58 = vld [vmem:[%s27626_s0 + $0x6c4] ss:$400 sps:$4 sm:$0xff]  }
 0x11d   :  { %16173 = vmatprep.mubr.msk.bf16.mxu0 %vm1491_vm0, %v20850_v47  ;;  %16175 = vmatprep.mubr.msk.bf16.mxu1 %vm1491_vm0, %v20850_v47  ;;  %v18956_v47 = vld [vmem:[%s27626_s0 + $0xcf8] ss:$400 sps:$4 sm:$0xff]  }
 0x11f   :  { %3693 = vmatpush1.bf16.msra.mxu0 %v18939_v59  ;;  %3736 = vmatpush1.bf16.msra.mxu1 %v18942_v60  ;;  %v19029_v59 = vld [vmem:[%s27626_s0 + $0x3a0] ss:$400 sps:$4 sm:$0xff]   ;;  %v19032_v60 = vld [vmem:[%s27626_s0 + $0x3a8] ss:$400 sps:$4 sm:$0xff]  }
 0x120   :  { %3694 = vmatprep.subr.bf16.mxu0 %v18947_v61  ;;  %3737 = vmatprep.subr.bf16.mxu1 %v18950_v62  ;;  %v19027_v61 = vld [vmem:[%s27626_s0 + $0x39c] ss:$400 sps:$4 sm:$0xff]   ;;  %v19030_v62 = vld [vmem:[%s27626_s0 + $0x3a4] ss:$400 sps:$4 sm:$0xff]  }
 0x123   :  { %3695 = vmatpush1.bf16.msra.mxu0 %v18945_v63  ;;  %3738 = vmatpush1.bf16.msra.mxu1 %v18948_v0  ;;  %v19035_v63 = vld [vmem:[%s27626_s0 + $0x80] ss:$400 sps:$4 sm:$0xff]   ;;  %v19038_v0 = vld [vmem:[%s27626_s0 + $0x88] ss:$400 sps:$4 sm:$0xff]  }
 0x124   :  { %3696 = vmatprep.subr.bf16.mxu0 %v18953_v1  ;;  %3739 = vmatprep.subr.bf16.mxu1 %v18956_v47  ;;  %v2365_v1 = vld [vmem:[%s27626_s0 + $0x1c9c] sm:$0x77]  ;;  %v2366_v47 = vld [vmem:[%s27626_s0 + $0x1ca4] sm:$0x77] }
 0x127   :  { %3697 = vmatpush1.bf16.msra.mxu0 %v18951_v2  ;;  %3740 = vmatpush1.bf16.msra.mxu1 %v18954_v3  ;;  %v19033_v2 = vld [vmem:[%s27626_s0 + $0x7c] ss:$400 sps:$4 sm:$0xff]   ;;  %v19036_v3 = vld [vmem:[%s27626_s0 + $0x84] ss:$400 sps:$4 sm:$0xff]  }
 0x128   :  { %3698 = vmatprep.subr.bf16.mxu0 %v18959_v4  ;;  %3741 = vmatprep.subr.bf16.mxu1 %v18962_v5  ;;  %v16152_v4 = vcombine.high %v2365_v1, %v2365_v1  ;;  %v16154_v5 = vcombine.high %v2366_v47, %v2366_v47 }
 0x12b   :  { %3699 = vmatpush1.bf16.msra.mxu0 %v18957_v6  ;;  %3742 = vmatpush1.bf16.msra.mxu1 %v18960_v8  ;;  %v16151_v6 = vcombine.low %v2365_v1, %v2365_v1  ;;  %v16153_v8 = vcombine.low %v2366_v47, %v2366_v47  ;;  %v19109_v47 = vld [vmem:[%s27626_s0 + $0x1680] ss:$400 sps:$4 sm:$0xff]  }
 0x12c   :  { %3700 = vmatprep.subr.bf16.mxu0 %v18965_v9  ;;  %3743 = vmatprep.subr.bf16.mxu1 %v18968_v10  ;;  %v19045_v9 = vld [vmem:[%s27626_s0 + $0x1980] ss:$400 sps:$4 sm:$0xff]  }
 0x12d   :  { %v3591_v10 = vsel %vm1495_vm1, %v16151_v6, 0  ;;  %v19115_v6 = vld [vmem:[%s27626_s0 + $0x1360] ss:$400 sps:$4 sm:$0xff]  }
 0x12f   :  { %3701 = vmatpush1.bf16.msra.mxu0 %v18963_v11  ;;  %3744 = vmatpush1.bf16.msra.mxu1 %v18966_v12  ;;  %v3597_v11 = vsel %vm1495_vm1, %v16153_v8, 0  ;;  %v19048_v12 = vld [vmem:[%s27626_s0 + $0x1988] ss:$400 sps:$4 sm:$0xff]  }
 0x130   :  { %3702 = vmatprep.subr.bf16.mxu0 %v18971_v13  ;;  %3745 = vmatprep.subr.bf16.mxu1 %v18974_v14  ;;  %v19043_v13 = vld [vmem:[%s27626_s0 + $0x197c] ss:$400 sps:$4 sm:$0xff]   ;;  %v19046_v14 = vld [vmem:[%s27626_s0 + $0x1984] ss:$400 sps:$4 sm:$0xff]   ;;  %v19118_v8 = vld [vmem:[%s27626_s0 + $0x1368] ss:$400 sps:$4 sm:$0xff]  }
 0x133   :  { %3703 = vmatpush1.bf16.msra.mxu0 %v18969_v15  ;;  %3746 = vmatpush1.bf16.msra.mxu1 %v18972_v16  ;;  %v19051_v15 = vld [vmem:[%s27626_s0 + $0x1670] ss:$400 sps:$4 sm:$0xff]   ;;  %v19054_v16 = vld [vmem:[%s27626_s0 + $0x1678] ss:$400 sps:$4 sm:$0xff]  }
 0x134   :  { %3704 = vmatprep.subr.bf16.mxu0 %v18977_v17  ;;  %3747 = vmatprep.subr.bf16.mxu1 %v18980_v18  ;;  %v19049_v17 = vld [vmem:[%s27626_s0 + $0x166c] ss:$400 sps:$4 sm:$0xff]   ;;  %v19052_v18 = vld [vmem:[%s27626_s0 + $0x1674] ss:$400 sps:$4 sm:$0xff]  }
 0x137   :  { %3705 = vmatpush1.bf16.msra.mxu0 %v18975_v21  ;;  %3748 = vmatpush1.bf16.msra.mxu1 %v18978_v31  ;;  %v19055_v21 = vld [vmem:[%s27626_s0 + $0x134c] ss:$400 sps:$4 sm:$0xff]   ;;  %v19058_v31 = vld [vmem:[%s27626_s0 + $0x1354] ss:$400 sps:$4 sm:$0xff]  }
 0x138   :  { %16172 = vmatprep.subr.msk.bf16.mxu0 %vm1495_vm1, %v16148_v22  ;;  %16174 = vmatprep.subr.msk.bf16.mxu1 %vm1495_vm1, %v16150_v23  ;;  %v21459_v22 = vld [vmem:[%s27627_s1] ss:$8 sps:$4 sm:$0xff]  }
 0x139   :  { %v19063_v23 = vld [vmem:[%s27626_s0 + $0x1030] ss:$400 sps:$4 sm:$0xff]  }
 0x13b   :  { %3719 = vmatpush2.bf16.msra.mxu0 %v3579_v27  ;;  %3762 = vmatpush2.bf16.msra.mxu1 %v3585_v28  ;;  %v19069_v27 = vld [vmem:[%s27626_s0 + $0xd10] ss:$400 sps:$4 sm:$0xff]   ;;  %v19072_v28 = vld [vmem:[%s27626_s0 + $0xd18] ss:$400 sps:$4 sm:$0xff]  }
 0x13c   :  { %3720 = vmatprep.subr.bf16.mxu0 %v18987_v26  ;;  %3763 = vmatprep.subr.bf16.mxu1 %v18990_v29  ;;  %v19064_v26 = vld [vmem:[%s27626_s0 + $0x1034] ss:$400 sps:$4 sm:$0xff]   ;;  %v19067_v29 = vld [vmem:[%s27626_s0 + $0xd0c] ss:$400 sps:$4 sm:$0xff]  }
 0x13f   :  { %3721 = vmatpush2.bf16.msra.mxu0 %v18985_v30  ;;  %3764 = vmatpush2.bf16.msra.mxu1 %v18988_v32  ;;  %v19070_v30 = vld [vmem:[%s27626_s0 + $0xd14] ss:$400 sps:$4 sm:$0xff]   ;;  %v19075_v32 = vld [vmem:[%s27626_s0 + $0x9f0] ss:$400 sps:$4 sm:$0xff]  }
 0x140   :  { %3776 = vmatprep.subr.bf16.mxu0 %v18993_v33  ;;  %3819 = vmatprep.subr.bf16.mxu1 %v18996_v34  ;;  %v19078_v33 = vld [vmem:[%s27626_s0 + $0x9f8] ss:$400 sps:$4 sm:$0xff]   ;;  %v19073_v34 = vld [vmem:[%s27626_s0 + $0x9ec] ss:$400 sps:$4 sm:$0xff]  }
 0x142   :  { %3723 = vmatmul.mubr.bf16.vlgmr.msra.gmra.mxu0 %v20965_v41  ;;  %3766 = vmatmul.mubr.bf16.vlgmr.msra.gmra.mxu1 %v20965_v41  ;;  %v19008_v41 = vld [vmem:[%s27626_s0 + $0x1028] ss:$400 sps:$4 sm:$0xff]  }
 0x143   :  { %3777 = vmatpush1.bf16.msra.mxu0 %v18991_v35  ;;  %3820 = vmatpush1.bf16.msra.mxu1 %v18994_v36  ;;  %v19076_v35 = vld [vmem:[%s27626_s0 + $0x9f4] ss:$400 sps:$4 sm:$0xff]   ;;  %v19081_v36 = vld [vmem:[%s27626_s0 + $0x6d0] ss:$400 sps:$4 sm:$0xff]  }
 0x144   :  { %3778 = vmatprep.subr.bf16.mxu0 %v18999_v37  ;;  %3821 = vmatprep.subr.bf16.mxu1 %v19002_v38  ;;  %v19084_v37 = vld [vmem:[%s27626_s0 + $0x6d8] ss:$400 sps:$4 sm:$0xff]   ;;  %v19079_v38 = vld [vmem:[%s27626_s0 + $0x6cc] ss:$400 sps:$4 sm:$0xff]  }
 0x145   :  { %16177 = vmatprep.mubr.msk.bf16.mxu0 %vm1491_vm0, %v21338_v43  ;;  %16179 = vmatprep.mubr.msk.bf16.mxu1 %vm1491_vm0, %v21338_v43 }
 0x147   :  { %3779 = vmatpush1.bf16.msra.mxu0 %v18997_v39  ;;  %3822 = vmatpush1.bf16.msra.mxu1 %v19000_v40  ;;  %v19082_v39 = vld [vmem:[%s27626_s0 + $0x6d4] ss:$400 sps:$4 sm:$0xff]   ;;  %v19087_v40 = vld [vmem:[%s27626_s0 + $0x3b0] ss:$400 sps:$4 sm:$0xff]  }
 0x148   :  { %3780 = vmatprep.subr.bf16.mxu0 %v19005_v42  ;;  %3823 = vmatprep.subr.bf16.mxu1 %v19008_v41  ;;  %v19090_v42 = vld [vmem:[%s27626_s0 + $0x3b8] ss:$400 sps:$4 sm:$0xff]   ;;  %v19085_v41 = vld [vmem:[%s27626_s0 + $0x3ac] ss:$400 sps:$4 sm:$0xff]  }
 0x14b   :  { %3781 = vmatpush1.bf16.msra.mxu0 %v19003_v44  ;;  %3824 = vmatpush1.bf16.msra.mxu1 %v19006_v45  ;;  %v19088_v44 = vld [vmem:[%s27626_s0 + $0x3b4] ss:$400 sps:$4 sm:$0xff]   ;;  %v19093_v45 = vld [vmem:[%s27626_s0 + $0x90] ss:$400 sps:$4 sm:$0xff]  }
 0x14c   :  { %3782 = vmatprep.subr.bf16.mxu0 %v19011_v46  ;;  %3825 = vmatprep.subr.bf16.mxu1 %v19014_v48  ;;  %v19096_v46 = vld [vmem:[%s27626_s0 + $0x98] ss:$400 sps:$4 sm:$0xff]   ;;  %v2367_v48 = vld [vmem:[%s27626_s0 + $0x1cac] sm:$0x77] }
 0x14f   :  { %3783 = vmatpush1.bf16.msra.mxu0 %v19009_v49  ;;  %3826 = vmatpush1.bf16.msra.mxu1 %v19012_v50  ;;  %v21536_v49 = vpop.f32.mrf.mxu0  ;;  %v2368_v50 = vld [vmem:[%s27626_s0 + $0x1cb4] sm:$0x77] }
 0x150   :  { %3784 = vmatprep.subr.bf16.mxu0 %v19017_v51  ;;  %3827 = vmatprep.subr.bf16.mxu1 %v19020_v52  ;;  %v19091_v51 = vld [vmem:[%s27626_s0 + $0x8c] ss:$400 sps:$4 sm:$0xff]   ;;  %v19094_v52 = vld [vmem:[%s27626_s0 + $0x94] ss:$400 sps:$4 sm:$0xff]  }
 0x153   :  { %3785 = vmatpush1.bf16.msra.mxu0 %v19015_v53  ;;  %3828 = vmatpush1.bf16.msra.mxu1 %v19018_v54  ;;  %v16155_v53 = vcombine.low %v2367_v48, %v2367_v48  ;;  %v16157_v54 = vcombine.low %v2368_v50, %v2368_v50 }
 0x154   :  { %3786 = vmatprep.subr.bf16.mxu0 %v19023_v55  ;;  %3829 = vmatprep.subr.bf16.mxu1 %v19026_v56  ;;  %v21547_v55 = vpop.f32.mrf.mxu0  ;;  %v16156_v56 = vcombine.high %v2367_v48, %v2367_v48 }
 0x155   :  { %27644 = vst [vmem:[#allocation2_spill] sm:$0xff] %v21547_v55 }
 0x157   :  { %3787 = vmatpush1.bf16.msra.mxu0 %v19021_v57  ;;  %3830 = vmatpush1.bf16.msra.mxu1 %v19024_v58  ;;  %v16158_v57 = vcombine.high %v2368_v50, %v2368_v50  ;;  %v3603_v58 = vsel %vm1495_vm1, %v16155_v53, 0 }
 0x158   :  { %3788 = vmatprep.subr.bf16.mxu0 %v19029_v59  ;;  %3831 = vmatprep.subr.bf16.mxu1 %v19032_v60  ;;  %v3609_v59 = vsel %vm1495_vm1, %v16157_v54, 0  ;;  %v21551_v60 = vpop.f32.mrf.mxu0 }
 0x15a   :  { %v21567_v1 = vpop.f32.mrf.mxu0 }
 0x15b   :  { %3789 = vmatpush1.bf16.msra.mxu0 %v19027_v61  ;;  %3832 = vmatpush1.bf16.msra.mxu1 %v19030_v62  ;;  %v19103_v61 = vld [vmem:[%s27626_s0 + $0x1990] ss:$400 sps:$4 sm:$0xff]   ;;  %v19106_v62 = vld [vmem:[%s27626_s0 + $0x1998] ss:$400 sps:$4 sm:$0xff]   ;;  %27645 = vst [vmem:[#allocation3_spill] sm:$0xff] %v21567_v1 }
 0x15c   :  { %3790 = vmatprep.subr.bf16.mxu0 %v19035_v63  ;;  %3833 = vmatprep.subr.bf16.mxu1 %v19038_v0  ;;  %v19101_v63 = vld [vmem:[%s27626_s0 + $0x198c] ss:$400 sps:$4 sm:$0xff]   ;;  %v19104_v0 = vld [vmem:[%s27626_s0 + $0x1994] ss:$400 sps:$4 sm:$0xff]  }
 0x15f   :  { %3791 = vmatpush1.bf16.msra.mxu0 %v19033_v2  ;;  %3834 = vmatpush1.bf16.msra.mxu1 %v19036_v3  ;;  %v19112_v2 = vld [vmem:[%s27626_s0 + $0x1688] ss:$400 sps:$4 sm:$0xff]   ;;  %v21575_v3 = vpop.f32.mrf.mxu0 }
 0x160   :  { %16176 = vmatprep.subr.msk.bf16.mxu0 %vm1495_vm1, %v16152_v4  ;;  %16178 = vmatprep.subr.msk.bf16.mxu1 %vm1495_vm1, %v16154_v5  ;;  %v19107_v4 = vld [vmem:[%s27626_s0 + $0x167c] ss:$400 sps:$4 sm:$0xff]   ;;  %v19110_v5 = vld [vmem:[%s27626_s0 + $0x1684] ss:$400 sps:$4 sm:$0xff]  }
 0x163   :  { %3805 = vmatpush2.bf16.msra.mxu0 %v3591_v10  ;;  %3848 = vmatpush2.bf16.msra.mxu1 %v3597_v11  ;;  %v19113_v10 = vld [vmem:[%s27626_s0 + $0x135c] ss:$400 sps:$4 sm:$0xff]   ;;  %v19116_v11 = vld [vmem:[%s27626_s0 + $0x1364] ss:$400 sps:$4 sm:$0xff]  }
 0x164   :  { %3806 = vmatprep.subr.bf16.mxu0 %v19045_v9  ;;  %3849 = vmatprep.subr.bf16.mxu1 %v19048_v12  ;;  %v21591_v9 = vpop.f32.mrf.mxu0  ;;  %v19121_v12 = vld [vmem:[%s27626_s0 + $0x1040] ss:$400 sps:$4 sm:$0xff]  }
 0x167   :  { %3807 = vmatpush2.bf16.msra.mxu0 %v19043_v13  ;;  %3850 = vmatpush2.bf16.msra.mxu1 %v19046_v14  ;;  %v19124_v13 = vld [vmem:[%s27626_s0 + $0x1048] ss:$400 sps:$4 sm:$0xff]   ;;  %v21609_v14 = vpop.f32.mrf.mxu0 }
 0x168   :  { %3862 = vmatprep.subr.bf16.mxu0 %v19051_v15  ;;  %3905 = vmatprep.subr.bf16.mxu1 %v19054_v16  ;;  %v19119_v15 = vld [vmem:[%s27626_s0 + $0x103c] ss:$400 sps:$4 sm:$0xff]   ;;  %v19122_v16 = vld [vmem:[%s27626_s0 + $0x1044] ss:$400 sps:$4 sm:$0xff]  }
 0x16a   :  { %3809 = vmatmul.mubr.bf16.vlgmr.msra.gmra.mxu0 %v21459_v22  ;;  %3852 = vmatmul.mubr.bf16.vlgmr.msra.gmra.mxu1 %v21459_v22 }
 0x16b   :  { %3863 = vmatpush1.bf16.msra.mxu0 %v19049_v17  ;;  %3906 = vmatpush1.bf16.msra.mxu1 %v19052_v18  ;;  %v19127_v17 = vld [vmem:[%s27626_s0 + $0xd20] ss:$400 sps:$4 sm:$0xff]   ;;  %v21623_v18 = vpop.f32.mrf.mxu0 }
 0x16c   :  { %3864 = vmatprep.subr.bf16.mxu0 %v19057_v19  ;;  %3907 = vmatprep.subr.bf16.mxu1 %v19060_v20  ;;  %v19125_v19 = vld [vmem:[%s27626_s0 + $0xd1c] ss:$400 sps:$4 sm:$0xff]   ;;  %v19128_v20 = vld [vmem:[%s27626_s0 + $0xd24] ss:$400 sps:$4 sm:$0xff]  }
 0x16d   :  { %16181 = vmatprep.mubr.msk.bf16.mxu0 %vm1491_vm0, %v21338_v43  ;;  %16183 = vmatprep.mubr.msk.bf16.mxu1 %vm1491_vm0, %v21338_v43 }
 0x16f   :  { %3865 = vmatpush1.bf16.msra.mxu0 %v19055_v21  ;;  %3908 = vmatpush1.bf16.msra.mxu1 %v19058_v31  ;;  %v19133_v21 = vld [vmem:[%s27626_s0 + $0xa00] ss:$400 sps:$4 sm:$0xff]   ;;  %v19136_v31 = vld [vmem:[%s27626_s0 + $0xa08] ss:$400 sps:$4 sm:$0xff]  }
 0x170   :  { %3866 = vmatprep.subr.bf16.mxu0 %v19063_v23  ;;  %3909 = vmatprep.subr.bf16.mxu1 %v19066_v24  ;;  %v21637_v23 = vpop.f32.mrf.mxu0  ;;  %v19131_v24 = vld [vmem:[%s27626_s0 + $0x9fc] ss:$400 sps:$4 sm:$0xff]  }
 0x173   :  { %3867 = vmatpush1.bf16.msra.mxu0 %v19061_v25  ;;  %3910 = vmatpush1.bf16.msra.mxu1 %v19064_v26  ;;  %v19134_v25 = vld [vmem:[%s27626_s0 + $0xa04] ss:$400 sps:$4 sm:$0xff]   ;;  %v19139_v26 = vld [vmem:[%s27626_s0 + $0x6e0] ss:$400 sps:$4 sm:$0xff]  }
 0x174   :  { %3868 = vmatprep.subr.bf16.mxu0 %v19069_v27  ;;  %3911 = vmatprep.subr.bf16.mxu1 %v19072_v28  ;;  %v19142_v27 = vld [vmem:[%s27626_s0 + $0x6e8] ss:$400 sps:$4 sm:$0xff]   ;;  %v21651_v28 = vpop.f32.mrf.mxu0 }
 0x175   :  { %27646 = vst [vmem:[#allocation4_spill] sm:$0xff] %v21651_v28 }
 0x177   :  { %3869 = vmatpush1.bf16.msra.mxu0 %v19067_v29  ;;  %3912 = vmatpush1.bf16.msra.mxu1 %v19070_v30  ;;  %v19137_v29 = vld [vmem:[%s27626_s0 + $0x6dc] ss:$400 sps:$4 sm:$0xff]   ;;  %v19140_v30 = vld [vmem:[%s27626_s0 + $0x6e4] ss:$400 sps:$4 sm:$0xff]  }
 0x178   :  { %3870 = vmatprep.subr.bf16.mxu0 %v19075_v32  ;;  %3913 = vmatprep.subr.bf16.mxu1 %v19078_v33  ;;  %v19145_v32 = vld [vmem:[%s27626_s0 + $0x3c0] ss:$400 sps:$4 sm:$0xff]   ;;  %v19148_v33 = vld [vmem:[%s27626_s0 + $0x3c8] ss:$400 sps:$4 sm:$0xff]  }
 0x17b   :  { %3871 = vmatpush1.bf16.msra.mxu0 %v19073_v34  ;;  %3914 = vmatpush1.bf16.msra.mxu1 %v19076_v35  ;;  %v21665_v34 = vpop.f32.mrf.mxu0  ;;  %v19143_v35 = vld [vmem:[%s27626_s0 + $0x3bc] ss:$400 sps:$4 sm:$0xff]  }
 0x17c   :  { %3872 = vmatprep.subr.bf16.mxu0 %v19081_v36  ;;  %3915 = vmatprep.subr.bf16.mxu1 %v19084_v37  ;;  %v19146_v36 = vld [vmem:[%s27626_s0 + $0x3c4] ss:$400 sps:$4 sm:$0xff]   ;;  %v19151_v37 = vld [vmem:[%s27626_s0 + $0xa0] ss:$400 sps:$4 sm:$0xff]  }
 0x17f   :  { %3873 = vmatpush1.bf16.msra.mxu0 %v19079_v38  ;;  %3916 = vmatpush1.bf16.msra.mxu1 %v19082_v39  ;;  %v19154_v38 = vld [vmem:[%s27626_s0 + $0xa8] ss:$400 sps:$4 sm:$0xff]   ;;  %v2369_v39 = vld [vmem:[%s27626_s0 + $0x1cbc] sm:$0x77] }
 0x180   :  { %3874 = vmatprep.subr.bf16.mxu0 %v19087_v40  ;;  %3917 = vmatprep.subr.bf16.mxu1 %v19090_v42  ;;  %v2370_v40 = vld [vmem:[%s27626_s0 + $0x1cc4] sm:$0x77]  ;;  %v21685_v42 = vpop.f32.mrf.mxu0  ;;  %v16160_v48 = vcombine.high %v2369_v39, %v2369_v39 }
 0x181   :  { %27647 = vst [vmem:[#allocation5_spill] sm:$0xff] %v21685_v42  ;;  %v16162_v50 = vcombine.high %v2370_v40, %v2370_v40  ;;  %v19456_v42 = vld [vmem:[%s27626_s0 + $0xd7c] ss:$400 sps:$4 sm:$0xff]  }
 0x183   :  { %3875 = vmatpush1.bf16.msra.mxu0 %v19085_v41  ;;  %3918 = vmatpush1.bf16.msra.mxu1 %v19088_v44  ;;  %v19149_v41 = vld [vmem:[%s27626_s0 + $0x9c] ss:$400 sps:$4 sm:$0xff]   ;;  %v19152_v44 = vld [vmem:[%s27626_s0 + $0xa4] ss:$400 sps:$4 sm:$0xff]  }
 0x184   :  { %3876 = vmatprep.subr.bf16.mxu0 %v19093_v45  ;;  %3919 = vmatprep.subr.bf16.mxu1 %v19096_v46  ;;  %v21693_v45 = vpop.f32.mrf.mxu0  ;;  %v16159_v46 = vcombine.low %v2369_v39, %v2369_v39  ;;  %v19204_v39 = vld [vmem:[%s27626_s0 + $0x3d4] ss:$400 sps:$4 sm:$0xff]  }
 0x185   :  { %27648 = vst [vmem:[#allocation6_spill] sm:$0xff] %v21693_v45 }
 0x186   :  { %v3615_v53 = vsel %vm1495_vm1, %v16159_v46, 0  ;;  %v2371_v46 = vld [vmem:[%s27626_s0 + $0x1ccc] sm:$0x77] }
 0x187   :  { %3877 = vmatpush1.bf16.msra.mxu0 %v19091_v51  ;;  %3920 = vmatpush1.bf16.msra.mxu1 %v19094_v52  ;;  %v16161_v51 = vcombine.low %v2370_v40, %v2370_v40  ;;  %v21695_v52 = vpop.f32.mrf.mxu0  ;;  %v19209_v40 = vld [vmem:[%s27626_s0 + $0xb0] ss:$400 sps:$4 sm:$0xff]  }
 0x188   :  { %16180 = vmatprep.subr.msk.bf16.mxu0 %vm1495_vm1, %v16156_v56  ;;  %16182 = vmatprep.subr.msk.bf16.mxu1 %vm1495_vm1, %v16158_v57  ;;  %27649 = vst [vmem:[#allocation7_spill] sm:$0xff] %v21695_v52  ;;  %v19161_v56 = vld [vmem:[%s27626_s0 + $0x19a0] ss:$400 sps:$4 sm:$0xff]   ;;  %v19164_v57 = vld [vmem:[%s27626_s0 + $0x19a8] ss:$400 sps:$4 sm:$0xff]  }
 0x189   :  { %v3621_v54 = vsel %vm1495_vm1, %v16161_v51, 0  ;;  %v19210_v51 = vld [vmem:[%s27626_s0 + $0xb4] ss:$400 sps:$4 sm:$0xff]  }
 0x18b   :  { %3891 = vmatpush2.bf16.msra.mxu0 %v3603_v58  ;;  %3934 = vmatpush2.bf16.msra.mxu1 %v3609_v59  ;;  %v21707_v58 = vpop.f32.mrf.mxu0  ;;  %v19159_v59 = vld [vmem:[%s27626_s0 + $0x199c] ss:$400 sps:$4 sm:$0xff]  }
 0x18c   :  { %3892 = vmatprep.subr.bf16.mxu0 %v19103_v61  ;;  %3935 = vmatprep.subr.bf16.mxu1 %v19106_v62  ;;  %27650 = vst [vmem:[#allocation8_spill] sm:$0xff] %v21707_v58  ;;  %v19162_v61 = vld [vmem:[%s27626_s0 + $0x19a4] ss:$400 sps:$4 sm:$0xff]   ;;  %v19167_v62 = vld [vmem:[%s27626_s0 + $0x1690] ss:$400 sps:$4 sm:$0xff]  }
 0x18d   :  { %v8682_v58 = vld [vmem:[%s27629_s5 + $0x200] sm:$0xff] }
 0x18f   :  { %3893 = vmatpush2.bf16.msra.mxu0 %v19101_v63  ;;  %3936 = vmatpush2.bf16.msra.mxu1 %v19104_v0  ;;  %v19170_v63 = vld [vmem:[%s27626_s0 + $0x1698] ss:$400 sps:$4 sm:$0xff]   ;;  %v21721_v0 = vpop.f32.mrf.mxu0 }
 0x190   :  { %3948 = vmatprep.subr.bf16.mxu0 %v19109_v47  ;;  %3991 = vmatprep.subr.bf16.mxu1 %v19112_v2  ;;  %27651 = vst [vmem:[#allocation9_spill] sm:$0xff] %v21721_v0  ;;  %v19165_v47 = vld [vmem:[%s27626_s0 + $0x168c] ss:$400 sps:$4 sm:$0xff]   ;;  %v19168_v2 = vld [vmem:[%s27626_s0 + $0x1694] ss:$400 sps:$4 sm:$0xff]  }
 0x192   :  { %3895 = vmatmul.mubr.bf16.vlgmr.msra.gmra.mxu0 %v21459_v22  ;;  %3938 = vmatmul.mubr.bf16.vlgmr.msra.gmra.mxu1 %v21459_v22 }
 0x193   :  { %3949 = vmatpush1.bf16.msra.mxu0 %v19107_v4  ;;  %3992 = vmatpush1.bf16.msra.mxu1 %v19110_v5  ;;  %v19173_v4 = vld [vmem:[%s27626_s0 + $0x1370] ss:$400 sps:$4 sm:$0xff]   ;;  %v19176_v5 = vld [vmem:[%s27626_s0 + $0x1378] ss:$400 sps:$4 sm:$0xff]  }
 0x194   :  { %3950 = vmatprep.subr.bf16.mxu0 %v19115_v6  ;;  %3993 = vmatprep.subr.bf16.mxu1 %v19118_v8  ;;  %v21737_v6 = vpop.f32.mrf.mxu0  ;;  %v19171_v8 = vld [vmem:[%s27626_s0 + $0x136c] ss:$400 sps:$4 sm:$0xff]  }
 0x195   :  { %16185 = vmatprep.mubr.msk.bf16.mxu0 %vm1491_vm0, %v21338_v43  ;;  %16187 = vmatprep.mubr.msk.bf16.mxu1 %vm1491_vm0, %v21338_v43  ;;  %v19130_v43 = vld [vmem:[%s27626_s0 + $0xd28] ss:$400 sps:$4 sm:$0xff]   ;;  %27652 = vst [vmem:[#allocation10_spill] sm:$0xff] %v21737_v6  ;;  %v8720_v6 = vld [vmem:[%s27629_s5 + $0x330] sm:$0xff] }
 0x197   :  { %3951 = vmatpush1.bf16.msra.mxu0 %v19113_v10  ;;  %3994 = vmatpush1.bf16.msra.mxu1 %v19116_v11  ;;  %v19174_v10 = vld [vmem:[%s27626_s0 + $0x1374] ss:$400 sps:$4 sm:$0xff]   ;;  %v19179_v11 = vld [vmem:[%s27626_s0 + $0x1050] ss:$400 sps:$4 sm:$0xff]  }
 0x198   :  { %3952 = vmatprep.subr.bf16.mxu0 %v19121_v12  ;;  %3995 = vmatprep.subr.bf16.mxu1 %v19124_v13  ;;  %v21754_v12 = vld [vmem:[%s27627_s1 + $0x4] ss:$8 sps:$4 sm:$0xff]   ;;  %v21760_v13 = vpop.f32.mrf.mxu0 }
 0x199   :  { %27653 = vst [vmem:[#allocation11_spill] sm:$0xff] %v21760_v13  ;;  %v19466_v13 = vld [vmem:[%s27626_s0 + $0x738] ss:$400 sps:$4 sm:$0xff]  }
 0x19b   :  { %3953 = vmatpush1.bf16.msra.mxu0 %v19119_v15  ;;  %3996 = vmatpush1.bf16.msra.mxu1 %v19122_v16  ;;  %v19177_v15 = vld [vmem:[%s27626_s0 + $0x104c] ss:$400 sps:$4 sm:$0xff]   ;;  %v19180_v16 = vld [vmem:[%s27626_s0 + $0x1054] ss:$400 sps:$4 sm:$0xff]  }
 0x19c   :  { %3954 = vmatprep.subr.bf16.mxu0 %v19127_v17  ;;  %3997 = vmatprep.subr.bf16.mxu1 %v19130_v43  ;;  %v19185_v17 = vld [vmem:[%s27626_s0 + $0xd30] ss:$400 sps:$4 sm:$0xff]   ;;  %v19188_v43 = vld [vmem:[%s27626_s0 + $0xd38] ss:$400 sps:$4 sm:$0xff]  }
 0x19f   :  { %3955 = vmatpush1.bf16.msra.mxu0 %v19125_v19  ;;  %3998 = vmatpush1.bf16.msra.mxu1 %v19128_v20  ;;  %v21774_v19 = vpop.f32.mrf.mxu0  ;;  %v19183_v20 = vld [vmem:[%s27626_s0 + $0xd2c] ss:$400 sps:$4 sm:$0xff]  }
 0x1a0   :  { %3956 = vmatprep.subr.bf16.mxu0 %v19133_v21  ;;  %3999 = vmatprep.subr.bf16.mxu1 %v19136_v31  ;;  %27654 = vst [vmem:[#allocation12_spill] sm:$0xff] %v21774_v19  ;;  %v19186_v21 = vld [vmem:[%s27626_s0 + $0xd34] ss:$400 sps:$4 sm:$0xff]   ;;  %v19191_v31 = vld [vmem:[%s27626_s0 + $0xa10] ss:$400 sps:$4 sm:$0xff]  }
 0x1a3   :  { %3957 = vmatpush1.bf16.msra.mxu0 %v19131_v24  ;;  %4000 = vmatpush1.bf16.msra.mxu1 %v19134_v25  ;;  %v19194_v24 = vld [vmem:[%s27626_s0 + $0xa18] ss:$400 sps:$4 sm:$0xff]   ;;  %v21788_v25 = vpop.f32.mrf.mxu0 }
 0x1a4   :  { %3958 = vmatprep.subr.bf16.mxu0 %v19139_v26  ;;  %4001 = vmatprep.subr.bf16.mxu1 %v19142_v27  ;;  %27655 = vst [vmem:[#allocation13_spill] sm:$0xff] %v21788_v25  ;;  %v19189_v26 = vld [vmem:[%s27626_s0 + $0xa0c] ss:$400 sps:$4 sm:$0xff]   ;;  %v19192_v27 = vld [vmem:[%s27626_s0 + $0xa14] ss:$400 sps:$4 sm:$0xff]  }
 0x1a7   :  { %3959 = vmatpush1.bf16.msra.mxu0 %v19137_v29  ;;  %4002 = vmatpush1.bf16.msra.mxu1 %v19140_v30  ;;  %v19197_v29 = vld [vmem:[%s27626_s0 + $0x6f0] ss:$400 sps:$4 sm:$0xff]   ;;  %v19200_v30 = vld [vmem:[%s27626_s0 + $0x6f8] ss:$400 sps:$4 sm:$0xff]  }
 0x1a8   :  { %3960 = vmatprep.subr.bf16.mxu0 %v19145_v32  ;;  %4003 = vmatprep.subr.bf16.mxu1 %v19148_v33  ;;  %v19195_v33 = vld [vmem:[%s27626_s0 + $0x6ec] ss:$400 sps:$4 sm:$0xff]  }
 0x1ab   :  { %3961 = vmatpush1.bf16.msra.mxu0 %v19143_v35  ;;  %4004 = vmatpush1.bf16.msra.mxu1 %v19146_v36  ;;  %v19198_v35 = vld [vmem:[%s27626_s0 + $0x6f4] ss:$400 sps:$4 sm:$0xff]   ;;  %v19203_v36 = vld [vmem:[%s27626_s0 + $0x3d0] ss:$400 sps:$4 sm:$0xff]  }
 0x1ac   :  { %3962 = vmatprep.subr.bf16.mxu0 %v19151_v37  ;;  %4005 = vmatprep.subr.bf16.mxu1 %v19154_v38  ;;  %v19206_v37 = vld [vmem:[%s27626_s0 + $0x3d8] ss:$400 sps:$4 sm:$0xff]   ;;  %v19201_v38 = vld [vmem:[%s27626_s0 + $0x3cc] ss:$400 sps:$4 sm:$0xff]  }
 0x1af   :  { %3963 = vmatpush1.bf16.msra.mxu0 %v19149_v41  ;;  %4006 = vmatpush1.bf16.msra.mxu1 %v19152_v44  ;;  %v19212_v41 = vld [vmem:[%s27626_s0 + $0xb8] ss:$400 sps:$4 sm:$0xff]  }
 0x1b0   :  { %16184 = vmatprep.subr.msk.bf16.mxu0 %vm1495_vm1, %v16160_v48  ;;  %16186 = vmatprep.subr.msk.bf16.mxu1 %vm1495_vm1, %v16162_v50  ;;  %v2372_v48 = vld [vmem:[%s27626_s0 + $0x1cd4] sm:$0x77]  ;;  %v19207_v50 = vld [vmem:[%s27626_s0 + $0xac] ss:$400 sps:$4 sm:$0xff]  }
 0x1b2   :  { %v21802_v32 = vpop.f32.mrf.mxu0 }
 0x1b3   :  { %3977 = vmatpush2.bf16.msra.mxu0 %v3615_v53  ;;  %4020 = vmatpush2.bf16.msra.mxu1 %v3621_v54  ;;  %27656 = vst [vmem:[#allocation14_spill] sm:$0xff] %v21802_v32  ;;  %v16163_v54 = vcombine.low %v2371_v46, %v2371_v46  ;;  %v19725_v32 = vld [vmem:[%s27626_s0 + $0xdc4] ss:$400 sps:$4 sm:$0xff]  }
 0x1b4   :  { %3978 = vmatprep.subr.bf16.mxu0 %v19161_v56  ;;  %4021 = vmatprep.subr.bf16.mxu1 %v19164_v57  ;;  %v21828_v44 = vpop.f32.mrf.mxu0  ;;  %v16164_v56 = vcombine.high %v2371_v46, %v2371_v46  ;;  %v16166_v57 = vcombine.high %v2372_v48, %v2372_v48  ;;  %v19247_v46 = vld [vmem:[%s27626_s0 + $0x3dc] ss:$400 sps:$4 sm:$0xff]  }
 0x1b5   :  { %27657 = vst [vmem:[#allocation15_spill] sm:$0xff] %v21828_v44 }
 0x1b6   :  { %v21842_v53 = vpop.f32.mrf.mxu0 }
 0x1b7   :  { %3979 = vmatpush2.bf16.msra.mxu0 %v19159_v59  ;;  %4022 = vmatpush2.bf16.msra.mxu1 %v19162_v61  ;;  %27658 = vst [vmem:[#allocation16_spill] sm:$0xff] %v21842_v53  ;;  %v16165_v59 = vcombine.low %v2372_v48, %v2372_v48  ;;  %v19250_v48 = vld [vmem:[%s27626_s0 + $0x3e4] ss:$400 sps:$4 sm:$0xff]  }
 0x1b8   :  { %4034 = vmatprep.subr.bf16.mxu0 %v19167_v62  ;;  %4077 = vmatprep.subr.bf16.mxu1 %v19170_v63  ;;  %v21844_v61 = vpop.f32.mrf.mxu0  ;;  %v3627_v62 = vsel %vm1495_vm1, %v16163_v54, 0  ;;  %v19251_v54 = vld [vmem:[%s27626_s0 + $0xbc] ss:$400 sps:$4 sm:$0xff]  }
 0x1b9   :  { %27659 = vst [vmem:[#allocation17_spill] sm:$0xff] %v21844_v61  ;;  %v3633_v63 = vsel %vm1495_vm1, %v16165_v59, 0  ;;  %v19524_v61 = vld [vmem:[%s27626_s0 + $0x748] ss:$400 sps:$4 sm:$0xff]  }
 0x1ba   :  { %3981 = vmatmul.mubr.bf16.vlgmr.msra.gmra.mxu0 %v21459_v22  ;;  %4024 = vmatmul.mubr.bf16.vlgmr.msra.gmra.mxu1 %v21459_v22  ;;  %v19182_v22 = vld [vmem:[%s27626_s0 + $0x1058] ss:$400 sps:$4 sm:$0xff]  }
 0x1bb   :  { %4035 = vmatpush1.bf16.msra.mxu0 %v19165_v47  ;;  %4078 = vmatpush1.bf16.msra.mxu1 %v19168_v2  ;;  %v19219_v47 = vld [vmem:[%s27626_s0 + $0x19b0] ss:$400 sps:$4 sm:$0xff]   ;;  %v19222_v2 = vld [vmem:[%s27626_s0 + $0x19b8] ss:$400 sps:$4 sm:$0xff]  }
 0x1bc   :  { %4036 = vmatprep.subr.bf16.mxu0 %v19173_v4  ;;  %4079 = vmatprep.subr.bf16.mxu1 %v19176_v5  ;;  %v19217_v5 = vld [vmem:[%s27626_s0 + $0x19ac] ss:$400 sps:$4 sm:$0xff]  }
 0x1bd   :  { %16189 = vmatprep.mubr.msk.bf16.mxu0 %vm1491_vm0, %v21754_v12  ;;  %16191 = vmatprep.mubr.msk.bf16.mxu1 %vm1491_vm0, %v21754_v12 }
 0x1bf   :  { %4037 = vmatpush1.bf16.msra.mxu0 %v19171_v8  ;;  %4080 = vmatpush1.bf16.msra.mxu1 %v19174_v10  ;;  %v19220_v8 = vld [vmem:[%s27626_s0 + $0x19b4] ss:$400 sps:$4 sm:$0xff]   ;;  %v19225_v10 = vld [vmem:[%s27626_s0 + $0x16a0] ss:$400 sps:$4 sm:$0xff]  }
 0x1c0   :  { %4038 = vmatprep.subr.bf16.mxu0 %v19179_v11  ;;  %4081 = vmatprep.subr.bf16.mxu1 %v19182_v22 }
 0x1c3   :  { %4039 = vmatpush1.bf16.msra.mxu0 %v19177_v15  ;;  %4082 = vmatpush1.bf16.msra.mxu1 %v19180_v16  ;;  %v19223_v15 = vld [vmem:[%s27626_s0 + $0x169c] ss:$400 sps:$4 sm:$0xff]   ;;  %v19226_v16 = vld [vmem:[%s27626_s0 + $0x16a4] ss:$400 sps:$4 sm:$0xff]  }
 0x1c4   :  { %4040 = vmatprep.subr.bf16.mxu0 %v19185_v17  ;;  %4083 = vmatprep.subr.bf16.mxu1 %v19188_v43  ;;  %v19229_v17 = vld [vmem:[%s27626_s0 + $0x1380] ss:$400 sps:$4 sm:$0xff]  }
 0x1c7   :  { %4041 = vmatpush1.bf16.msra.mxu0 %v19183_v20  ;;  %4084 = vmatpush1.bf16.msra.mxu1 %v19186_v21  ;;  %v21882_v20 = vld [vmem:[%s27627_s1] ss:$8 sps:$4 sm:$0xff]   ;;  %v19227_v21 = vld [vmem:[%s27626_s0 + $0x137c] ss:$400 sps:$4 sm:$0xff]  }
 0x1c8   :  { %4042 = vmatprep.subr.bf16.mxu0 %v19191_v31  ;;  %4085 = vmatprep.subr.bf16.mxu1 %v19194_v24  ;;  %v19230_v31 = vld [vmem:[%s27626_s0 + $0x1384] ss:$400 sps:$4 sm:$0xff]   ;;  %v19233_v24 = vld [vmem:[%s27626_s0 + $0x1060] ss:$400 sps:$4 sm:$0xff]  }
 0x1cb   :  { %4043 = vmatpush1.bf16.msra.mxu0 %v19189_v26  ;;  %4086 = vmatpush1.bf16.msra.mxu1 %v19192_v27  ;;  %v19231_v26 = vld [vmem:[%s27626_s0 + $0x105c] ss:$400 sps:$4 sm:$0xff]   ;;  %v19234_v27 = vld [vmem:[%s27626_s0 + $0x1064] ss:$400 sps:$4 sm:$0xff]  }
 0x1cc   :  { %4044 = vmatprep.subr.bf16.mxu0 %v19197_v29  ;;  %4087 = vmatprep.subr.bf16.mxu1 %v19200_v30  ;;  %v19237_v29 = vld [vmem:[%s27626_s0 + $0xd40] ss:$400 sps:$4 sm:$0xff]   ;;  %v19235_v30 = vld [vmem:[%s27626_s0 + $0xd3c] ss:$400 sps:$4 sm:$0xff]  }
 0x1cf   :  { %4045 = vmatpush1.bf16.msra.mxu0 %v19195_v33  ;;  %4088 = vmatpush1.bf16.msra.mxu1 %v19198_v35  ;;  %v19238_v33 = vld [vmem:[%s27626_s0 + $0xd44] ss:$400 sps:$4 sm:$0xff]   ;;  %v19241_v35 = vld [vmem:[%s27626_s0 + $0xa20] ss:$400 sps:$4 sm:$0xff]  }
 0x1d0   :  { %4046 = vmatprep.subr.bf16.mxu0 %v19203_v36  ;;  %4089 = vmatprep.subr.bf16.mxu1 %v19206_v37  ;;  %v19239_v36 = vld [vmem:[%s27626_s0 + $0xa1c] ss:$400 sps:$4 sm:$0xff]   ;;  %v19242_v37 = vld [vmem:[%s27626_s0 + $0xa24] ss:$400 sps:$4 sm:$0xff]  }
 0x1d3   :  { %4047 = vmatpush1.bf16.msra.mxu0 %v19201_v38  ;;  %4090 = vmatpush1.bf16.msra.mxu1 %v19204_v39  ;;  %v19245_v38 = vld [vmem:[%s27626_s0 + $0x700] ss:$400 sps:$4 sm:$0xff]   ;;  %v19243_v39 = vld [vmem:[%s27626_s0 + $0x6fc] ss:$400 sps:$4 sm:$0xff]  }
 0x1d4   :  { %4048 = vmatprep.subr.bf16.mxu0 %v19209_v40  ;;  %4091 = vmatprep.subr.bf16.mxu1 %v19212_v41  ;;  %v19246_v40 = vld [vmem:[%s27626_s0 + $0x704] ss:$400 sps:$4 sm:$0xff]   ;;  %v19249_v41 = vld [vmem:[%s27626_s0 + $0x3e0] ss:$400 sps:$4 sm:$0xff]  }
 0x1d7   :  { %4049 = vmatpush1.bf16.msra.mxu0 %v19207_v50  ;;  %4092 = vmatpush1.bf16.msra.mxu1 %v19210_v51  ;;  %v19253_v50 = vld [vmem:[%s27626_s0 + $0xc0] ss:$400 sps:$4 sm:$0xff]  }
 0x1d8   :  { %16188 = vmatprep.subr.msk.bf16.mxu0 %vm1495_vm1, %v16164_v56  ;;  %16190 = vmatprep.subr.msk.bf16.mxu1 %vm1495_vm1, %v16166_v57  ;;  %v2373_v51 = vld [vmem:[%s27626_s0 + $0x1cdc] sm:$0x77]  ;;  %v19254_v56 = vld [vmem:[%s27626_s0 + $0xc4] ss:$400 sps:$4 sm:$0xff]  }
 0x1d9   :  { %v16168_v57 = vcombine.high %v2373_v51, %v2373_v51  ;;  %v16167_v59 = vcombine.low %v2373_v51, %v2373_v51  ;;  %v19300_v51 = vld [vmem:[%s27626_s0 + $0x3ec] ss:$400 sps:$4 sm:$0xff]  }
 0x1da   :  { %v21856_v4 = vpop.f32.mrf.mxu0 }
 0x1db   :  { %27660 = vst [vmem:[#allocation18_spill] sm:$0xff] %v21856_v4  ;;  %4063 = vmatpush2.bf16.msra.mxu0 %v3627_v62  ;;  %4106 = vmatpush2.bf16.msra.mxu1 %v3633_v63  ;;  %v19257_v62 = vld [vmem:[%s27626_s0 + $0x1ce4] ss:$0 sps:$4 sm:$0x77]   ;;  %v3639_v63 = vsel %vm1495_vm1, %v16167_v59, 0 }
 0x1dc   :  { %4064 = vmatprep.subr.bf16.mxu0 %v19219_v47  ;;  %4107 = vmatprep.subr.bf16.mxu1 %v19222_v2  ;;  %v2123_v11 = vpop.f32.mrf.mxu0  ;;  %v3645_v47 = vsel %vm1495_vm1, %v19257_v62, 0  ;;  %v19260_v2 = vld [vmem:[%s27626_s0 + $0x19c0] ss:$400 sps:$4 sm:$0xff]   ;;  %v19306_v59 = vld [vmem:[%s27626_s0 + $0xcc] ss:$400 sps:$4 sm:$0xff]  }
 0x1dd   :  { %v19267_v11 = vld [vmem:[%s27626_s0 + $0x16b4] ss:$400 sps:$4 sm:$0xff]   ;;  %v19512_v4 = vld [vmem:[%s27626_s0 + $0xd88] ss:$400 sps:$4 sm:$0xff]  }
 0x1de   :  { %v21867_v22 = vpop.f32.mrf.mxu0  ;;  %v19309_v62 = vld [vmem:[%s27626_s0 + $0xd4] ss:$400 sps:$4 sm:$0xff]  }
 0x1df   :  { %27661 = vst [vmem:[#allocation19_spill] sm:$0xff] %v21867_v22  ;;  %4065 = vmatpush2.bf16.msra.mxu0 %v19217_v5  ;;  %4108 = vmatpush2.bf16.msra.mxu1 %v19220_v8  ;;  %v19258_v5 = vld [vmem:[%s27626_s0 + $0x19bc] ss:$400 sps:$4 sm:$0xff]   ;;  %v19261_v8 = vld [vmem:[%s27626_s0 + $0x19c4] ss:$400 sps:$4 sm:$0xff]  }
 0x1e0   :  { %4120 = vmatprep.subr.bf16.mxu0 %v19225_v10  ;;  %4163 = vmatprep.subr.bf16.mxu1 %v27637_v7  ;;  %v2126_v43 = vpop.f32.mrf.mxu0  ;;  %v19264_v10 = vld [vmem:[%s27626_s0 + $0x16ac] ss:$400 sps:$4 sm:$0xff]  }
 0x1e1   :  { %v19273_v43 = vld [vmem:[%s27626_s0 + $0x1394] ss:$400 sps:$4 sm:$0xff]  }
 0x1e2   :  { %4067 = vmatmul.mubr.bf16.vlgmr.msra.gmra.mxu0 %v21882_v20  ;;  %4110 = vmatmul.mubr.bf16.vlgmr.msra.gmra.mxu1 %v21882_v20 }
 0x1e3   :  { %4121 = vmatpush1.bf16.msra.mxu0 %v19223_v15  ;;  %4164 = vmatpush1.bf16.msra.mxu1 %v19226_v16  ;;  %v19262_v15 = vld [vmem:[%s27626_s0 + $0x16a8] ss:$400 sps:$4 sm:$0xff]   ;;  %v19265_v16 = vld [vmem:[%s27626_s0 + $0x16b0] ss:$400 sps:$4 sm:$0xff]  }
 0x1e4   :  { %4122 = vmatprep.subr.bf16.mxu0 %v19229_v17  ;;  %4165 = vmatprep.subr.bf16.mxu1 %v27637_v7  ;;  %v19270_v17 = vld [vmem:[%s27626_s0 + $0x138c] ss:$400 sps:$4 sm:$0xff]  }
 0x1e5   :  { %16193 = vmatprep.mubr.msk.bf16.mxu0 %vm1491_vm0, %v21754_v12  ;;  %16194 = vmatprep.mubr.msk.bf16.mxu1 %vm1491_vm0, %v21754_v12 }
 0x1e7   :  { %4123 = vmatpush1.bf16.msra.mxu0 %v19227_v21  ;;  %4166 = vmatpush1.bf16.msra.mxu1 %v19230_v31  ;;  %v19268_v21 = vld [vmem:[%s27626_s0 + $0x1388] ss:$400 sps:$4 sm:$0xff]   ;;  %v19271_v31 = vld [vmem:[%s27626_s0 + $0x1390] ss:$400 sps:$4 sm:$0xff]  }
 0x1e8   :  { %4124 = vmatprep.subr.bf16.mxu0 %v19233_v24  ;;  %4167 = vmatprep.subr.bf16.mxu1 %v27637_v7  ;;  %v19276_v24 = vld [vmem:[%s27626_s0 + $0x106c] ss:$400 sps:$4 sm:$0xff]  }
 0x1eb   :  { %4125 = vmatpush1.bf16.msra.mxu0 %v19231_v26  ;;  %4168 = vmatpush1.bf16.msra.mxu1 %v19234_v27  ;;  %v19279_v26 = vld [vmem:[%s27626_s0 + $0x1074] ss:$400 sps:$4 sm:$0xff]   ;;  %v19274_v27 = vld [vmem:[%s27626_s0 + $0x1068] ss:$400 sps:$4 sm:$0xff]  }
 0x1ec   :  { %4126 = vmatprep.subr.bf16.mxu0 %v19237_v29  ;;  %4169 = vmatprep.subr.bf16.mxu1 %v27637_v7  ;;  %v19277_v29 = vld [vmem:[%s27626_s0 + $0x1070] ss:$400 sps:$4 sm:$0xff]  }
 0x1ef   :  { %4127 = vmatpush1.bf16.msra.mxu0 %v19235_v30  ;;  %4170 = vmatpush1.bf16.msra.mxu1 %v19238_v33  ;;  %v19282_v30 = vld [vmem:[%s27626_s0 + $0xd4c] ss:$400 sps:$4 sm:$0xff]   ;;  %v19285_v33 = vld [vmem:[%s27626_s0 + $0xd54] ss:$400 sps:$4 sm:$0xff]  }
 0x1f0   :  { %4128 = vmatprep.subr.bf16.mxu0 %v19241_v35  ;;  %4171 = vmatprep.subr.bf16.mxu1 %v27637_v7  ;;  %v19280_v35 = vld [vmem:[%s27626_s0 + $0xd48] ss:$400 sps:$4 sm:$0xff]  }
 0x1f3   :  { %4129 = vmatpush1.bf16.msra.mxu0 %v19239_v36  ;;  %4172 = vmatpush1.bf16.msra.mxu1 %v19242_v37  ;;  %v19283_v36 = vld [vmem:[%s27626_s0 + $0xd50] ss:$400 sps:$4 sm:$0xff]   ;;  %v19288_v37 = vld [vmem:[%s27626_s0 + $0xa2c] ss:$400 sps:$4 sm:$0xff]  }
 0x1f4   :  { %4130 = vmatprep.subr.bf16.mxu0 %v19245_v38  ;;  %4173 = vmatprep.subr.bf16.mxu1 %v27637_v7  ;;  %v19291_v38 = vld [vmem:[%s27626_s0 + $0xa34] ss:$400 sps:$4 sm:$0xff]  }
 0x1f7   :  { %4131 = vmatpush1.bf16.msra.mxu0 %v19243_v39  ;;  %4174 = vmatpush1.bf16.msra.mxu1 %v19246_v40  ;;  %v19286_v39 = vld [vmem:[%s27626_s0 + $0xa28] ss:$400 sps:$4 sm:$0xff]   ;;  %v19289_v40 = vld [vmem:[%s27626_s0 + $0xa30] ss:$400 sps:$4 sm:$0xff]  }
 0x1f8   :  { %4132 = vmatprep.subr.bf16.mxu0 %v19249_v41  ;;  %4175 = vmatprep.subr.bf16.mxu1 %v27637_v7  ;;  %v19294_v41 = vld [vmem:[%s27626_s0 + $0x70c] ss:$400 sps:$4 sm:$0xff]  }
 0x1fb   :  { %4133 = vmatpush1.bf16.msra.mxu0 %v19247_v46  ;;  %4176 = vmatpush1.bf16.msra.mxu1 %v19250_v48  ;;  %v19297_v46 = vld [vmem:[%s27626_s0 + $0x714] ss:$400 sps:$4 sm:$0xff]   ;;  %v19292_v48 = vld [vmem:[%s27626_s0 + $0x708] ss:$400 sps:$4 sm:$0xff]  }
 0x1fc   :  { %4134 = vmatprep.subr.bf16.mxu0 %v19253_v50  ;;  %4177 = vmatprep.subr.bf16.mxu1 %v27637_v7  ;;  %v19295_v50 = vld [vmem:[%s27626_s0 + $0x710] ss:$400 sps:$4 sm:$0xff]  }
 0x1ff   :  { %4135 = vmatpush1.bf16.msra.mxu0 %v19251_v54  ;;  %4178 = vmatpush1.bf16.msra.mxu1 %v19254_v56  ;;  %v19303_v54 = vld [vmem:[%s27626_s0 + $0x3f4] ss:$400 sps:$4 sm:$0xff]   ;;  %v19298_v56 = vld [vmem:[%s27626_s0 + $0x3e8] ss:$400 sps:$4 sm:$0xff]  }
 0x200   :  { %16192 = vmatprep.subr.msk.bf16.mxu0 %vm1495_vm1, %v16168_v57  ;;  %4191 = vmatprep.subr.bf16.mxu1 %v27637_v7  ;;  %v19301_v57 = vld [vmem:[%s27626_s0 + $0x3f0] ss:$400 sps:$4 sm:$0xff]  }
 0x203   :  { %4149 = vmatpush2.bf16.msra.mxu0 %v3639_v63  ;;  %4192 = vmatpush2.bf16.msra.mxu1 %v3645_v47  ;;  %v4438_v63 = vld [vmem:[%s27626_s0 + $0x1ce8] sm:$0x77]  ;;  %v4439_v47 = vld [vmem:[%s27626_s0 + $0x1cf0] sm:$0x77] }
 0x204   :  { %4150 = vmatprep.subr.bf16.mxu0 %v19260_v2  ;;  %4193 = vmatprep.subr.bf16.mxu1 %v27637_v7  ;;  %v22079_v2 = vpop.f32.mrf.mxu1 }
 0x207   :  { %4151 = vmatpush2.bf16.msra.mxu0 %v19258_v5  ;;  %4194 = vmatpush2.bf16.msra.mxu1 %v19261_v8  ;;  %v19304_v5 = vld [vmem:[%s27626_s0 + $0xc8] ss:$400 sps:$4 sm:$0xff]   ;;  %v19307_v8 = vld [vmem:[%s27626_s0 + $0xd0] ss:$400 sps:$4 sm:$0xff]  }
 0x208   :  { %5723 = vmatprep.subr.bf16.mxu0 %v19264_v10  ;;  %5766 = vmatprep.subr.bf16.mxu1 %v19267_v11  ;;  %v16421_v10 = vcombine.high %v4438_v63, %v4438_v63  ;;  %v16423_v11 = vcombine.high %v4439_v47, %v4439_v47 }
 0x20a   :  { %4153 = vmatmul.mubr.bf16.vlgmr.msra.gmra.mxu0 %v21882_v20  ;;  %4196 = vmatmul.mubr.bf16.vlgmr.msra.gmra.mxu1 %v21882_v20 }
 0x20b   :  { %5724 = vmatpush1.bf16.msra.mxu0 %v19262_v15  ;;  %5767 = vmatpush1.bf16.msra.mxu1 %v19265_v16  ;;  %v16420_v15 = vcombine.low %v4438_v63, %v4438_v63  ;;  %v16422_v16 = vcombine.low %v4439_v47, %v4439_v47  ;;  %v19338_v63 = vld [vmem:[%s27626_s0 + $0xd58] ss:$400 sps:$4 sm:$0xff]   ;;  %v19341_v47 = vld [vmem:[%s27626_s0 + $0xd60] ss:$400 sps:$4 sm:$0xff]  }
 0x20c   :  { %5725 = vmatprep.subr.bf16.mxu0 %v19270_v17  ;;  %5768 = vmatprep.subr.bf16.mxu1 %v19273_v43  ;;  %v22087_v17 = vpop.f32.mrf.mxu1 }
 0x20d   :  { %16448 = vmatprep.mubr.msk.bf16.mxu1 %vm1491_vm0, %v21754_v12  ;;  %16446 = vmatprep.mubr.msk.bf16.mxu0 %vm1491_vm0, %v21754_v12  ;;  %27662 = vst [vmem:[#allocation20_spill] sm:$0xff] %v22087_v17  ;;  %v5649_v43 = vsel %vm1495_vm1, %v16420_v15, 0  ;;  %v19344_v15 = vld [vmem:[%s27626_s0 + $0xa38] ss:$400 sps:$4 sm:$0xff]   ;;  %v19865_v17 = vld [vmem:[%s27626_s0 + $0x164] ss:$400 sps:$4 sm:$0xff]  }
 0x20f   :  { %5726 = vmatpush1.bf16.msra.mxu0 %v19268_v21  ;;  %5769 = vmatpush1.bf16.msra.mxu1 %v19271_v31  ;;  %v5655_v21 = vsel %vm1495_vm1, %v16422_v16, 0  ;;  %v19316_v31 = vld [vmem:[%s27626_s0 + $0x19cc] ss:$400 sps:$4 sm:$0xff]   ;;  %v19347_v16 = vld [vmem:[%s27626_s0 + $0xa40] ss:$400 sps:$4 sm:$0xff]  }
 0x210   :  { %5727 = vmatprep.subr.bf16.mxu0 %v19276_v24  ;;  %5770 = vmatprep.subr.bf16.mxu1 %v19279_v26  ;;  %v19319_v24 = vld [vmem:[%s27626_s0 + $0x19d4] ss:$400 sps:$4 sm:$0xff]   ;;  %v22099_v26 = vpop.f32.mrf.mxu1 }
 0x213   :  { %5728 = vmatpush1.bf16.msra.mxu0 %v19274_v27  ;;  %5771 = vmatpush1.bf16.msra.mxu1 %v19277_v29  ;;  %v19314_v27 = vld [vmem:[%s27626_s0 + $0x19c8] ss:$400 sps:$4 sm:$0xff]   ;;  %v19317_v29 = vld [vmem:[%s27626_s0 + $0x19d0] ss:$400 sps:$4 sm:$0xff]  }
 0x214   :  { %5729 = vmatprep.subr.bf16.mxu0 %v19282_v30  ;;  %5772 = vmatprep.subr.bf16.mxu1 %v19285_v33  ;;  %v19322_v30 = vld [vmem:[%s27626_s0 + $0x16bc] ss:$400 sps:$4 sm:$0xff]   ;;  %v19325_v33 = vld [vmem:[%s27626_s0 + $0x16c4] ss:$400 sps:$4 sm:$0xff]  }
 0x217   :  { %5730 = vmatpush1.bf16.msra.mxu0 %v19280_v35  ;;  %5773 = vmatpush1.bf16.msra.mxu1 %v19283_v36  ;;  %v22113_v35 = vpop.f32.mrf.mxu1  ;;  %v19320_v36 = vld [vmem:[%s27626_s0 + $0x16b8] ss:$400 sps:$4 sm:$0xff]  }
 0x218   :  { %5731 = vmatprep.subr.bf16.mxu0 %v19288_v37  ;;  %5774 = vmatprep.subr.bf16.mxu1 %v19291_v38  ;;  %27663 = vst [vmem:[#allocation21_spill] sm:$0xff] %v22113_v35  ;;  %v19323_v37 = vld [vmem:[%s27626_s0 + $0x16c0] ss:$400 sps:$4 sm:$0xff]  }
 0x219   :  { %v22121_v38 = vpop.f32.mrf.mxu1  ;;  %v14540_v35 = vld [vmem:[%s27630_s7 + $0x10] sm:$0xff] }
 0x21b   :  { %5732 = vmatpush1.bf16.msra.mxu0 %v19286_v39  ;;  %5775 = vmatpush1.bf16.msra.mxu1 %v19289_v40  ;;  %v19328_v39 = vld [vmem:[%s27626_s0 + $0x139c] ss:$400 sps:$4 sm:$0xff]   ;;  %v19331_v40 = vld [vmem:[%s27626_s0 + $0x13a4] ss:$400 sps:$4 sm:$0xff]  }
 0x21c   :  { %5733 = vmatprep.subr.bf16.mxu0 %v19294_v41  ;;  %5776 = vmatprep.subr.bf16.mxu1 %v19297_v46  ;;  %v19326_v41 = vld [vmem:[%s27626_s0 + $0x1398] ss:$400 sps:$4 sm:$0xff]   ;;  %v19329_v46 = vld [vmem:[%s27626_s0 + $0x13a0] ss:$400 sps:$4 sm:$0xff]  }
 0x21f   :  { %5734 = vmatpush1.bf16.msra.mxu0 %v19292_v48  ;;  %5777 = vmatpush1.bf16.msra.mxu1 %v19295_v50  ;;  %v22137_v48 = vpop.f32.mrf.mxu1  ;;  %v19334_v50 = vld [vmem:[%s27626_s0 + $0x107c] ss:$400 sps:$4 sm:$0xff]  }
 0x220   :  { %5735 = vmatprep.subr.bf16.mxu0 %v19300_v51  ;;  %5778 = vmatprep.subr.bf16.mxu1 %v19303_v54  ;;  %v19337_v51 = vld [vmem:[%s27626_s0 + $0x1084] ss:$400 sps:$4 sm:$0xff]   ;;  %v19332_v54 = vld [vmem:[%s27626_s0 + $0x1078] ss:$400 sps:$4 sm:$0xff]  }
 0x223   :  { %5736 = vmatpush1.bf16.msra.mxu0 %v19298_v56  ;;  %5779 = vmatpush1.bf16.msra.mxu1 %v19301_v57  ;;  %v19335_v56 = vld [vmem:[%s27626_s0 + $0x1080] ss:$400 sps:$4 sm:$0xff]   ;;  %v22155_v57 = vpop.f32.mrf.mxu1 }
 0x224   :  { %5737 = vmatprep.subr.bf16.mxu0 %v19306_v59  ;;  %5780 = vmatprep.subr.bf16.mxu1 %v19309_v62  ;;  %v19340_v59 = vld [vmem:[%s27626_s0 + $0xd5c] ss:$400 sps:$4 sm:$0xff]   ;;  %v19343_v62 = vld [vmem:[%s27626_s0 + $0xd64] ss:$400 sps:$4 sm:$0xff]  }
 0x227   :  { %5738 = vmatpush1.bf16.msra.mxu0 %v19304_v5  ;;  %5781 = vmatpush1.bf16.msra.mxu1 %v19307_v8  ;;  %v22169_v5 = vpop.f32.mrf.mxu1  ;;  %v19346_v8 = vld [vmem:[%s27626_s0 + $0xa3c] ss:$400 sps:$4 sm:$0xff]  }
 0x228   :  { %16445 = vmatprep.subr.msk.bf16.mxu0 %vm1495_vm1, %v16421_v10  ;;  %16447 = vmatprep.subr.msk.bf16.mxu1 %vm1495_vm1, %v16423_v11  ;;  %v19349_v10 = vld [vmem:[%s27626_s0 + $0xa44] ss:$400 sps:$4 sm:$0xff]  }
 0x229   :  { %v22177_v11 = vpop.f32.mrf.mxu1 }
 0x22a   :  { %27664 = vst [vmem:[#allocation22_spill] sm:$0xff] %v22177_v11 }
 0x22b   :  { %5752 = vmatpush2.bf16.msra.mxu0 %v5649_v43  ;;  %5795 = vmatpush2.bf16.msra.mxu1 %v5655_v21  ;;  %v19352_v43 = vld [vmem:[%s27626_s0 + $0x71c] ss:$400 sps:$4 sm:$0xff]   ;;  %v19355_v21 = vld [vmem:[%s27626_s0 + $0x724] ss:$400 sps:$4 sm:$0xff]  }
 0x22c   :  { %5753 = vmatprep.subr.bf16.mxu0 %v19316_v31  ;;  %5796 = vmatprep.subr.bf16.mxu1 %v19319_v24  ;;  %v22191_v31 = vpop.f32.mrf.mxu1  ;;  %v19350_v24 = vld [vmem:[%s27626_s0 + $0x718] ss:$400 sps:$4 sm:$0xff]  }
 0x22d   :  { %27665 = vst [vmem:[#allocation23_spill] sm:$0xff] %v22191_v31 }
 0x22f   :  { %5754 = vmatpush2.bf16.msra.mxu0 %v19314_v27  ;;  %5797 = vmatpush2.bf16.msra.mxu1 %v19317_v29  ;;  %v19353_v27 = vld [vmem:[%s27626_s0 + $0x720] ss:$400 sps:$4 sm:$0xff]   ;;  %v19358_v29 = vld [vmem:[%s27626_s0 + $0x3fc] ss:$400 sps:$4 sm:$0xff]  }
 0x230   :  { %5809 = vmatprep.subr.bf16.mxu0 %v19322_v30  ;;  %5852 = vmatprep.subr.bf16.mxu1 %v19325_v33  ;;  %v19361_v30 = vld [vmem:[%s27626_s0 + $0x404] ss:$400 sps:$4 sm:$0xff]   ;;  %v22205_v33 = vpop.f32.mrf.mxu1 }
 0x231   :  { %27666 = vst [vmem:[#allocation24_spill] sm:$0xff] %v22205_v33 }
 0x232   :  { %5799 = vmatmul.mubr.bf16.vlgmr.msra.gmra.mxu1 %v21882_v20  ;;  %5756 = vmatmul.mubr.bf16.vlgmr.msra.gmra.mxu0 %v21882_v20 }
 0x233   :  { %5810 = vmatpush1.bf16.msra.mxu0 %v19320_v36  ;;  %5853 = vmatpush1.bf16.msra.mxu1 %v19323_v37  ;;  %v19356_v36 = vld [vmem:[%s27626_s0 + $0x3f8] ss:$400 sps:$4 sm:$0xff]   ;;  %v19359_v37 = vld [vmem:[%s27626_s0 + $0x400] ss:$400 sps:$4 sm:$0xff]  }
 0x234   :  { %5811 = vmatprep.subr.bf16.mxu0 %v19328_v39  ;;  %5854 = vmatprep.subr.bf16.mxu1 %v19331_v40  ;;  %v19364_v39 = vld [vmem:[%s27626_s0 + $0xdc] ss:$400 sps:$4 sm:$0xff]   ;;  %v19367_v40 = vld [vmem:[%s27626_s0 + $0xe4] ss:$400 sps:$4 sm:$0xff]  }
 0x235   :  { %16452 = vmatprep.mubr.msk.bf16.mxu1 %vm1491_vm0, %v21754_v12  ;;  %16450 = vmatprep.mubr.msk.bf16.mxu0 %vm1491_vm0, %v21754_v12 }
 0x237   :  { %5812 = vmatpush1.bf16.msra.mxu0 %v19326_v41  ;;  %5855 = vmatpush1.bf16.msra.mxu1 %v19329_v46  ;;  %v4440_v41 = vld [vmem:[%s27626_s0 + $0x1cf8] sm:$0x77]  ;;  %v4441_v46 = vld [vmem:[%s27626_s0 + $0x1d00] sm:$0x77] }
 0x238   :  { %5813 = vmatprep.subr.bf16.mxu0 %v19334_v50  ;;  %5856 = vmatprep.subr.bf16.mxu1 %v19337_v51  ;;  %v22225_v50 = vpop.f32.mrf.mxu1  ;;  %v19362_v51 = vld [vmem:[%s27626_s0 + $0xd8] ss:$400 sps:$4 sm:$0xff]  }
 0x239   :  { %27667 = vst [vmem:[#allocation25_spill] sm:$0xff] %v22225_v50  ;;  %v19472_v50 = vld [vmem:[%s27626_s0 + $0x418] ss:$400 sps:$4 sm:$0xff]  }
 0x23b   :  { %5814 = vmatpush1.bf16.msra.mxu0 %v19332_v54  ;;  %5857 = vmatpush1.bf16.msra.mxu1 %v19335_v56  ;;  %v19365_v54 = vld [vmem:[%s27626_s0 + $0xe0] ss:$400 sps:$4 sm:$0xff]   ;;  %v16425_v56 = vcombine.high %v4440_v41, %v4440_v41 }
 0x23c   :  { %5815 = vmatprep.subr.bf16.mxu0 %v19340_v59  ;;  %5858 = vmatprep.subr.bf16.mxu1 %v19343_v62  ;;  %v22233_v59 = vpop.f32.mrf.mxu1  ;;  %v16427_v62 = vcombine.high %v4441_v46, %v4441_v46 }
 0x23d   :  { %27668 = vst [vmem:[#allocation26_spill] sm:$0xff] %v22233_v59 }
 0x23f   :  { %5816 = vmatpush1.bf16.msra.mxu0 %v19338_v63  ;;  %5859 = vmatpush1.bf16.msra.mxu1 %v19341_v47  ;;  %v16424_v63 = vcombine.low %v4440_v41, %v4440_v41  ;;  %v16426_v47 = vcombine.low %v4441_v46, %v4441_v46  ;;  %v19389_v41 = vld [vmem:[%s27626_s0 + $0x13b4] ss:$400 sps:$4 sm:$0xff]  }
 0x240   :  { %5817 = vmatprep.subr.bf16.mxu0 %v19346_v8  ;;  %5860 = vmatprep.subr.bf16.mxu1 %v19349_v10  ;;  %v22235_v8 = vpop.f32.mrf.mxu1 }
 0x241   :  { %27669 = vst [vmem:[#allocation27_spill] sm:$0xff] %v22235_v8  ;;  %v5661_v10 = vsel %vm1495_vm1, %v16424_v63, 0  ;;  %v8740_v8 = vld [vmem:[%s27629_s5 + $0x3d0] sm:$0xff] }
 0x243   :  { %5818 = vmatpush1.bf16.msra.mxu0 %v19344_v15  ;;  %5861 = vmatpush1.bf16.msra.mxu1 %v19347_v16  ;;  %v5667_v15 = vsel %vm1495_vm1, %v16426_v47, 0  ;;  %v19374_v16 = vld [vmem:[%s27626_s0 + $0x19dc] ss:$400 sps:$4 sm:$0xff]   ;;  %v19390_v47 = vld [vmem:[%s27626_s0 + $0x1088] ss:$400 sps:$4 sm:$0xff]  }
 0x244   :  { %5819 = vmatprep.subr.bf16.mxu0 %v19352_v43  ;;  %5862 = vmatprep.subr.bf16.mxu1 %v19355_v21  ;;  %v19377_v43 = vld [vmem:[%s27626_s0 + $0x19e4] ss:$400 sps:$4 sm:$0xff]   ;;  %v19372_v21 = vld [vmem:[%s27626_s0 + $0x19d8] ss:$400 sps:$4 sm:$0xff]  }
 0x247   :  { %5820 = vmatpush1.bf16.msra.mxu0 %v19350_v24  ;;  %5863 = vmatpush1.bf16.msra.mxu1 %v19353_v27  ;;  %v19375_v24 = vld [vmem:[%s27626_s0 + $0x19e0] ss:$400 sps:$4 sm:$0xff]   ;;  %v22253_v27 = vpop.f32.mrf.mxu1 }
 0x248   :  { %5821 = vmatprep.subr.bf16.mxu0 %v19358_v29  ;;  %5864 = vmatprep.subr.bf16.mxu1 %v19361_v30  ;;  %27670 = vst [vmem:[#allocation28_spill] sm:$0xff] %v22253_v27  ;;  %v19380_v29 = vld [vmem:[%s27626_s0 + $0x16cc] ss:$400 sps:$4 sm:$0xff]   ;;  %v19383_v30 = vld [vmem:[%s27626_s0 + $0x16d4] ss:$400 sps:$4 sm:$0xff]  }
 0x24b   :  { %5822 = vmatpush1.bf16.msra.mxu0 %v19356_v36  ;;  %5865 = vmatpush1.bf16.msra.mxu1 %v19359_v37  ;;  %v19378_v36 = vld [vmem:[%s27626_s0 + $0x16c8] ss:$400 sps:$4 sm:$0xff]   ;;  %v19381_v37 = vld [vmem:[%s27626_s0 + $0x16d0] ss:$400 sps:$4 sm:$0xff]  }
 0x24c   :  { %5823 = vmatprep.subr.bf16.mxu0 %v19364_v39  ;;  %5866 = vmatprep.subr.bf16.mxu1 %v19367_v40  ;;  %v22267_v39 = vpop.f32.mrf.mxu1  ;;  %v19386_v40 = vld [vmem:[%s27626_s0 + $0x13ac] ss:$400 sps:$4 sm:$0xff]  }
 0x24d   :  { %27671 = vst [vmem:[#allocation29_spill] sm:$0xff] %v22267_v39 }
 0x24e   :  { %v22275_v46 = vpop.f32.mrf.mxu1 }
 0x24f   :  { %5824 = vmatpush1.bf16.msra.mxu0 %v19362_v51  ;;  %5867 = vmatpush1.bf16.msra.mxu1 %v19365_v54  ;;  %27672 = vst [vmem:[#allocation30_spill] sm:$0xff] %v22275_v46  ;;  %v19384_v51 = vld [vmem:[%s27626_s0 + $0x13a8] ss:$400 sps:$4 sm:$0xff]   ;;  %v19387_v54 = vld [vmem:[%s27626_s0 + $0x13b0] ss:$400 sps:$4 sm:$0xff]  }
 0x250   :  { %16449 = vmatprep.subr.msk.bf16.mxu0 %vm1495_vm1, %v16425_v56  ;;  %16451 = vmatprep.subr.msk.bf16.mxu1 %vm1495_vm1, %v16427_v62  ;;  %v19392_v56 = vld [vmem:[%s27626_s0 + $0x108c] ss:$400 sps:$4 sm:$0xff]   ;;  %v19395_v62 = vld [vmem:[%s27626_s0 + $0x1094] ss:$400 sps:$4 sm:$0xff]   ;;  %v22295_v63 = vpop.f32.mrf.mxu1 }
 0x251   :  { %27673 = vst [vmem:[#allocation31_spill] sm:$0xff] %v22295_v63  ;;  %v8658_v63 = vld [vmem:[%s27629_s5 + $0x140] sm:$0xff] }
 0x253   :  { %5838 = vmatpush2.bf16.msra.mxu0 %v5661_v10  ;;  %5881 = vmatpush2.bf16.msra.mxu1 %v5667_v15  ;;  %v19393_v10 = vld [vmem:[%s27626_s0 + $0x1090] ss:$400 sps:$4 sm:$0xff]   ;;  %v19398_v15 = vld [vmem:[%s27626_s0 + $0xd6c] ss:$400 sps:$4 sm:$0xff]  }
 0x254   :  { %5839 = vmatprep.subr.bf16.mxu0 %v19374_v16  ;;  %5882 = vmatprep.subr.bf16.mxu1 %v19377_v43  ;;  %v22309_v16 = vpop.f32.mrf.mxu1  ;;  %v19396_v43 = vld [vmem:[%s27626_s0 + $0xd68] ss:$400 sps:$4 sm:$0xff]  }
 0x255   :  { %27674 = vst [vmem:[#allocation32_spill] sm:$0xff] %v22309_v16 }
 0x257   :  { %5840 = vmatpush2.bf16.msra.mxu0 %v19372_v21  ;;  %5883 = vmatpush2.bf16.msra.mxu1 %v19375_v24  ;;  %v19399_v21 = vld [vmem:[%s27626_s0 + $0xd70] ss:$400 sps:$4 sm:$0xff]   ;;  %v19404_v24 = vld [vmem:[%s27626_s0 + $0xa4c] ss:$400 sps:$4 sm:$0xff]  }
 0x258   :  { %5895 = vmatprep.subr.bf16.mxu0 %v19380_v29  ;;  %5938 = vmatprep.subr.bf16.mxu1 %v19383_v30  ;;  %v19407_v29 = vld [vmem:[%s27626_s0 + $0xa54] ss:$400 sps:$4 sm:$0xff]   ;;  %v22323_v30 = vpop.f32.mrf.mxu1 }
 0x259   :  { %27675 = vst [vmem:[#allocation33_spill] sm:$0xff] %v22323_v30 }
 0x25a   :  { %5885 = vmatmul.mubr.bf16.vlgmr.msra.gmra.mxu1 %v21882_v20  ;;  %5842 = vmatmul.mubr.bf16.vlgmr.msra.gmra.mxu0 %v21882_v20 }
 0x25b   :  { %5896 = vmatpush1.bf16.msra.mxu0 %v19378_v36  ;;  %5939 = vmatpush1.bf16.msra.mxu1 %v19381_v37  ;;  %v19402_v36 = vld [vmem:[%s27626_s0 + $0xa48] ss:$400 sps:$4 sm:$0xff]   ;;  %v19405_v37 = vld [vmem:[%s27626_s0 + $0xa50] ss:$400 sps:$4 sm:$0xff]  }
 0x25c   :  { %5897 = vmatprep.subr.bf16.mxu0 %v19386_v40  ;;  %5940 = vmatprep.subr.bf16.mxu1 %v19389_v41  ;;  %v22331_v40 = vpop.f32.mrf.mxu1  ;;  %v19410_v41 = vld [vmem:[%s27626_s0 + $0x72c] ss:$400 sps:$4 sm:$0xff]  }
 0x25d   :  { %16456 = vmatprep.mubr.msk.bf16.mxu1 %vm1491_vm0, %v21754_v12  ;;  %16454 = vmatprep.mubr.msk.bf16.mxu0 %vm1491_vm0, %v21754_v12  ;;  %v19401_v12 = vld [vmem:[%s27626_s0 + $0xd74] ss:$400 sps:$4 sm:$0xff]   ;;  %27676 = vst [vmem:[#allocation34_spill] sm:$0xff] %v22331_v40 }
 0x25e   :  { %v4447_v40 = vld [vmem:[%s27626_s0 + $0x1d30] sm:$0x77] }
 0x25f   :  { %5898 = vmatpush1.bf16.msra.mxu0 %v19384_v51  ;;  %5941 = vmatpush1.bf16.msra.mxu1 %v19387_v54  ;;  %v19413_v51 = vld [vmem:[%s27626_s0 + $0x734] ss:$400 sps:$4 sm:$0xff]   ;;  %v19408_v54 = vld [vmem:[%s27626_s0 + $0x728] ss:$400 sps:$4 sm:$0xff]  }
 0x260   :  { %5899 = vmatprep.subr.bf16.mxu0 %v19392_v56  ;;  %5942 = vmatprep.subr.bf16.mxu1 %v19395_v62  ;;  %v19411_v56 = vld [vmem:[%s27626_s0 + $0x730] ss:$400 sps:$4 sm:$0xff]   ;;  %v22345_v62 = vpop.f32.mrf.mxu1 }
 0x261   :  { %27677 = vst [vmem:[#allocation35_spill] sm:$0xff] %v22345_v62 }
 0x263   :  { %5900 = vmatpush1.bf16.msra.mxu0 %v19390_v47  ;;  %5943 = vmatpush1.bf16.msra.mxu1 %v19393_v10  ;;  %v19416_v47 = vld [vmem:[%s27626_s0 + $0x40c] ss:$400 sps:$4 sm:$0xff]   ;;  %v19419_v10 = vld [vmem:[%s27626_s0 + $0x414] ss:$400 sps:$4 sm:$0xff]  }
 0x264   :  { %5901 = vmatprep.subr.bf16.mxu0 %v19398_v15  ;;  %5944 = vmatprep.subr.bf16.mxu1 %v19401_v12  ;;  %v19414_v15 = vld [vmem:[%s27626_s0 + $0x408] ss:$400 sps:$4 sm:$0xff]   ;;  %v19417_v12 = vld [vmem:[%s27626_s0 + $0x410] ss:$400 sps:$4 sm:$0xff]  }
 0x267   :  { %5902 = vmatpush1.bf16.msra.mxu0 %v19396_v43  ;;  %5945 = vmatpush1.bf16.msra.mxu1 %v19399_v21  ;;  %v22359_v43 = vpop.f32.mrf.mxu1  ;;  %v19422_v21 = vld [vmem:[%s27626_s0 + $0xec] ss:$400 sps:$4 sm:$0xff]  }
 0x268   :  { %5903 = vmatprep.subr.bf16.mxu0 %v19404_v24  ;;  %5946 = vmatprep.subr.bf16.mxu1 %v19407_v29  ;;  %27678 = vst [vmem:[#allocation36_spill] sm:$0xff] %v22359_v43  ;;  %v19425_v24 = vld [vmem:[%s27626_s0 + $0xf4] ss:$400 sps:$4 sm:$0xff]   ;;  %v4442_v29 = vld [vmem:[%s27626_s0 + $0x1d08] sm:$0x77] }
 0x26b   :  { %5904 = vmatpush1.bf16.msra.mxu0 %v19402_v36  ;;  %5947 = vmatpush1.bf16.msra.mxu1 %v19405_v37  ;;  %v4443_v36 = vld [vmem:[%s27626_s0 + $0x1d10] sm:$0x77]  ;;  %v19420_v37 = vld [vmem:[%s27626_s0 + $0xe8] ss:$400 sps:$4 sm:$0xff]  }
 0x26c   :  { %5905 = vmatprep.subr.bf16.mxu0 %v19410_v41  ;;  %5948 = vmatprep.subr.bf16.mxu1 %v19413_v51  ;;  %v19423_v41 = vld [vmem:[%s27626_s0 + $0xf0] ss:$400 sps:$4 sm:$0xff]   ;;  %v16429_v51 = vcombine.high %v4442_v29, %v4442_v29 }
 0x26f   :  { %5906 = vmatpush1.bf16.msra.mxu0 %v19408_v54  ;;  %5949 = vmatpush1.bf16.msra.mxu1 %v19411_v56  ;;  %v22379_v54 = vpop.f32.mrf.mxu1  ;;  %v16431_v56 = vcombine.high %v4443_v36, %v4443_v36 }
 0x270   :  { %5907 = vmatprep.subr.bf16.mxu0 %v19416_v47  ;;  %5950 = vmatprep.subr.bf16.mxu1 %v19419_v10  ;;  %27679 = vst [vmem:[#allocation37_spill] sm:$0xff] %v22379_v54  ;;  %v16428_v47 = vcombine.low %v4442_v29, %v4442_v29  ;;  %v16430_v10 = vcombine.low %v4443_v36, %v4443_v36  ;;  %v19430_v36 = vld [vmem:[%s27626_s0 + $0x19e8] ss:$400 sps:$4 sm:$0xff]  }
 0x271   :  { %v22381_v7 = vpop.f32.mrf.mxu1 }
 0x273   :  { %5908 = vmatpush1.bf16.msra.mxu0 %v19414_v15  ;;  %5951 = vmatpush1.bf16.msra.mxu1 %v19417_v12  ;;  %v5673_v15 = vsel %vm1495_vm1, %v16428_v47, 0  ;;  %v5679_v12 = vsel %vm1495_vm1, %v16430_v10, 0  ;;  %v22393_v29 = vpop.f32.mrf.mxu1  ;;  %v19436_v47 = vld [vmem:[%s27626_s0 + $0x16d8] ss:$400 sps:$4 sm:$0xff]   ;;  %v19439_v10 = vld [vmem:[%s27626_s0 + $0x16e0] ss:$400 sps:$4 sm:$0xff]  }
 0x274   :  { %5909 = vmatprep.subr.bf16.mxu0 %v19422_v21  ;;  %5952 = vmatprep.subr.bf16.mxu1 %v19425_v24  ;;  %v19432_v21 = vld [vmem:[%s27626_s0 + $0x19ec] ss:$400 sps:$4 sm:$0xff]   ;;  %v19435_v24 = vld [vmem:[%s27626_s0 + $0x19f4] ss:$400 sps:$4 sm:$0xff]   ;;  %27680 = vst [vmem:[#allocation38_spill] sm:$0xff] %v22393_v29 }
 0x275   :  { %v14548_v29 = vld [vmem:[%s27630_s7 + $0x50] sm:$0xff] }
 0x277   :  { %5910 = vmatpush1.bf16.msra.mxu0 %v19420_v37  ;;  %5953 = vmatpush1.bf16.msra.mxu1 %v19423_v41  ;;  %v19433_v37 = vld [vmem:[%s27626_s0 + $0x19f0] ss:$400 sps:$4 sm:$0xff]   ;;  %v19438_v41 = vld [vmem:[%s27626_s0 + $0x16dc] ss:$400 sps:$4 sm:$0xff]  }
 0x278   :  { %16453 = vmatprep.subr.msk.bf16.mxu0 %vm1495_vm1, %v16429_v51  ;;  %16455 = vmatprep.subr.msk.bf16.mxu1 %vm1495_vm1, %v16431_v56  ;;  %v19441_v51 = vld [vmem:[%s27626_s0 + $0x16e4] ss:$400 sps:$4 sm:$0xff]   ;;  %v22407_v56 = vpop.f32.mrf.mxu1 }
 0x27b   :  { %5924 = vmatpush2.bf16.msra.mxu0 %v5673_v15  ;;  %5967 = vmatpush2.bf16.msra.mxu1 %v5679_v12  ;;  %v19444_v15 = vld [vmem:[%s27626_s0 + $0x13bc] ss:$400 sps:$4 sm:$0xff]   ;;  %v19447_v12 = vld [vmem:[%s27626_s0 + $0x13c4] ss:$400 sps:$4 sm:$0xff]  }
 0x27c   :  { %5925 = vmatprep.subr.bf16.mxu0 %v19432_v21  ;;  %5968 = vmatprep.subr.bf16.mxu1 %v19435_v24  ;;  %v8506_v21 = vld [vmem:[%s27628_s2] sm:$0xff]  ;;  %v22424_v24 = vpop.f32.mrf.mxu1 }
 0x27d   :  { %8510 = vperm.xlu0 %18541, %v8506_v21   ;;  %27681 = vst [vmem:[#allocation39_spill] sm:$0xff] %v22424_v24  ;;  %v14546_v24 = vld [vmem:[%s27630_s7 + $0x40] sm:$0xff] }
 0x27f   :  { %5926 = vmatpush2.bf16.msra.mxu0 %v19430_v36  ;;  %5969 = vmatpush2.bf16.msra.mxu1 %v19433_v37  ;;  %v19442_v36 = vld [vmem:[%s27626_s0 + $0x13b8] ss:$400 sps:$4 sm:$0xff]   ;;  %v19445_v37 = vld [vmem:[%s27626_s0 + $0x13c0] ss:$400 sps:$4 sm:$0xff]  }
 0x280   :  { %5981 = vmatprep.subr.bf16.mxu0 %v19438_v41  ;;  %6024 = vmatprep.subr.bf16.mxu1 %v19441_v51  ;;  %v8507_v41 = vld [vmem:[%s27628_s2 + $0x8] sm:$0xff]  ;;  %v22437_v51 = vpop.f32.mrf.mxu1 }
 0x281   :  { %8515 = vperm.xlu0 %18541, %v8507_v41   ;;  %v19454_v41 = vld [vmem:[%s27626_s0 + $0xd78] ss:$400 sps:$4 sm:$0xff]  }
 0x282   :  { %5971 = vmatmul.mubr.bf16.vlgmr.msra.gmra.mxu1 %v21882_v20  ;;  %5928 = vmatmul.mubr.bf16.vlgmr.msra.gmra.mxu0 %v21882_v20  ;;  %v19450_v20 = vld [vmem:[%s27626_s0 + $0x109c] ss:$400 sps:$4 sm:$0xff]   ;;  %v22460_v21 = vpop.f32.mrf.mxu1 }
 0x283   :  { %5982 = vmatpush1.bf16.msra.mxu0 %v19436_v47  ;;  %6025 = vmatpush1.bf16.msra.mxu1 %v19439_v10  ;;  %v19453_v47 = vld [vmem:[%s27626_s0 + $0x10a4] ss:$400 sps:$4 sm:$0xff]  }
 0x284   :  { %5983 = vmatprep.subr.bf16.mxu0 %v19444_v15  ;;  %6026 = vmatprep.subr.bf16.mxu1 %v19447_v12  ;;  %v22448_v10 = vld [vmem:[%s27627_s1 + $0x4] ss:$8 sps:$4 sm:$0xff]   ;;  %v19448_v15 = vld [vmem:[%s27626_s0 + $0x1098] ss:$400 sps:$4 sm:$0xff]   ;;  %v19451_v12 = vld [vmem:[%s27626_s0 + $0x10a0] ss:$400 sps:$4 sm:$0xff]   ;;  %v22480_v28 = vpop.f32.mrf.mxu1 }
 0x285   :  { %16460 = vmatprep.mubr.msk.bf16.mxu1 %vm1491_vm0, %v22448_v10  ;;  %16458 = vmatprep.mubr.msk.bf16.mxu0 %vm1491_vm0, %v22448_v10 }
 0x286   :  { %v22497_v25 = vpop.f32.mrf.mxu1 }
 0x287   :  { %5984 = vmatpush1.bf16.msra.mxu0 %v19442_v36  ;;  %6027 = vmatpush1.bf16.msra.mxu1 %v19445_v37  ;;  %v19459_v36 = vld [vmem:[%s27626_s0 + $0xd84] ss:$400 sps:$4 sm:$0xff]  }
 0x288   :  { %5985 = vmatprep.subr.bf16.mxu0 %v19450_v20  ;;  %6028 = vmatprep.subr.bf16.mxu1 %v19453_v47  ;;  %v8632_v37 = vld [vmem:[%s27629_s5 + $0x70] sm:$0xff] }
 0x289   :  { %10005 = vperm.xlu0 %18541, %v8632_v37   ;;  %v19457_v20 = vld [vmem:[%s27626_s0 + $0xd80] ss:$400 sps:$4 sm:$0xff]   ;;  %v19460_v37 = vld [vmem:[%s27626_s0 + $0xa58] ss:$400 sps:$4 sm:$0xff]  }
 0x28a   :  { %v8680_v47 = vld [vmem:[%s27629_s5 + $0x1f0] sm:$0xff] }
 0x28b   :  { %5986 = vmatpush1.bf16.msra.mxu0 %v19448_v15  ;;  %6029 = vmatpush1.bf16.msra.mxu1 %v19451_v12  ;;  %v19462_v15 = vld [vmem:[%s27626_s0 + $0xa5c] ss:$400 sps:$4 sm:$0xff]   ;;  %v19465_v12 = vld [vmem:[%s27626_s0 + $0xa64] ss:$400 sps:$4 sm:$0xff]  }
 0x28c   :  { %5987 = vmatprep.subr.bf16.mxu0 %v19456_v42  ;;  %6030 = vmatprep.subr.bf16.mxu1 %v19459_v36  ;;  %v19463_v42 = vld [vmem:[%s27626_s0 + $0xa60] ss:$400 sps:$4 sm:$0xff]  }
 0x28d   :  { %10245 = vperm.xlu0 %18541, %v8680_v47   ;;  %v8664_v36 = vld [vmem:[%s27629_s5 + $0x170] sm:$0xff]  ;;  %v22505_v47 = vpop.f32.mrf.mxu1 }
 0x28f   :  { %5988 = vmatpush1.bf16.msra.mxu0 %v19454_v41  ;;  %6031 = vmatpush1.bf16.msra.mxu1 %v19457_v20  ;;  %v19468_v41 = vld [vmem:[%s27626_s0 + $0x73c] ss:$400 sps:$4 sm:$0xff]   ;;  %v19471_v20 = vld [vmem:[%s27626_s0 + $0x744] ss:$400 sps:$4 sm:$0xff]  }
 0x290   :  { %5989 = vmatprep.subr.bf16.mxu0 %v19462_v15  ;;  %6032 = vmatprep.subr.bf16.mxu1 %v19465_v12  ;;  %v19469_v15 = vld [vmem:[%s27626_s0 + $0x740] ss:$400 sps:$4 sm:$0xff]  }
 0x291   :  { %10165 = vperm.xlu0 %18541, %v8664_v36   ;;  %v8646_v12 = vld [vmem:[%s27629_s5 + $0xe0] sm:$0xff]  ;;  %v19474_v36 = vld [vmem:[%s27626_s0 + $0x41c] ss:$400 sps:$4 sm:$0xff]  }
 0x293   :  { %5990 = vmatpush1.bf16.msra.mxu0 %v19460_v37  ;;  %6033 = vmatpush1.bf16.msra.mxu1 %v19463_v42  ;;  %v19477_v37 = vld [vmem:[%s27626_s0 + $0x424] ss:$400 sps:$4 sm:$0xff]   ;;  %v22522_v42 = vpop.f32.mrf.mxu1 }
 0x294   :  { %5991 = vmatprep.subr.bf16.mxu0 %v19468_v41  ;;  %6034 = vmatprep.subr.bf16.mxu1 %v19471_v20  ;;  %27682 = vst [vmem:[#allocation40_spill] sm:$0xff] %v22522_v42  ;;  %v19475_v41 = vld [vmem:[%s27626_s0 + $0x420] ss:$400 sps:$4 sm:$0xff]  }
 0x295   :  { %10075 = vperm.xlu0 %18541, %v8646_v12   ;;  %v8630_v20 = vld [vmem:[%s27629_s5 + $0x60] sm:$0xff]  ;;  %v19480_v12 = vld [vmem:[%s27626_s0 + $0xfc] ss:$400 sps:$4 sm:$0xff]   ;;  %v22545_v31 = vpop.f32.mrf.mxu1 }
 0x296   :  { %v4445_v42 = vld [vmem:[%s27626_s0 + $0x1d20] sm:$0x77] }
 0x297   :  { %5992 = vmatpush1.bf16.msra.mxu0 %v19466_v13  ;;  %6035 = vmatpush1.bf16.msra.mxu1 %v19469_v15  ;;  %v19483_v13 = vld [vmem:[%s27626_s0 + $0x104] ss:$400 sps:$4 sm:$0xff]   ;;  %v4444_v15 = vld [vmem:[%s27626_s0 + $0x1d18] sm:$0x77]  ;;  %v16435_v22 = vcombine.high %v4445_v42, %v4445_v42  ;;  %v16434_v43 = vcombine.low %v4445_v42, %v4445_v42 }
 0x298   :  { %5993 = vmatprep.subr.bf16.mxu0 %v19474_v36  ;;  %6036 = vmatprep.subr.bf16.mxu1 %v19477_v37  ;;  %v19478_v36 = vld [vmem:[%s27626_s0 + $0xf8] ss:$400 sps:$4 sm:$0xff]   ;;  %v19481_v37 = vld [vmem:[%s27626_s0 + $0x100] ss:$400 sps:$4 sm:$0xff]   ;;  %v16432_v30 = vcombine.low %v4444_v15, %v4444_v15  ;;  %v16433_v54 = vcombine.high %v4444_v15, %v4444_v15  ;;  %v19490_v42 = vld [vmem:[%s27626_s0 + $0x19fc] ss:$400 sps:$4 sm:$0xff]  }
 0x299   :  { %9995 = vperm.xlu0 %18541, %v8630_v20   ;;  %v8678_v20 = vld [vmem:[%s27629_s5 + $0x1e0] sm:$0xff] }
 0x29b   :  { %5994 = vmatpush1.bf16.msra.mxu0 %v19472_v50  ;;  %6037 = vmatpush1.bf16.msra.mxu1 %v19475_v41  ;;  %v22556_v50 = vpop.f32.mrf.mxu1  ;;  %v5685_v41 = vsel %vm1495_vm1, %v16432_v30, 0  ;;  %v8662_v30 = vld [vmem:[%s27629_s5 + $0x160] sm:$0xff] }
 0x29c   :  { %5995 = vmatprep.subr.bf16.mxu0 %v19480_v12  ;;  %6038 = vmatprep.subr.bf16.mxu1 %v19483_v13  ;;  %27683 = vst [vmem:[#allocation41_spill] sm:$0xff] %v22556_v50  ;;  %v5691_v12 = vsel %vm1495_vm1, %v16434_v43, 0  ;;  %v19493_v13 = vld [vmem:[%s27626_s0 + $0x1a04] ss:$400 sps:$4 sm:$0xff]   ;;  %v19491_v43 = vld [vmem:[%s27626_s0 + $0x1a00] ss:$400 sps:$4 sm:$0xff]  }
 0x29d   :  { %10235 = vperm.xlu0 %18541, %v8678_v20   ;;  %v22559_v62 = vpop.f32.mrf.mxu1  ;;  %v19494_v20 = vld [vmem:[%s27626_s0 + $0x16e8] ss:$400 sps:$4 sm:$0xff]   ;;  %v8676_v50 = vld [vmem:[%s27629_s5 + $0x1d0] sm:$0xff] }
 0x29e   :  { %27684 = vst [vmem:[#allocation42_spill] sm:$0xff] %v22559_v62  ;;  %v14552_v62 = vld [vmem:[%s27630_s7 + $0x70] sm:$0xff] }
 0x29f   :  { %5996 = vmatpush1.bf16.msra.mxu0 %v19478_v36  ;;  %6039 = vmatpush1.bf16.msra.mxu1 %v19481_v37  ;;  %v22582_v15 = vpop.f32.mrf.mxu1  ;;  %v19496_v36 = vld [vmem:[%s27626_s0 + $0x16ec] ss:$400 sps:$4 sm:$0xff]   ;;  %v19499_v37 = vld [vmem:[%s27626_s0 + $0x16f4] ss:$400 sps:$4 sm:$0xff]  }
 0x2a0   :  { %16457 = vmatprep.subr.msk.bf16.mxu0 %vm1495_vm1, %v16433_v54  ;;  %16459 = vmatprep.subr.msk.bf16.mxu1 %vm1495_vm1, %v16435_v22  ;;  %v19488_v22 = vld [vmem:[%s27626_s0 + $0x19f8] ss:$400 sps:$4 sm:$0xff]   ;;  %v8644_v54 = vld [vmem:[%s27629_s5 + $0xd0] sm:$0xff]  ;;  %27685 = vst [vmem:[#allocation43_spill] sm:$0xff] %v22582_v15 }
 0x2a1   :  { %10155 = vperm.xlu0 %18541, %v8662_v30   ;;  %v22607_v30 = vld [vmem:[%s27627_s1] ss:$8 sps:$4 sm:$0xff]  }
 0x2a3   :  { %6010 = vmatpush2.bf16.msra.mxu0 %v5685_v41  ;;  %6053 = vmatpush2.bf16.msra.mxu1 %v5691_v12  ;;  %v19497_v41 = vld [vmem:[%s27626_s0 + $0x16f0] ss:$400 sps:$4 sm:$0xff]   ;;  %v22596_v12 = vpop.f32.mrf.mxu1 }
 0x2a4   :  { %6011 = vmatprep.subr.bf16.mxu0 %v19490_v42  ;;  %6054 = vmatprep.subr.bf16.mxu1 %v19493_v13  ;;  %27686 = vst [vmem:[#allocation44_spill] sm:$0xff] %v22596_v12  ;;  %v19502_v42 = vld [vmem:[%s27626_s0 + $0x13cc] ss:$400 sps:$4 sm:$0xff]   ;;  %v19505_v13 = vld [vmem:[%s27626_s0 + $0x13d4] ss:$400 sps:$4 sm:$0xff]  }
 0x2a5   :  { %10065 = vperm.xlu0 %18541, %v8644_v54   ;;  %v8628_v54 = vld [vmem:[%s27629_s5 + $0x50] sm:$0xff] }
 0x2a7   :  { %6012 = vmatpush2.bf16.msra.mxu0 %v19488_v22  ;;  %6055 = vmatpush2.bf16.msra.mxu1 %v19491_v43  ;;  %v19500_v22 = vld [vmem:[%s27626_s0 + $0x13c8] ss:$400 sps:$4 sm:$0xff]   ;;  %v19503_v43 = vld [vmem:[%s27626_s0 + $0x13d0] ss:$400 sps:$4 sm:$0xff]  }
 0x2a8   :  { %6067 = vmatprep.subr.bf16.mxu0 %v19496_v36  ;;  %6110 = vmatprep.subr.bf16.mxu1 %v19499_v37  ;;  %v22620_v36 = vpop.f32.mrf.mxu1  ;;  %v19508_v37 = vld [vmem:[%s27626_s0 + $0x10ac] ss:$400 sps:$4 sm:$0xff]  }
 0x2a9   :  { %27687 = vst [vmem:[#allocation45_spill] sm:$0xff] %v22620_v36  ;;  %9985 = vperm.xlu0 %18541, %v8628_v54   ;;  %v19514_v54 = vld [vmem:[%s27626_s0 + $0xd8c] ss:$400 sps:$4 sm:$0xff]   ;;  %v8640_v36 = vld [vmem:[%s27629_s5 + $0xb0] sm:$0xff] }
 0x2aa   :  { %6057 = vmatmul.mubr.bf16.vlgmr.msra.gmra.mxu1 %v22607_v30  ;;  %6014 = vmatmul.mubr.bf16.vlgmr.msra.gmra.mxu0 %v22607_v30 }
 0x2ab   :  { %6068 = vmatpush1.bf16.msra.mxu0 %v19494_v20  ;;  %6111 = vmatpush1.bf16.msra.mxu1 %v19497_v41  ;;  %v19511_v20 = vld [vmem:[%s27626_s0 + $0x10b4] ss:$400 sps:$4 sm:$0xff]   ;;  %v22632_v41 = vpop.f32.mrf.mxu1 }
 0x2ac   :  { %6069 = vmatprep.subr.bf16.mxu0 %v19502_v42  ;;  %6112 = vmatprep.subr.bf16.mxu1 %v19505_v13  ;;  %27688 = vst [vmem:[#allocation46_spill] sm:$0xff] %v22632_v41  ;;  %v19506_v42 = vld [vmem:[%s27626_s0 + $0x10a8] ss:$400 sps:$4 sm:$0xff]   ;;  %v19509_v13 = vld [vmem:[%s27626_s0 + $0x10b0] ss:$400 sps:$4 sm:$0xff]  }
 0x2ad   :  { %16464 = vmatprep.mubr.msk.bf16.mxu1 %vm1491_vm0, %v22448_v10  ;;  %16462 = vmatprep.mubr.msk.bf16.mxu0 %vm1491_vm0, %v22448_v10  ;;  %v8702_v41 = vld [vmem:[%s27629_s5 + $0x2a0] sm:$0xff] }
 0x2ae   :  { %10225 = vperm.xlu0 %18541, %v8676_v50   ;;  %v19520_v50 = vld [vmem:[%s27626_s0 + $0xa6c] ss:$400 sps:$4 sm:$0xff]  }
 0x2af   :  { %6070 = vmatpush1.bf16.msra.mxu0 %v19500_v22  ;;  %6113 = vmatpush1.bf16.msra.mxu1 %v19503_v43  ;;  %v19517_v22 = vld [vmem:[%s27626_s0 + $0xd94] ss:$400 sps:$4 sm:$0xff]   ;;  %v22649_v43 = vpop.f32.mrf.mxu1 }
 0x2b0   :  { %6071 = vmatprep.subr.bf16.mxu0 %v19508_v37  ;;  %6114 = vmatprep.subr.bf16.mxu1 %v19511_v20  ;;  %27689 = vst [vmem:[#allocation47_spill] sm:$0xff] %v22649_v43  ;;  %v19515_v37 = vld [vmem:[%s27626_s0 + $0xd90] ss:$400 sps:$4 sm:$0xff]   ;;  %v19518_v43 = vld [vmem:[%s27626_s0 + $0xa68] ss:$400 sps:$4 sm:$0xff]  }
 0x2b1   :  { %v8660_v20 = vld [vmem:[%s27629_s5 + $0x150] sm:$0xff] }
 0x2b2   :  { %10145 = vperm.xlu0 %18541, %v8660_v20   ;;  %v19526_v20 = vld [vmem:[%s27626_s0 + $0x74c] ss:$400 sps:$4 sm:$0xff]  }
 0x2b3   :  { %6072 = vmatpush1.bf16.msra.mxu0 %v19506_v42  ;;  %6115 = vmatpush1.bf16.msra.mxu1 %v19509_v13  ;;  %v19523_v42 = vld [vmem:[%s27626_s0 + $0xa74] ss:$400 sps:$4 sm:$0xff]   ;;  %v22666_v13 = vpop.f32.mrf.mxu1 }
 0x2b4   :  { %6073 = vmatprep.subr.bf16.mxu0 %v19514_v54  ;;  %6116 = vmatprep.subr.bf16.mxu1 %v19517_v22  ;;  %27690 = vst [vmem:[#allocation48_spill] sm:$0xff] %v22666_v13  ;;  %v19521_v54 = vld [vmem:[%s27626_s0 + $0xa70] ss:$400 sps:$4 sm:$0xff]  }
 0x2b5   :  { %v8642_v22 = vld [vmem:[%s27629_s5 + $0xc0] sm:$0xff] }
 0x2b6   :  { %10055 = vperm.xlu0 %18541, %v8642_v22   ;;  %v19530_v22 = vld [vmem:[%s27626_s0 + $0x428] ss:$400 sps:$4 sm:$0xff]  }
 0x2b7   :  { %6074 = vmatpush1.bf16.msra.mxu0 %v19512_v4  ;;  %6117 = vmatpush1.bf16.msra.mxu1 %v19515_v37  ;;  %v19529_v4 = vld [vmem:[%s27626_s0 + $0x754] ss:$400 sps:$4 sm:$0xff]   ;;  %v22683_v37 = vpop.f32.mrf.mxu1 }
 0x2b8   :  { %6075 = vmatprep.subr.bf16.mxu0 %v19520_v50  ;;  %6118 = vmatprep.subr.bf16.mxu1 %v19523_v42  ;;  %27691 = vst [vmem:[#allocation49_spill] sm:$0xff] %v22683_v37  ;;  %v19527_v50 = vld [vmem:[%s27626_s0 + $0x750] ss:$400 sps:$4 sm:$0xff]  }
 0x2b9   :  { %v8626_v42 = vld [vmem:[%s27629_s5 + $0x40] sm:$0xff]  ;;  %v22694_v44 = vpop.f32.mrf.mxu1 }
 0x2ba   :  { %27692 = vst [vmem:[#allocation50_spill] sm:$0xff] %v22694_v44  ;;  %9975 = vperm.xlu0 %18541, %v8626_v42   ;;  %v4446_v42 = vld [vmem:[%s27626_s0 + $0x1d28] sm:$0x77] }
 0x2bb   :  { %6076 = vmatpush1.bf16.msra.mxu0 %v19518_v43  ;;  %6119 = vmatpush1.bf16.msra.mxu1 %v19521_v54  ;;  %v19532_v43 = vld [vmem:[%s27626_s0 + $0x42c] ss:$400 sps:$4 sm:$0xff]   ;;  %v19535_v54 = vld [vmem:[%s27626_s0 + $0x434] ss:$400 sps:$4 sm:$0xff]   ;;  %v22711_v37 = vpop.f32.mrf.mxu1 }
 0x2bc   :  { %6077 = vmatprep.subr.bf16.mxu0 %v19526_v20  ;;  %6120 = vmatprep.subr.bf16.mxu1 %v19529_v4  ;;  %v19533_v20 = vld [vmem:[%s27626_s0 + $0x430] ss:$400 sps:$4 sm:$0xff]   ;;  %27693 = vst [vmem:[#allocation51_spill] sm:$0xff] %v22711_v37  ;;  %v16437_v37 = vcombine.high %v4446_v42, %v4446_v42 }
 0x2bd   :  { %v8674_v4 = vld [vmem:[%s27629_s5 + $0x1c0] sm:$0xff]  ;;  %v22734_v0 = vpop.f32.mrf.mxu1 }
 0x2be   :  { %10215 = vperm.xlu0 %18541, %v8674_v4   ;;  %27694 = vst [vmem:[#allocation52_spill] sm:$0xff] %v22734_v0  ;;  %v16439_v4 = vcombine.high %v4447_v40, %v4447_v40  ;;  %v8724_v0 = vld [vmem:[%s27629_s5 + $0x350] sm:$0xff] }
 0x2bf   :  { %6078 = vmatpush1.bf16.msra.mxu0 %v19524_v61  ;;  %6121 = vmatpush1.bf16.msra.mxu1 %v19527_v50  ;;  %v19538_v61 = vld [vmem:[%s27626_s0 + $0x10c] ss:$400 sps:$4 sm:$0xff]   ;;  %v19541_v50 = vld [vmem:[%s27626_s0 + $0x114] ss:$400 sps:$4 sm:$0xff]   ;;  %v22739_v52 = vpop.f32.mrf.mxu1 }
 0x2c0   :  { %6079 = vmatprep.subr.bf16.mxu0 %v19532_v43  ;;  %6122 = vmatprep.subr.bf16.mxu1 %v19535_v54  ;;  %v19536_v43 = vld [vmem:[%s27626_s0 + $0x108] ss:$400 sps:$4 sm:$0xff]   ;;  %v19539_v54 = vld [vmem:[%s27626_s0 + $0x110] ss:$400 sps:$4 sm:$0xff]   ;;  %27695 = vst [vmem:[#allocation53_spill] sm:$0xff] %v22739_v52 }
 0x2c2   :  { %10135 = vperm.xlu0 %18541, %v8658_v63   ;;  %v19548_v63 = vld [vmem:[%s27626_s0 + $0x1a0c] ss:$400 sps:$4 sm:$0xff]  }
 0x2c3   :  { %6080 = vmatpush1.bf16.msra.mxu0 %v19530_v22  ;;  %6123 = vmatpush1.bf16.msra.mxu1 %v19533_v20  ;;  %v16436_v22 = vcombine.low %v4446_v42, %v4446_v42  ;;  %v16438_v20 = vcombine.low %v4447_v40, %v4447_v40  ;;  %v19551_v40 = vld [vmem:[%s27626_s0 + $0x1a14] ss:$400 sps:$4 sm:$0xff]   ;;  %v19549_v42 = vld [vmem:[%s27626_s0 + $0x1a10] ss:$400 sps:$4 sm:$0xff]  }
 0x2c4   :  { %6081 = vmatprep.subr.bf16.mxu0 %v19538_v61  ;;  %6124 = vmatprep.subr.bf16.mxu1 %v19541_v50 }
 0x2c5   :  { %v5697_v15 = vsel %vm1495_vm1, %v16436_v22, 0  ;;  %v5703_v61 = vsel %vm1495_vm1, %v16438_v20, 0  ;;  %v19552_v22 = vld [vmem:[%s27626_s0 + $0x16f8] ss:$400 sps:$4 sm:$0xff]   ;;  %v19555_v20 = vld [vmem:[%s27626_s0 + $0x1700] ss:$400 sps:$4 sm:$0xff]  }
 0x2c6   :  { %10045 = vperm.xlu0 %18541, %v8640_v36   ;;  %v19557_v36 = vld [vmem:[%s27626_s0 + $0x1704] ss:$400 sps:$4 sm:$0xff]  }
 0x2c7   :  { %6082 = vmatpush1.bf16.msra.mxu0 %v19536_v43  ;;  %6125 = vmatpush1.bf16.msra.mxu1 %v19539_v54  ;;  %v8624_v43 = vld [vmem:[%s27629_s5 + $0x30] sm:$0xff] }
 0x2c8   :  { %16461 = vmatprep.subr.msk.bf16.mxu0 %vm1495_vm1, %v16437_v37  ;;  %16463 = vmatprep.subr.msk.bf16.mxu1 %vm1495_vm1, %v16439_v4  ;;  %v19546_v37 = vld [vmem:[%s27626_s0 + $0x1a08] ss:$400 sps:$4 sm:$0xff]  }
 0x2ca   :  { %v22751_v50 = vpop.f32.mrf.mxu1  ;;  %9965 = vperm.xlu0 %18541, %v8624_v43   ;;  %v8672_v43 = vld [vmem:[%s27629_s5 + $0x1b0] sm:$0xff] }
 0x2cb   :  { %27696 = vst [vmem:[#allocation54_spill] sm:$0xff] %v22751_v50  ;;  %6096 = vmatpush2.bf16.msra.mxu0 %v5697_v15  ;;  %6139 = vmatpush2.bf16.msra.mxu1 %v5703_v61  ;;  %v19554_v15 = vld [vmem:[%s27626_s0 + $0x16fc] ss:$400 sps:$4 sm:$0xff]  }
 0x2cc   :  { %v4199_v54 = vpop.f32.mrf.mxu1  ;;  %6097 = vmatprep.subr.bf16.mxu0 %v19548_v63  ;;  %6140 = vmatprep.subr.bf16.mxu1 %v19551_v40  ;;  %v19560_v63 = vld [vmem:[%s27626_s0 + $0x13dc] ss:$400 sps:$4 sm:$0xff]   ;;  %v19563_v40 = vld [vmem:[%s27626_s0 + $0x13e4] ss:$400 sps:$4 sm:$0xff]  }
 0x2cd   :  { %v19566_v54 = vld [vmem:[%s27626_s0 + $0x10bc] ss:$400 sps:$4 sm:$0xff]  }
 0x2ce   :  { %v22768_v4 = vpop.f32.mrf.mxu1  ;;  %10205 = vperm.xlu0 %18541, %v8672_v43   ;;  %v19578_v43 = vld [vmem:[%s27626_s0 + $0xa7c] ss:$400 sps:$4 sm:$0xff]  }
 0x2cf   :  { %27697 = vst [vmem:[#allocation55_spill] sm:$0xff] %v22768_v4  ;;  %6098 = vmatpush2.bf16.msra.mxu0 %v19546_v37  ;;  %6141 = vmatpush2.bf16.msra.mxu1 %v19549_v42  ;;  %v19558_v37 = vld [vmem:[%s27626_s0 + $0x13d8] ss:$400 sps:$4 sm:$0xff]   ;;  %v19561_v42 = vld [vmem:[%s27626_s0 + $0x13e0] ss:$400 sps:$4 sm:$0xff]  }
 0x2d0   :  { %v4202_v61 = vpop.f32.mrf.mxu1  ;;  %6153 = vmatprep.subr.bf16.mxu0 %v19554_v15  ;;  %6196 = vmatprep.subr.bf16.mxu1 %v19557_v36  ;;  %v19569_v15 = vld [vmem:[%s27626_s0 + $0x10c4] ss:$400 sps:$4 sm:$0xff]   ;;  %v19564_v36 = vld [vmem:[%s27626_s0 + $0x10b8] ss:$400 sps:$4 sm:$0xff]  }
 0x2d1   :  { %v19572_v61 = vld [vmem:[%s27626_s0 + $0xd9c] ss:$400 sps:$4 sm:$0xff]  }
 0x2d2   :  { %6143 = vmatmul.mubr.bf16.vlgmr.msra.gmra.mxu1 %v22607_v30  ;;  %6100 = vmatmul.mubr.bf16.vlgmr.msra.gmra.mxu0 %v22607_v30 }
 0x2d3   :  { %6154 = vmatpush1.bf16.msra.mxu0 %v19552_v22  ;;  %6197 = vmatpush1.bf16.msra.mxu1 %v19555_v20  ;;  %v19567_v22 = vld [vmem:[%s27626_s0 + $0x10c0] ss:$400 sps:$4 sm:$0xff]  }
 0x2d4   :  { %6155 = vmatprep.subr.bf16.mxu0 %v19560_v63  ;;  %6198 = vmatprep.subr.bf16.mxu1 %v19563_v40  ;;  %v8656_v20 = vld [vmem:[%s27629_s5 + $0x130] sm:$0xff]  ;;  %v19570_v40 = vld [vmem:[%s27626_s0 + $0xd98] ss:$400 sps:$4 sm:$0xff]  }
 0x2d5   :  { %16468 = vmatprep.mubr.msk.bf16.mxu1 %vm1491_vm0, %v22448_v10  ;;  %16466 = vmatprep.mubr.msk.bf16.mxu0 %vm1491_vm0, %v22448_v10  ;;  %v19575_v63 = vld [vmem:[%s27626_s0 + $0xda4] ss:$400 sps:$4 sm:$0xff]  }
 0x2d6   :  { %10125 = vperm.xlu0 %18541, %v8656_v20   ;;  %v19584_v20 = vld [vmem:[%s27626_s0 + $0x75c] ss:$400 sps:$4 sm:$0xff]  }
 0x2d7   :  { %6156 = vmatpush1.bf16.msra.mxu0 %v19558_v37  ;;  %6199 = vmatpush1.bf16.msra.mxu1 %v19561_v42  ;;  %v19573_v37 = vld [vmem:[%s27626_s0 + $0xda0] ss:$400 sps:$4 sm:$0xff]  }
 0x2d8   :  { %6157 = vmatprep.subr.bf16.mxu0 %v19566_v54  ;;  %6200 = vmatprep.subr.bf16.mxu1 %v19569_v15  ;;  %v8638_v42 = vld [vmem:[%s27629_s5 + $0xa0] sm:$0xff]  ;;  %v19576_v15 = vld [vmem:[%s27626_s0 + $0xa78] ss:$400 sps:$4 sm:$0xff]  }
 0x2d9   :  { %v19581_v54 = vld [vmem:[%s27626_s0 + $0xa84] ss:$400 sps:$4 sm:$0xff]  }
 0x2da   :  { %10035 = vperm.xlu0 %18541, %v8638_v42   ;;  %v19590_v42 = vld [vmem:[%s27626_s0 + $0x43c] ss:$400 sps:$4 sm:$0xff]  }
 0x2db   :  { %6158 = vmatpush1.bf16.msra.mxu0 %v19564_v36  ;;  %6201 = vmatpush1.bf16.msra.mxu1 %v19567_v22  ;;  %v19579_v36 = vld [vmem:[%s27626_s0 + $0xa80] ss:$400 sps:$4 sm:$0xff]  }
 0x2dc   :  { %6159 = vmatprep.subr.bf16.mxu0 %v19572_v61  ;;  %6202 = vmatprep.subr.bf16.mxu1 %v19575_v63  ;;  %v8622_v22 = vld [vmem:[%s27629_s5 + $0x20] sm:$0xff]  ;;  %v19582_v63 = vld [vmem:[%s27626_s0 + $0x758] ss:$400 sps:$4 sm:$0xff]  }
 0x2dd   :  { %v19587_v61 = vld [vmem:[%s27626_s0 + $0x764] ss:$400 sps:$4 sm:$0xff]  }
 0x2de   :  { %9955 = vperm.xlu0 %18541, %v8622_v22   ;;  %v19596_v22 = vld [vmem:[%s27626_s0 + $0x11c] ss:$400 sps:$4 sm:$0xff]  }
 0x2df   :  { %6160 = vmatpush1.bf16.msra.mxu0 %v19570_v40  ;;  %6203 = vmatpush1.bf16.msra.mxu1 %v19573_v37  ;;  %v19585_v40 = vld [vmem:[%s27626_s0 + $0x760] ss:$400 sps:$4 sm:$0xff]  }
 0x2e0   :  { %6161 = vmatprep.subr.bf16.mxu0 %v19578_v43  ;;  %6204 = vmatprep.subr.bf16.mxu1 %v19581_v54  ;;  %v8670_v37 = vld [vmem:[%s27629_s5 + $0x1a0] sm:$0xff]  ;;  %v19588_v54 = vld [vmem:[%s27626_s0 + $0x438] ss:$400 sps:$4 sm:$0xff]  }
 0x2e1   :  { %v19593_v43 = vld [vmem:[%s27626_s0 + $0x444] ss:$400 sps:$4 sm:$0xff]  }
 0x2e2   :  { %10195 = vperm.xlu0 %18541, %v8670_v37   ;;  %v19597_v37 = vld [vmem:[%s27626_s0 + $0x120] ss:$400 sps:$4 sm:$0xff]  }
 0x2e3   :  { %6162 = vmatpush1.bf16.msra.mxu0 %v19576_v15  ;;  %6205 = vmatpush1.bf16.msra.mxu1 %v19579_v36  ;;  %v19591_v15 = vld [vmem:[%s27626_s0 + $0x440] ss:$400 sps:$4 sm:$0xff]  }
 0x2e4   :  { %6163 = vmatprep.subr.bf16.mxu0 %v19584_v20  ;;  %6206 = vmatprep.subr.bf16.mxu1 %v19587_v61  ;;  %v8654_v36 = vld [vmem:[%s27629_s5 + $0x120] sm:$0xff]  ;;  %v4448_v61 = vld [vmem:[%s27626_s0 + $0x1d38] sm:$0x77] }
 0x2e5   :  { %v19599_v20 = vld [vmem:[%s27626_s0 + $0x124] ss:$400 sps:$4 sm:$0xff]   ;;  %v16440_v50 = vcombine.low %v4448_v61, %v4448_v61 }
 0x2e6   :  { %10115 = vperm.xlu0 %18541, %v8654_v36  }
 0x2e7   :  { %6164 = vmatpush1.bf16.msra.mxu0 %v19582_v63  ;;  %6207 = vmatpush1.bf16.msra.mxu1 %v19585_v40  ;;  %v4449_v63 = vld [vmem:[%s27626_s0 + $0x1d40] sm:$0x77]  ;;  %v19594_v40 = vld [vmem:[%s27626_s0 + $0x118] ss:$400 sps:$4 sm:$0xff]  }
 0x2e8   :  { %6165 = vmatprep.subr.bf16.mxu0 %v19590_v42  ;;  %6208 = vmatprep.subr.bf16.mxu1 %v19593_v43  ;;  %v16441_v42 = vcombine.high %v4448_v61, %v4448_v61  ;;  %v8636_v43 = vld [vmem:[%s27629_s5 + $0x90] sm:$0xff]  ;;  %v16443_v4 = vcombine.high %v4449_v63, %v4449_v63  ;;  %v16442_v36 = vcombine.low %v4449_v63, %v4449_v63  ;;  %v19604_v61 = vld [vmem:[%s27626_s0 + $0x1a18] ss:$400 sps:$4 sm:$0xff]  }
 0x2e9   :  { %v19612_v63 = vld [vmem:[%s27626_s0 + $0x1710] ss:$400 sps:$4 sm:$0xff]  }
 0x2ea   :  { %10025 = vperm.xlu0 %18541, %v8636_v43   ;;  %v5715_v52 = vsel %vm1495_vm1, %v16442_v36, 0  ;;  %v19614_v43 = vld [vmem:[%s27626_s0 + $0x13ec] ss:$400 sps:$4 sm:$0xff]   ;;  %v19617_v36 = vld [vmem:[%s27626_s0 + $0x13e8] ss:$400 sps:$4 sm:$0xff]  }
 0x2eb   :  { %6166 = vmatpush1.bf16.msra.mxu0 %v19588_v54  ;;  %6209 = vmatpush1.bf16.msra.mxu1 %v19591_v15  ;;  %v8620_v54 = vld [vmem:[%s27629_s5 + $0x10] sm:$0xff]  ;;  %v5709_v15 = vsel %vm1495_vm1, %v16440_v50, 0 }
 0x2ec   :  { %6167 = vmatprep.subr.bf16.mxu0 %v19596_v22  ;;  %6210 = vmatprep.subr.bf16.mxu1 %v19599_v20  ;;  %v19606_v22 = vld [vmem:[%s27626_s0 + $0x1a1c] ss:$400 sps:$4 sm:$0xff]   ;;  %v19609_v20 = vld [vmem:[%s27626_s0 + $0x1a24] ss:$400 sps:$4 sm:$0xff]   ;;  %v19607_v50 = vld [vmem:[%s27626_s0 + $0x1a20] ss:$400 sps:$4 sm:$0xff]  }
 0x2ee   :  { %9945 = vperm.xlu0 %18541, %v8620_v54   ;;  %v8652_v54 = vld [vmem:[%s27629_s5 + $0x110] sm:$0xff] }
 0x2ef   :  { %6168 = vmatpush1.bf16.msra.mxu0 %v19594_v40  ;;  %6211 = vmatpush1.bf16.msra.mxu1 %v19597_v37  ;;  %v19613_v40 = vld [vmem:[%s27626_s0 + $0x1708] ss:$400 sps:$4 sm:$0xff]   ;;  %v27698_v37 = vmov 0  }
 0x2f0   :  { %16465 = vmatprep.subr.msk.bf16.mxu0 %vm1495_vm1, %v16441_v42  ;;  %16467 = vmatprep.subr.msk.bf16.mxu1 %vm1495_vm1, %v16443_v4  ;;  %v8668_v4 = vld [vmem:[%s27629_s5 + $0x190] sm:$0xff] }
 0x2f1   :  { %v19616_v42 = vld [vmem:[%s27626_s0 + $0x13f0] ss:$400 sps:$4 sm:$0xff]  }
 0x2f2   :  { %10185 = vperm.xlu0 %18541, %v8668_v4   ;;  %v19622_v4 = vld [vmem:[%s27626_s0 + $0xdac] ss:$400 sps:$4 sm:$0xff]  }
 0x2f3   :  { %6182 = vmatpush2.bf16.msra.mxu0 %v5709_v15  ;;  %6225 = vmatpush2.bf16.msra.mxu1 %v5715_v52  ;;  %v19610_v52 = vld [vmem:[%s27626_s0 + $0x170c] ss:$400 sps:$4 sm:$0xff]   ;;  %v19620_v15 = vld [vmem:[%s27626_s0 + $0x10d0] ss:$400 sps:$4 sm:$0xff]  }
 0x2f4   :  { %6183 = vmatprep.subr.bf16.mxu0 %v19606_v22  ;;  %6226 = vmatprep.subr.bf16.mxu1 %v19609_v20  ;;  %v19618_v22 = vld [vmem:[%s27626_s0 + $0x10cc] ss:$400 sps:$4 sm:$0xff]   ;;  %v19621_v20 = vld [vmem:[%s27626_s0 + $0x10c8] ss:$400 sps:$4 sm:$0xff]  }
 0x2f6   :  { %10105 = vperm.xlu0 %18541, %v8652_v54   ;;  %v19632_v54 = vld [vmem:[%s27626_s0 + $0x770] ss:$400 sps:$4 sm:$0xff]  }
 0x2f7   :  { %6184 = vmatpush2.bf16.msra.mxu0 %v19604_v61  ;;  %6227 = vmatpush2.bf16.msra.mxu1 %v19607_v50  ;;  %v8634_v61 = vld [vmem:[%s27629_s5 + $0x80] sm:$0xff] }
 0x2f8   :  { %6239 = vmatprep.subr.bf16.mxu0 %v27698_v37  ;;  %7799 = vmatprep.subr.bf16.mxu1 %v19612_v63  ;;  %v19624_v50 = vld [vmem:[%s27626_s0 + $0xdb0] ss:$400 sps:$4 sm:$0xff]   ;;  %v19625_v63 = vld [vmem:[%s27626_s0 + $0xda8] ss:$400 sps:$4 sm:$0xff]  }
 0x2fa   :  { %6229 = vmatmul.mubr.bf16.vlgmr.msra.gmra.mxu1 %v22607_v30  ;;  %6186 = vmatmul.mubr.bf16.vlgmr.msra.gmra.mxu0 %v22607_v30 }
 0x2fb   :  { %6240 = vmatpush1.bf16.msra.mxu0 %v19613_v40  ;;  %7800 = vmatpush1.bf16.msra.mxu1 %v19610_v52  ;;  %v8618_v52 = vld [vmem:[%s27629_s5] sm:$0xff] }
 0x2fc   :  { %6241 = vmatprep.subr.bf16.mxu0 %v27698_v37  ;;  %7801 = vmatprep.subr.bf16.mxu1 %v19616_v42  ;;  %v19628_v40 = vld [vmem:[%s27626_s0 + $0xa90] ss:$400 sps:$4 sm:$0xff]   ;;  %v19626_v42 = vld [vmem:[%s27626_s0 + $0xa8c] ss:$400 sps:$4 sm:$0xff]  }
 0x2fd   :  { %16721 = vmatprep.mubr.msk.bf16.mxu1 %vm1491_vm0, %v22448_v10  ;;  %16469 = vmatprep.mubr.msk.bf16.mxu0 %vm1491_vm0, %v22448_v10 }
 0x2fe   :  { %10015 = vperm.xlu0 %18541, %v8634_v61   ;;  %v19636_v61 = vld [vmem:[%s27626_s0 + $0x450] ss:$400 sps:$4 sm:$0xff]  }
 0x2ff   :  { %6242 = vmatpush1.bf16.msra.mxu0 %v19617_v36  ;;  %7802 = vmatpush1.bf16.msra.mxu1 %v19614_v43  ;;  %v19629_v43 = vld [vmem:[%s27626_s0 + $0xa88] ss:$400 sps:$4 sm:$0xff]   ;;  %v8666_v36 = vld [vmem:[%s27629_s5 + $0x180] sm:$0xff] }
 0x300   :  { %6243 = vmatprep.subr.bf16.mxu0 %v27698_v37  ;;  %7803 = vmatprep.subr.bf16.mxu1 %v19620_v15  ;;  %v19630_v15 = vld [vmem:[%s27626_s0 + $0x76c] ss:$400 sps:$4 sm:$0xff]  }
 0x302   :  { %9935 = vperm.xlu0 %18541, %v8618_v52   ;;  %v19640_v52 = vld [vmem:[%s27626_s0 + $0x130] ss:$400 sps:$4 sm:$0xff]  }
 0x303   :  { %6244 = vmatpush1.bf16.msra.mxu0 %v19621_v20  ;;  %7804 = vmatpush1.bf16.msra.mxu1 %v19618_v22  ;;  %v19633_v22 = vld [vmem:[%s27626_s0 + $0x768] ss:$400 sps:$4 sm:$0xff]   ;;  %v8650_v20 = vld [vmem:[%s27629_s5 + $0x100] sm:$0xff] }
 0x304   :  { %6245 = vmatprep.subr.bf16.mxu0 %v27698_v37  ;;  %7805 = vmatprep.subr.bf16.mxu1 %v19624_v50  ;;  %v19634_v50 = vld [vmem:[%s27626_s0 + $0x44c] ss:$400 sps:$4 sm:$0xff]  }
 0x306   :  { %10175 = vperm.xlu0 %18541, %v8666_v36   ;;  %v8696_v36 = vld [vmem:[%s27629_s5 + $0x270] sm:$0xff] }
 0x307   :  { %6246 = vmatpush1.bf16.msra.mxu0 %v19625_v63  ;;  %7806 = vmatpush1.bf16.msra.mxu1 %v19622_v4  ;;  %v19637_v4 = vld [vmem:[%s27626_s0 + $0x448] ss:$400 sps:$4 sm:$0xff]   ;;  %v8712_v63 = vld [vmem:[%s27629_s5 + $0x2f0] sm:$0xff] }
 0x308   :  { %6247 = vmatprep.subr.bf16.mxu0 %v27698_v37  ;;  %7807 = vmatprep.subr.bf16.mxu1 %v19628_v40  ;;  %v6514_v40 = vld [vmem:[%s27626_s0 + $0x1d4c] sm:$0x77] }
 0x30a   :  { %10095 = vperm.xlu0 %18541, %v8650_v20   ;;  %v8744_v20 = vld [vmem:[%s27629_s5 + $0x3f0] sm:$0xff] }
 0x30b   :  { %6248 = vmatpush1.bf16.msra.mxu0 %v19629_v43  ;;  %7808 = vmatpush1.bf16.msra.mxu1 %v19626_v42  ;;  %v19638_v42 = vld [vmem:[%s27626_s0 + $0x12c] ss:$400 sps:$4 sm:$0xff]   ;;  %v19641_v43 = vld [vmem:[%s27626_s0 + $0x128] ss:$400 sps:$4 sm:$0xff]  }
 0x30c   :  { %6249 = vmatprep.subr.bf16.mxu0 %v27698_v37  ;;  %7809 = vmatprep.subr.bf16.mxu1 %v19632_v54  ;;  %v16696_v54 = vcombine.high %v6514_v40, %v6514_v40 }
 0x30e   :  { %10405 = vperm.xlu0 %18541, %v8712_v63   ;;  %v19645_v63 = vld [vmem:[%s27626_s0 + $0x1a2c] ss:$400 sps:$4 sm:$0xff]  }
 0x30f   :  { %6250 = vmatpush1.bf16.msra.mxu0 %v19633_v22  ;;  %7810 = vmatpush1.bf16.msra.mxu1 %v19630_v15  ;;  %v19643_v15 = vld [vmem:[%s27626_s0 + $0x1d48] ss:$0 sps:$4 sm:$0x77]   ;;  %v16695_v22 = vcombine.low %v6514_v40, %v6514_v40  ;;  %v8728_v40 = vld [vmem:[%s27629_s5 + $0x370] sm:$0xff] }
 0x310   :  { %6251 = vmatprep.subr.bf16.mxu0 %v27698_v37  ;;  %7811 = vmatprep.subr.bf16.mxu1 %v19636_v61  ;;  %v5721_v61 = vsel %vm1495_vm1, %v19643_v15, 0  ;;  %v19657_v15 = vld [vmem:[%s27626_s0 + $0x13f8] ss:$400 sps:$4 sm:$0xff]  }
 0x312   :  { %10325 = vperm.xlu0 %18541, %v8696_v36   ;;  %v19649_v36 = vld [vmem:[%s27626_s0 + $0x1714] ss:$400 sps:$4 sm:$0xff]  }
 0x313   :  { %6252 = vmatpush1.bf16.msra.mxu0 %v19637_v4  ;;  %7812 = vmatpush1.bf16.msra.mxu1 %v19634_v50  ;;  %v7725_v50 = vsel %vm1495_vm1, %v16695_v22, 0  ;;  %v19647_v4 = vld [vmem:[%s27626_s0 + $0x1a30] ss:$400 sps:$4 sm:$0xff]  }
 0x314   :  { %6253 = vmatprep.subr.bf16.mxu0 %v27698_v37  ;;  %7813 = vmatprep.subr.bf16.mxu1 %v19640_v52  ;;  %v19648_v52 = vld [vmem:[%s27626_s0 + $0x1a28] ss:$400 sps:$4 sm:$0xff]   ;;  %v19660_v22 = vld [vmem:[%s27626_s0 + $0x1400] ss:$400 sps:$4 sm:$0xff]  }
 0x316   :  { %10565 = vperm.xlu0 %18541, %v8744_v20   ;;  %v19655_v20 = vld [vmem:[%s27626_s0 + $0x13f4] ss:$400 sps:$4 sm:$0xff]  }
 0x317   :  { %6254 = vmatpush1.bf16.msra.mxu0 %v19641_v43  ;;  %7814 = vmatpush1.bf16.msra.mxu1 %v19638_v42  ;;  %v19651_v42 = vld [vmem:[%s27626_s0 + $0x1718] ss:$400 sps:$4 sm:$0xff]   ;;  %v19654_v43 = vld [vmem:[%s27626_s0 + $0x1720] ss:$400 sps:$4 sm:$0xff]  }
 0x318   :  { %6267 = vmatprep.subr.bf16.mxu0 %v27698_v37  ;;  %16720 = vmatprep.subr.msk.bf16.mxu1 %vm1495_vm1, %v16696_v54  ;;  %v19652_v54 = vld [vmem:[%s27626_s0 + $0x171c] ss:$400 sps:$4 sm:$0xff]  }
 0x31a   :  { %10485 = vperm.xlu0 %18541, %v8728_v40   ;;  %v19664_v40 = vld [vmem:[%s27626_s0 + $0x10dc] ss:$400 sps:$4 sm:$0xff]  }
 0x31b   :  { %6268 = vmatpush2.bf16.msra.mxu0 %v5721_v61  ;;  %7828 = vmatpush2.bf16.msra.mxu1 %v7725_v50  ;;  %v19658_v61 = vld [vmem:[%s27626_s0 + $0x13fc] ss:$400 sps:$4 sm:$0xff]   ;;  %v8710_v50 = vld [vmem:[%s27629_s5 + $0x2e0] sm:$0xff] }
 0x31c   :  { %6269 = vmatprep.subr.bf16.mxu0 %v27698_v37  ;;  %7829 = vmatprep.subr.bf16.mxu1 %v19647_v4  ;;  %v19663_v4 = vld [vmem:[%s27626_s0 + $0x10d8] ss:$400 sps:$4 sm:$0xff]  }
 0x31e   :  { %10395 = vperm.xlu0 %18541, %v8710_v50  }
 0x31f   :  { %6270 = vmatpush2.bf16.msra.mxu0 %v19648_v52  ;;  %7830 = vmatpush2.bf16.msra.mxu1 %v19645_v63  ;;  %v19666_v63 = vld [vmem:[%s27626_s0 + $0x10e0] ss:$400 sps:$4 sm:$0xff]   ;;  %v19661_v52 = vld [vmem:[%s27626_s0 + $0x10d4] ss:$400 sps:$4 sm:$0xff]  }
 0x320   :  { %7842 = vmatprep.subr.bf16.mxu0 %v19651_v42  ;;  %7885 = vmatprep.subr.bf16.mxu1 %v19654_v43  ;;  %v23093_v42 = vpop.permute.xlu0 %8510  ;;  %v8694_v43 = vld [vmem:[%s27629_s5 + $0x260] sm:$0xff] }
 0x322   :  { %7832 = vmatmul.mubr.bf16.vlgmr.msra.gmra.mxu1 %v22607_v30  ;;  %6272 = vmatmul.mubr.bf16.vlgmr.msra.gmra.mxu0 %v22607_v30 }
 0x323   :  { %7843 = vmatpush1.bf16.msra.mxu0 %v19649_v36  ;;  %7886 = vmatpush1.bf16.msra.mxu1 %v19652_v54  ;;  %v19672_v36 = vld [vmem:[%s27626_s0 + $0xdc0] ss:$400 sps:$4 sm:$0xff]   ;;  %v19667_v54 = vld [vmem:[%s27626_s0 + $0xdb4] ss:$400 sps:$4 sm:$0xff]  }
 0x324   :  { %7844 = vmatprep.subr.bf16.mxu0 %v19657_v15  ;;  %7887 = vmatprep.subr.bf16.mxu1 %v19660_v22  ;;  %v19670_v15 = vld [vmem:[%s27626_s0 + $0xdbc] ss:$400 sps:$4 sm:$0xff]   ;;  %v8742_v22 = vld [vmem:[%s27629_s5 + $0x3e0] sm:$0xff]  ;;  %v23119_v50 = vpop.permute.xlu0 %8515 }
 0x325   :  { %16723 = vmatprep.mubr.msk.bf16.mxu0 %vm1491_vm0, %v22448_v10  ;;  %16725 = vmatprep.mubr.msk.bf16.mxu1 %vm1491_vm0, %v22448_v10  ;;  %v19669_v10 = vld [vmem:[%s27626_s0 + $0xdb8] ss:$400 sps:$4 sm:$0xff]  }
 0x326   :  { %10315 = vperm.xlu0 %18541, %v8694_v43   ;;  %v19684_v43 = vld [vmem:[%s27626_s0 + $0x780] ss:$400 sps:$4 sm:$0xff]  }
 0x327   :  { %7845 = vmatpush1.bf16.msra.mxu0 %v19655_v20  ;;  %7888 = vmatpush1.bf16.msra.mxu1 %v19658_v61  ;;  %v19675_v20 = vld [vmem:[%s27626_s0 + $0xa98] ss:$400 sps:$4 sm:$0xff]   ;;  %v19678_v61 = vld [vmem:[%s27626_s0 + $0xaa0] ss:$400 sps:$4 sm:$0xff]  }
 0x328   :  { %7846 = vmatprep.subr.bf16.mxu0 %v19663_v4  ;;  %7889 = vmatprep.subr.bf16.mxu1 %v19666_v63  ;;  %v19673_v4 = vld [vmem:[%s27626_s0 + $0xa94] ss:$400 sps:$4 sm:$0xff]   ;;  %v19676_v63 = vld [vmem:[%s27626_s0 + $0xa9c] ss:$400 sps:$4 sm:$0xff]  }
 0x32a   :  { %10555 = vperm.xlu0 %18541, %v8742_v22   ;;  %v23147_v22 = vpop.f32.mrf.mxu0 }
 0x32b   :  { %7847 = vmatpush1.bf16.msra.mxu0 %v19661_v52  ;;  %7890 = vmatpush1.bf16.msra.mxu1 %v19664_v40  ;;  %v8726_v52 = vld [vmem:[%s27629_s5 + $0x360] sm:$0xff]  ;;  %v19681_v40 = vld [vmem:[%s27626_s0 + $0x778] ss:$400 sps:$4 sm:$0xff]  }
 0x32c   :  { %7848 = vmatprep.subr.bf16.mxu0 %v19669_v10  ;;  %7891 = vmatprep.subr.bf16.mxu1 %v19672_v36  ;;  %v19679_v10 = vld [vmem:[%s27626_s0 + $0x774] ss:$400 sps:$4 sm:$0xff]   ;;  %v19682_v36 = vld [vmem:[%s27626_s0 + $0x77c] ss:$400 sps:$4 sm:$0xff]  }
 0x32e   :  { %10475 = vperm.xlu0 %18541, %v8726_v52   ;;  %v8692_v52 = vld [vmem:[%s27629_s5 + $0x250] sm:$0xff] }
 0x32f   :  { %7849 = vmatpush1.bf16.msra.mxu0 %v19667_v54  ;;  %7892 = vmatpush1.bf16.msra.mxu1 %v19670_v15  ;;  %v23142_v54 = vpop.permute.xlu0 %10005  ;;  %v8708_v15 = vld [vmem:[%s27629_s5 + $0x2d0] sm:$0xff] }
 0x330   :  { %7850 = vmatprep.subr.bf16.mxu0 %v19675_v20  ;;  %7893 = vmatprep.subr.bf16.mxu1 %v19678_v61  ;;  %27699 = vst [vmem:[#allocation56_spill] sm:$0xff] %v23142_v54  ;;  %v19687_v20 = vld [vmem:[%s27626_s0 + $0x458] ss:$400 sps:$4 sm:$0xff]   ;;  %v19690_v61 = vld [vmem:[%s27626_s0 + $0x460] ss:$400 sps:$4 sm:$0xff]  }
 0x332   :  { %10385 = vperm.xlu0 %18541, %v8708_v15   ;;  %v6516_v15 = vld [vmem:[%s27626_s0 + $0x1d5c] sm:$0x77] }
 0x333   :  { %7851 = vmatpush1.bf16.msra.mxu0 %v19673_v4  ;;  %7894 = vmatpush1.bf16.msra.mxu1 %v19676_v63  ;;  %v19685_v4 = vld [vmem:[%s27626_s0 + $0x454] ss:$400 sps:$4 sm:$0xff]   ;;  %v19688_v63 = vld [vmem:[%s27626_s0 + $0x45c] ss:$400 sps:$4 sm:$0xff]   ;;  %v23178_v54 = vpop.permute.xlu0 %10245 }
 0x334   :  { %7852 = vmatprep.subr.bf16.mxu0 %v19681_v40  ;;  %7895 = vmatprep.subr.bf16.mxu1 %v19684_v43  ;;  %v23164_v40 = vpop.f32.mrf.mxu0  ;;  %v19693_v43 = vld [vmem:[%s27626_s0 + $0x138] ss:$400 sps:$4 sm:$0xff]   ;;  %27701 = vst [vmem:[#allocation58_spill] sm:$0xff] %v23178_v54 }
 0x335   :  { %27700 = vst [vmem:[#allocation57_spill] sm:$0xff] %v23164_v40 }
 0x336   :  { %10305 = vperm.xlu0 %18541, %v8692_v52   ;;  %v23189_v53 = vpop.f32.mrf.mxu0  ;;  %v16700_v52 = vcombine.high %v6516_v15, %v6516_v15 }
 0x337   :  { %7853 = vmatpush1.bf16.msra.mxu0 %v19679_v10  ;;  %7896 = vmatpush1.bf16.msra.mxu1 %v19682_v36  ;;  %v19696_v10 = vld [vmem:[%s27626_s0 + $0x140] ss:$400 sps:$4 sm:$0xff]   ;;  %v6515_v36 = vld [vmem:[%s27626_s0 + $0x1d54] sm:$0x77]  ;;  %v23191_v54 = vpop.permute.xlu0 %10165 }
 0x338   :  { %7854 = vmatprep.subr.bf16.mxu0 %v19687_v20  ;;  %7897 = vmatprep.subr.bf16.mxu1 %v19690_v61  ;;  %v19691_v20 = vld [vmem:[%s27626_s0 + $0x134] ss:$400 sps:$4 sm:$0xff]   ;;  %v19694_v61 = vld [vmem:[%s27626_s0 + $0x13c] ss:$400 sps:$4 sm:$0xff]   ;;  %v16698_v39 = vcombine.high %v6515_v36, %v6515_v36  ;;  %27702 = vst [vmem:[#allocation59_spill] sm:$0xff] %v23191_v54  ;;  %v23196_v16 = vpop.f32.mrf.mxu0 }
 0x339   :  { %27703 = vst [vmem:[#allocation60_spill] sm:$0xff] %v23196_v16  ;;  %v19722_v54 = vld [vmem:[%s27626_s0 + $0x10ec] ss:$400 sps:$4 sm:$0xff]  }
 0x33a   :  { %10545 = vperm.xlu0 %18541, %v8740_v8   ;;  %v19703_v8 = vld [vmem:[%s27626_s0 + $0x1a38] ss:$400 sps:$4 sm:$0xff]  }
 0x33b   :  { %7855 = vmatpush1.bf16.msra.mxu0 %v19685_v4  ;;  %7898 = vmatpush1.bf16.msra.mxu1 %v19688_v63  ;;  %v16697_v4 = vcombine.low %v6515_v36, %v6515_v36  ;;  %v16699_v63 = vcombine.low %v6516_v15, %v6516_v15  ;;  %v19706_v36 = vld [vmem:[%s27626_s0 + $0x1a40] ss:$400 sps:$4 sm:$0xff]   ;;  %v23208_v15 = vpop.f32.mrf.mxu0 }
 0x33c   :  { %7856 = vmatprep.subr.bf16.mxu0 %v19693_v43  ;;  %7899 = vmatprep.subr.bf16.mxu1 %v19696_v10 }
 0x33d   :  { %v7731_v43 = vsel %vm1495_vm1, %v16697_v4, 0  ;;  %v7737_v10 = vsel %vm1495_vm1, %v16699_v63, 0  ;;  %v23225_v4 = vpop.permute.xlu0 %10075  ;;  %v23227_v63 = vpop.f32.mrf.mxu0 }
 0x33e   :  { %10465 = vperm.xlu0 %18541, %v8724_v0   ;;  %v19709_v0 = vld [vmem:[%s27626_s0 + $0x1728] ss:$400 sps:$4 sm:$0xff]   ;;  %27704 = vst [vmem:[#allocation61_spill] sm:$0xff] %v23225_v4  ;;  %v8738_v4 = vld [vmem:[%s27629_s5 + $0x3c0] sm:$0xff] }
 0x33f   :  { %7857 = vmatpush1.bf16.msra.mxu0 %v19691_v20  ;;  %7900 = vmatpush1.bf16.msra.mxu1 %v19694_v61  ;;  %v19704_v20 = vld [vmem:[%s27626_s0 + $0x1a3c] ss:$400 sps:$4 sm:$0xff]   ;;  %v8706_v61 = vld [vmem:[%s27629_s5 + $0x2c0] sm:$0xff] }
 0x340   :  { %16722 = vmatprep.subr.msk.bf16.mxu0 %vm1495_vm1, %v16698_v39  ;;  %16724 = vmatprep.subr.msk.bf16.mxu1 %vm1495_vm1, %v16700_v52  ;;  %v19701_v39 = vld [vmem:[%s27626_s0 + $0x1a34] ss:$400 sps:$4 sm:$0xff]   ;;  %v19712_v52 = vld [vmem:[%s27626_s0 + $0x1730] ss:$400 sps:$4 sm:$0xff]  }
 0x342   :  { %10375 = vperm.xlu0 %18541, %v8706_v61   ;;  %v19716_v61 = vld [vmem:[%s27626_s0 + $0x140c] ss:$400 sps:$4 sm:$0xff]  }
 0x343   :  { %7871 = vmatpush2.bf16.msra.mxu0 %v7731_v43  ;;  %7914 = vmatpush2.bf16.msra.mxu1 %v7737_v10  ;;  %v19707_v43 = vld [vmem:[%s27626_s0 + $0x1724] ss:$400 sps:$4 sm:$0xff]   ;;  %v19710_v10 = vld [vmem:[%s27626_s0 + $0x172c] ss:$400 sps:$4 sm:$0xff]  }
 0x344   :  { %7872 = vmatprep.subr.bf16.mxu0 %v19703_v8  ;;  %7915 = vmatprep.subr.bf16.mxu1 %v19706_v36  ;;  %v19715_v8 = vld [vmem:[%s27626_s0 + $0x1408] ss:$400 sps:$4 sm:$0xff]   ;;  %v19718_v36 = vld [vmem:[%s27626_s0 + $0x1410] ss:$400 sps:$4 sm:$0xff]  }
 0x347   :  { %7873 = vmatpush2.bf16.msra.mxu0 %v19701_v39  ;;  %7916 = vmatpush2.bf16.msra.mxu1 %v19704_v20  ;;  %v23241_v39 = vpop.f32.mrf.mxu0  ;;  %v19713_v20 = vld [vmem:[%s27626_s0 + $0x1404] ss:$400 sps:$4 sm:$0xff]  }
 0x348   :  { %7928 = vmatprep.subr.bf16.mxu0 %v19709_v0  ;;  %7971 = vmatprep.subr.bf16.mxu1 %v19712_v52  ;;  %v23251_v0 = vpop.permute.xlu0 %9995  ;;  %v8690_v52 = vld [vmem:[%s27629_s5 + $0x240] sm:$0xff] }
 0x349   :  { %27705 = vst [vmem:[#allocation62_spill] sm:$0xff] %v23251_v0  ;;  %10295 = vperm.xlu0 %18541, %v8690_v52  }
 0x34a   :  { %7875 = vmatmul.mubr.bf16.vlgmr.msra.gmra.mxu0 %v22607_v30  ;;  %7918 = vmatmul.mubr.bf16.vlgmr.msra.gmra.mxu1 %v22607_v30  ;;  %v19721_v30 = vld [vmem:[%s27626_s0 + $0x10e8] ss:$400 sps:$4 sm:$0xff]  }
 0x34b   :  { %7929 = vmatpush1.bf16.msra.mxu0 %v19707_v43  ;;  %7972 = vmatpush1.bf16.msra.mxu1 %v19710_v10  ;;  %v19724_v43 = vld [vmem:[%s27626_s0 + $0x10f0] ss:$400 sps:$4 sm:$0xff]   ;;  %v23265_v10 = vld [vmem:[%s27627_s1 + $0x4] ss:$8 sps:$4 sm:$0xff]  }
 0x34c   :  { %7930 = vmatprep.subr.bf16.mxu0 %v19715_v8  ;;  %7973 = vmatprep.subr.bf16.mxu1 %v19718_v36  ;;  %v23271_v8 = vpop.f32.mrf.mxu0  ;;  %v19719_v36 = vld [vmem:[%s27626_s0 + $0x10e4] ss:$400 sps:$4 sm:$0xff]   ;;  %v23290_v52 = vpop.permute.xlu0 %10235 }
 0x34d   :  { %16727 = vmatprep.mubr.msk.bf16.mxu0 %vm1491_vm0, %v23265_v10  ;;  %16729 = vmatprep.mubr.msk.bf16.mxu1 %vm1491_vm0, %v23265_v10  ;;  %27707 = vst [vmem:[#allocation64_spill] sm:$0xff] %v23290_v52  ;;  %v8704_v52 = vld [vmem:[%s27629_s5 + $0x2b0] sm:$0xff] }
 0x34e   :  { %v23282_v0 = vpop.f32.mrf.mxu0  ;;  %10535 = vperm.xlu0 %18541, %v8738_v4   ;;  %v19736_v4 = vld [vmem:[%s27626_s0 + $0xab0] ss:$400 sps:$4 sm:$0xff]  }
 0x34f   :  { %7931 = vmatpush1.bf16.msra.mxu0 %v19713_v20  ;;  %7974 = vmatpush1.bf16.msra.mxu1 %v19716_v61  ;;  %27706 = vst [vmem:[#allocation63_spill] sm:$0xff] %v23282_v0  ;;  %v19727_v20 = vld [vmem:[%s27626_s0 + $0xdc8] ss:$400 sps:$4 sm:$0xff]   ;;  %v19730_v61 = vld [vmem:[%s27626_s0 + $0xdd0] ss:$400 sps:$4 sm:$0xff]  }
 0x350   :  { %7932 = vmatprep.subr.bf16.mxu0 %v19721_v30  ;;  %7975 = vmatprep.subr.bf16.mxu1 %v19724_v43  ;;  %v19728_v30 = vld [vmem:[%s27626_s0 + $0xdcc] ss:$400 sps:$4 sm:$0xff]   ;;  %v8722_v43 = vld [vmem:[%s27629_s5 + $0x340] sm:$0xff]  ;;  %v23301_v44 = vpop.f32.mrf.mxu0 }
 0x351   :  { %27708 = vst [vmem:[#allocation65_spill] sm:$0xff] %v23301_v44 }
 0x352   :  { %10455 = vperm.xlu0 %18541, %v8722_v43   ;;  %v23320_v44 = vpop.f32.mrf.mxu0  ;;  %v19737_v43 = vld [vmem:[%s27626_s0 + $0x784] ss:$400 sps:$4 sm:$0xff]  }
 0x353   :  { %7933 = vmatpush1.bf16.msra.mxu0 %v19719_v36  ;;  %7976 = vmatpush1.bf16.msra.mxu1 %v19722_v54  ;;  %v19733_v54 = vld [vmem:[%s27626_s0 + $0xaa8] ss:$400 sps:$4 sm:$0xff]   ;;  %v19731_v36 = vld [vmem:[%s27626_s0 + $0xaa4] ss:$400 sps:$4 sm:$0xff]   ;;  %27710 = vst [vmem:[#allocation67_spill] sm:$0xff] %v23320_v44 }
 0x354   :  { %7934 = vmatprep.subr.bf16.mxu0 %v19727_v20  ;;  %7977 = vmatprep.subr.bf16.mxu1 %v19730_v61  ;;  %v19734_v20 = vld [vmem:[%s27626_s0 + $0xaac] ss:$400 sps:$4 sm:$0xff]   ;;  %v23315_v61 = vpop.permute.xlu0 %10155 }
 0x355   :  { %27709 = vst [vmem:[#allocation66_spill] sm:$0xff] %v23315_v61  ;;  %v23337_v61 = vpop.f32.mrf.mxu0 }
 0x356   :  { %10365 = vperm.xlu0 %18541, %v8704_v52   ;;  %27711 = vst [vmem:[#allocation68_spill] sm:$0xff] %v23337_v61  ;;  %v19745_v52 = vld [vmem:[%s27626_s0 + $0x468] ss:$400 sps:$4 sm:$0xff]   ;;  %v8736_v61 = vld [vmem:[%s27629_s5 + $0x3b0] sm:$0xff] }
 0x357   :  { %7935 = vmatpush1.bf16.msra.mxu0 %v19725_v32  ;;  %7978 = vmatpush1.bf16.msra.mxu1 %v19728_v30  ;;  %v19739_v32 = vld [vmem:[%s27626_s0 + $0x788] ss:$400 sps:$4 sm:$0xff]   ;;  %v19742_v30 = vld [vmem:[%s27626_s0 + $0x790] ss:$400 sps:$4 sm:$0xff]   ;;  %v23347_v46 = vpop.f32.mrf.mxu0 }
 0x358   :  { %7936 = vmatprep.subr.bf16.mxu0 %v19733_v54  ;;  %7979 = vmatprep.subr.bf16.mxu1 %v19736_v4  ;;  %v19740_v54 = vld [vmem:[%s27626_s0 + $0x78c] ss:$400 sps:$4 sm:$0xff]   ;;  %v8688_v4 = vld [vmem:[%s27629_s5 + $0x230] sm:$0xff]  ;;  %27713 = vst [vmem:[#allocation70_spill] sm:$0xff] %v23347_v46  ;;  %v23577_v46 = vpop.f32.mrf.mxu1 }
 0x359   :  { %v23370_v19 = vpop.f32.mrf.mxu0 }
 0x35a   :  { %10285 = vperm.xlu0 %18541, %v8688_v4   ;;  %v19751_v4 = vld [vmem:[%s27626_s0 + $0x148] ss:$400 sps:$4 sm:$0xff]   ;;  %27714 = vst [vmem:[#allocation71_spill] sm:$0xff] %v23370_v19 }
 0x35b   :  { %7937 = vmatpush1.bf16.msra.mxu0 %v19731_v36  ;;  %7980 = vmatpush1.bf16.msra.mxu1 %v19734_v20  ;;  %v19748_v36 = vld [vmem:[%s27626_s0 + $0x470] ss:$400 sps:$4 sm:$0xff]   ;;  %v23345_v20 = vpop.permute.xlu0 %10065  ;;  %v23383_v19 = vpop.f32.mrf.mxu0 }
 0x35c   :  { %7938 = vmatprep.subr.bf16.mxu0 %v19739_v32  ;;  %7981 = vmatprep.subr.bf16.mxu1 %v19742_v30  ;;  %27712 = vst [vmem:[#allocation69_spill] sm:$0xff] %v23345_v20  ;;  %v19743_v32 = vld [vmem:[%s27626_s0 + $0x464] ss:$400 sps:$4 sm:$0xff]   ;;  %v19746_v30 = vld [vmem:[%s27626_s0 + $0x46c] ss:$400 sps:$4 sm:$0xff]   ;;  %27716 = vst [vmem:[#allocation73_spill] sm:$0xff] %v23383_v19 }
 0x35d   :  { %v6518_v20 = vld [vmem:[%s27626_s0 + $0x1d6c] sm:$0x77] }
 0x35e   :  { %10525 = vperm.xlu0 %18541, %v8736_v61   ;;  %v16704_v61 = vcombine.high %v6518_v20, %v6518_v20 }
 0x35f   :  { %7939 = vmatpush1.bf16.msra.mxu0 %v19737_v43  ;;  %7982 = vmatpush1.bf16.msra.mxu1 %v19740_v54  ;;  %v19754_v43 = vld [vmem:[%s27626_s0 + $0x150] ss:$400 sps:$4 sm:$0xff]   ;;  %v6517_v54 = vld [vmem:[%s27626_s0 + $0x1d64] sm:$0x77]  ;;  %v23378_v27 = vpop.permute.xlu0 %9985 }
 0x360   :  { %7940 = vmatprep.subr.bf16.mxu0 %v19745_v52  ;;  %7983 = vmatprep.subr.bf16.mxu1 %v19748_v36  ;;  %v19749_v52 = vld [vmem:[%s27626_s0 + $0x144] ss:$400 sps:$4 sm:$0xff]   ;;  %v19752_v36 = vld [vmem:[%s27626_s0 + $0x14c] ss:$400 sps:$4 sm:$0xff]   ;;  %v16702_v13 = vcombine.high %v6517_v54, %v6517_v54  ;;  %27715 = vst [vmem:[#allocation72_spill] sm:$0xff] %v23378_v27 }
 0x362   :  { %10445 = vperm.xlu0 %18541, %v8720_v6   ;;  %v19764_v6 = vld [vmem:[%s27626_s0 + $0x1a50] ss:$400 sps:$4 sm:$0xff]  }
 0x363   :  { %7941 = vmatpush1.bf16.msra.mxu0 %v19743_v32  ;;  %7984 = vmatpush1.bf16.msra.mxu1 %v19746_v30  ;;  %v16701_v32 = vcombine.low %v6517_v54, %v6517_v54  ;;  %v16703_v30 = vcombine.low %v6518_v20, %v6518_v20  ;;  %v19761_v20 = vld [vmem:[%s27626_s0 + $0x1a48] ss:$400 sps:$4 sm:$0xff]   ;;  %v23400_v54 = vpop.f32.mrf.mxu0 }
 0x364   :  { %7942 = vmatprep.subr.bf16.mxu0 %v19751_v4  ;;  %7985 = vmatprep.subr.bf16.mxu1 %v19754_v43  ;;  %v23398_v43 = vpop.permute.xlu0 %10225  ;;  %27718 = vst [vmem:[#allocation75_spill] sm:$0xff] %v23400_v54 }
 0x365   :  { %v7743_v27 = vsel %vm1495_vm1, %v16701_v32, 0  ;;  %v7749_v4 = vsel %vm1495_vm1, %v16703_v30, 0  ;;  %27717 = vst [vmem:[#allocation74_spill] sm:$0xff] %v23398_v43  ;;  %v19765_v32 = vld [vmem:[%s27626_s0 + $0x1734] ss:$400 sps:$4 sm:$0xff]  }
 0x366   :  { %10355 = vperm.xlu0 %18541, %v8702_v41   ;;  %v19770_v41 = vld [vmem:[%s27626_s0 + $0x1740] ss:$400 sps:$4 sm:$0xff]   ;;  %v19768_v30 = vld [vmem:[%s27626_s0 + $0x173c] ss:$400 sps:$4 sm:$0xff]  }
 0x367   :  { %7943 = vmatpush1.bf16.msra.mxu0 %v19749_v52  ;;  %7986 = vmatpush1.bf16.msra.mxu1 %v19752_v36  ;;  %v19762_v52 = vld [vmem:[%s27626_s0 + $0x1a4c] ss:$400 sps:$4 sm:$0xff]   ;;  %v8686_v36 = vld [vmem:[%s27629_s5 + $0x220] sm:$0xff] }
 0x368   :  { %16726 = vmatprep.subr.msk.bf16.mxu0 %vm1495_vm1, %v16702_v13  ;;  %16728 = vmatprep.subr.msk.bf16.mxu1 %vm1495_vm1, %v16704_v61  ;;  %v19759_v13 = vld [vmem:[%s27626_s0 + $0x1a44] ss:$400 sps:$4 sm:$0xff]   ;;  %v23411_v61 = vpop.f32.mrf.mxu0 }
 0x369   :  { %27719 = vst [vmem:[#allocation76_spill] sm:$0xff] %v23411_v61  ;;  %v8698_v61 = vld [vmem:[%s27629_s5 + $0x280] sm:$0xff] }
 0x36a   :  { %10275 = vperm.xlu0 %18541, %v8686_v36   ;;  %v19771_v36 = vld [vmem:[%s27626_s0 + $0x1414] ss:$400 sps:$4 sm:$0xff]  }
 0x36b   :  { %7957 = vmatpush2.bf16.msra.mxu0 %v7743_v27  ;;  %8000 = vmatpush2.bf16.msra.mxu1 %v7749_v4  ;;  %v19767_v27 = vld [vmem:[%s27626_s0 + $0x1738] ss:$400 sps:$4 sm:$0xff]   ;;  %v23425_v4 = vpop.permute.xlu0 %10145 }
 0x36c   :  { %7958 = vmatprep.subr.bf16.mxu0 %v19761_v20  ;;  %8001 = vmatprep.subr.bf16.mxu1 %v19764_v6  ;;  %27720 = vst [vmem:[#allocation77_spill] sm:$0xff] %v23425_v4  ;;  %v23427_v20 = vpop.f32.mrf.mxu0  ;;  %v19773_v6 = vld [vmem:[%s27626_s0 + $0x1418] ss:$400 sps:$4 sm:$0xff]  }
 0x36d   :  { %27721 = vst [vmem:[#allocation78_spill] sm:$0xff] %v23427_v20  ;;  %v8718_v20 = vld [vmem:[%s27629_s5 + $0x320] sm:$0xff] }
 0x36e   :  { %v23451_v43 = vpop.f32.mrf.mxu0 }
 0x36f   :  { %7959 = vmatpush2.bf16.msra.mxu0 %v19759_v13  ;;  %8002 = vmatpush2.bf16.msra.mxu1 %v19762_v52  ;;  %v19776_v13 = vld [vmem:[%s27626_s0 + $0x1420] ss:$400 sps:$4 sm:$0xff]   ;;  %27722 = vst [vmem:[#allocation79_spill] sm:$0xff] %v23451_v43  ;;  %v23463_v4 = vpop.permute.xlu0 %10055 }
 0x370   :  { %8014 = vmatprep.subr.bf16.mxu0 %v19767_v27  ;;  %8057 = vmatprep.subr.bf16.mxu1 %v19770_v41  ;;  %v23438_v52 = vld [vmem:[%s27627_s1] ss:$8 sps:$4 sm:$0xff]   ;;  %v19774_v27 = vld [vmem:[%s27626_s0 + $0x141c] ss:$400 sps:$4 sm:$0xff]   ;;  %27723 = vst [vmem:[#allocation80_spill] sm:$0xff] %v23463_v4  ;;  %v23474_v54 = vpop.f32.mrf.mxu0 }
 0x371   :  { %v8734_v41 = vld [vmem:[%s27629_s5 + $0x3a0] sm:$0xff]  ;;  %27724 = vst [vmem:[#allocation81_spill] sm:$0xff] %v23474_v54  ;;  %v8700_v54 = vld [vmem:[%s27629_s5 + $0x290] sm:$0xff] }
 0x372   :  { %7961 = vmatmul.mubr.bf16.vlgmr.msra.gmra.mxu0 %v23438_v52  ;;  %8004 = vmatmul.mubr.bf16.vlgmr.msra.gmra.mxu1 %v23438_v52  ;;  %v19783_v4 = vld [vmem:[%s27626_s0 + $0xdd4] ss:$400 sps:$4 sm:$0xff]  }
 0x373   :  { %8015 = vmatpush1.bf16.msra.mxu0 %v19765_v32  ;;  %8058 = vmatpush1.bf16.msra.mxu1 %v19768_v30  ;;  %v19779_v32 = vld [vmem:[%s27626_s0 + $0x10f8] ss:$400 sps:$4 sm:$0xff]   ;;  %v19782_v30 = vld [vmem:[%s27626_s0 + $0x1100] ss:$400 sps:$4 sm:$0xff]  }
 0x374   :  { %8016 = vmatprep.subr.bf16.mxu0 %v19773_v6  ;;  %8059 = vmatprep.subr.bf16.mxu1 %v19776_v13  ;;  %v19777_v6 = vld [vmem:[%s27626_s0 + $0x10f4] ss:$400 sps:$4 sm:$0xff]   ;;  %v19780_v13 = vld [vmem:[%s27626_s0 + $0x10fc] ss:$400 sps:$4 sm:$0xff]  }
 0x375   :  { %16731 = vmatprep.mubr.msk.bf16.mxu0 %vm1491_vm0, %v23265_v10  ;;  %16733 = vmatprep.mubr.msk.bf16.mxu1 %vm1491_vm0, %v23265_v10 }
 0x376   :  { %10515 = vperm.xlu0 %18541, %v8734_v41   ;;  %v23482_v41 = vpop.f32.mrf.mxu0 }
 0x377   :  { %8017 = vmatpush1.bf16.msra.mxu0 %v19771_v36  ;;  %8060 = vmatpush1.bf16.msra.mxu1 %v19774_v27  ;;  %v19785_v36 = vld [vmem:[%s27626_s0 + $0xdd8] ss:$400 sps:$4 sm:$0xff]   ;;  %v19788_v27 = vld [vmem:[%s27626_s0 + $0xde0] ss:$400 sps:$4 sm:$0xff]   ;;  %27725 = vst [vmem:[#allocation82_spill] sm:$0xff] %v23482_v41 }
 0x378   :  { %8018 = vmatprep.subr.bf16.mxu0 %v19779_v32  ;;  %8061 = vmatprep.subr.bf16.mxu1 %v19782_v30  ;;  %v19786_v32 = vld [vmem:[%s27626_s0 + $0xddc] ss:$400 sps:$4 sm:$0xff]   ;;  %v23490_v30 = vpop.permute.xlu0 %9975  ;;  %v8732_v41 = vld [vmem:[%s27629_s5 + $0x390] sm:$0xff] }
 0x379   :  { %27726 = vst [vmem:[#allocation83_spill] sm:$0xff] %v23490_v30  ;;  %v19789_v30 = vld [vmem:[%s27626_s0 + $0xab4] ss:$400 sps:$4 sm:$0xff]  }
 0x37a   :  { %10435 = vperm.xlu0 %18541, %v8718_v20   ;;  %v19791_v20 = vld [vmem:[%s27626_s0 + $0xab8] ss:$400 sps:$4 sm:$0xff]  }
 0x37b   :  { %8019 = vmatpush1.bf16.msra.mxu0 %v19777_v6  ;;  %8062 = vmatpush1.bf16.msra.mxu1 %v19780_v13  ;;  %v19794_v6 = vld [vmem:[%s27626_s0 + $0xac0] ss:$400 sps:$4 sm:$0xff]   ;;  %v23501_v13 = vpop.f32.mrf.mxu0 }
 0x37c   :  { %8020 = vmatprep.subr.bf16.mxu0 %v19785_v36  ;;  %8063 = vmatprep.subr.bf16.mxu1 %v19788_v27  ;;  %27727 = vst [vmem:[#allocation84_spill] sm:$0xff] %v23501_v13  ;;  %v19792_v36 = vld [vmem:[%s27626_s0 + $0xabc] ss:$400 sps:$4 sm:$0xff]   ;;  %v8684_v27 = vld [vmem:[%s27629_s5 + $0x210] sm:$0xff] }
 0x37d   :  { %v23520_v13 = vpop.f32.mrf.mxu0 }
 0x37e   :  { %10345 = vperm.xlu0 %18541, %v8700_v54   ;;  %v19797_v54 = vld [vmem:[%s27626_s0 + $0x798] ss:$400 sps:$4 sm:$0xff]   ;;  %27729 = vst [vmem:[#allocation86_spill] sm:$0xff] %v23520_v13  ;;  %v8716_v13 = vld [vmem:[%s27629_s5 + $0x310] sm:$0xff] }
 0x37f   :  { %8021 = vmatpush1.bf16.msra.mxu0 %v19783_v4  ;;  %8064 = vmatpush1.bf16.msra.mxu1 %v19786_v32  ;;  %v19800_v4 = vld [vmem:[%s27626_s0 + $0x7a0] ss:$400 sps:$4 sm:$0xff]   ;;  %v23518_v32 = vpop.permute.xlu0 %10215 }
 0x380   :  { %8022 = vmatprep.subr.bf16.mxu0 %v19791_v20  ;;  %8065 = vmatprep.subr.bf16.mxu1 %v19794_v6  ;;  %27728 = vst [vmem:[#allocation85_spill] sm:$0xff] %v23518_v32  ;;  %v19795_v20 = vld [vmem:[%s27626_s0 + $0x794] ss:$400 sps:$4 sm:$0xff]   ;;  %v19798_v6 = vld [vmem:[%s27626_s0 + $0x79c] ss:$400 sps:$4 sm:$0xff]  }
 0x381   :  { %v19801_v32 = vld [vmem:[%s27626_s0 + $0x474] ss:$400 sps:$4 sm:$0xff]  }
 0x382   :  { %10265 = vperm.xlu0 %18541, %v8684_v27   ;;  %v19803_v27 = vld [vmem:[%s27626_s0 + $0x478] ss:$400 sps:$4 sm:$0xff]  }
 0x383   :  { %8023 = vmatpush1.bf16.msra.mxu0 %v19789_v30  ;;  %8066 = vmatpush1.bf16.msra.mxu1 %v19792_v36  ;;  %v19806_v30 = vld [vmem:[%s27626_s0 + $0x480] ss:$400 sps:$4 sm:$0xff]   ;;  %v23537_v36 = vpop.f32.mrf.mxu0 }
 0x384   :  { %8024 = vmatprep.subr.bf16.mxu0 %v19797_v54  ;;  %8067 = vmatprep.subr.bf16.mxu1 %v19800_v4  ;;  %27730 = vst [vmem:[#allocation87_spill] sm:$0xff] %v23537_v36  ;;  %v19804_v54 = vld [vmem:[%s27626_s0 + $0x47c] ss:$400 sps:$4 sm:$0xff]   ;;  %v23545_v4 = vpop.permute.xlu0 %10135 }
 0x385   :  { %27731 = vst [vmem:[#allocation88_spill] sm:$0xff] %v23545_v4  ;;  %v23550_v43 = vpop.f32.mrf.mxu0  ;;  %v6520_v4 = vld [vmem:[%s27626_s0 + $0x1d7c] sm:$0x77] }
 0x386   :  { %10505 = vperm.xlu0 %18541, %v8732_v41   ;;  %v19809_v41 = vld [vmem:[%s27626_s0 + $0x158] ss:$400 sps:$4 sm:$0xff]  }
 0x387   :  { %8025 = vmatpush1.bf16.msra.mxu0 %v19795_v20  ;;  %8068 = vmatpush1.bf16.msra.mxu1 %v19798_v6  ;;  %v19812_v20 = vld [vmem:[%s27626_s0 + $0x160] ss:$400 sps:$4 sm:$0xff]   ;;  %v6519_v6 = vld [vmem:[%s27626_s0 + $0x1d74] sm:$0x77]  ;;  %v23573_v19 = vpop.f32.mrf.mxu0 }
 0x388   :  { %8026 = vmatprep.subr.bf16.mxu0 %v19803_v27  ;;  %8069 = vmatprep.subr.bf16.mxu1 %v19806_v30  ;;  %v19807_v27 = vld [vmem:[%s27626_s0 + $0x154] ss:$400 sps:$4 sm:$0xff]   ;;  %v19810_v30 = vld [vmem:[%s27626_s0 + $0x15c] ss:$400 sps:$4 sm:$0xff]   ;;  %v16706_v36 = vcombine.high %v6519_v6, %v6519_v6  ;;  %27732 = vst [vmem:[#allocation89_spill] sm:$0xff] %v23573_v19  ;;  %v23575_v59 = vpop.permute.xlu0 %10045 }
 0x389   :  { %27733 = vst [vmem:[#allocation90_spill] sm:$0xff] %v23575_v59  ;;  %v23582_v12 = vpop.f32.mrf.mxu0  ;;  %v19831_v59 = vld [vmem:[%s27626_s0 + $0x1428] ss:$400 sps:$4 sm:$0xff]  }
 0x38a   :  { %10425 = vperm.xlu0 %18541, %v8716_v13   ;;  %v16708_v13 = vcombine.high %v6520_v4, %v6520_v4 }
 0x38b   :  { %8027 = vmatpush1.bf16.msra.mxu0 %v19801_v32  ;;  %8070 = vmatpush1.bf16.msra.mxu1 %v19804_v54  ;;  %v16705_v32 = vcombine.low %v6519_v6, %v6519_v6  ;;  %v16707_v54 = vcombine.low %v6520_v4, %v6520_v4  ;;  %v23594_v6 = vpop.f32.mrf.mxu1 }
 0x38c   :  { %8028 = vmatprep.subr.bf16.mxu0 %v19809_v41  ;;  %8071 = vmatprep.subr.bf16.mxu1 %v19812_v20  ;;  %v19822_v20 = vld [vmem:[%s27626_s0 + $0x1a60] ss:$400 sps:$4 sm:$0xff]   ;;  %27734 = vst [vmem:[#allocation91_spill] sm:$0xff] %v23594_v6 }
 0x38d   :  { %v7755_v41 = vsel %vm1495_vm1, %v16705_v32, 0  ;;  %v7761_v4 = vsel %vm1495_vm1, %v16707_v54, 0  ;;  %v23607_v32 = vpop.f32.mrf.mxu0  ;;  %v19828_v54 = vld [vmem:[%s27626_s0 + $0x1750] ss:$400 sps:$4 sm:$0xff]  }
 0x38e   :  { %10335 = vperm.xlu0 %18541, %v8698_v61   ;;  %v19819_v61 = vld [vmem:[%s27626_s0 + $0x1a58] ss:$400 sps:$4 sm:$0xff]   ;;  %27736 = vst [vmem:[#allocation93_spill] sm:$0xff] %v23607_v32 }
 0x38f   :  { %8029 = vmatpush1.bf16.msra.mxu0 %v19807_v27  ;;  %8072 = vmatpush1.bf16.msra.mxu1 %v19810_v30  ;;  %v19820_v27 = vld [vmem:[%s27626_s0 + $0x1a5c] ss:$400 sps:$4 sm:$0xff]   ;;  %v23602_v30 = vpop.permute.xlu0 %9965 }
 0x390   :  { %16730 = vmatprep.subr.msk.bf16.mxu0 %vm1495_vm1, %v16706_v36  ;;  %16732 = vmatprep.subr.msk.bf16.mxu1 %vm1495_vm1, %v16708_v13  ;;  %v19817_v36 = vld [vmem:[%s27626_s0 + $0x1a54] ss:$400 sps:$4 sm:$0xff]   ;;  %27735 = vst [vmem:[#allocation92_spill] sm:$0xff] %v23602_v30 }
 0x391   :  { %v8730_v13 = vld [vmem:[%s27629_s5 + $0x380] sm:$0xff] }
 0x392   :  { %10255 = vperm.xlu0 %18541, %v8682_v58   ;;  %v19825_v58 = vld [vmem:[%s27626_s0 + $0x1748] ss:$400 sps:$4 sm:$0xff]  }
 0x393   :  { %8043 = vmatpush2.bf16.msra.mxu0 %v7755_v41  ;;  %8086 = vmatpush2.bf16.msra.mxu1 %v7761_v4  ;;  %v23615_v41 = vpop.f32.mrf.mxu1  ;;  %v23617_v4 = vpop.f32.mrf.mxu0 }
 0x394   :  { %8044 = vmatprep.subr.bf16.mxu0 %v19819_v61  ;;  %8087 = vmatprep.subr.bf16.mxu1 %v19822_v20  ;;  %v19823_v61 = vld [vmem:[%s27626_s0 + $0x1744] ss:$400 sps:$4 sm:$0xff]   ;;  %v19826_v20 = vld [vmem:[%s27626_s0 + $0x174c] ss:$400 sps:$4 sm:$0xff]  }
 0x395   :  { %v23637_v30 = vpop.f32.mrf.mxu0 }
 0x396   :  { %10495 = vperm.xlu0 %18541, %v8730_v13   ;;  %v19834_v13 = vld [vmem:[%s27626_s0 + $0x1430] ss:$400 sps:$4 sm:$0xff]  }
 0x397   :  { %8045 = vmatpush2.bf16.msra.mxu0 %v19817_v36  ;;  %8088 = vmatpush2.bf16.msra.mxu1 %v19820_v27  ;;  %v23631_v36 = vpop.permute.xlu0 %10205  ;;  %v23633_v27 = vpop.f32.mrf.mxu1 }
 0x398   :  { %8100 = vmatprep.subr.bf16.mxu0 %v19825_v58  ;;  %8143 = vmatprep.subr.bf16.mxu1 %v19828_v54  ;;  %27737 = vst [vmem:[#allocation94_spill] sm:$0xff] %v23631_v36  ;;  %v19829_v58 = vld [vmem:[%s27626_s0 + $0x1424] ss:$400 sps:$4 sm:$0xff]   ;;  %v19832_v54 = vld [vmem:[%s27626_s0 + $0x142c] ss:$400 sps:$4 sm:$0xff]   ;;  %v23660_v44 = vpop.f32.mrf.mxu0 }
 0x399   :  { %v8714_v36 = vld [vmem:[%s27629_s5 + $0x300] sm:$0xff]  ;;  %v23648_v33 = vpop.f32.mrf.mxu1 }
 0x39a   :  { %8047 = vmatmul.mubr.bf16.vlgmr.msra.gmra.mxu0 %v23438_v52  ;;  %8090 = vmatmul.mubr.bf16.vlgmr.msra.gmra.mxu1 %v23438_v52 }
 0x39b   :  { %8101 = vmatpush1.bf16.msra.mxu0 %v19823_v61  ;;  %8144 = vmatpush1.bf16.msra.mxu1 %v19826_v20  ;;  %v19837_v61 = vld [vmem:[%s27626_s0 + $0x1108] ss:$400 sps:$4 sm:$0xff]   ;;  %v19840_v20 = vld [vmem:[%s27626_s0 + $0x1110] ss:$400 sps:$4 sm:$0xff]   ;;  %v23668_v45 = vpop.permute.xlu0 %10125  ;;  %v23673_v11 = vpop.f32.mrf.mxu1 }
 0x39c   :  { %8102 = vmatprep.subr.bf16.mxu0 %v19831_v59  ;;  %8145 = vmatprep.subr.bf16.mxu1 %v19834_v13  ;;  %v19835_v59 = vld [vmem:[%s27626_s0 + $0x1104] ss:$400 sps:$4 sm:$0xff]   ;;  %v19838_v13 = vld [vmem:[%s27626_s0 + $0x110c] ss:$400 sps:$4 sm:$0xff]   ;;  %27738 = vst [vmem:[#allocation95_spill] sm:$0xff] %v23668_v45 }
 0x39d   :  { %16735 = vmatprep.mubr.msk.bf16.mxu0 %vm1491_vm0, %v23265_v10  ;;  %16737 = vmatprep.mubr.msk.bf16.mxu1 %vm1491_vm0, %v23265_v10  ;;  %v19841_v45 = vld [vmem:[%s27626_s0 + $0xde4] ss:$400 sps:$4 sm:$0xff]   ;;  %v23692_v0 = vpop.f32.mrf.mxu1 }
 0x39e   :  { %10415 = vperm.xlu0 %18541, %v8714_v36   ;;  %v19843_v36 = vld [vmem:[%s27626_s0 + $0xde8] ss:$400 sps:$4 sm:$0xff]  }
 0x39f   :  { %8103 = vmatpush1.bf16.msra.mxu0 %v19829_v58  ;;  %8146 = vmatpush1.bf16.msra.mxu1 %v19832_v54  ;;  %v19846_v58 = vld [vmem:[%s27626_s0 + $0xdf0] ss:$400 sps:$4 sm:$0xff]   ;;  %v23681_v54 = vpop.f32.mrf.mxu0  ;;  %v23702_v55 = vpop.permute.xlu0 %10035 }
 0x3a0   :  { %8104 = vmatprep.subr.bf16.mxu0 %v19837_v61  ;;  %8147 = vmatprep.subr.bf16.mxu1 %v19840_v20  ;;  %v19844_v61 = vld [vmem:[%s27626_s0 + $0xdec] ss:$400 sps:$4 sm:$0xff]   ;;  %v14550_v20 = vld [vmem:[%s27630_s7 + $0x60] sm:$0xff]  ;;  %27739 = vst [vmem:[#allocation96_spill] sm:$0xff] %v23702_v55  ;;  %v23713_v19 = vpop.f32.mrf.mxu1 }
 0x3a2   :  { %14626 = vperm.xlu0 %18541, %v14552_v62   ;;  %v19849_v62 = vld [vmem:[%s27626_s0 + $0xac8] ss:$400 sps:$4 sm:$0xff]   ;;  %v23723_v55 = vpop.f32.mrf.mxu1 }
 0x3a3   :  { %8105 = vmatpush1.bf16.msra.mxu0 %v19835_v59  ;;  %8148 = vmatpush1.bf16.msra.mxu1 %v19838_v13  ;;  %v19852_v59 = vld [vmem:[%s27626_s0 + $0xad0] ss:$400 sps:$4 sm:$0xff]   ;;  %v23700_v13 = vpop.f32.mrf.mxu0  ;;  %27741 = vst [vmem:[#allocation98_spill] sm:$0xff] %v23723_v55  ;;  %v23731_v1 = vpop.permute.xlu0 %9955 }
 0x3a4   :  { %8106 = vmatprep.subr.bf16.mxu0 %v19843_v36  ;;  %8149 = vmatprep.subr.bf16.mxu1 %v19846_v58  ;;  %v19847_v36 = vld [vmem:[%s27626_s0 + $0xac4] ss:$400 sps:$4 sm:$0xff]   ;;  %v19850_v58 = vld [vmem:[%s27626_s0 + $0xacc] ss:$400 sps:$4 sm:$0xff]   ;;  %27742 = vst [vmem:[#allocation99_spill] sm:$0xff] %v23731_v1 }
 0x3a5   :  { %v14544_v1 = vld [vmem:[%s27630_s7 + $0x30] sm:$0xff] }
 0x3a6   :  { %14616 = vperm.xlu0 %18541, %v14550_v20   ;;  %v23721_v20 = vpop.f32.mrf.mxu0  ;;  %v6522_v55 = vld [vmem:[%s27626_s0 + $0x1d8c] sm:$0x77] }
 0x3a7   :  { %8107 = vmatpush1.bf16.msra.mxu0 %v19841_v45  ;;  %8150 = vmatpush1.bf16.msra.mxu1 %v19844_v61  ;;  %v19855_v45 = vld [vmem:[%s27626_s0 + $0x7a8] ss:$400 sps:$4 sm:$0xff]   ;;  %v19858_v61 = vld [vmem:[%s27626_s0 + $0x7b0] ss:$400 sps:$4 sm:$0xff]   ;;  %27740 = vst [vmem:[#allocation97_spill] sm:$0xff] %v23721_v20  ;;  %v23744_v20 = vpop.f32.mrf.mxu1 }
 0x3a8   :  { %8108 = vmatprep.subr.bf16.mxu0 %v19849_v62  ;;  %8151 = vmatprep.subr.bf16.mxu1 %v19852_v59  ;;  %v19853_v62 = vld [vmem:[%s27626_s0 + $0x7a4] ss:$400 sps:$4 sm:$0xff]   ;;  %v19856_v59 = vld [vmem:[%s27626_s0 + $0x7ac] ss:$400 sps:$4 sm:$0xff]   ;;  %27743 = vst [vmem:[#allocation100_spill] sm:$0xff] %v23744_v20 }
 0x3aa   :  { %14606 = vperm.xlu0 %18541, %v14548_v29   ;;  %v19861_v29 = vld [vmem:[%s27626_s0 + $0x488] ss:$400 sps:$4 sm:$0xff]  }
 0x3ab   :  { %8109 = vmatpush1.bf16.msra.mxu0 %v19847_v36  ;;  %8152 = vmatpush1.bf16.msra.mxu1 %v19850_v58  ;;  %v19864_v36 = vld [vmem:[%s27626_s0 + $0x490] ss:$400 sps:$4 sm:$0xff]   ;;  %v23742_v58 = vpop.f32.mrf.mxu0 }
 0x3ac   :  { %8110 = vmatprep.subr.bf16.mxu0 %v19855_v45  ;;  %8153 = vmatprep.subr.bf16.mxu1 %v19858_v61  ;;  %v19859_v45 = vld [vmem:[%s27626_s0 + $0x484] ss:$400 sps:$4 sm:$0xff]   ;;  %v19862_v61 = vld [vmem:[%s27626_s0 + $0x48c] ss:$400 sps:$4 sm:$0xff]  }
 0x3ad   :  { %v23764_v20 = vpop.f32.mrf.mxu0 }
 0x3ae   :  { %14596 = vperm.xlu0 %18541, %v14546_v24   ;;  %v19867_v24 = vld [vmem:[%s27626_s0 + $0x168] ss:$400 sps:$4 sm:$0xff]   ;;  %27744 = vst [vmem:[#allocation101_spill] sm:$0xff] %v23764_v20  ;;  %v19868_v20 = vld [vmem:[%s27626_s0 + $0x16c] ss:$400 sps:$4 sm:$0xff]  }
 0x3af   :  { %8111 = vmatpush1.bf16.msra.mxu0 %v19853_v62  ;;  %8154 = vmatpush1.bf16.msra.mxu1 %v19856_v59  ;;  %v19870_v62 = vld [vmem:[%s27626_s0 + $0x170] ss:$400 sps:$4 sm:$0xff]   ;;  %v6521_v59 = vld [vmem:[%s27626_s0 + $0x1d84] sm:$0x77]  ;;  %v23773_v32 = vpop.f32.mrf.mxu0 }
 0x3b0   :  { %8112 = vmatprep.subr.bf16.mxu0 %v19861_v29  ;;  %8155 = vmatprep.subr.bf16.mxu1 %v19864_v36  ;;  %v23769_v29 = vpop.permute.xlu0 %10195  ;;  %v23771_v36 = vpop.f32.mrf.mxu1  ;;  %27747 = vst [vmem:[#allocation104_spill] sm:$0xff] %v23773_v32  ;;  %v16710_v40 = vcombine.high %v6521_v59, %v6521_v59  ;;  %v16709_v32 = vcombine.low %v6521_v59, %v6521_v59  ;;  %v14538_v59 = vld [vmem:[%s27630_s7] sm:$0xff] }
 0x3b1   :  { %27745 = vst [vmem:[#allocation102_spill] sm:$0xff] %v23769_v29  ;;  %27746 = vst [vmem:[#allocation103_spill] sm:$0xff] %v23771_v36  ;;  %v14542_v29 = vld [vmem:[%s27630_s7 + $0x20] sm:$0xff]  ;;  %v16712_v36 = vcombine.high %v6522_v55, %v6522_v55 }
 0x3b2   :  { %14586 = vperm.xlu0 %18541, %v14544_v1   ;;  %v16711_v1 = vcombine.low %v6522_v55, %v6522_v55  ;;  %v7767_v55 = vsel %vm1495_vm1, %v16709_v32, 0  ;;  %v19878_v32 = vld [vmem:[%s27626_s0 + $0x1a6c] ss:$400 sps:$4 sm:$0xff]  }
 0x3b3   :  { %8113 = vmatpush1.bf16.msra.mxu0 %v19859_v45  ;;  %8156 = vmatpush1.bf16.msra.mxu1 %v19862_v61  ;;  %v23784_v45 = vpop.f32.mrf.mxu1  ;;  %v23786_v61 = vpop.f32.mrf.mxu0 }
 0x3b4   :  { %8114 = vmatprep.subr.bf16.mxu0 %v19867_v24  ;;  %8157 = vmatprep.subr.bf16.mxu1 %v19870_v62  ;;  %27748 = vst [vmem:[#allocation105_spill] sm:$0xff] %v23784_v45  ;;  %27749 = vst [vmem:[#allocation106_spill] sm:$0xff] %v23786_v61  ;;  %v23788_v6 = vpop.permute.xlu0 %10115  ;;  %v7773_v24 = vsel %vm1495_vm1, %v16711_v1, 0  ;;  %v15384_v61 = vld [vmem:[%s27631_s9 + $0x10] sm:$0xff] }
 0x3b5   :  { %27750 = vst [vmem:[#allocation107_spill] sm:$0xff] %v23788_v6  ;;  %v23793_v16 = vpop.f32.mrf.mxu1  ;;  %v23805_v62 = vpop.f32.mrf.mxu0  ;;  %v19889_v6 = vld [vmem:[%s27626_s0 + $0x1438] ss:$400 sps:$4 sm:$0xff]  }
 0x3b6   :  { %14576 = vperm.xlu0 %18541, %v14542_v29  }
 0x3b7   :  { %8115 = vmatpush1.bf16.msra.mxu0 %v19865_v17  ;;  %8158 = vmatpush1.bf16.msra.mxu1 %v19868_v20  ;;  %v19877_v17 = vld [vmem:[%s27626_s0 + $0x1a68] ss:$400 sps:$4 sm:$0xff]   ;;  %v19880_v20 = vld [vmem:[%s27626_s0 + $0x1a70] ss:$400 sps:$4 sm:$0xff]   ;;  %v23816_v29 = vpop.f32.mrf.mxu1 }
 0x3b8   :  { %16734 = vmatprep.subr.msk.bf16.mxu0 %vm1495_vm1, %v16710_v40  ;;  %16736 = vmatprep.subr.msk.bf16.mxu1 %vm1495_vm1, %v16712_v36  ;;  %v19875_v40 = vld [vmem:[%s27626_s0 + $0x1a64] ss:$400 sps:$4 sm:$0xff]   ;;  %27751 = vst [vmem:[#allocation108_spill] sm:$0xff] %v23816_v29  ;;  %v19886_v36 = vld [vmem:[%s27626_s0 + $0x1760] ss:$400 sps:$4 sm:$0xff]   ;;  %v23824_v1 = vpop.permute.xlu0 %10025 }
 0x3b9   :  { %27752 = vst [vmem:[#allocation109_spill] sm:$0xff] %v23824_v1  ;;  %v15382_v1 = vld [vmem:[%s27631_s9] sm:$0xff]  ;;  %v15388_v29 = vld [vmem:[%s27631_s9 + $0x30] sm:$0xff] }
 0x3ba   :  { %14566 = vperm.xlu0 %18541, %v14540_v35   ;;  %v19883_v35 = vld [vmem:[%s27626_s0 + $0x1758] ss:$400 sps:$4 sm:$0xff]  }
 0x3bb   :  { %8129 = vmatpush2.bf16.msra.mxu0 %v7767_v55  ;;  %8172 = vmatpush2.bf16.msra.mxu1 %v7773_v24  ;;  %v23826_v55 = vpop.f32.mrf.mxu0  ;;  %v19881_v24 = vld [vmem:[%s27626_s0 + $0x1754] ss:$400 sps:$4 sm:$0xff]  }
 0x3bc   :  { %8130 = vmatprep.subr.bf16.mxu0 %v19877_v17  ;;  %8173 = vmatprep.subr.bf16.mxu1 %v19880_v20  ;;  %27753 = vst [vmem:[#allocation110_spill] sm:$0xff] %v23826_v55  ;;  %v19884_v17 = vld [vmem:[%s27626_s0 + $0x175c] ss:$400 sps:$4 sm:$0xff]   ;;  %v23834_v20 = vpop.f32.mrf.mxu1 }
 0x3bd   :  { %27754 = vst [vmem:[#allocation111_spill] sm:$0xff] %v23834_v20 }
 0x3be   :  { %14556 = vperm.xlu0 %18541, %v14538_v59   ;;  %v19887_v59 = vld [vmem:[%s27626_s0 + $0x1434] ss:$400 sps:$4 sm:$0xff]   ;;  %v23857_v45 = vpop.f32.mrf.mxu1 }
 0x3bf   :  { %8131 = vmatpush2.bf16.msra.mxu0 %v19875_v40  ;;  %8174 = vmatpush2.bf16.msra.mxu1 %v19878_v32  ;;  %v19892_v40 = vld [vmem:[%s27626_s0 + $0x1440] ss:$400 sps:$4 sm:$0xff]   ;;  %v23844_v32 = vpop.f32.mrf.mxu0  ;;  %27757 = vst [vmem:[#allocation114_spill] sm:$0xff] %v23857_v45 }
 0x3c0   :  { %8186 = vmatprep.subr.bf16.mxu0 %v19883_v35  ;;  %8229 = vmatprep.subr.bf16.mxu1 %v19886_v36  ;;  %27755 = vst [vmem:[#allocation112_spill] sm:$0xff] %v23844_v32  ;;  %v19890_v35 = vld [vmem:[%s27626_s0 + $0x143c] ss:$400 sps:$4 sm:$0xff]   ;;  %v23852_v36 = vpop.permute.xlu0 %9945  ;;  %v15386_v45 = vld [vmem:[%s27631_s9 + $0x20] sm:$0xff] }
 0x3c1   :  { %27756 = vst [vmem:[#allocation113_spill] sm:$0xff] %v23852_v36  ;;  %v23869_v36 = vpop.f32.mrf.mxu1  ;;  %v23871_v55 = vpop.f32.mrf.mxu0 }
 0x3c2   :  { %8133 = vmatmul.mubr.bf16.vlgmr.msra.gmra.mxu0 %v23438_v52  ;;  %8176 = vmatmul.mubr.bf16.vlgmr.msra.gmra.mxu1 %v23438_v52  ;;  %27758 = vst [vmem:[#allocation115_spill] sm:$0xff] %v23869_v36  ;;  %27759 = vst [vmem:[#allocation116_spill] sm:$0xff] %v23871_v55 }
 0x3c3   :  { %8187 = vmatpush1.bf16.msra.mxu0 %v19881_v24  ;;  %8230 = vmatpush1.bf16.msra.mxu1 %v19884_v17  ;;  %v19895_v24 = vld [vmem:[%s27626_s0 + $0x1118] ss:$400 sps:$4 sm:$0xff]   ;;  %v19898_v17 = vld [vmem:[%s27626_s0 + $0x1120] ss:$400 sps:$4 sm:$0xff]   ;;  %v23892_v55 = vpop.f32.mrf.mxu0 }
 0x3c4   :  { %8188 = vmatprep.subr.bf16.mxu0 %v19889_v6  ;;  %8231 = vmatprep.subr.bf16.mxu1 %v19892_v40  ;;  %v19893_v6 = vld [vmem:[%s27626_s0 + $0x1114] ss:$400 sps:$4 sm:$0xff]   ;;  %v19896_v40 = vld [vmem:[%s27626_s0 + $0x111c] ss:$400 sps:$4 sm:$0xff]   ;;  %27762 = vst [vmem:[#allocation119_spill] sm:$0xff] %v23892_v55 }
 0x3c5   :  { %16739 = vmatprep.mubr.msk.bf16.mxu0 %vm1491_vm0, %v23265_v10  ;;  %16741 = vmatprep.mubr.msk.bf16.mxu1 %vm1491_vm0, %v23265_v10  ;;  %v19901_v10 = vld [vmem:[%s27626_s0 + $0xdf8] ss:$400 sps:$4 sm:$0xff]   ;;  %v15394_v55 = vld [vmem:[%s27631_s9 + $0x60] sm:$0xff] }
 0x3c6   :  { %15400 = vperm.xlu0 %18541, %v15382_v1   ;;  %v19904_v1 = vld [vmem:[%s27626_s0 + $0xe00] ss:$400 sps:$4 sm:$0xff]  }
 0x3c7   :  { %8189 = vmatpush1.bf16.msra.mxu0 %v19887_v59  ;;  %8232 = vmatpush1.bf16.msra.mxu1 %v19890_v35  ;;  %v23888_v59 = vpop.permute.xlu0 %10185  ;;  %v23890_v35 = vpop.f32.mrf.mxu1 }
 0x3c8   :  { %8190 = vmatprep.subr.bf16.mxu0 %v19895_v24  ;;  %8233 = vmatprep.subr.bf16.mxu1 %v19898_v17  ;;  %27760 = vst [vmem:[#allocation117_spill] sm:$0xff] %v23888_v59  ;;  %27761 = vst [vmem:[#allocation118_spill] sm:$0xff] %v23890_v35  ;;  %v19899_v24 = vld [vmem:[%s27626_s0 + $0xdf4] ss:$400 sps:$4 sm:$0xff]   ;;  %v19902_v17 = vld [vmem:[%s27626_s0 + $0xdfc] ss:$400 sps:$4 sm:$0xff]   ;;  %v23911_v59 = vpop.f32.mrf.mxu0 }
 0x3c9   :  { %27764 = vst [vmem:[#allocation121_spill] sm:$0xff] %v23911_v59 }
 0x3ca   :  { %15410 = vperm.xlu0 %18541, %v15384_v61   ;;  %v19907_v61 = vld [vmem:[%s27626_s0 + $0xad8] ss:$400 sps:$4 sm:$0xff]   ;;  %v23932_v59 = vpop.f32.mrf.mxu0 }
 0x3cb   :  { %8191 = vmatpush1.bf16.msra.mxu0 %v19893_v6  ;;  %8234 = vmatpush1.bf16.msra.mxu1 %v19896_v40  ;;  %v19910_v6 = vld [vmem:[%s27626_s0 + $0xae0] ss:$400 sps:$4 sm:$0xff]   ;;  %v23909_v40 = vpop.f32.mrf.mxu1  ;;  %v23919_v35 = vpop.permute.xlu0 %10105  ;;  %27767 = vst [vmem:[#allocation124_spill] sm:$0xff] %v23932_v59 }
 0x3cc   :  { %8192 = vmatprep.subr.bf16.mxu0 %v19901_v10  ;;  %8235 = vmatprep.subr.bf16.mxu1 %v19904_v1  ;;  %27763 = vst [vmem:[#allocation120_spill] sm:$0xff] %v23909_v40  ;;  %v19905_v10 = vld [vmem:[%s27626_s0 + $0xad4] ss:$400 sps:$4 sm:$0xff]   ;;  %v19908_v1 = vld [vmem:[%s27626_s0 + $0xadc] ss:$400 sps:$4 sm:$0xff]   ;;  %27765 = vst [vmem:[#allocation122_spill] sm:$0xff] %v23919_v35 }
 0x3cd   :  { %v15390_v35 = vld [vmem:[%s27631_s9 + $0x40] sm:$0xff] }
 0x3ce   :  { %15420 = vperm.xlu0 %18541, %v15386_v45   ;;  %v19913_v45 = vld [vmem:[%s27626_s0 + $0x7b8] ss:$400 sps:$4 sm:$0xff]  }
 0x3cf   :  { %8193 = vmatpush1.bf16.msra.mxu0 %v19899_v24  ;;  %8236 = vmatpush1.bf16.msra.mxu1 %v19902_v17  ;;  %v19916_v24 = vld [vmem:[%s27626_s0 + $0x7c0] ss:$400 sps:$4 sm:$0xff]   ;;  %v23930_v17 = vpop.f32.mrf.mxu1 }
 0x3d0   :  { %8194 = vmatprep.subr.bf16.mxu0 %v19907_v61  ;;  %8237 = vmatprep.subr.bf16.mxu1 %v19910_v6  ;;  %27766 = vst [vmem:[#allocation123_spill] sm:$0xff] %v23930_v17  ;;  %v19911_v61 = vld [vmem:[%s27626_s0 + $0x7b4] ss:$400 sps:$4 sm:$0xff]   ;;  %v19914_v6 = vld [vmem:[%s27626_s0 + $0x7bc] ss:$400 sps:$4 sm:$0xff]   ;;  %v23953_v17 = vpop.f32.mrf.mxu0 }
 0x3d1   :  { %v23943_v40 = vpop.f32.mrf.mxu1  ;;  %27770 = vst [vmem:[#allocation127_spill] sm:$0xff] %v23953_v17 }
 0x3d2   :  { %15430 = vperm.xlu0 %18541, %v15388_v29   ;;  %27768 = vst [vmem:[#allocation125_spill] sm:$0xff] %v23943_v40  ;;  %v19919_v29 = vld [vmem:[%s27626_s0 + $0x498] ss:$400 sps:$4 sm:$0xff]   ;;  %v15392_v40 = vld [vmem:[%s27631_s9 + $0x50] sm:$0xff]  ;;  %v23978_v17 = vpop.f32.mrf.mxu0 }
 0x3d3   :  { %8195 = vmatpush1.bf16.msra.mxu0 %v19905_v10  ;;  %8238 = vmatpush1.bf16.msra.mxu1 %v19908_v1  ;;  %v19922_v10 = vld [vmem:[%s27626_s0 + $0x4a0] ss:$400 sps:$4 sm:$0xff]   ;;  %v23951_v1 = vpop.permute.xlu0 %10015  ;;  %v23964_v59 = vpop.f32.mrf.mxu1  ;;  %27772 = vst [vmem:[#allocation129_spill] sm:$0xff] %v23978_v17 }
 0x3d4   :  { %8196 = vmatprep.subr.bf16.mxu0 %v19913_v45  ;;  %8239 = vmatprep.subr.bf16.mxu1 %v19916_v24  ;;  %27769 = vst [vmem:[#allocation126_spill] sm:$0xff] %v23951_v1  ;;  %v19917_v45 = vld [vmem:[%s27626_s0 + $0x494] ss:$400 sps:$4 sm:$0xff]   ;;  %v19920_v24 = vld [vmem:[%s27626_s0 + $0x49c] ss:$400 sps:$4 sm:$0xff]   ;;  %27771 = vst [vmem:[#allocation128_spill] sm:$0xff] %v23964_v59  ;;  %v23993_v17 = vpop.f32.mrf.mxu0 }
 0x3d5   :  { %v6524_v1 = vld [vmem:[%s27626_s0 + $0x1d9c] sm:$0x77]  ;;  %v23991_v20 = vpop.f32.mrf.mxu1 }
 0x3d6   :  { %15440 = vperm.xlu0 %18541, %v15390_v35   ;;  %v19925_v35 = vld [vmem:[%s27626_s0 + $0x178] ss:$400 sps:$4 sm:$0xff]  }
 0x3d7   :  { %8197 = vmatpush1.bf16.msra.mxu0 %v19911_v61  ;;  %8240 = vmatpush1.bf16.msra.mxu1 %v19914_v6  ;;  %v19928_v61 = vld [vmem:[%s27626_s0 + $0x180] ss:$400 sps:$4 sm:$0xff]   ;;  %v6523_v6 = vld [vmem:[%s27626_s0 + $0x1d94] sm:$0x77]  ;;  %v23986_v36 = vpop.permute.xlu0 %9935  ;;  %v23998_v32 = vpop.f32.mrf.mxu1 }
 0x3d8   :  { %8198 = vmatprep.subr.bf16.mxu0 %v19919_v29  ;;  %8241 = vmatprep.subr.bf16.mxu1 %v19922_v10  ;;  %v19923_v29 = vld [vmem:[%s27626_s0 + $0x174] ss:$400 sps:$4 sm:$0xff]   ;;  %v19926_v10 = vld [vmem:[%s27626_s0 + $0x17c] ss:$400 sps:$4 sm:$0xff]   ;;  %v16714_v59 = vcombine.high %v6523_v6, %v6523_v6  ;;  %27773 = vst [vmem:[#allocation130_spill] sm:$0xff] %v23986_v36 }
 0x3d9   :  { %v15396_v36 = vld [vmem:[%s27631_s9 + $0x70] sm:$0xff] }
 0x3da   :  { %15450 = vperm.xlu0 %18541, %v15392_v40   ;;  %v16716_v40 = vcombine.high %v6524_v1, %v6524_v1 }
 0x3db   :  { %8199 = vmatpush1.bf16.msra.mxu0 %v19917_v45  ;;  %8242 = vmatpush1.bf16.msra.mxu1 %v19920_v24  ;;  %v16713_v45 = vcombine.low %v6523_v6, %v6523_v6  ;;  %v16715_v24 = vcombine.low %v6524_v1, %v6524_v1  ;;  %v19938_v1 = vld [vmem:[%s27626_s0 + $0x1a80] ss:$400 sps:$4 sm:$0xff]   ;;  %v24010_v6 = vpop.permute.xlu0 %10175 }
 0x3dc   :  { %8200 = vmatprep.subr.bf16.mxu0 %v19925_v35  ;;  %8243 = vmatprep.subr.bf16.mxu1 %v19928_v61  ;;  %27774 = vst [vmem:[#allocation131_spill] sm:$0xff] %v24010_v6 }
 0x3dd   :  { %v7779_v35 = vsel %vm1495_vm1, %v16713_v45, 0  ;;  %v7785_v61 = vsel %vm1495_vm1, %v16715_v24, 0  ;;  %v19933_v45 = vld [vmem:[%s27626_s0 + $0x1a74] ss:$400 sps:$4 sm:$0xff]   ;;  %v19936_v24 = vld [vmem:[%s27626_s0 + $0x1a7c] ss:$400 sps:$4 sm:$0xff]  }
 0x3de   :  { %15460 = vperm.xlu0 %18541, %v15394_v55   ;;  %v19935_v55 = vld [vmem:[%s27626_s0 + $0x1a78] ss:$400 sps:$4 sm:$0xff]  }
 0x3df   :  { %8201 = vmatpush1.bf16.msra.mxu0 %v19923_v29  ;;  %8244 = vmatpush1.bf16.msra.mxu1 %v19926_v10 }
 0x3e0   :  { %16738 = vmatprep.subr.msk.bf16.mxu0 %vm1495_vm1, %v16714_v59  ;;  %16740 = vmatprep.subr.msk.bf16.mxu1 %vm1495_vm1, %v16716_v40  ;;  %v8356_v59 = vmax.f32 %v21536_v49, %v22381_v7  ;;  %v19941_v7 = vld [vmem:[%s27626_s0 + $0x1768] ss:$400 sps:$4 sm:$0xff]  }
 0x3e2   :  { %v7833_v29 = vpop.f32.mrf.mxu1  ;;  %v24012_v10 = vpop.f32.mrf.mxu0  ;;  %15470 = vperm.xlu0 %18541, %v15396_v36  }
 0x3e3   :  { %v8406_v40 = vmax.f32 %v23550_v43, %v7833_v29  ;;  %8215 = vmatpush2.bf16.msra.mxu0 %v7779_v35  ;;  %8258 = vmatpush2.bf16.msra.mxu1 %v7785_v61  ;;  %v8381_v61 = vmax.f32 %v21551_v60, %v22407_v56 }
 0x3e4   :  { %v24023_v6 = vpop.f32.mrf.mxu1  ;;  %8216 = vmatprep.subr.bf16.mxu0 %v19935_v55  ;;  %8259 = vmatprep.subr.bf16.mxu1 %v19938_v1  ;;  %v6275_v49 = vpop.f32.mrf.mxu0  ;;  %v19939_v55 = vld [vmem:[%s27626_s0 + $0x1764] ss:$400 sps:$4 sm:$0xff]   ;;  %v19942_v1 = vld [vmem:[%s27626_s0 + $0x176c] ss:$400 sps:$4 sm:$0xff]  }
 0x3e5   :  { %v8456_v43 = vmax.f32 %v8356_v59, %v8406_v40  ;;  %v19945_v59 = vld [vmem:[%s27626_s0 + $0x1448] ss:$400 sps:$4 sm:$0xff]  }
 0x3e6   :  { %v7837_v36 = vpop.f32.mrf.mxu1  ;;  %v24028_v35 = vpop.f32.mrf.mxu0 }
 0x3e7   :  { %v8431_v29 = vmax.f32 %v23582_v12, %v7837_v36  ;;  %8217 = vmatpush2.bf16.msra.mxu0 %v19933_v45  ;;  %8260 = vmatpush2.bf16.msra.mxu1 %v19936_v24  ;;  %v8518_v56 = vadd.f32 %v23093_v42, %v8456_v43  ;;  %v19943_v45 = vld [vmem:[%s27626_s0 + $0x1444] ss:$400 sps:$4 sm:$0xff]   ;;  %v19946_v24 = vld [vmem:[%s27626_s0 + $0x144c] ss:$400 sps:$4 sm:$0xff]  }
 0x3e8   :  { %8272 = vmatprep.subr.bf16.mxu0 %v19941_v7  ;;  %8315 = vmatprep.subr.bf16.mxu1 %v27698_v37  ;;  %v6278_v60 = vpop.f32.mrf.mxu0  ;;  %v19949_v7 = vld [vmem:[%s27626_s0 + $0x1128] ss:$400 sps:$4 sm:$0xff]   ;;  %v20252_v36 = vld [vmem:[%s27627_s1 + $0x4] ss:$8 sps:$4 sm:$0xff]  }
 0x3e9   :  { %v8481_v12 = vmax.f32 %v8381_v61, %v8431_v29  ;;  %v8568_v49 = vmax.f32 %v8518_v56, 0.0  ;;  %v19947_v61 = vld [vmem:[%s27626_s0 + $0x1124] ss:$400 sps:$4 sm:$0xff]   ;;  %v19950_v29 = vld [vmem:[%s27626_s0 + $0x112c] ss:$400 sps:$4 sm:$0xff]  }
 0x3ea   :  { %8219 = vmatmul.mubr.bf16.vlgmr.msra.gmra.mxu0 %v23438_v52  ;;  %8262 = vmatmul.mubr.bf16.vlgmr.msra.gmra.mxu1 %v23438_v52  ;;  %v19954_v60 = vld [vmem:[%s27626_s0 + $0xe0c] ss:$400 sps:$4 sm:$0xff]   ;;  %v19957_v56 = vld [vmem:[%s27626_s0 + $0xae8] ss:$400 sps:$4 sm:$0xff]  }
 0x3eb   :  { %v8543_v40 = vadd.f32 %v23119_v50, %v8481_v12  ;;  %8273 = vmatpush1.bf16.msra.mxu0 %v19939_v55  ;;  %8316 = vmatpush1.bf16.msra.mxu1 %v19942_v1  ;;  %v19953_v1 = vld [vmem:[%s27626_s0 + $0xe08] ss:$400 sps:$4 sm:$0xff]   ;;  %v19955_v12 = vld [vmem:[%s27626_s0 + $0xae4] ss:$400 sps:$4 sm:$0xff]  }
 0x3ec   :  { %8274 = vmatprep.subr.bf16.mxu0 %v19945_v59  ;;  %8317 = vmatprep.subr.bf16.mxu1 %v27698_v37  ;;  %v19951_v59 = vld [vmem:[%s27626_s0 + $0xe04] ss:$400 sps:$4 sm:$0xff]  }
 0x3ed   :  { %v8593_v43 = vmax.f32 %v8543_v40, 0.0  ;;  %16743 = vmatprep.mubr.msk.bf16.mxu0 %vm1491_vm0, %v20252_v36  ;;  %16744 = vmatprep.mubr.msk.bf16.mxu1 %vm1491_vm0, %v20252_v36  ;;  %v19958_v40 = vld [vmem:[%s27626_s0 + $0xaec] ss:$400 sps:$4 sm:$0xff]  }
 0x3ee   :  { %v19966_v36 = vld [vmem:[%s27626_s0 + $0x4ac] ss:$400 sps:$4 sm:$0xff]  }
 0x3ef   :  { %8275 = vmatpush1.bf16.msra.mxu0 %v19943_v45  ;;  %8318 = vmatpush1.bf16.msra.mxu1 %v19946_v24  ;;  %v24068_v55 = vpack.c.bf16 %v8593_v43, %v8568_v49  ;;  %v19961_v45 = vld [vmem:[%s27626_s0 + $0x7c8] ss:$400 sps:$4 sm:$0xff]   ;;  %v19959_v24 = vld [vmem:[%s27626_s0 + $0x7c4] ss:$400 sps:$4 sm:$0xff]  }
 0x3f0   :  { %8276 = vmatprep.subr.bf16.mxu0 %v19949_v7  ;;  %8319 = vmatprep.subr.bf16.mxu1 %v27698_v37  ;;  %v19962_v7 = vld [vmem:[%s27626_s0 + $0x7cc] ss:$400 sps:$4 sm:$0xff]   ;;  %v19965_v49 = vld [vmem:[%s27626_s0 + $0x4a8] ss:$400 sps:$4 sm:$0xff]   ;;  %v19963_v43 = vld [vmem:[%s27626_s0 + $0x4a4] ss:$400 sps:$4 sm:$0xff]  }
 0x3f3   :  { %8277 = vmatpush1.bf16.msra.mxu0 %v19947_v61  ;;  %8320 = vmatpush1.bf16.msra.mxu1 %v19950_v29  ;;  %v19969_v61 = vld [vmem:[%s27626_s0 + $0x188] ss:$400 sps:$4 sm:$0xff]  }
 0x3f4   :  { %8278 = vmatprep.subr.bf16.mxu0 %v19953_v1  ;;  %8321 = vmatprep.subr.bf16.mxu1 %v27698_v37  ;;  %v6525_v29 = vld [vmem:[%s27626_s0 + $0x1da4] sm:$0x77] }
 0x3f5   :  { %v19967_v1 = vld [vmem:[%s27626_s0 + $0x184] ss:$400 sps:$4 sm:$0xff]  }
 0x3f7   :  { %8279 = vmatpush1.bf16.msra.mxu0 %v19951_v59  ;;  %8322 = vmatpush1.bf16.msra.mxu1 %v19954_v60  ;;  %v19970_v59 = vld [vmem:[%s27626_s0 + $0x18c] ss:$400 sps:$4 sm:$0xff]   ;;  %v16718_v60 = vcombine.high %v6525_v29, %v6525_v29 }
 0x3f8   :  { %8280 = vmatprep.subr.bf16.mxu0 %v19957_v56  ;;  %8323 = vmatprep.subr.bf16.mxu1 %v27698_v37  ;;  %v16717_v56 = vcombine.low %v6525_v29, %v6525_v29  ;;  %v19974_v29 = vld [vmem:[%s27626_s0 + $0x1a84] ss:$400 sps:$4 sm:$0xff]  }
 0x3fb   :  { %8281 = vmatpush1.bf16.msra.mxu0 %v19955_v12  ;;  %8324 = vmatpush1.bf16.msra.mxu1 %v19958_v40  ;;  %v19973_v12 = vld [vmem:[%s27626_s0 + $0x1dac] ss:$0 sps:$4 sm:$0x77]   ;;  %v24127_v40 = vpop.f32.mrf.mxu1 }
 0x3fc   :  { %8282 = vmatprep.subr.bf16.mxu0 %v19961_v45  ;;  %8325 = vmatprep.subr.bf16.mxu1 %v27698_v37  ;;  %v7791_v45 = vsel %vm1495_vm1, %v16717_v56, 0 }
 0x3ff   :  { %8283 = vmatpush1.bf16.msra.mxu0 %v19959_v24  ;;  %8326 = vmatpush1.bf16.msra.mxu1 %v19962_v7  ;;  %v7797_v24 = vsel %vm1495_vm1, %v19973_v12, 0  ;;  %v19976_v7 = vld [vmem:[%s27626_s0 + $0x1a88] ss:$400 sps:$4 sm:$0xff]  }
 0x400   :  { %8284 = vmatprep.subr.bf16.mxu0 %v19965_v49  ;;  %8327 = vmatprep.subr.bf16.mxu1 %v27698_v37 }
 0x403   :  { %8285 = vmatpush1.bf16.msra.mxu0 %v19963_v43  ;;  %8328 = vmatpush1.bf16.msra.mxu1 %v19966_v36 }
 0x404   :  { %8286 = vmatprep.subr.bf16.mxu0 %v19969_v61  ;;  %8329 = vmatprep.subr.bf16.mxu1 %v27698_v37 }
 0x407   :  { %8287 = vmatpush1.bf16.msra.mxu0 %v19967_v1  ;;  %8330 = vmatpush1.bf16.msra.mxu1 %v19970_v59  ;;  %v8358_v1 = vmax.f32 %v22079_v2, %v23147_v22  ;;  %v8360_v59 = vmax.f32 %v21575_v3, %v22437_v51  ;;  %v8383_v2 = vmax.f32 %v22099_v26, %v23189_v53 }
 0x408   :  { %16742 = vmatprep.subr.msk.bf16.mxu0 %vm1495_vm1, %v16718_v60  ;;  %8343 = vmatprep.subr.bf16.mxu1 %v27698_v37  ;;  %v8385_v3 = vmax.f32 %v21609_v14, %v22480_v28 }
 0x40a   :  { %v7876_v49 = vpop.f32.mrf.mxu0  ;;  %v7919_v43 = vpop.f32.mrf.mxu1 }
 0x40b   :  { %v8408_v36 = vmax.f32 %v23577_v46, %v7876_v49  ;;  %v8410_v61 = vmax.f32 %v23617_v4, %v7919_v43  ;;  %8301 = vmatpush2.bf16.msra.mxu0 %v7791_v45  ;;  %8344 = vmatpush2.bf16.msra.mxu1 %v7797_v24  ;;  %v19977_v46 = vld [vmem:[%s27626_s0 + $0x1a8c] ss:$400 sps:$4 sm:$0xff]  }
 0x40c   :  { %v24145_v60 = vpop.f32.mrf.mxu0  ;;  %v24147_v56 = vpop.f32.mrf.mxu1  ;;  %8302 = vmatprep.subr.bf16.mxu0 %v19976_v7  ;;  %8345 = vmatprep.subr.bf16.mxu1 %v27698_v37 }
 0x40d   :  { %v8458_v4 = vmax.f32 %v8358_v1, %v8408_v36  ;;  %v8460_v12 = vmax.f32 %v8360_v59, %v8410_v61 }
 0x40e   :  { %v7880_v45 = vpop.f32.mrf.mxu0  ;;  %v7923_v24 = vpop.f32.mrf.mxu1 }
 0x40f   :  { %8303 = vmatpush2.bf16.msra.mxu0 %v19974_v29  ;;  %v8433_v51 = vmax.f32 %v23615_v41, %v7880_v45  ;;  %v8435_v22 = vmax.f32 %v23660_v44, %v7923_v24  ;;  %8346 = vmatpush2.bf16.msra.mxu1 %v19977_v46  ;;  %v8520_v37 = vadd.f32 %v23093_v42, %v8458_v4 }
 0x410   :  { %v8522_v7 = vadd.f32 %v23093_v42, %v8460_v12  ;;  %v24169_v29 = vpop.f32.mrf.mxu0  ;;  %v7925_v1 = vpop.f32.mrf.mxu1  ;;  %v8364_v4 = vmax.f32 %v21637_v23, %v22505_v47  ;;  %v8648_v23 = vld [vmem:[%s27629_s5 + $0xf0] sm:$0xff]  ;;  %v8389_v47 = vmax.f32 %v21665_v34, %v22545_v31 }
 0x411   :  { %v8483_v49 = vmax.f32 %v8383_v2, %v8433_v51  ;;  %v8485_v43 = vmax.f32 %v8385_v3, %v8435_v22  ;;  %v8570_v14 = vmax.f32 %v8520_v37, 0.0  ;;  %v8363_v37 = vmax.f32 %v22137_v48, %v23227_v63  ;;  %10085 = vperm.xlu1 %18542, %v8648_v23  }
 0x412   :  { %8305 = vmatmul.mubr.bf16.vlgmr.msra.gmra.mxu0 %v23438_v52  ;;  %8348 = vmatmul.mubr.bf16.vlgmr.msra.gmra.mxu1 %v23438_v52  ;;  %v8572_v28 = vmax.f32 %v8522_v7, 0.0  ;;  %v8362_v52 = vmax.f32 %v22121_v38, %v23208_v15  ;;  %v8387_v38 = vmax.f32 %v22155_v57, %v23241_v39  ;;  %v8388_v57 = vmax.f32 %v22169_v5, %v23271_v8 }
 0x413   :  { %v8545_v53 = vadd.f32 %v23119_v50, %v8483_v49  ;;  %v8547_v26 = vadd.f32 %v23119_v50, %v8485_v43  ;;  %v8386_v43 = vmax.f32 %v21623_v18, %v22497_v25  ;;  %v8411_v39 = vmax.f32 %v23637_v30, %v24147_v56  ;;  %v8633_v30 = vld [vmem:[%s27629_s5 + $0x78] sm:$0xff] }
 0x415   :  { %v8595_v41 = vmax.f32 %v8545_v53, 0.0  ;;  %v8597_v36 = vmax.f32 %v8547_v26, 0.0  ;;  %v8361_v53 = vmax.f32 %v21591_v9, %v22460_v21  ;;  %v8434_v21 = vmax.f32 %v23633_v27, %v24169_v29 }
 0x417   :  { %v24165_v44 = vpack.c.bf16 %v8597_v36, %v8572_v28  ;;  %v24167_v61 = vpack.c.bf16 %v8595_v41, %v8570_v14  ;;  %v8461_v56 = vmax.f32 %v8361_v53, %v8411_v39  ;;  %v27783_v39 = vld [vmem:[#allocation89_spill] sm:$0xff] }
 0x419   :  { %v8523_v27 = vadd.f32 %v23093_v42, %v8461_v56  ;;  %v8679_v56 = vld [vmem:[%s27629_s5 + $0x1e8] sm:$0xff] }
 0x432   :  { %v7962_v59 = vpop.f32.mrf.mxu0  ;;  %v8005_v46 = vpop.f32.mrf.mxu1 }
 0x433   :  { %v8412_v12 = vmax.f32 %v23648_v33, %v7962_v59  ;;  %v8414_v45 = vmax.f32 %v23700_v13, %v8005_v46  ;;  %v8436_v33 = vmax.f32 %v23681_v54, %v7925_v1  ;;  %v8649_v13 = vld [vmem:[%s27629_s5 + $0xf8] sm:$0xff] }
 0x434   :  { %v7964_v24 = vpop.f32.mrf.mxu0  ;;  %v24177_v2 = vpop.f32.mrf.mxu1  ;;  %10090 = vperm.xlu1 %18542, %v8649_v13   ;;  %v27781_v13 = vld [vmem:[#allocation39_spill] sm:$0xff] }
 0x435   :  { %v8462_v3 = vmax.f32 %v8362_v52, %v8412_v12  ;;  %v8464_v51 = vmax.f32 %v8364_v4, %v8414_v45  ;;  %v8413_v22 = vmax.f32 %v23673_v11, %v7964_v24  ;;  %v8486_v26 = vmax.f32 %v8386_v43, %v8436_v33  ;;  %v8681_v52 = vld [vmem:[%s27629_s5 + $0x1f8] sm:$0xff]  ;;  %v27775_v12 = vld [vmem:[#allocation60_spill] sm:$0xff]  ;;  %v27782_v43 = vld [vmem:[#allocation3_spill] sm:$0xff] }
 0x436   :  { %v7966_v7 = vpop.f32.mrf.mxu0  ;;  %v8009_v49 = vpop.f32.mrf.mxu1  ;;  %v27776_v45 = vld [vmem:[#allocation21_spill] sm:$0xff] }
 0x437   :  { %v8463_v15 = vmax.f32 %v8363_v37, %v8413_v22  ;;  %v8437_v11 = vmax.f32 %v23692_v0, %v7966_v7  ;;  %v8439_v48 = vmax.f32 %v23742_v58, %v8009_v49  ;;  %v8524_v34 = vadd.f32 %v23093_v42, %v8462_v3  ;;  %v27777_v3 = vld [vmem:[#allocation91_spill] sm:$0xff]  ;;  %v27778_v22 = vld [vmem:[#allocation57_spill] sm:$0xff]  ;;  %v27779_v37 = vld [vmem:[#allocation20_spill] sm:$0xff] }
 0x438   :  { %v7968_v63 = vpop.f32.mrf.mxu0  ;;  %v8526_v31 = vadd.f32 %v23093_v42, %v8464_v51  ;;  %v8548_v36 = vadd.f32 %v23119_v50, %v8486_v26  ;;  %10010 = vperm.xlu1 %18542, %v8633_v30   ;;  %v8384_v24 = vmax.f32 %v27776_v45, %v27775_v12  ;;  %v8409_v51 = vmax.f32 %v27777_v3, %v24145_v60  ;;  %v27780_v60 = vld [vmem:[#allocation93_spill] sm:$0xff]  ;;  %v8631_v26 = vld [vmem:[%s27629_s5 + $0x68] sm:$0xff]  ;;  %v27790_v12 = vld [vmem:[#allocation98_spill] sm:$0xff] }
 0x439   :  { %v8487_v0 = vmax.f32 %v8387_v38, %v8437_v11  ;;  %v8489_v54 = vmax.f32 %v8389_v47, %v8439_v48  ;;  %v8438_v58 = vmax.f32 %v23713_v19, %v7968_v63  ;;  %v8525_v18 = vadd.f32 %v23093_v42, %v8463_v15  ;;  %v8665_v38 = vld [vmem:[%s27629_s5 + $0x178] sm:$0xff]  ;;  %v8647_v63 = vld [vmem:[%s27629_s5 + $0xe8] sm:$0xff] }
 0x43a   :  { %v8574_v14 = vmax.f32 %v8524_v34, 0.0  ;;  %v8576_v28 = vmax.f32 %v8526_v31, 0.0  ;;  %v8359_v7 = vmax.f32 %v27779_v37, %v27778_v22  ;;  %v8484_v49 = vmax.f32 %v8384_v24, %v8434_v21  ;;  %v27786_v21 = vld [vmem:[#allocation63_spill] sm:$0xff]  ;;  %v27791_v24 = vld [vmem:[#allocation104_spill] sm:$0xff] }
 0x43b   :  { %v8549_v25 = vadd.f32 %v23119_v50, %v8487_v0  ;;  %v8551_v5 = vadd.f32 %v23119_v50, %v8489_v54  ;;  %v8488_v8 = vmax.f32 %v8388_v57, %v8438_v58  ;;  %v8575_v1 = vmax.f32 %v8525_v18, 0.0  ;;  %v27784_v0 = vld [vmem:[#allocation38_spill] sm:$0xff] }
 0x43c   :  { %10250 = vperm.xlu1 %18542, %v8681_v52   ;;  %v8598_v23 = vmax.f32 %v8548_v36, 0.0  ;;  %v8459_v33 = vmax.f32 %v8359_v7, %v8409_v51  ;;  %v8573_v47 = vmax.f32 %v8523_v27, 0.0  ;;  %v8432_v15 = vmax.f32 %v27780_v60, %v24127_v40  ;;  %v27785_v40 = vld [vmem:[#allocation2_spill] sm:$0xff]  ;;  %v27794_v60 = vld [vmem:[#allocation44_spill] sm:$0xff] }
 0x43d   :  { %v8599_v19 = vmax.f32 %v8549_v25, 0.0  ;;  %v8601_v41 = vmax.f32 %v8551_v5, 0.0  ;;  %v8550_v9 = vadd.f32 %v23119_v50, %v8488_v8  ;;  %v8546_v11 = vadd.f32 %v23119_v50, %v8484_v49  ;;  %v27787_v36 = vld [vmem:[#allocation22_spill] sm:$0xff]  ;;  %v8629_v49 = vld [vmem:[%s27629_s5 + $0x58] sm:$0xff] }
 0x43e   :  { %v10834_v48 = vpack.c.bf16 %v8598_v23, %v8573_v47  ;;  %v8382_v57 = vmax.f32 %v27782_v43, %v27781_v13  ;;  %v8407_v34 = vmax.f32 %v27783_v39, %v24023_v6  ;;  %v8521_v31 = vadd.f32 %v23093_v42, %v8459_v33  ;;  %v27792_v23 = vld [vmem:[#allocation67_spill] sm:$0xff]  ;;  %v19978_v47 = vld [vmem:[%s27632_s3] sm:$0xff]  }
 0x43f   :  { %v8600_v59 = vmax.f32 %v8550_v9, 0.0  ;;  %v10835_v46 = vpack.c.bf16 %v8599_v19, %v8574_v14  ;;  %v24219_v4 = vpack.c.bf16 %v8601_v41, %v8576_v28  ;;  %v8357_v54 = vmax.f32 %v27785_v40, %v27784_v0  ;;  %v24255_v28 = vpop.f32.mrf.mxu1  ;;  %18092 = vmatprep.mubr.bf16.mxu1 %v19978_v47 }
 0x440   :  { %10170 = vperm.xlu1 %18542, %v8665_v38   ;;  %v8482_v58 = vmax.f32 %v8382_v57, %v8432_v15  ;;  %v8596_v53 = vmax.f32 %v8546_v11, 0.0  ;;  %v8571_v25 = vmax.f32 %v8521_v31, 0.0  ;;  %v27793_v38 = vld [vmem:[#allocation24_spill] sm:$0xff]  ;;  %v19979_v57 = vld [vmem:[%s27632_s3 + $0x8] sm:$0xff]  }
 0x441   :  { %v10836_v29 = vpack.c.bf16 %v8600_v59, %v8575_v1  ;;  %v8457_v18 = vmax.f32 %v8357_v54, %v8407_v34  ;;  %v8366_v1 = vmax.f32 %v27787_v36, %v27786_v21  ;;  %v27788_v59 = vld [vmem:[#allocation42_spill] sm:$0xff]  ;;  %v8391_v33 = vmax.f32 %v27793_v38, %v27792_v23  ;;  %v27795_v15 = vld [vmem:[#allocation8_spill] sm:$0xff]  ;;  %v19991_v21 = vld [vmem:[%s27632_s3 + $0x38] sm:$0xff]  }
 0x442   :  { %v8544_v6 = vadd.f32 %v23119_v50, %v8482_v58  ;;  %v10832_v5 = vpack.c.bf16 %v8596_v53, %v8571_v25  ;;  %v8393_v11 = vmax.f32 %v27795_v15, %v27794_v60  ;;  %v19980_v58 = vld [vmem:[%s27633_s4] sm:$0xff]   ;;  %v8661_v25 = vld [vmem:[%s27629_s5 + $0x158] sm:$0xff] }
 0x443   :  { %18076 = vmatprep.subr.bf16.mxu1 %v10836_v29  ;;  %v8519_v8 = vadd.f32 %v23093_v42, %v8457_v18  ;;  %17948 = vmatprep.mubr.msk.bf16.mxu0 %vm9195_vm2, %v19980_v58  ;;  %v19982_v18 = vld [vmem:[%s27632_s3 + $0x10] sm:$0xff]   ;;  %v8641_v36 = vld [vmem:[%s27629_s5 + $0xb8] sm:$0xff]  ;;  %v27800_v23 = vld [vmem:[#allocation46_spill] sm:$0xff] }
 0x444   :  { %18077 = vmatpush3.bf16.msra.mxu1 %v10836_v29  ;;  %10080 = vperm.xlu1 %18542, %v8647_v63   ;;  %v8594_v30 = vmax.f32 %v8544_v6, 0.0  ;;  %v27796_v63 = vld [vmem:[#allocation103_spill] sm:$0xff]  ;;  %v19983_v6 = vld [vmem:[%s27632_s3 + $0x18] sm:$0xff]   ;;  %v27801_v38 = vld [vmem:[#allocation10_spill] sm:$0xff] }
 0x445   :  { %18078 = vmatprep.subr.bf16.mxu1 %v10835_v46  ;;  %v8569_v14 = vmax.f32 %v8519_v8, 0.0  ;;  %v27807_v58 = vld [vmem:[#allocation119_spill] sm:$0xff] }
 0x447   :  { %v10830_v19 = vpack.c.bf16 %v8594_v30, %v8569_v14  ;;  %v8643_v30 = vld [vmem:[%s27629_s5 + $0xc8] sm:$0xff] }
 0x448   :  { %18079 = vmatpush3.bf16.msra.mxu1 %v10835_v46  ;;  %10000 = vperm.xlu1 %18542, %v8631_v26   ;;  %v27789_v46 = vld [vmem:[#allocation6_spill] sm:$0xff]  ;;  %v8627_v14 = vld [vmem:[%s27629_s5 + $0x48] sm:$0xff] }
 0x449   :  { %18080 = vmatprep.subr.bf16.mxu1 %v10834_v48  ;;  %v8368_v52 = vmax.f32 %v27789_v46, %v27788_v59 }
 0x44c   :  { %18081 = vmatpush3.bf16.msra.mxu1 %v10834_v48  ;;  %10240 = vperm.xlu1 %18542, %v8679_v56   ;;  %v19986_v56 = vld [vmem:[%s27632_s3 + $0x20] sm:$0xff]  }
 0x44d   :  { %18082 = vmatprep.subr.bf16.mxu1 %v24165_v44 }
 0x450   :  { %18083 = vmatpush3.bf16.msra.mxu1 %v24165_v44  ;;  %v8663_v44 = vld [vmem:[%s27629_s5 + $0x168] sm:$0xff] }
 0x451   :  { %18084 = vmatprep.subr.bf16.mxu1 %v10832_v5  ;;  %10160 = vperm.xlu1 %18542, %v8663_v44   ;;  %v8675_v44 = vld [vmem:[%s27629_s5 + $0x1c8] sm:$0xff] }
 0x454   :  { %18085 = vmatpush3.bf16.msra.mxu1 %v10832_v5 }
 0x455   :  { %18086 = vmatprep.subr.bf16.mxu1 %v24167_v61 }
 0x458   :  { %18087 = vmatpush3.bf16.msra.mxu1 %v24167_v61  ;;  %v8645_v61 = vld [vmem:[%s27629_s5 + $0xd8] sm:$0xff] }
 0x459   :  { %18088 = vmatprep.subr.bf16.mxu1 %v10830_v19  ;;  %10070 = vperm.xlu1 %18542, %v8645_v61   ;;  %v27797_v61 = vld [vmem:[#allocation112_spill] sm:$0xff] }
 0x45a   :  { %v8048_v41 = vpop.f32.mrf.mxu0  ;;  %v8091_v9 = vpop.f32.mrf.mxu1 }
 0x45b   :  { %v8416_v45 = vmax.f32 %v27790_v12, %v8048_v41  ;;  %v8418_v3 = vmax.f32 %v27791_v24, %v8091_v9  ;;  %v19990_v41 = vld [vmem:[%s27632_s3 + $0x30] sm:$0xff]   ;;  %v8659_v9 = vld [vmem:[%s27629_s5 + $0x148] sm:$0xff] }
 0x45c   :  { %v24267_v51 = vpop.f32.mrf.mxu0  ;;  %v24269_v27 = vpop.f32.mrf.mxu1  ;;  %18089 = vmatpush3.bf16.msra.mxu1 %v10830_v19  ;;  %v19987_v19 = vld [vmem:[%s27632_s3 + $0x28] sm:$0xff]  }
 0x45d   :  { %v8466_v29 = vmax.f32 %v8366_v1, %v8416_v45  ;;  %v8468_v22 = vmax.f32 %v8368_v52, %v8418_v3  ;;  %18090 = vmatprep.subr.bf16.mxu1 %v24068_v55  ;;  %9990 = vperm.xlu1 %18542, %v8629_v49   ;;  %v19994_v1 = vld [vmem:[%s27632_s3 + $0x40] sm:$0xff]   ;;  %v8625_v52 = vld [vmem:[%s27629_s5 + $0x38] sm:$0xff]  ;;  %v19995_v12 = vld [vmem:[%s27632_s3 + $0x48] sm:$0xff]  }
 0x45e   :  { %v8052_v37 = vpop.f32.mrf.mxu0  ;;  %v8095_v7 = vpop.f32.mrf.mxu1 }
 0x45f   :  { %v8528_v48 = vadd.f32 %v23093_v42, %v8466_v29  ;;  %v8441_v13 = vmax.f32 %v27796_v63, %v8052_v37  ;;  %v8443_v43 = vmax.f32 %v23805_v62, %v8095_v7  ;;  %v8530_v39 = vadd.f32 %v23093_v42, %v8468_v22  ;;  %v8677_v62 = vld [vmem:[%s27629_s5 + $0x1d8] sm:$0xff]  ;;  %v27798_v37 = vld [vmem:[#allocation70_spill] sm:$0xff]  ;;  %v19998_v63 = vld [vmem:[%s27632_s3 + $0x50] sm:$0xff]  }
 0x460   :  { %18091 = vmatpush3.bf16.msra.mxu1 %v24068_v55  ;;  %v24345_v59 = vpop.f32.mrf.mxu0  ;;  %v24347_v46 = vpop.f32.mrf.mxu1  ;;  %v8673_v22 = vld [vmem:[%s27629_s5 + $0x1b8] sm:$0xff]  ;;  %v27799_v7 = vld [vmem:[#allocation26_spill] sm:$0xff] }
 0x461   :  { %v8491_v34 = vmax.f32 %v8391_v33, %v8441_v13  ;;  %v8493_v31 = vmax.f32 %v8393_v11, %v8443_v43  ;;  %v8578_v0 = vmax.f32 %v8528_v48, 0.0  ;;  %v8580_v53 = vmax.f32 %v8530_v39, 0.0  ;;  %10230 = vperm.xlu1 %18542, %v8677_v62   ;;  %v8657_v13 = vld [vmem:[%s27629_s5 + $0x138] sm:$0xff]  ;;  %v27803_v39 = vld [vmem:[#allocation28_spill] sm:$0xff] }
 0x462   :  { %v8370_v49 = vmax.f32 %v27799_v7, %v27798_v37  ;;  %v8372_v33 = vmax.f32 %v27801_v38, %v27800_v23  ;;  %v19999_v43 = vld [vmem:[%s27632_s3 + $0x58] sm:$0xff]   ;;  %v20011_v37 = vld [vmem:[%s27632_s3 + $0x88] sm:$0xff]  }
 0x463   :  { %v8553_v40 = vadd.f32 %v23119_v50, %v8491_v34  ;;  %v8555_v54 = vadd.f32 %v23119_v50, %v8493_v31  ;;  %18093 = vmatmul.mubr.bf16.vlgmr.msra.gmra.mxu1 %v19979_v57  ;;  %v27802_v57 = vld [vmem:[#allocation73_spill] sm:$0xff]  ;;  %v27804_v31 = vld [vmem:[#allocation48_spill] sm:$0xff] }
 0x464   :  { %18096 = vmatprep.mubr.bf16.mxu1 %v19982_v18  ;;  %v8395_v34 = vmax.f32 %v27803_v39, %v27802_v57  ;;  %v8669_v7 = vld [vmem:[%s27629_s5 + $0x198] sm:$0xff]  ;;  %v27810_v39 = vld [vmem:[#allocation76_spill] sm:$0xff] }
 0x465   :  { %v8603_v55 = vmax.f32 %v8553_v40, 0.0  ;;  %v8605_v26 = vmax.f32 %v8555_v54, 0.0  ;;  %10150 = vperm.xlu1 %18542, %v8661_v25   ;;  %v27806_v54 = vld [vmem:[#allocation111_spill] sm:$0xff]  ;;  %v8653_v23 = vld [vmem:[%s27629_s5 + $0x118] sm:$0xff] }
 0x466   :  { %v20015_v38 = vld [vmem:[%s27632_s3 + $0x98] sm:$0xff]  }
 0x467   :  { %v24311_v5 = vpack.c.bf16 %v8605_v26, %v8580_v53  ;;  %v24313_v8 = vpack.c.bf16 %v8603_v55, %v8578_v0  ;;  %v27805_v0 = vld [vmem:[#allocation12_spill] sm:$0xff] }
 0x468   :  { %v8397_v40 = vmax.f32 %v27805_v0, %v27804_v31  ;;  %v27812_v0 = vld [vmem:[#allocation50_spill] sm:$0xff] }
 0x469   :  { %10060 = vperm.xlu1 %18542, %v8643_v30  }
 0x46b   :  { %18097 = vmatmul.mubr.bf16.gmra.mxu1 %v19983_v6  ;;  %v8639_v6 = vld [vmem:[%s27629_s5 + $0xa8] sm:$0xff] }
 0x46c   :  { %18100 = vmatprep.mubr.bf16.mxu1 %v19986_v56 }
 0x46d   :  { %9980 = vperm.xlu1 %18542, %v8627_v14  }
 0x471   :  { %10220 = vperm.xlu1 %18542, %v8675_v44  }
 0x473   :  { %18101 = vmatmul.mubr.bf16.gmra.mxu1 %v19987_v19 }
 0x474   :  { %18104 = vmatprep.mubr.bf16.mxu1 %v19990_v41 }
 0x475   :  { %10140 = vperm.xlu1 %18542, %v8659_v9   ;;  %v20002_v9 = vld [vmem:[%s27632_s3 + $0x60] sm:$0xff]  }
 0x479   :  { %10050 = vperm.xlu1 %18542, %v8641_v36  }
 0x47b   :  { %18105 = vmatmul.mubr.bf16.gmra.mxu1 %v19991_v21  ;;  %v8623_v21 = vld [vmem:[%s27629_s5 + $0x28] sm:$0xff] }
 0x47c   :  { %18108 = vmatprep.mubr.bf16.mxu1 %v19994_v1 }
 0x47d   :  { %9970 = vperm.xlu1 %18542, %v8625_v52   ;;  %v20003_v52 = vld [vmem:[%s27632_s3 + $0x68] sm:$0xff]  }
 0x481   :  { %10210 = vperm.xlu1 %18542, %v8673_v22   ;;  %v8621_v22 = vld [vmem:[%s27629_s5 + $0x18] sm:$0xff] }
 0x482   :  { %v8134_v45 = vpop.f32.mrf.mxu0  ;;  %v8177_v24 = vpop.f32.mrf.mxu1 }
 0x483   :  { %v8420_v3 = vmax.f32 %v23793_v16, %v8134_v45  ;;  %v8422_v29 = vmax.f32 %v27797_v61, %v8177_v24  ;;  %18109 = vmatmul.mubr.bf16.gmra.mxu1 %v19995_v12  ;;  %v8671_v12 = vld [vmem:[%s27629_s5 + $0x1a8] sm:$0xff]  ;;  %v20006_v45 = vld [vmem:[%s27632_s3 + $0x70] sm:$0xff]   ;;  %v8637_v61 = vld [vmem:[%s27629_s5 + $0x98] sm:$0xff] }
 0x484   :  { %v24364_v47 = vpop.f32.mrf.mxu0  ;;  %v24366_v60 = vpop.f32.mrf.mxu1  ;;  %18112 = vmatprep.mubr.bf16.mxu1 %v19998_v63  ;;  %v8655_v24 = vld [vmem:[%s27629_s5 + $0x128] sm:$0xff] }
 0x485   :  { %v8470_v15 = vmax.f32 %v8370_v49, %v8420_v3  ;;  %v8472_v11 = vmax.f32 %v8372_v33, %v8422_v29  ;;  %10130 = vperm.xlu1 %18542, %v8657_v13   ;;  %v20007_v3 = vld [vmem:[%s27632_s3 + $0x78] sm:$0xff]   ;;  %v20010_v29 = vld [vmem:[%s27632_s3 + $0x80] sm:$0xff]   ;;  %v20014_v49 = vld [vmem:[%s27632_s3 + $0x90] sm:$0xff]  }
 0x486   :  { %v8138_v16 = vpop.f32.mrf.mxu0  ;;  %v8181_v48 = vpop.f32.mrf.mxu1  ;;  %v27808_v63 = vld [vmem:[#allocation115_spill] sm:$0xff] }
 0x487   :  { %v8445_v62 = vmax.f32 %v27806_v54, %v8138_v16  ;;  %v8447_v53 = vmax.f32 %v27807_v58, %v8181_v48  ;;  %v8532_v55 = vadd.f32 %v23093_v42, %v8470_v15  ;;  %v8534_v26 = vadd.f32 %v23093_v42, %v8472_v11  ;;  %v8635_v11 = vld [vmem:[%s27629_s5 + $0x88] sm:$0xff] }
 0x488   :  { %v24439_v33 = vpop.f32.mrf.mxu0  ;;  %v24441_v15 = vpop.f32.mrf.mxu1 }
 0x489   :  { %v8495_v18 = vmax.f32 %v8395_v34, %v8445_v62  ;;  %v8497_v25 = vmax.f32 %v8397_v40, %v8447_v53  ;;  %v8582_v14 = vmax.f32 %v8532_v55, 0.0  ;;  %v8584_v19 = vmax.f32 %v8534_v26, 0.0  ;;  %10040 = vperm.xlu1 %18542, %v8639_v6   ;;  %v27811_v34 = vld [vmem:[#allocation30_spill] sm:$0xff]  ;;  %v8619_v6 = vld [vmem:[%s27629_s5 + $0x8] sm:$0xff] }
 0x48a   :  { %v8374_v31 = vmax.f32 %v27811_v34, %v27810_v39  ;;  %v27813_v40 = vld [vmem:[#allocation14_spill] sm:$0xff]  ;;  %v8697_v34 = vld [vmem:[%s27629_s5 + $0x278] sm:$0xff] }
 0x48b   :  { %v8557_v30 = vadd.f32 %v23119_v50, %v8495_v18  ;;  %v8559_v56 = vadd.f32 %v23119_v50, %v8497_v25  ;;  %18113 = vmatmul.mubr.bf16.gmra.mxu1 %v19999_v43  ;;  %v27809_v43 = vld [vmem:[#allocation124_spill] sm:$0xff]  ;;  %v8376_v54 = vmax.f32 %v27813_v40, %v27812_v0  ;;  %v20018_v25 = vld [vmem:[%s27632_s3 + $0xa0] sm:$0xff]   ;;  %v8745_v0 = vld [vmem:[%s27629_s5 + $0x3f8] sm:$0xff] }
 0x48c   :  { %18116 = vmatprep.mubr.bf16.mxu1 %v20002_v9  ;;  %v20026_v39 = vld [vmem:[%s27632_s3 + $0xc0] sm:$0xff]   ;;  %v20030_v40 = vld [vmem:[%s27632_s3 + $0xd0] sm:$0xff]  }
 0x48d   :  { %v8607_v44 = vmax.f32 %v8557_v30, 0.0  ;;  %v8609_v41 = vmax.f32 %v8559_v56, 0.0  ;;  %9960 = vperm.xlu1 %18542, %v8623_v21   ;;  %v20019_v30 = vld [vmem:[%s27632_s3 + $0xa8] sm:$0xff]   ;;  %v27818_v21 = vld [vmem:[#allocation120_spill] sm:$0xff] }
 0x48e   :  { %v27814_v56 = vld [vmem:[#allocation79_spill] sm:$0xff] }
 0x48f   :  { %v24396_v36 = vpack.c.bf16 %v8607_v44, %v8582_v14  ;;  %v24398_v1 = vpack.c.bf16 %v8609_v41, %v8584_v19  ;;  %v27815_v14 = vld [vmem:[#allocation32_spill] sm:$0xff] }
 0x490   :  { %v8399_v19 = vmax.f32 %v27815_v14, %v27814_v56  ;;  %v27816_v44 = vld [vmem:[#allocation52_spill] sm:$0xff]  ;;  %v27823_v56 = vld [vmem:[#allocation27_spill] sm:$0xff] }
 0x491   :  { %10200 = vperm.xlu1 %18542, %v8671_v12   ;;  %v27817_v41 = vld [vmem:[#allocation16_spill] sm:$0xff]  ;;  %v27819_v12 = vld [vmem:[#allocation129_spill] sm:$0xff] }
 0x492   :  { %v8401_v9 = vmax.f32 %v27817_v41, %v27816_v44  ;;  %v27825_v44 = vld [vmem:[#allocation29_spill] sm:$0xff] }
 0x493   :  { %18117 = vmatmul.mubr.bf16.gmra.mxu1 %v20003_v52 }
 0x494   :  { %18120 = vmatprep.mubr.bf16.mxu1 %v20006_v45 }
 0x495   :  { %10120 = vperm.xlu1 %18542, %v8655_v24  }
 0x499   :  { %10030 = vperm.xlu1 %18542, %v8637_v61  }
 0x49b   :  { %18121 = vmatmul.mubr.bf16.gmra.mxu1 %v20007_v3 }
 0x49c   :  { %18124 = vmatprep.mubr.bf16.mxu1 %v20010_v29 }
 0x49d   :  { %9950 = vperm.xlu1 %18542, %v8621_v22   ;;  %v8667_v22 = vld [vmem:[%s27629_s5 + $0x188] sm:$0xff] }
 0x4a1   :  { %10190 = vperm.xlu1 %18542, %v8669_v7  }
 0x4a3   :  { %18125 = vmatmul.mubr.bf16.gmra.mxu1 %v20011_v37 }
 0x4a4   :  { %18128 = vmatprep.mubr.bf16.mxu1 %v20014_v49 }
 0x4a5   :  { %10110 = vperm.xlu1 %18542, %v8653_v23  }
 0x4a9   :  { %10020 = vperm.xlu1 %18542, %v8635_v11  }
 0x4aa   :  { %v8220_v16 = vpop.f32.mrf.mxu0  ;;  %v8263_v48 = vpop.f32.mrf.mxu1 }
 0x4ab   :  { %v8424_v13 = vmax.f32 %v27808_v63, %v8220_v16  ;;  %v8426_v57 = vmax.f32 %v27809_v43, %v8263_v48  ;;  %18129 = vmatmul.mubr.bf16.gmra.mxu1 %v20015_v38  ;;  %v20022_v16 = vld [vmem:[%s27632_s3 + $0xb0] sm:$0xff]   ;;  %v8651_v48 = vld [vmem:[%s27629_s5 + $0x108] sm:$0xff]  ;;  %v20023_v43 = vld [vmem:[%s27632_s3 + $0xb8] sm:$0xff]  }
 0x4ac   :  { %v24452_v62 = vpop.f32.mrf.mxu0  ;;  %v24454_v58 = vpop.f32.mrf.mxu1  ;;  %18132 = vmatprep.mubr.bf16.mxu1 %v20018_v25  ;;  %v27821_v25 = vld [vmem:[#allocation114_spill] sm:$0xff] }
 0x4ad   :  { %v8474_v53 = vmax.f32 %v8374_v31, %v8424_v13  ;;  %v8476_v55 = vmax.f32 %v8376_v54, %v8426_v57  ;;  %9940 = vperm.xlu1 %18542, %v8619_v6   ;;  %v8713_v57 = vld [vmem:[%s27629_s5 + $0x2f8] sm:$0xff]  ;;  %v20027_v31 = vld [vmem:[%s27632_s3 + $0xc8] sm:$0xff]   ;;  %v8446_v6 = vmax.f32 %v27821_v25, %v24439_v33 }
 0x4ae   :  { %v8224_v26 = vpop.f32.mrf.mxu0  ;;  %v8267_v18 = vpop.f32.mrf.mxu1  ;;  %v8729_v54 = vld [vmem:[%s27629_s5 + $0x378] sm:$0xff]  ;;  %v20035_v33 = vld [vmem:[%s27632_s3 + $0xe8] sm:$0xff]  }
 0x4af   :  { %v8449_v52 = vmax.f32 %v27818_v21, %v8224_v26  ;;  %v8451_v45 = vmax.f32 %v27819_v12, %v8267_v18  ;;  %v8536_v24 = vadd.f32 %v23093_v42, %v8474_v53  ;;  %v8538_v3 = vadd.f32 %v23093_v42, %v8476_v55  ;;  %v20031_v53 = vld [vmem:[%s27632_s3 + $0xd8] sm:$0xff]   ;;  %v8711_v55 = vld [vmem:[%s27629_s5 + $0x2e8] sm:$0xff]  ;;  %v27820_v26 = vld [vmem:[#allocation108_spill] sm:$0xff] }
 0x4b0   :  { %v8421_v18 = vmax.f32 %v27820_v26, %v24364_v47  ;;  %v20034_v21 = vld [vmem:[%s27632_s3 + $0xe0] sm:$0xff]   ;;  %v8695_v47 = vld [vmem:[%s27629_s5 + $0x268] sm:$0xff]  ;;  %v24535_v12 = vpop.f32.mrf.mxu0  ;;  %v27838_v25 = vld [vmem:[#allocation53_spill] sm:$0xff] }
 0x4b1   :  { %v8499_v61 = vmax.f32 %v8399_v19, %v8449_v52  ;;  %v8501_v29 = vmax.f32 %v8401_v9, %v8451_v45  ;;  %v8586_v49 = vmax.f32 %v8536_v24, 0.0  ;;  %v8588_v23 = vmax.f32 %v8538_v3, 0.0  ;;  %10180 = vperm.xlu1 %18542, %v8667_v22   ;;  %v27824_v19 = vld [vmem:[#allocation75_spill] sm:$0xff]  ;;  %v8269_v45 = vpop.f32.mrf.mxu1  ;;  %v27828_v22 = vld [vmem:[#allocation45_spill] sm:$0xff] }
 0x4b2   :  { %v8396_v41 = vmax.f32 %v27825_v44, %v27824_v19  ;;  %v27826_v24 = vld [vmem:[#allocation43_spill] sm:$0xff] }
 0x4b3   :  { %v8561_v37 = vadd.f32 %v23119_v50, %v8499_v61  ;;  %v8563_v7 = vadd.f32 %v23119_v50, %v8501_v29  ;;  %18133 = vmatmul.mubr.bf16.gmra.mxu1 %v20019_v30  ;;  %v27822_v30 = vld [vmem:[#allocation71_spill] sm:$0xff] }
 0x4b4   :  { %18136 = vmatprep.mubr.bf16.mxu1 %v20022_v16  ;;  %v8371_v14 = vmax.f32 %v27823_v56, %v27822_v30  ;;  %v8496_v52 = vmax.f32 %v8396_v41, %v8446_v6  ;;  %v27827_v3 = vld [vmem:[#allocation7_spill] sm:$0xff]  ;;  %v27839_v6 = vld [vmem:[#allocation17_spill] sm:$0xff]  ;;  %v27841_v56 = vld [vmem:[#allocation18_spill] sm:$0xff] }
 0x4b5   :  { %v8611_v38 = vmax.f32 %v8561_v37, 0.0  ;;  %v8613_v11 = vmax.f32 %v8563_v7, 0.0  ;;  %10100 = vperm.xlu1 %18542, %v8651_v48   ;;  %v8369_v61 = vmax.f32 %v27827_v3, %v27826_v24  ;;  %v8743_v29 = vld [vmem:[%s27629_s5 + $0x3e8] sm:$0xff]  ;;  %v27829_v37 = vld [vmem:[#allocation9_spill] sm:$0xff]  ;;  %v8402_v30 = vmax.f32 %v27839_v6, %v27838_v25  ;;  %v27842_v41 = vld [vmem:[#allocation84_spill] sm:$0xff] }
 0x4b6   :  { %v8471_v9 = vmax.f32 %v8371_v14, %v8421_v18  ;;  %v8394_v7 = vmax.f32 %v27829_v37, %v27828_v22  ;;  %v27832_v16 = vld [vmem:[#allocation127_spill] sm:$0xff]  ;;  %v27846_v24 = vld [vmem:[#allocation128_spill] sm:$0xff]  ;;  %v27851_v25 = vld [vmem:[#allocation106_spill] sm:$0xff] }
 0x4b7   :  { %v24484_v63 = vpack.c.bf16 %v8613_v11, %v8588_v23  ;;  %v24486_v13 = vpack.c.bf16 %v8611_v38, %v8586_v49  ;;  %v27830_v49 = vld [vmem:[#allocation78_spill] sm:$0xff]  ;;  %v27831_v23 = vld [vmem:[#allocation31_spill] sm:$0xff]  ;;  %v8427_v48 = vmax.f32 %v27832_v16, %v24454_v58 }
 0x4b8   :  { %v8375_v38 = vmax.f32 %v27831_v23, %v27830_v49  ;;  %v24547_v11 = vadd.f32 %v23093_v42, %v8471_v9  ;;  %v27837_v26 = vld [vmem:[#allocation15_spill] sm:$0xff]  ;;  %v27840_v58 = vld [vmem:[#allocation54_spill] sm:$0xff] }
 0x4b9   :  { %10410 = vperm.xlu1 %18542, %v8713_v57   ;;  %v27833_v57 = vld [vmem:[#allocation82_spill] sm:$0xff]  ;;  %v8380_v14 = vmax.f32 %v27841_v56, %v27840_v58  ;;  %v27843_v9 = vld [vmem:[#allocation35_spill] sm:$0xff] }
 0x4ba   :  { %v27847_v37 = vld [vmem:[#allocation55_spill] sm:$0xff]  ;;  %v8583_v16 = vmax.f32 %v24547_v11, 0.0  ;;  %v27852_v6 = vld [vmem:[#allocation110_spill] sm:$0xff]  ;;  %v24653_v11 = vpop.permute.xlu1 %10085 }
 0x4bb   :  { %18137 = vmatmul.mubr.bf16.gmra.mxu1 %v20023_v43  ;;  %v27848_v49 = vld [vmem:[#allocation19_spill] sm:$0xff]  ;;  %v27853_v58 = vld [vmem:[#allocation118_spill] sm:$0xff]  ;;  %27867 = vst [vmem:[#allocation60_spill] sm:$0xff] %v24653_v11  ;;  %v20158_v11 = vld [vmem:[%s27632_s3 + $0x4d0] sm:$0xff]  }
 0x4bc   :  { %18140 = vmatprep.mubr.bf16.mxu1 %v20026_v39  ;;  %v27834_v39 = vld [vmem:[#allocation34_spill] sm:$0xff]  ;;  %v8405_v23 = vmax.f32 %v27848_v49, %v27847_v37  ;;  %v8425_v56 = vmax.f32 %v27853_v58, %v24452_v62 }
 0x4bd   :  { %10330 = vperm.xlu1 %18542, %v8697_v34   ;;  %v8378_v34 = vmax.f32 %v27834_v39, %v27833_v57 }
 0x4be   :  { %v8475_v49 = vmax.f32 %v8375_v38, %v8425_v56  ;;  %v8693_v38 = vld [vmem:[%s27629_s5 + $0x258] sm:$0xff] }
 0x4c1   :  { %10570 = vperm.xlu1 %18542, %v8745_v0   ;;  %v8452_v0 = vmax.f32 %v23993_v17, %v8269_v45  ;;  %v27844_v17 = vld [vmem:[#allocation86_spill] sm:$0xff] }
 0x4c3   :  { %18141 = vmatmul.mubr.bf16.gmra.mxu1 %v20027_v31  ;;  %v24554_v31 = vadd.f32 %v23119_v50, %v8496_v52  ;;  %v27845_v52 = vld [vmem:[#allocation36_spill] sm:$0xff]  ;;  %v8502_v39 = vmax.f32 %v8402_v30, %v8452_v0  ;;  %v8419_v0 = vmax.f32 %v27851_v25, %v24269_v27  ;;  %v27854_v27 = vld [vmem:[#allocation123_spill] sm:$0xff] }
 0x4c4   :  { %18144 = vmatprep.mubr.bf16.mxu1 %v20030_v40  ;;  %v27835_v40 = vld [vmem:[#allocation125_spill] sm:$0xff] }
 0x4c5   :  { %10490 = vperm.xlu1 %18542, %v8729_v54  }
 0x4c9   :  { %10400 = vperm.xlu1 %18542, %v8711_v55   ;;  %v27836_v55 = vld [vmem:[#allocation51_spill] sm:$0xff] }
 0x4ca   :  { %v8377_v18 = vmax.f32 %v27837_v26, %v27836_v55  ;;  %v8727_v55 = vld [vmem:[%s27629_s5 + $0x368] sm:$0xff]  ;;  %v27850_v26 = vld [vmem:[#allocation37_spill] sm:$0xff] }
 0x4cb   :  { %18145 = vmatmul.mubr.bf16.gmra.mxu1 %v20031_v53 }
 0x4cc   :  { %18148 = vmatprep.mubr.bf16.mxu1 %v20034_v21  ;;  %v8379_v21 = vmax.f32 %v27843_v9, %v27842_v41 }
 0x4cd   :  { %10320 = vperm.xlu1 %18542, %v8695_v47   ;;  %v8403_v47 = vmax.f32 %v27845_v52, %v27844_v17  ;;  %v24602_v17 = vadd.f32 %v23119_v50, %v8502_v39 }
 0x4d1   :  { %10560 = vperm.xlu1 %18542, %v8743_v29   ;;  %v27849_v29 = vld [vmem:[#allocation87_spill] sm:$0xff] }
 0x4d2   :  { %v8306_v43 = vpop.f32.mrf.mxu0  ;;  %v8349_v53 = vpop.f32.mrf.mxu1 }
 0x4d3   :  { %v8428_v54 = vmax.f32 %v27835_v40, %v8306_v43  ;;  %v8430_v19 = vmax.f32 %v24012_v10, %v8349_v53  ;;  %18149 = vmatmul.mubr.bf16.gmra.mxu1 %v20035_v33  ;;  %v8477_v43 = vmax.f32 %v8377_v18, %v8427_v48  ;;  %v20038_v33 = vld [vmem:[%s27632_s3 + $0xf0] sm:$0xff]   ;;  %v8608_v53 = vmax.f32 %v24554_v31, 0.0  ;;  %v20039_v48 = vld [vmem:[%s27632_s3 + $0xf8] sm:$0xff]  }
 0x4d4   :  { %v8308_v44 = vpop.f32.mrf.mxu0  ;;  %v8351_v22 = vpop.f32.mrf.mxu1  ;;  %v8404_v18 = vmax.f32 %v27850_v26, %v27849_v29  ;;  %18152 = vmatprep.mubr.bf16.mxu1 %v20038_v33  ;;  %v27857_v29 = vld [vmem:[#allocation65_spill] sm:$0xff]  ;;  %v27858_v26 = vld [vmem:[#allocation23_spill] sm:$0xff] }
 0x4d5   :  { %v8478_v45 = vmax.f32 %v8378_v34, %v8428_v54  ;;  %v8429_v3 = vmax.f32 %v27846_v24, %v8308_v44  ;;  %v8480_v57 = vmax.f32 %v8380_v14, %v8430_v19  ;;  %v24596_v9 = vadd.f32 %v23093_v42, %v8477_v43  ;;  %10480 = vperm.xlu1 %18542, %v8727_v55   ;;  %v27856_v24 = vld [vmem:[#allocation33_spill] sm:$0xff] }
 0x4d6   :  { %v8310_v10 = vpop.f32.mrf.mxu0  ;;  %v8352_v54 = vpop.f32.mrf.mxu1  ;;  %v8614_v55 = vmax.f32 %v24602_v17, 0.0  ;;  %v27864_v17 = vld [vmem:[#allocation25_spill] sm:$0xff] }
 0x4d7   :  { %v8479_v40 = vmax.f32 %v8379_v21, %v8429_v3  ;;  %v8453_v34 = vmax.f32 %v23991_v20, %v8310_v10  ;;  %v8444_v20 = vmax.f32 %v27852_v6, %v24347_v46  ;;  %v8455_v30 = vmax.f32 %v24028_v35, %v8352_v54  ;;  %v27859_v6 = vld [vmem:[#allocation100_spill] sm:$0xff] }
 0x4d8   :  { %v8312_v31 = vpop.f32.mrf.mxu0  ;;  %v8540_v14 = vadd.f32 %v23093_v42, %v8478_v45  ;;  %v8354_v41 = vpop.f32.mrf.mxu1  ;;  %v8450_v21 = vmax.f32 %v27854_v27, %v24535_v12  ;;  %v8542_v46 = vadd.f32 %v23093_v42, %v8480_v57  ;;  %v27855_v45 = vld [vmem:[#allocation81_spill] sm:$0xff]  ;;  %v8469_v12 = vmax.f32 %v8369_v61, %v8419_v0  ;;  %v19981_v0 = vld [vmem:[%s27633_s4 + $0x8] sm:$0xff]  }
 0x4d9   :  { %v8503_v19 = vmax.f32 %v8403_v47, %v8453_v34  ;;  %v8454_v44 = vmax.f32 %v23998_v32, %v8312_v31  ;;  %v8505_v35 = vmax.f32 %v8405_v23, %v8455_v30  ;;  %v8541_v62 = vadd.f32 %v23093_v42, %v8479_v40  ;;  %v8709_v32 = vld [vmem:[%s27629_s5 + $0x2d8] sm:$0xff]  ;;  %v20042_v34 = vld [vmem:[%s27632_s3 + $0x100] sm:$0xff]   ;;  %v27861_v41 = vld [vmem:[#allocation116_spill] sm:$0xff] }
 0x4da   :  { %v8400_v3 = vmax.f32 %v27856_v24, %v27855_v45  ;;  %v8494_v22 = vmax.f32 %v8394_v7, %v8444_v20  ;;  %v8590_v23 = vmax.f32 %v8540_v14, 0.0  ;;  %v8589_v10 = vmax.f32 %v24596_v9, 0.0  ;;  %10390 = vperm.xlu1 %18542, %v8709_v32   ;;  %v27860_v31 = vld [vmem:[#allocation105_spill] sm:$0xff]  ;;  %v19984_v14 = vld [vmem:[%s27633_s4 + $0x10] sm:$0xff]  }
 0x4db   :  { %v8565_v52 = vadd.f32 %v23119_v50, %v8503_v19  ;;  %v8504_v47 = vmax.f32 %v8404_v18, %v8454_v44  ;;  %v8567_v37 = vadd.f32 %v23119_v50, %v8505_v35  ;;  %18153 = vmatmul.mubr.bf16.gmra.mxu1 %v20039_v48  ;;  %v8592_v39 = vmax.f32 %v8542_v46, 0.0  ;;  %v20043_v48 = vld [vmem:[%s27632_s3 + $0x108] sm:$0xff]   ;;  %v8741_v19 = vld [vmem:[%s27629_s5 + $0x3d8] sm:$0xff]  ;;  %v27863_v35 = vld [vmem:[#allocation68_spill] sm:$0xff] }
 0x4dc   :  { %v8500_v33 = vmax.f32 %v8400_v3, %v8450_v21  ;;  %v8591_v61 = vmax.f32 %v8541_v62, 0.0  ;;  %v8367_v18 = vmax.f32 %v27858_v26, %v27857_v29  ;;  %18156 = vmatprep.mubr.bf16.mxu1 %v20042_v34  ;;  %v8417_v20 = vmax.f32 %v27859_v6, %v24267_v51  ;;  %v27870_v34 = vld [vmem:[#allocation97_spill] sm:$0xff] }
 0x4dd   :  { %v8615_v43 = vmax.f32 %v8565_v52, 0.0  ;;  %v8566_v57 = vadd.f32 %v23119_v50, %v8504_v47  ;;  %v8617_v40 = vmax.f32 %v8567_v37, 0.0  ;;  %v8531_v30 = vadd.f32 %v23093_v42, %v8469_v12  ;;  %v27865_v52 = vld [vmem:[#allocation47_spill] sm:$0xff]  ;;  %v27875_v6 = vld [vmem:[#allocation41_spill] sm:$0xff] }
 0x4de   :  { %v8442_v58 = vmax.f32 %v27860_v31, %v24345_v59  ;;  %v8556_v44 = vadd.f32 %v23119_v50, %v8494_v22  ;;  %v8423_v9 = vmax.f32 %v27861_v41, %v24366_v60  ;;  %v12030_v51 = vpack.c.bf16 %v8608_v53, %v8583_v16  ;;  %10310 = vperm.xlu1 %18542, %v8693_v38   ;;  %v27862_v59 = vld [vmem:[#allocation121_spill] sm:$0xff]  ;;  %v27866_v47 = vld [vmem:[#allocation11_spill] sm:$0xff]  ;;  %v20046_v22 = vld [vmem:[%s27632_s3 + $0x110] sm:$0xff]  }
 0x4df   :  { %v8616_v7 = vmax.f32 %v8566_v57, 0.0  ;;  %v13223_v54 = vpack.c.bf16 %v8615_v43, %v8590_v23  ;;  %v8874_v25 = vpack.c.bf16 %v8617_v40, %v8592_v39  ;;  %v8448_v27 = vmax.f32 %v27862_v59, %v24441_v15  ;;  %v27868_v16 = vld [vmem:[#allocation49_spill] sm:$0xff]  ;;  %v8707_v40 = vld [vmem:[%s27629_s5 + $0x2c8] sm:$0xff] }
 0x4e0   :  { %v8537_v21 = vadd.f32 %v23093_v42, %v8475_v49  ;;  %v8562_v46 = vadd.f32 %v23119_v50, %v8500_v33  ;;  %v8392_v62 = vmax.f32 %v27864_v17, %v27863_v35  ;;  %v8373_v60 = vmax.f32 %v27866_v47, %v27865_v52  ;;  %v27869_v53 = vld [vmem:[#allocation13_spill] sm:$0xff]  ;;  %v8691_v41 = vld [vmem:[%s27629_s5 + $0x248] sm:$0xff] }
 0x4e1   :  { %v13224_v56 = vpack.c.bf16 %v8616_v7, %v8591_v61  ;;  %17946 = vmatprep.subr.bf16.mxu0 %v8874_v25  ;;  %v8398_v32 = vmax.f32 %v27869_v53, %v27868_v16  ;;  %v8467_v15 = vmax.f32 %v8367_v18, %v8417_v20  ;;  %v8581_v45 = vmax.f32 %v8531_v30, 0.0  ;;  %v8725_v57 = vld [vmem:[%s27629_s5 + $0x358] sm:$0xff]  ;;  %v19996_v16 = vld [vmem:[%s27633_s4 + $0x40] sm:$0xff]  }
 0x4e2   :  { %17947 = vmatpush3.bf16.msra.mxu0 %v8874_v25  ;;  %v8492_v24 = vmax.f32 %v8392_v62, %v8442_v58  ;;  %v8473_v3 = vmax.f32 %v8373_v60, %v8423_v9  ;;  %v8606_v12 = vmax.f32 %v8556_v44, 0.0  ;;  %10550 = vperm.xlu1 %18542, %v8741_v19   ;;  %v8587_v49 = vmax.f32 %v8537_v21, 0.0  ;;  %v20047_v33 = vld [vmem:[%s27632_s3 + $0x118] sm:$0xff]   ;;  %v27873_v25 = vld [vmem:[#allocation40_spill] sm:$0xff]  ;;  %v20051_v9 = vld [vmem:[%s27632_s3 + $0x128] sm:$0xff]  }
 0x4e3   :  { %18364 = vmatprep.subr.bf16.mxu1 %v13224_v56  ;;  %18220 = vmatprep.subr.bf16.mxu0 %v12030_v51  ;;  %v8498_v37 = vmax.f32 %v8398_v32, %v8448_v27  ;;  %v13222_v23 = vpack.c.bf16 %v8614_v55, %v8589_v10  ;;  %v8612_v43 = vmax.f32 %v8562_v46, 0.0  ;;  %v19985_v39 = vld [vmem:[%s27633_s4 + $0x18] sm:$0xff]   ;;  %v19988_v10 = vld [vmem:[%s27633_s4 + $0x20] sm:$0xff]   ;;  %v8415_v61 = vmax.f32 %v27870_v34, %v24177_v2  ;;  %v19992_v27 = vld [vmem:[%s27633_s4 + $0x30] sm:$0xff]  }
 0x4e4   :  { %18365 = vmatpush3.bf16.msra.mxu1 %v13224_v56  ;;  %v27871_v7 = vld [vmem:[#allocation101_spill] sm:$0xff]  ;;  %v8554_v55 = vadd.f32 %v23119_v50, %v8492_v24  ;;  %v12028_v38 = vpack.c.bf16 %v8606_v12, %v8581_v45  ;;  %v8529_v29 = vadd.f32 %v23093_v42, %v8467_v15  ;;  %v8535_v26 = vadd.f32 %v23093_v42, %v8473_v3  ;;  %v8739_v21 = vld [vmem:[%s27629_s5 + $0x3c8] sm:$0xff]  ;;  %v20058_v15 = vld [vmem:[%s27632_s3 + $0x140] sm:$0xff]  }
 0x4e5   :  { %18366 = vmatprep.subr.bf16.mxu1 %v13223_v54  ;;  %18157 = vmatmul.mubr.bf16.gmra.mxu1 %v20043_v48  ;;  %v24683_v48 = vpop.permute.xlu1 %10090  ;;  %v8560_v18 = vadd.f32 %v23119_v50, %v8498_v37  ;;  %v27876_v20 = vld [vmem:[#allocation5_spill] sm:$0xff]  ;;  %v13220_v19 = vpack.c.bf16 %v8612_v43, %v8587_v49  ;;  %v20059_v45 = vld [vmem:[%s27632_s3 + $0x148] sm:$0xff]   ;;  %v20000_v3 = vld [vmem:[%s27633_s4 + $0x50] sm:$0xff]  }
 0x4e6   :  { %17949 = vmatmul.mubr.msk.bf16.vlgmr.msra.gmra.mxu0 %vm9195_vm2, %v19981_v0  ;;  %18160 = vmatprep.mubr.bf16.mxu1 %v20046_v22  ;;  %27872 = vst [vmem:[#allocation21_spill] sm:$0xff] %v24683_v48  ;;  %v27874_v0 = vld [vmem:[#allocation4_spill] sm:$0xff]  ;;  %v8604_v58 = vmax.f32 %v8554_v55, 0.0  ;;  %v8579_v56 = vmax.f32 %v8529_v29, 0.0  ;;  %v20055_v47 = vld [vmem:[%s27632_s3 + $0x138] sm:$0xff]   ;;  %v19997_v24 = vld [vmem:[%s27633_s4 + $0x48] sm:$0xff]  }
 0x4e7   :  { %18221 = vmatpush3.bf16.msra.mxu0 %v12030_v51  ;;  %17952 = vmatprep.mubr.msk.bf16.mxu0 %vm9195_vm2, %v19984_v14  ;;  %v8365_v2 = vmax.f32 %v27874_v0, %v27873_v25  ;;  %v8585_v14 = vmax.f32 %v8535_v26, 0.0  ;;  %v8610_v44 = vmax.f32 %v8560_v18, 0.0  ;;  %v19989_v51 = vld [vmem:[%s27633_s4 + $0x28] sm:$0xff]   ;;  %v19993_v60 = vld [vmem:[%s27633_s4 + $0x38] sm:$0xff]   ;;  %v20004_v43 = vld [vmem:[%s27633_s4 + $0x60] sm:$0xff]  }
 0x4e8   :  { %18222 = vmatprep.subr.bf16.mxu0 %v24396_v36  ;;  %18367 = vmatpush3.bf16.msra.mxu1 %v13223_v54  ;;  %v8440_v54 = vmax.f32 %v27871_v7, %v24255_v28  ;;  %v8390_v28 = vmax.f32 %v27876_v20, %v27875_v6  ;;  %v12026_v35 = vpack.c.bf16 %v8604_v58, %v8579_v56  ;;  %v8705_v53 = vld [vmem:[%s27629_s5 + $0x2b8] sm:$0xff]  ;;  %v20005_v34 = vld [vmem:[%s27633_s4 + $0x68] sm:$0xff]   ;;  %v20070_v55 = vld [vmem:[%s27632_s3 + $0x170] sm:$0xff]  }
 0x4e9   :  { %18368 = vmatprep.subr.bf16.mxu1 %v13222_v23  ;;  %10470 = vperm.xlu1 %18542, %v8725_v57   ;;  %v8465_v30 = vmax.f32 %v8365_v2, %v8415_v61  ;;  %v24710_v59 = vpop.permute.xlu1 %10010  ;;  %v8737_v12 = vld [vmem:[%s27629_s5 + $0x3b8] sm:$0xff]  ;;  %v8703_v57 = vld [vmem:[%s27629_s5 + $0x2a8] sm:$0xff]  ;;  %v20008_v61 = vld [vmem:[%s27633_s4 + $0x70] sm:$0xff]  }
 0x4ea   :  { %v8490_v31 = vmax.f32 %v8390_v28, %v8440_v54  ;;  %v8721_v37 = vld [vmem:[%s27629_s5 + $0x338] sm:$0xff]  ;;  %v8735_v7 = vld [vmem:[%s27629_s5 + $0x3a8] sm:$0xff]  ;;  %v20012_v18 = vld [vmem:[%s27633_s4 + $0x80] sm:$0xff]  }
 0x4eb   :  { %18223 = vmatpush3.bf16.msra.mxu0 %v24396_v36  ;;  %v20050_v36 = vld [vmem:[%s27632_s3 + $0x120] sm:$0xff]   ;;  %v20063_v49 = vld [vmem:[%s27632_s3 + $0x158] sm:$0xff]   ;;  %v20075_v20 = vld [vmem:[%s27632_s3 + $0x188] sm:$0xff]  }
 0x4ec   :  { %18224 = vmatprep.subr.bf16.mxu0 %v12028_v38  ;;  %18369 = vmatpush3.bf16.msra.mxu1 %v13222_v23  ;;  %v8552_v46 = vadd.f32 %v23119_v50, %v8490_v31  ;;  %v20054_v50 = vld [vmem:[%s27632_s3 + $0x130] sm:$0xff]   ;;  %v20071_v29 = vld [vmem:[%s27632_s3 + $0x178] sm:$0xff]   ;;  %v20074_v2 = vld [vmem:[%s27632_s3 + $0x180] sm:$0xff]  }
 0x4ed   :  { %18370 = vmatprep.subr.bf16.mxu1 %v24484_v63  ;;  %18161 = vmatmul.mubr.bf16.gmra.mxu1 %v20047_v33  ;;  %v24723_v62 = vpop.permute.xlu1 %10250  ;;  %v20009_v26 = vld [vmem:[%s27633_s4 + $0x78] sm:$0xff]   ;;  %v20013_v28 = vld [vmem:[%s27633_s4 + $0x88] sm:$0xff]   ;;  %v20016_v31 = vld [vmem:[%s27633_s4 + $0x90] sm:$0xff]  }
 0x4ee   :  { %17953 = vmatmul.mubr.msk.bf16.gmra.mxu0 %vm9195_vm2, %v19985_v39  ;;  %10380 = vperm.xlu1 %18542, %v8707_v40   ;;  %v8602_v17 = vmax.f32 %v8552_v46, 0.0  ;;  %27877 = vst [vmem:[#allocation91_spill] sm:$0xff] %v24723_v62  ;;  %v20066_v39 = vld [vmem:[%s27632_s3 + $0x160] sm:$0xff]   ;;  %v20067_v40 = vld [vmem:[%s27632_s3 + $0x168] sm:$0xff]   ;;  %v8701_v25 = vld [vmem:[%s27629_s5 + $0x298] sm:$0xff] }
 0x4ef   :  { %18225 = vmatpush3.bf16.msra.mxu0 %v12028_v38  ;;  %17956 = vmatprep.mubr.msk.bf16.mxu0 %vm9195_vm2, %v19988_v10  ;;  %v8687_v10 = vld [vmem:[%s27629_s5 + $0x228] sm:$0xff]  ;;  %v8685_v6 = vld [vmem:[%s27629_s5 + $0x218] sm:$0xff] }
 0x4f0   :  { %18226 = vmatprep.subr.bf16.mxu0 %v24311_v5  ;;  %18371 = vmatpush3.bf16.msra.mxu1 %v24484_v63  ;;  %v8527_v63 = vadd.f32 %v23093_v42, %v8465_v30  ;;  %v13218_v42 = vpack.c.bf16 %v8610_v44, %v8585_v14  ;;  %v8719_v38 = vld [vmem:[%s27629_s5 + $0x328] sm:$0xff]  ;;  %v8733_v58 = vld [vmem:[%s27629_s5 + $0x398] sm:$0xff] }
 0x4f1   :  { %18372 = vmatprep.subr.bf16.mxu1 %v13220_v19  ;;  %18164 = vmatprep.mubr.bf16.mxu1 %v20050_v36  ;;  %v20017_v44 = vld [vmem:[%s27633_s4 + $0x98] sm:$0xff]  }
 0x4f2   :  { %10300 = vperm.xlu1 %18542, %v8691_v41   ;;  %v8577_v52 = vmax.f32 %v8527_v63, 0.0  ;;  %v8699_v63 = vld [vmem:[%s27629_s5 + $0x288] sm:$0xff]  ;;  %v15397_v48 = vld [vmem:[%s27631_s9 + $0x78] sm:$0xff] }
 0x4f3   :  { %18227 = vmatpush3.bf16.msra.mxu0 %v24311_v5  ;;  %v8723_v5 = vld [vmem:[%s27629_s5 + $0x348] sm:$0xff] }
 0x4f4   :  { %18228 = vmatprep.subr.bf16.mxu0 %v12026_v35  ;;  %18373 = vmatpush3.bf16.msra.mxu1 %v13220_v19  ;;  %v12024_v32 = vpack.c.bf16 %v8602_v17, %v8577_v52  ;;  %v20078_v19 = vld [vmem:[%s27632_s3 + $0x190] sm:$0xff]   ;;  %v20021_v52 = vld [vmem:[%s27633_s4 + $0xa8] sm:$0xff]  }
 0x4f5   :  { %18374 = vmatprep.subr.bf16.mxu1 %v24486_v13  ;;  %18165 = vmatmul.mubr.bf16.gmra.mxu1 %v20051_v9  ;;  %v8717_v9 = vld [vmem:[%s27629_s5 + $0x318] sm:$0xff] }
 0x4f6   :  { %17957 = vmatmul.mubr.msk.bf16.gmra.mxu0 %vm9195_vm2, %v19989_v51  ;;  %10540 = vperm.xlu1 %18542, %v8739_v21   ;;  %v20079_v51 = vld [vmem:[%s27632_s3 + $0x198] sm:$0xff]   ;;  %v20020_v21 = vld [vmem:[%s27633_s4 + $0xa0] sm:$0xff]  }
 0x4f7   :  { %18229 = vmatpush3.bf16.msra.mxu0 %v12026_v35  ;;  %17960 = vmatprep.mubr.msk.bf16.mxu0 %vm9195_vm2, %v19992_v27 }
 0x4f8   :  { %18230 = vmatprep.subr.bf16.mxu0 %v24313_v8  ;;  %18375 = vmatpush3.bf16.msra.mxu1 %v24486_v13  ;;  %v24747_v13 = vpop.permute.xlu1 %10170 }
 0x4f9   :  { %18376 = vmatprep.subr.bf16.mxu1 %v13218_v42  ;;  %18168 = vmatprep.mubr.bf16.mxu1 %v20054_v50  ;;  %27878 = vst [vmem:[#allocation57_spill] sm:$0xff] %v24747_v13  ;;  %v20082_v50 = vld [vmem:[%s27632_s3 + $0x1a0] sm:$0xff]  }
 0x4fa   :  { %10460 = vperm.xlu1 %18542, %v8723_v5   ;;  %v8683_v5 = vld [vmem:[%s27629_s5 + $0x208] sm:$0xff]  ;;  %v20122_v13 = vld [vmem:[%s27632_s3 + $0x440] sm:$0xff]  }
 0x4fb   :  { %18231 = vmatpush3.bf16.msra.mxu0 %v24313_v8  ;;  %v8689_v8 = vld [vmem:[%s27629_s5 + $0x238] sm:$0xff] }
 0x4fc   :  { %18232 = vmatprep.subr.bf16.mxu0 %v12024_v32  ;;  %18377 = vmatpush3.bf16.msra.mxu1 %v13218_v42  ;;  %v24772_v22 = vpop.permute.xlu1 %10080 }
 0x4fd   :  { %18378 = vmatprep.subr.bf16.mxu1 %v24398_v1  ;;  %18169 = vmatmul.mubr.bf16.gmra.mxu1 %v20055_v47  ;;  %27879 = vst [vmem:[#allocation20_spill] sm:$0xff] %v24772_v22  ;;  %v20083_v47 = vld [vmem:[%s27632_s3 + $0x1a8] sm:$0xff]  }
 0x4fe   :  { %17961 = vmatmul.mubr.msk.bf16.gmra.mxu0 %vm9195_vm2, %v19993_v60  ;;  %10370 = vperm.xlu1 %18542, %v8705_v53   ;;  %v20024_v53 = vld [vmem:[%s27633_s4 + $0xb0] sm:$0xff]  }
 0x4ff   :  { %18233 = vmatpush3.bf16.msra.mxu0 %v12024_v32  ;;  %17964 = vmatprep.mubr.msk.bf16.mxu0 %vm9195_vm2, %v19996_v16 }
 0x500   :  { %18234 = vmatprep.subr.bf16.mxu0 %v24219_v4  ;;  %18379 = vmatpush3.bf16.msra.mxu1 %v24398_v1  ;;  %v20062_v1 = vld [vmem:[%s27632_s3 + $0x150] sm:$0xff]   ;;  %v24789_v23 = vpop.permute.xlu1 %10000 }
 0x501   :  { %18172 = vmatprep.mubr.bf16.mxu1 %v20058_v15 }
 0x502   :  { %10290 = vperm.xlu1 %18542, %v8689_v8   ;;  %v20086_v8 = vld [vmem:[%s27632_s3 + $0x1b0] sm:$0xff]  }
 0x503   :  { %18235 = vmatpush3.bf16.msra.mxu0 %v24219_v4  ;;  %v20001_v4 = vld [vmem:[%s27633_s4 + $0x58] sm:$0xff]  }
 0x504   :  { %v24798_v33 = vpop.permute.xlu1 %10240 }
 0x505   :  { %18173 = vmatmul.mubr.bf16.gmra.mxu1 %v20059_v45  ;;  %27880 = vst [vmem:[#allocation93_spill] sm:$0xff] %v24798_v33  ;;  %v20025_v45 = vld [vmem:[%s27633_s4 + $0xb8] sm:$0xff]  }
 0x506   :  { %17965 = vmatmul.mubr.msk.bf16.gmra.mxu0 %vm9195_vm2, %v19997_v24  ;;  %10530 = vperm.xlu1 %18542, %v8737_v12  }
 0x507   :  { %17968 = vmatprep.mubr.msk.bf16.mxu0 %vm9195_vm2, %v20000_v3  ;;  %18176 = vmatprep.mubr.bf16.mxu1 %v20062_v1  ;;  %v20087_v3 = vld [vmem:[%s27632_s3 + $0x1b8] sm:$0xff]   ;;  %v20028_v1 = vld [vmem:[%s27633_s4 + $0xc0] sm:$0xff]  }
 0x508   :  { %v24819_v54 = vpop.permute.xlu1 %10160 }
 0x509   :  { %27881 = vst [vmem:[#allocation39_spill] sm:$0xff] %v24819_v54 }
 0x50a   :  { %10450 = vperm.xlu1 %18542, %v8721_v37  }
 0x50c   :  { %v24841_v0 = vpop.permute.xlu1 %10070 }
 0x50d   :  { %18177 = vmatmul.mubr.bf16.gmra.mxu1 %v20063_v49  ;;  %27882 = vst [vmem:[#allocation3_spill] sm:$0xff] %v24841_v0  ;;  %v20162_v0 = vld [vmem:[%s27632_s3 + $0x4e0] sm:$0xff]  }
 0x50e   :  { %17969 = vmatmul.mubr.msk.bf16.gmra.mxu0 %vm9195_vm2, %v20001_v4  ;;  %10360 = vperm.xlu1 %18542, %v8703_v57   ;;  %v20090_v4 = vld [vmem:[%s27632_s3 + $0x1c0] sm:$0xff]  }
 0x50f   :  { %17972 = vmatprep.mubr.msk.bf16.mxu0 %vm9195_vm2, %v20004_v43  ;;  %18180 = vmatprep.mubr.bf16.mxu1 %v20066_v39  ;;  %v20029_v43 = vld [vmem:[%s27633_s4 + $0xc8] sm:$0xff]  }
 0x510   :  { %v24857_v30 = vpop.permute.xlu1 %9990  ;;  %v20091_v39 = vld [vmem:[%s27632_s3 + $0x1c8] sm:$0xff]  }
 0x512   :  { %10280 = vperm.xlu1 %18542, %v8687_v10  }
 0x514   :  { %v24868_v56 = vpop.permute.xlu1 %10230 }
 0x515   :  { %18181 = vmatmul.mubr.bf16.gmra.mxu1 %v20067_v40  ;;  %27883 = vst [vmem:[#allocation89_spill] sm:$0xff] %v24868_v56  ;;  %v20032_v40 = vld [vmem:[%s27633_s4 + $0xd0] sm:$0xff]   ;;  %v20119_v56 = vld [vmem:[%s27632_s3 + $0x438] sm:$0xff]  }
 0x516   :  { %17973 = vmatmul.mubr.msk.bf16.gmra.mxu0 %vm9195_vm2, %v20005_v34  ;;  %10520 = vperm.xlu1 %18542, %v8735_v7   ;;  %v20094_v7 = vld [vmem:[%s27632_s3 + $0x1d0] sm:$0xff]  }
 0x517   :  { %17976 = vmatprep.mubr.msk.bf16.mxu0 %vm9195_vm2, %v20008_v61  ;;  %18184 = vmatprep.mubr.bf16.mxu1 %v20070_v55 }
 0x518   :  { %v24892_v46 = vpop.permute.xlu1 %10150 }
 0x519   :  { %27884 = vst [vmem:[#allocation38_spill] sm:$0xff] %v24892_v46 }
 0x51a   :  { %10440 = vperm.xlu1 %18542, %v8719_v38   ;;  %v20095_v38 = vld [vmem:[%s27632_s3 + $0x1d8] sm:$0xff]  }
 0x51c   :  { %v24917_v60 = vpop.permute.xlu1 %10060 }
 0x51d   :  { %18185 = vmatmul.mubr.bf16.gmra.mxu1 %v20071_v29  ;;  %27885 = vst [vmem:[#allocation2_spill] sm:$0xff] %v24917_v60  ;;  %v20033_v29 = vld [vmem:[%s27633_s4 + $0xd8] sm:$0xff]  }
 0x51e   :  { %17977 = vmatmul.mubr.msk.bf16.gmra.mxu0 %vm9195_vm2, %v20009_v26  ;;  %10350 = vperm.xlu1 %18542, %v8701_v25  }
 0x51f   :  { %17980 = vmatprep.mubr.msk.bf16.mxu0 %vm9195_vm2, %v20012_v18  ;;  %18188 = vmatprep.mubr.bf16.mxu1 %v20074_v2  ;;  %v20036_v18 = vld [vmem:[%s27633_s4 + $0xe0] sm:$0xff]  }
 0x522   :  { %10270 = vperm.xlu1 %18542, %v8685_v6   ;;  %v20098_v6 = vld [vmem:[%s27632_s3 + $0x1e0] sm:$0xff]  }
 0x523   :  { %v24865_v36 = vpop.f32.mrf.mxu1 }
 0x525   :  { %18189 = vmatmul.mubr.bf16.gmra.mxu1 %v20075_v20  ;;  %v24870_v14 = vpop.f32.mrf.mxu1 }
 0x526   :  { %17981 = vmatmul.mubr.msk.bf16.gmra.mxu0 %vm9195_vm2, %v20013_v28  ;;  %10510 = vperm.xlu1 %18542, %v8733_v58   ;;  %v20099_v28 = vld [vmem:[%s27632_s3 + $0x1e8] sm:$0xff]  }
 0x527   :  { %17984 = vmatprep.mubr.msk.bf16.mxu0 %vm9195_vm2, %v20016_v31  ;;  %v24879_v41 = vpop.f32.mrf.mxu1  ;;  %18192 = vmatprep.mubr.bf16.mxu1 %v20078_v19  ;;  %v20037_v31 = vld [vmem:[%s27633_s4 + $0xe8] sm:$0xff]   ;;  %v20040_v19 = vld [vmem:[%s27633_s4 + $0xf0] sm:$0xff]  }
 0x529   :  { %v24887_v27 = vpop.f32.mrf.mxu1 }
 0x52a   :  { %10430 = vperm.xlu1 %18542, %v8717_v9  }
 0x52b   :  { %v24894_v35 = vpop.f32.mrf.mxu1 }
 0x52d   :  { %18193 = vmatmul.mubr.bf16.gmra.mxu1 %v20079_v51  ;;  %v24900_v17 = vpop.f32.mrf.mxu1  ;;  %v20102_v51 = vld [vmem:[%s27632_s3 + $0x1f0] sm:$0xff]  }
 0x52e   :  { %17985 = vmatmul.mubr.msk.bf16.gmra.mxu0 %vm9195_vm2, %v20017_v44  ;;  %10340 = vperm.xlu1 %18542, %v8699_v63   ;;  %v20103_v63 = vld [vmem:[%s27632_s3 + $0x1f8] sm:$0xff]  }
 0x52f   :  { %17988 = vmatprep.mubr.msk.bf16.mxu0 %vm9195_vm2, %v20020_v21  ;;  %v24909_v42 = vpop.f32.mrf.mxu1  ;;  %18196 = vmatprep.mubr.bf16.mxu1 %v20082_v50  ;;  %v20041_v50 = vld [vmem:[%s27633_s4 + $0xf8] sm:$0xff]  }
 0x531   :  { %v24919_v16 = vpop.f32.mrf.mxu1 }
 0x532   :  { %10260 = vperm.xlu1 %18542, %v8683_v5  }
 0x533   :  { %v24924_v32 = vpop.f32.mrf.mxu1 }
 0x535   :  { %18197 = vmatmul.mubr.bf16.gmra.mxu1 %v20083_v47  ;;  %v24927_v15 = vpop.f32.mrf.mxu1  ;;  %v20044_v47 = vld [vmem:[%s27633_s4 + $0x100] sm:$0xff]  }
 0x536   :  { %17989 = vmatmul.mubr.msk.bf16.gmra.mxu0 %vm9195_vm2, %v20021_v52  ;;  %18200 = vmatprep.mubr.bf16.mxu1 %v20086_v8  ;;  %v25029_v52 = vpop.permute.xlu1 %9980 }
 0x537   :  { %17992 = vmatprep.mubr.msk.bf16.mxu0 %vm9195_vm2, %v20024_v53  ;;  %v24936_v24 = vpop.f32.mrf.mxu1 }
 0x539   :  { %v24941_v12 = vpop.f32.mrf.mxu1 }
 0x53b   :  { %v24946_v37 = vpop.f32.mrf.mxu1 }
 0x53d   :  { %18201 = vmatmul.mubr.bf16.gmra.mxu1 %v20087_v3  ;;  %v24949_v49 = vpop.f32.mrf.mxu1  ;;  %v25045_v3 = vpop.permute.xlu1 %10220 }
 0x53e   :  { %17993 = vmatmul.mubr.msk.bf16.gmra.mxu0 %vm9195_vm2, %v20025_v45  ;;  %18204 = vmatprep.mubr.bf16.mxu1 %v20090_v4  ;;  %v20106_v45 = vld [vmem:[%s27632_s3 + $0x400] sm:$0xff]   ;;  %27902 = vst [vmem:[#allocation73_spill] sm:$0xff] %v25045_v3  ;;  %v20107_v4 = vld [vmem:[%s27632_s3 + $0x408] sm:$0xff]  }
 0x53f   :  { %17996 = vmatprep.mubr.msk.bf16.mxu0 %vm9195_vm2, %v20028_v1  ;;  %v24958_v57 = vpop.f32.mrf.mxu1 }
 0x540   :  { %27886 = vst [vmem:[#allocation63_spill] sm:$0xff] %v24958_v57  ;;  %v28197_v57 = vld [vmem:[#allocation92_spill] sm:$0xff] }
 0x541   :  { %v24963_v10 = vpop.f32.mrf.mxu1 }
 0x542   :  { %27887 = vst [vmem:[#allocation22_spill] sm:$0xff] %v24963_v10 }
 0x543   :  { %v24968_v34 = vpop.f32.mrf.mxu1 }
 0x544   :  { %27888 = vst [vmem:[#allocation42_spill] sm:$0xff] %v24968_v34  ;;  %v20220_v34 = vld [vmem:[%s27632_s3 + $0x5c0] sm:$0xff]  }
 0x545   :  { %18205 = vmatmul.mubr.bf16.gmra.mxu1 %v20091_v39  ;;  %v24971_v61 = vpop.f32.mrf.mxu1 }
 0x546   :  { %17997 = vmatmul.mubr.msk.bf16.gmra.mxu0 %vm9195_vm2, %v20029_v43  ;;  %27889 = vst [vmem:[#allocation6_spill] sm:$0xff] %v24971_v61  ;;  %18208 = vmatprep.mubr.bf16.mxu1 %v20094_v7  ;;  %v20045_v43 = vld [vmem:[%s27633_s4 + $0x108] sm:$0xff]  }
 0x547   :  { %18000 = vmatprep.mubr.msk.bf16.mxu0 %vm9195_vm2, %v20032_v40  ;;  %v24977_v55 = vpop.f32.mrf.mxu1  ;;  %v20048_v40 = vld [vmem:[%s27633_s4 + $0x110] sm:$0xff]  }
 0x548   :  { %27890 = vst [vmem:[#allocation98_spill] sm:$0xff] %v24977_v55 }
 0x549   :  { %v24985_v26 = vpop.f32.mrf.mxu1 }
 0x54a   :  { %27891 = vst [vmem:[#allocation104_spill] sm:$0xff] %v24985_v26 }
 0x54b   :  { %v24990_v25 = vpop.f32.mrf.mxu1 }
 0x54c   :  { %27892 = vst [vmem:[#allocation67_spill] sm:$0xff] %v24990_v25 }
 0x54d   :  { %18209 = vmatmul.mubr.bf16.gmra.mxu1 %v20095_v38  ;;  %v24993_v2 = vpop.f32.mrf.mxu1  ;;  %v25063_v38 = vpop.permute.xlu1 %10140 }
 0x54e   :  { %18001 = vmatmul.mubr.msk.bf16.gmra.mxu0 %vm9195_vm2, %v20033_v29  ;;  %27893 = vst [vmem:[#allocation24_spill] sm:$0xff] %v24993_v2  ;;  %18212 = vmatprep.mubr.bf16.mxu1 %v20098_v6  ;;  %27906 = vst [vmem:[#allocation111_spill] sm:$0xff] %v25063_v38 }
 0x54f   :  { %18004 = vmatprep.mubr.msk.bf16.mxu0 %vm9195_vm2, %v20036_v18  ;;  %v24999_v20 = vpop.f32.mrf.mxu1  ;;  %v20110_v18 = vld [vmem:[%s27632_s3 + $0x410] sm:$0xff]  }
 0x550   :  { %27894 = vst [vmem:[#allocation44_spill] sm:$0xff] %v24999_v20 }
 0x551   :  { %v25007_v58 = vpop.f32.mrf.mxu1 }
 0x552   :  { %27895 = vst [vmem:[#allocation8_spill] sm:$0xff] %v25007_v58 }
 0x553   :  { %v25012_v44 = vpop.f32.mrf.mxu1 }
 0x554   :  { %27896 = vst [vmem:[#allocation103_spill] sm:$0xff] %v25012_v44 }
 0x555   :  { %18213 = vmatmul.mubr.bf16.gmra.mxu1 %v20099_v28  ;;  %v25015_v9 = vpop.f32.mrf.mxu1  ;;  %v20111_v28 = vld [vmem:[%s27632_s3 + $0x418] sm:$0xff]  }
 0x556   :  { %18005 = vmatmul.mubr.msk.bf16.gmra.mxu0 %vm9195_vm2, %v20037_v31  ;;  %27897 = vst [vmem:[#allocation112_spill] sm:$0xff] %v25015_v9  ;;  %18216 = vmatprep.mubr.bf16.mxu1 %v20102_v51  ;;  %v20049_v31 = vld [vmem:[%s27633_s4 + $0x118] sm:$0xff]   ;;  %v20052_v51 = vld [vmem:[%s27633_s4 + $0x120] sm:$0xff]  }
 0x557   :  { %18008 = vmatprep.mubr.msk.bf16.mxu0 %vm9195_vm2, %v20040_v19  ;;  %v25021_v21 = vpop.f32.mrf.mxu1 }
 0x558   :  { %27898 = vst [vmem:[#allocation70_spill] sm:$0xff] %v25021_v21 }
 0x559   :  { %v25031_v5 = vpop.f32.mrf.mxu1 }
 0x55a   :  { %27899 = vst [vmem:[#allocation26_spill] sm:$0xff] %v25031_v5 }
 0x55b   :  { %v25036_v53 = vpop.f32.mrf.mxu1 }
 0x55c   :  { %27900 = vst [vmem:[#allocation46_spill] sm:$0xff] %v25036_v53 }
 0x55d   :  { %18217 = vmatmul.mubr.bf16.gmra.mxu1 %v20103_v63  ;;  %v25039_v8 = vpop.f32.mrf.mxu1  ;;  %v25084_v63 = vpop.permute.xlu1 %10050 }
 0x55e   :  { %18009 = vmatmul.mubr.msk.bf16.gmra.mxu0 %vm9195_vm2, %v20041_v50  ;;  %27901 = vst [vmem:[#allocation10_spill] sm:$0xff] %v25039_v8  ;;  %18380 = vmatprep.mubr.bf16.mxu1 %v20106_v45  ;;  %27910 = vst [vmem:[#allocation76_spill] sm:$0xff] %v25084_v63  ;;  %v20212_v63 = vld [vmem:[%s27632_s3 + $0x5a0] sm:$0xff]  }
 0x55f   :  { %18012 = vmatprep.mubr.msk.bf16.mxu0 %vm9195_vm2, %v20044_v47  ;;  %v25047_v1 = vpop.f32.mrf.mxu1  ;;  %v8731_v47 = vld [vmem:[%s27629_s5 + $0x388] sm:$0xff] }
 0x560   :  { %27903 = vst [vmem:[#allocation28_spill] sm:$0xff] %v25047_v1  ;;  %10500 = vperm.xlu1 %18542, %v8731_v47   ;;  %v20056_v47 = vld [vmem:[%s27633_s4 + $0x130] sm:$0xff]   ;;  %v20092_v1 = vld [vmem:[%s27633_s4 + $0x1c0] sm:$0xff]  }
 0x561   :  { %v25055_v39 = vpop.f32.mrf.mxu1 }
 0x562   :  { %27904 = vst [vmem:[#allocation48_spill] sm:$0xff] %v25055_v39  ;;  %v15393_v39 = vld [vmem:[%s27631_s9 + $0x58] sm:$0xff] }
 0x563   :  { %v25060_v7 = vpop.f32.mrf.mxu1 }
 0x564   :  { %27905 = vst [vmem:[#allocation12_spill] sm:$0xff] %v25060_v7 }
 0x565   :  { %18381 = vmatmul.mubr.bf16.vlgmr.msra.gmra.mxu1 %v20107_v4  ;;  %v25065_v29 = vpop.f32.mrf.mxu1  ;;  %v20114_v4 = vld [vmem:[%s27632_s3 + $0x420] sm:$0xff]  }
 0x566   :  { %18013 = vmatmul.mubr.msk.bf16.gmra.mxu0 %vm9195_vm2, %v20045_v43  ;;  %27907 = vst [vmem:[#allocation119_spill] sm:$0xff] %v25065_v29  ;;  %18384 = vmatprep.mubr.bf16.mxu1 %v20110_v18  ;;  %v20115_v18 = vld [vmem:[%s27632_s3 + $0x428] sm:$0xff]  }
 0x567   :  { %18016 = vmatprep.mubr.msk.bf16.mxu0 %vm9195_vm2, %v20048_v40  ;;  %v25071_v6 = vpop.f32.mrf.mxu1  ;;  %v8715_v40 = vld [vmem:[%s27629_s5 + $0x308] sm:$0xff] }
 0x568   :  { %27908 = vst [vmem:[#allocation115_spill] sm:$0xff] %v25071_v6  ;;  %10420 = vperm.xlu1 %18542, %v8715_v40   ;;  %v20118_v40 = vld [vmem:[%s27632_s3 + $0x430] sm:$0xff]  }
 0x569   :  { %v25079_v19 = vpop.f32.mrf.mxu1 }
 0x56a   :  { %27909 = vst [vmem:[#allocation124_spill] sm:$0xff] %v25079_v19  ;;  %v20088_v19 = vld [vmem:[%s27633_s4 + $0x1b0] sm:$0xff]  }
 0x56b   :  { %v25086_v50 = vpop.f32.mrf.mxu1 }
 0x56c   :  { %27911 = vst [vmem:[#allocation30_spill] sm:$0xff] %v25086_v50 }
 0x56d   :  { %18385 = vmatmul.mubr.bf16.gmra.mxu1 %v20111_v28  ;;  %v25092_v45 = vpop.f32.mrf.mxu1  ;;  %v20053_v28 = vld [vmem:[%s27633_s4 + $0x128] sm:$0xff]  }
 0x56e   :  { %18017 = vmatmul.mubr.msk.bf16.gmra.mxu0 %vm9195_vm2, %v20049_v31  ;;  %27912 = vst [vmem:[#allocation50_spill] sm:$0xff] %v25092_v45  ;;  %18388 = vmatprep.mubr.bf16.mxu1 %v20114_v4  ;;  %v25109_v31 = vpop.permute.xlu1 %9970 }
 0x56f   :  { %18020 = vmatprep.mubr.msk.bf16.mxu0 %vm9195_vm2, %v20052_v51  ;;  %v25098_v43 = vpop.f32.mrf.mxu1 }
 0x570   :  { %27913 = vst [vmem:[#allocation14_spill] sm:$0xff] %v25098_v43  ;;  %v15385_v43 = vld [vmem:[%s27631_s9 + $0x18] sm:$0xff] }
 0x571   :  { %v25111_v51 = vpop.f32.mrf.mxu1 }
 0x572   :  { %27914 = vst [vmem:[#allocation79_spill] sm:$0xff] %v25111_v51  ;;  %v25125_v62 = vpop.permute.xlu1 %10210 }
 0x573   :  { %v25116_v33 = vpop.f32.mrf.mxu1  ;;  %27917 = vst [vmem:[#allocation16_spill] sm:$0xff] %v25125_v62 }
 0x574   :  { %27915 = vst [vmem:[#allocation32_spill] sm:$0xff] %v25116_v33 }
 0x575   :  { %18389 = vmatmul.mubr.bf16.gmra.mxu1 %v20115_v18  ;;  %v25119_v4 = vpop.f32.mrf.mxu1  ;;  %v20057_v18 = vld [vmem:[%s27633_s4 + $0x138] sm:$0xff]  }
 0x576   :  { %18021 = vmatmul.mubr.msk.bf16.gmra.mxu0 %vm9195_vm2, %v20053_v28  ;;  %27916 = vst [vmem:[#allocation52_spill] sm:$0xff] %v25119_v4  ;;  %18392 = vmatprep.mubr.bf16.mxu1 %v20118_v40  ;;  %v25143_v40 = vpop.permute.xlu1 %10130  ;;  %v14551_v4 = vld [vmem:[%s27630_s7 + $0x68] sm:$0xff] }
 0x577   :  { %18024 = vmatprep.mubr.msk.bf16.mxu0 %vm9195_vm2, %v20056_v47  ;;  %v25127_v3 = vpop.f32.mrf.mxu1  ;;  %v20060_v47 = vld [vmem:[%s27633_s4 + $0x140] sm:$0xff]   ;;  %27921 = vst [vmem:[#allocation114_spill] sm:$0xff] %v25143_v40 }
 0x578   :  { %27918 = vst [vmem:[#allocation120_spill] sm:$0xff] %v25127_v3 }
 0x579   :  { %v25135_v28 = vpop.f32.mrf.mxu1 }
 0x57a   :  { %27919 = vst [vmem:[#allocation129_spill] sm:$0xff] %v25135_v28 }
 0x57b   :  { %v25140_v54 = vpop.f32.mrf.mxu1 }
 0x57c   :  { %27920 = vst [vmem:[#allocation108_spill] sm:$0xff] %v25140_v54  ;;  %v20123_v54 = vld [vmem:[%s27632_s3 + $0x448] sm:$0xff]  }
 0x57d   :  { %18393 = vmatmul.mubr.bf16.gmra.mxu1 %v20119_v56  ;;  %v25145_v62 = vpop.f32.mrf.mxu1  ;;  %v20061_v56 = vld [vmem:[%s27633_s4 + $0x148] sm:$0xff]  }
 0x57e   :  { %18025 = vmatmul.mubr.msk.bf16.gmra.mxu0 %vm9195_vm2, %v20057_v18  ;;  %27922 = vst [vmem:[#allocation71_spill] sm:$0xff] %v25145_v62  ;;  %18396 = vmatprep.mubr.bf16.mxu1 %v20122_v13  ;;  %v14553_v62 = vld [vmem:[%s27630_s7 + $0x78] sm:$0xff] }
 0x57f   :  { %18028 = vmatprep.mubr.msk.bf16.mxu0 %vm9195_vm2, %v20060_v47  ;;  %v25151_v28 = vpop.f32.mrf.mxu1  ;;  %v20064_v47 = vld [vmem:[%s27633_s4 + $0x150] sm:$0xff]   ;;  %14631 = vperm.xlu1 %18542, %v14553_v62   ;;  %v20127_v62 = vld [vmem:[%s27632_s3 + $0x458] sm:$0xff]  }
 0x580   :  { %27923 = vst [vmem:[#allocation27_spill] sm:$0xff] %v25151_v28  ;;  %v25167_v28 = vpop.permute.xlu1 %10040 }
 0x581   :  { %v25159_v18 = vpop.f32.mrf.mxu1  ;;  %27925 = vst [vmem:[#allocation29_spill] sm:$0xff] %v25167_v28  ;;  %v20166_v28 = vld [vmem:[%s27632_s3 + $0x4f0] sm:$0xff]  }
 0x582   :  { %27924 = vst [vmem:[#allocation75_spill] sm:$0xff] %v25159_v18  ;;  %v20126_v18 = vld [vmem:[%s27632_s3 + $0x450] sm:$0xff]  }
 0x583   :  { %v25169_v13 = vpop.f32.mrf.mxu1  ;;  %14621 = vperm.xlu1 %18542, %v14551_v4   ;;  %v14549_v4 = vld [vmem:[%s27630_s7 + $0x58] sm:$0xff] }
 0x584   :  { %27926 = vst [vmem:[#allocation43_spill] sm:$0xff] %v25169_v13  ;;  %v14547_v13 = vld [vmem:[%s27630_s7 + $0x48] sm:$0xff] }
 0x585   :  { %18397 = vmatmul.mubr.bf16.gmra.mxu1 %v20123_v54  ;;  %v25172_v3 = vpop.f32.mrf.mxu1  ;;  %v25186_v54 = vpop.permute.xlu1 %9960 }
 0x586   :  { %18029 = vmatmul.mubr.msk.bf16.gmra.mxu0 %vm9195_vm2, %v20061_v56  ;;  %27927 = vst [vmem:[#allocation7_spill] sm:$0xff] %v25172_v3  ;;  %18400 = vmatprep.mubr.bf16.mxu1 %v20126_v18  ;;  %v20065_v56 = vld [vmem:[%s27633_s4 + $0x158] sm:$0xff]   ;;  %v20068_v3 = vld [vmem:[%s27633_s4 + $0x160] sm:$0xff]  }
 0x587   :  { %18032 = vmatprep.mubr.msk.bf16.mxu0 %vm9195_vm2, %v20064_v47  ;;  %v25181_v38 = vpop.f32.mrf.mxu1  ;;  %14611 = vperm.xlu1 %18542, %v14549_v4   ;;  %v20072_v4 = vld [vmem:[%s27633_s4 + $0x170] sm:$0xff]  }
 0x588   :  { %27928 = vst [vmem:[#allocation45_spill] sm:$0xff] %v25181_v38 }
 0x589   :  { %v25191_v47 = vpop.f32.mrf.mxu1  ;;  %v25211_v33 = vpop.permute.xlu1 %10200 }
 0x58a   :  { %27929 = vst [vmem:[#allocation9_spill] sm:$0xff] %v25191_v47  ;;  %v20130_v47 = vld [vmem:[%s27632_s3 + $0x460] sm:$0xff]   ;;  %27932 = vst [vmem:[#allocation127_spill] sm:$0xff] %v25211_v33  ;;  %v14543_v33 = vld [vmem:[%s27630_s7 + $0x28] sm:$0xff] }
 0x58b   :  { %v25199_v18 = vpop.f32.mrf.mxu1  ;;  %14601 = vperm.xlu1 %18542, %v14547_v13  }
 0x58c   :  { %27930 = vst [vmem:[#allocation78_spill] sm:$0xff] %v25199_v18 }
 0x58d   :  { %18401 = vmatmul.mubr.bf16.gmra.mxu1 %v20127_v62  ;;  %v25202_v38 = vpop.f32.mrf.mxu1  ;;  %v20131_v62 = vld [vmem:[%s27632_s3 + $0x468] sm:$0xff]  }
 0x58e   :  { %18033 = vmatmul.mubr.msk.bf16.gmra.mxu0 %vm9195_vm2, %v20065_v56  ;;  %27931 = vst [vmem:[#allocation31_spill] sm:$0xff] %v25202_v38  ;;  %18404 = vmatprep.mubr.bf16.mxu1 %v20130_v47  ;;  %v25231_v47 = vpop.permute.xlu1 %10120 }
 0x58f   :  { %18036 = vmatprep.mubr.msk.bf16.mxu0 %vm9195_vm2, %v20068_v3  ;;  %v25213_v46 = vpop.f32.mrf.mxu1  ;;  %v20069_v3 = vld [vmem:[%s27633_s4 + $0x168] sm:$0xff]   ;;  %27936 = vst [vmem:[#allocation51_spill] sm:$0xff] %v25231_v47 }
 0x590   :  { %27933 = vst [vmem:[#allocation82_spill] sm:$0xff] %v25213_v46  ;;  %v14545_v46 = vld [vmem:[%s27630_s7 + $0x38] sm:$0xff] }
 0x591   :  { %v25221_v56 = vpop.f32.mrf.mxu1  ;;  %14591 = vperm.xlu1 %18542, %v14545_v46   ;;  %v20135_v46 = vld [vmem:[%s27632_s3 + $0x478] sm:$0xff]  }
 0x592   :  { %27934 = vst [vmem:[#allocation34_spill] sm:$0xff] %v25221_v56  ;;  %v20134_v56 = vld [vmem:[%s27632_s3 + $0x470] sm:$0xff]  }
 0x593   :  { %v25229_v13 = vpop.f32.mrf.mxu1 }
 0x594   :  { %27935 = vst [vmem:[#allocation125_spill] sm:$0xff] %v25229_v13  ;;  %v14539_v13 = vld [vmem:[%s27630_s7 + $0x8] sm:$0xff] }
 0x595   :  { %18405 = vmatmul.mubr.bf16.gmra.mxu1 %v20131_v62  ;;  %v25234_v38 = vpop.f32.mrf.mxu1  ;;  %14581 = vperm.xlu1 %18542, %v14543_v33   ;;  %v20073_v62 = vld [vmem:[%s27633_s4 + $0x178] sm:$0xff]   ;;  %v25259_v33 = vpop.permute.xlu1 %10030 }
 0x596   :  { %18037 = vmatmul.mubr.msk.bf16.gmra.mxu0 %vm9195_vm2, %v20069_v3  ;;  %27937 = vst [vmem:[#allocation15_spill] sm:$0xff] %v25234_v38  ;;  %18408 = vmatprep.mubr.bf16.mxu1 %v20134_v56  ;;  %27940 = vst [vmem:[#allocation54_spill] sm:$0xff] %v25259_v33 }
 0x597   :  { %18040 = vmatprep.mubr.msk.bf16.mxu0 %vm9195_vm2, %v20072_v4  ;;  %v25243_v18 = vpop.f32.mrf.mxu1  ;;  %v20076_v4 = vld [vmem:[%s27633_s4 + $0x180] sm:$0xff]  }
 0x598   :  { %27938 = vst [vmem:[#allocation53_spill] sm:$0xff] %v25243_v18  ;;  %v14541_v18 = vld [vmem:[%s27630_s7 + $0x18] sm:$0xff] }
 0x599   :  { %v25251_v3 = vpop.f32.mrf.mxu1  ;;  %14571 = vperm.xlu1 %18542, %v14541_v18   ;;  %v20139_v18 = vld [vmem:[%s27632_s3 + $0x488] sm:$0xff]  }
 0x59a   :  { %27939 = vst [vmem:[#allocation17_spill] sm:$0xff] %v25251_v3  ;;  %v20138_v3 = vld [vmem:[%s27632_s3 + $0x480] sm:$0xff]  }
 0x59b   :  { %v25261_v56 = vpop.f32.mrf.mxu1 }
 0x59c   :  { %27941 = vst [vmem:[#allocation18_spill] sm:$0xff] %v25261_v56 }
 0x59d   :  { %18409 = vmatmul.mubr.bf16.gmra.mxu1 %v20135_v46  ;;  %v25264_v38 = vpop.f32.mrf.mxu1  ;;  %14561 = vperm.xlu1 %18542, %v14539_v13   ;;  %v25278_v46 = vpop.permute.xlu1 %9950  ;;  %v15383_v13 = vld [vmem:[%s27631_s9 + $0x8] sm:$0xff] }
 0x59e   :  { %18041 = vmatmul.mubr.msk.bf16.gmra.mxu0 %vm9195_vm2, %v20073_v62  ;;  %27942 = vst [vmem:[#allocation84_spill] sm:$0xff] %v25264_v38  ;;  %18412 = vmatprep.mubr.bf16.mxu1 %v20138_v3  ;;  %v20077_v62 = vld [vmem:[%s27633_s4 + $0x188] sm:$0xff]   ;;  %v20080_v38 = vld [vmem:[%s27633_s4 + $0x190] sm:$0xff]  }
 0x59f   :  { %18044 = vmatprep.mubr.msk.bf16.mxu0 %vm9195_vm2, %v20076_v4  ;;  %v25273_v51 = vpop.f32.mrf.mxu1 }
 0x5a0   :  { %27943 = vst [vmem:[#allocation35_spill] sm:$0xff] %v25273_v51 }
 0x5a1   :  { %v25283_v4 = vpop.f32.mrf.mxu1  ;;  %15405 = vperm.xlu1 %18542, %v15383_v13   ;;  %v25305_v13 = vpop.permute.xlu1 %10190 }
 0x5a2   :  { %27944 = vst [vmem:[#allocation86_spill] sm:$0xff] %v25283_v4  ;;  %v20142_v4 = vld [vmem:[%s27632_s3 + $0x490] sm:$0xff]   ;;  %27947 = vst [vmem:[#allocation55_spill] sm:$0xff] %v25305_v13  ;;  %v20084_v13 = vld [vmem:[%s27633_s4 + $0x1a0] sm:$0xff]  }
 0x5a5   :  { %v25291_v3 = vpop.f32.mrf.mxu1  ;;  %18413 = vmatmul.mubr.bf16.gmra.mxu1 %v20139_v18  ;;  %15415 = vperm.xlu1 %18542, %v15385_v43   ;;  %v15387_v43 = vld [vmem:[%s27631_s9 + $0x28] sm:$0xff]  ;;  %v25331_v47 = vpop.permute.xlu1 %10110 }
 0x5a6   :  { %27945 = vst [vmem:[#allocation36_spill] sm:$0xff] %v25291_v3  ;;  %v25293_v51 = vpop.f32.mrf.mxu0  ;;  %18045 = vmatmul.mubr.msk.bf16.gmra.mxu0 %vm9195_vm2, %v20077_v62  ;;  %18416 = vmatprep.mubr.bf16.mxu1 %v20142_v4  ;;  %27951 = vst [vmem:[#allocation106_spill] sm:$0xff] %v25331_v47 }
 0x5a7   :  { %18048 = vmatprep.mubr.msk.bf16.mxu0 %vm9195_vm2, %v20080_v38  ;;  %v25297_v56 = vpop.f32.mrf.mxu1  ;;  %v20143_v38 = vld [vmem:[%s27632_s3 + $0x498] sm:$0xff]  }
 0x5a8   :  { %27946 = vst [vmem:[#allocation128_spill] sm:$0xff] %v25297_v56  ;;  %v25307_v3 = vpop.f32.mrf.mxu0  ;;  %v20081_v56 = vld [vmem:[%s27633_s4 + $0x198] sm:$0xff]  }
 0x5a9   :  { %v25309_v18 = vpop.f32.mrf.mxu1  ;;  %15425 = vperm.xlu1 %18542, %v15387_v43   ;;  %v15389_v43 = vld [vmem:[%s27631_s9 + $0x38] sm:$0xff] }
 0x5aa   :  { %27948 = vst [vmem:[#allocation19_spill] sm:$0xff] %v25309_v18  ;;  %v25314_v62 = vpop.f32.mrf.mxu0 }
 0x5ab   :  { %v25322_v45 = vpop.f32.mrf.mxu1 }
 0x5ac   :  { %27949 = vst [vmem:[#allocation87_spill] sm:$0xff] %v25322_v45  ;;  %v25327_v4 = vpop.f32.mrf.mxu0  ;;  %v20146_v45 = vld [vmem:[%s27632_s3 + $0x4a0] sm:$0xff]  }
 0x5ad   :  { %v25329_v18 = vpop.f32.mrf.mxu1  ;;  %18417 = vmatmul.mubr.bf16.gmra.mxu1 %v20143_v38  ;;  %15435 = vperm.xlu1 %18542, %v15389_v43   ;;  %v25365_v43 = vpop.permute.xlu1 %10020 }
 0x5ae   :  { %27950 = vst [vmem:[#allocation37_spill] sm:$0xff] %v25329_v18  ;;  %v25333_v50 = vpop.f32.mrf.mxu0  ;;  %18049 = vmatmul.mubr.msk.bf16.gmra.mxu0 %vm9195_vm2, %v20081_v56  ;;  %18420 = vmatprep.mubr.bf16.mxu1 %v20146_v45  ;;  %v20147_v56 = vld [vmem:[%s27632_s3 + $0x4a8] sm:$0xff]   ;;  %27955 = vst [vmem:[#allocation81_spill] sm:$0xff] %v25365_v43 }
 0x5af   :  { %18052 = vmatprep.mubr.msk.bf16.mxu0 %vm9195_vm2, %v20084_v13  ;;  %v25337_v40 = vpop.f32.mrf.mxu1  ;;  %v15391_v45 = vld [vmem:[%s27631_s9 + $0x48] sm:$0xff] }
 0x5b0   :  { %27952 = vst [vmem:[#allocation110_spill] sm:$0xff] %v25337_v40  ;;  %v25345_v18 = vpop.f32.mrf.mxu0  ;;  %v20085_v40 = vld [vmem:[%s27633_s4 + $0x1a8] sm:$0xff]  }
 0x5b1   :  { %v25347_v38 = vpop.f32.mrf.mxu1  ;;  %15445 = vperm.xlu1 %18542, %v15391_v45  }
 0x5b2   :  { %27953 = vst [vmem:[#allocation118_spill] sm:$0xff] %v25347_v38  ;;  %v25352_v13 = vpop.f32.mrf.mxu0 }
 0x5b3   :  { %v25360_v6 = vpop.f32.mrf.mxu1 }
 0x5b4   :  { %27954 = vst [vmem:[#allocation123_spill] sm:$0xff] %v25360_v6  ;;  %v25367_v38 = vpop.f32.mrf.mxu0  ;;  %v20150_v6 = vld [vmem:[%s27632_s3 + $0x4b0] sm:$0xff]  }
 0x5b5   :  { %v25369_v29 = vpop.f32.mrf.mxu1  ;;  %18421 = vmatmul.mubr.bf16.gmra.mxu1 %v20147_v56  ;;  %15455 = vperm.xlu1 %18542, %v15393_v39  }
 0x5b6   :  { %27956 = vst [vmem:[#allocation33_spill] sm:$0xff] %v25369_v29  ;;  %v25371_v7 = vpop.f32.mrf.mxu0  ;;  %18053 = vmatmul.mubr.msk.bf16.gmra.mxu0 %vm9195_vm2, %v20085_v40  ;;  %18424 = vmatprep.mubr.bf16.mxu1 %v20150_v6  ;;  %v25390_v40 = vpop.permute.xlu1 %9940  ;;  %v20089_v29 = vld [vmem:[%s27633_s4 + $0x1b8] sm:$0xff]   ;;  %v15395_v6 = vld [vmem:[%s27631_s9 + $0x68] sm:$0xff] }
 0x5b7   :  { %18056 = vmatprep.mubr.msk.bf16.mxu0 %vm9195_vm2, %v20088_v19  ;;  %v25375_v47 = vpop.f32.mrf.mxu1  ;;  %v20151_v19 = vld [vmem:[%s27632_s3 + $0x4b8] sm:$0xff]  }
 0x5b8   :  { %27957 = vst [vmem:[#allocation65_spill] sm:$0xff] %v25375_v47  ;;  %v25383_v45 = vpop.f32.mrf.mxu0 }
 0x5b9   :  { %v25385_v56 = vpop.f32.mrf.mxu1  ;;  %15465 = vperm.xlu1 %18542, %v15395_v6  }
 0x5ba   :  { %27958 = vst [vmem:[#allocation23_spill] sm:$0xff] %v25385_v56  ;;  %v25392_v47 = vpop.f32.mrf.mxu0  ;;  %v25421_v6 = vpop.permute.xlu1 %10180 }
 0x5bb   :  { %v25400_v39 = vpop.f32.mrf.mxu1  ;;  %27962 = vst [vmem:[#allocation121_spill] sm:$0xff] %v25421_v6  ;;  %v20096_v6 = vld [vmem:[%s27633_s4 + $0x1d0] sm:$0xff]  }
 0x5bc   :  { %27959 = vst [vmem:[#allocation100_spill] sm:$0xff] %v25400_v39  ;;  %v25405_v56 = vpop.f32.mrf.mxu0  ;;  %v20154_v39 = vld [vmem:[%s27632_s3 + $0x4c0] sm:$0xff]  }
 0x5bd   :  { %v25407_v8 = vpop.f32.mrf.mxu1  ;;  %18425 = vmatmul.mubr.bf16.gmra.mxu1 %v20151_v19  ;;  %15475 = vperm.xlu1 %18542, %v15397_v48  }
 0x5be   :  { %27960 = vst [vmem:[#allocation105_spill] sm:$0xff] %v25407_v8  ;;  %v25409_v22 = vpop.f32.mrf.mxu0  ;;  %18057 = vmatmul.mubr.msk.bf16.gmra.mxu0 %vm9195_vm2, %v20089_v29  ;;  %18428 = vmatprep.mubr.bf16.mxu1 %v20154_v39 }
 0x5bf   :  { %18060 = vmatprep.mubr.msk.bf16.mxu0 %vm9195_vm2, %v20092_v1  ;;  %v25413_v53 = vpop.f32.mrf.mxu1  ;;  %v20155_v1 = vld [vmem:[%s27632_s3 + $0x4c8] sm:$0xff]  }
 0x5c0   :  { %27961 = vst [vmem:[#allocation116_spill] sm:$0xff] %v25413_v53  ;;  %v25423_v8 = vpop.f32.mrf.mxu0  ;;  %v20093_v53 = vld [vmem:[%s27633_s4 + $0x1c8] sm:$0xff]  }
 0x5c1   :  { %v25425_v19 = vpop.f32.mrf.mxu1 }
 0x5c2   :  { %27963 = vst [vmem:[#allocation68_spill] sm:$0xff] %v25425_v19  ;;  %v25430_v29 = vpop.f32.mrf.mxu0 }
 0x5c3   :  { %v25438_v5 = vpop.f32.mrf.mxu1 }
 0x5c4   :  { %27964 = vst [vmem:[#allocation25_spill] sm:$0xff] %v25438_v5  ;;  %v25440_v48 = vpop.f32.mrf.mxu0 }
 0x5c5   :  { %v25442_v19 = vpop.f32.mrf.mxu1  ;;  %18429 = vmatmul.mubr.bf16.gmra.mxu1 %v20155_v1  ;;  %v20159_v1 = vld [vmem:[%s27632_s3 + $0x4d8] sm:$0xff]  }
 0x5c6   :  { %27965 = vst [vmem:[#allocation47_spill] sm:$0xff] %v25442_v19  ;;  %v25444_v39 = vpop.f32.mrf.mxu0  ;;  %18061 = vmatmul.mubr.msk.bf16.gmra.mxu0 %vm9195_vm2, %v20093_v53  ;;  %18432 = vmatprep.mubr.bf16.mxu1 %v20158_v11  ;;  %v20097_v53 = vld [vmem:[%s27633_s4 + $0x1d8] sm:$0xff]  }
 0x5c7   :  { %18064 = vmatprep.mubr.msk.bf16.mxu0 %vm9195_vm2, %v20096_v6  ;;  %v25448_v21 = vpop.f32.mrf.mxu1  ;;  %v20100_v6 = vld [vmem:[%s27633_s4 + $0x1e0] sm:$0xff]  }
 0x5c8   :  { %27966 = vst [vmem:[#allocation11_spill] sm:$0xff] %v25448_v21  ;;  %v25453_v9 = vpop.f32.mrf.mxu0 }
 0x5c9   :  { %27967 = vst [vmem:[#allocation49_spill] sm:$0xff] %v25453_v9  ;;  %v25455_v5 = vpop.f32.mrf.mxu1 }
 0x5ca   :  { %27968 = vst [vmem:[#allocation13_spill] sm:$0xff] %v25455_v5  ;;  %v25460_v19 = vpop.f32.mrf.mxu0 }
 0x5cb   :  { %27969 = vst [vmem:[#allocation97_spill] sm:$0xff] %v25460_v19  ;;  %v25468_v21 = vpop.f32.mrf.mxu1 }
 0x5cc   :  { %27970 = vst [vmem:[#allocation101_spill] sm:$0xff] %v25468_v21  ;;  %v25470_v60 = vpop.f32.mrf.mxu0 }
 0x5cd   :  { %27971 = vst [vmem:[#allocation40_spill] sm:$0xff] %v25470_v60  ;;  %v25472_v5 = vpop.f32.mrf.mxu1  ;;  %18433 = vmatmul.mubr.bf16.gmra.mxu1 %v20159_v1  ;;  %v20163_v1 = vld [vmem:[%s27632_s3 + $0x4e8] sm:$0xff]  }
 0x5ce   :  { %27972 = vst [vmem:[#allocation4_spill] sm:$0xff] %v25472_v5  ;;  %v25474_v11 = vpop.f32.mrf.mxu0  ;;  %18065 = vmatmul.mubr.msk.bf16.gmra.mxu0 %vm9195_vm2, %v20097_v53  ;;  %18436 = vmatprep.mubr.bf16.mxu1 %v20162_v0  ;;  %v20101_v53 = vld [vmem:[%s27633_s4 + $0x1e8] sm:$0xff]  }
 0x5cf   :  { %27973 = vst [vmem:[#allocation41_spill] sm:$0xff] %v25474_v11  ;;  %18068 = vmatprep.mubr.msk.bf16.mxu0 %vm9195_vm2, %v20100_v6  ;;  %v25478_v44 = vpop.f32.mrf.mxu1  ;;  %v20104_v6 = vld [vmem:[%s27633_s4 + $0x1f0] sm:$0xff]  }
 0x5d0   :  { %27974 = vst [vmem:[#allocation5_spill] sm:$0xff] %v25478_v44  ;;  %v25483_v58 = vpop.f32.mrf.mxu0  ;;  %v20216_v11 = vld [vmem:[%s27632_s3 + $0x5b0] sm:$0xff]  }
 0x5d1   :  { %27975 = vst [vmem:[#allocation132_spill] sm:$0xff] %v25483_v58  ;;  %v25485_v21 = vpop.f32.mrf.mxu1 }
 0x5d2   :  { %27976 = vst [vmem:[#allocation133_spill] sm:$0xff] %v25485_v21  ;;  %v25490_v5 = vpop.f32.mrf.mxu0 }
 0x5d3   :  { %27977 = vst [vmem:[#allocation134_spill] sm:$0xff] %v25490_v5  ;;  %v25498_v44 = vpop.f32.mrf.mxu1 }
 0x5d4   :  { %27978 = vst [vmem:[#allocation135_spill] sm:$0xff] %v25498_v44  ;;  %v25500_v20 = vpop.f32.mrf.mxu0 }
 0x5d5   :  { %27979 = vst [vmem:[#allocation136_spill] sm:$0xff] %v25500_v20  ;;  %v25502_v21 = vpop.f32.mrf.mxu1  ;;  %18437 = vmatmul.mubr.bf16.gmra.mxu1 %v20163_v1  ;;  %v20167_v1 = vld [vmem:[%s27632_s3 + $0x4f8] sm:$0xff]  }
 0x5d6   :  { %27980 = vst [vmem:[#allocation137_spill] sm:$0xff] %v25502_v21  ;;  %v25504_v0 = vpop.f32.mrf.mxu0  ;;  %18069 = vmatmul.mubr.msk.bf16.gmra.mxu0 %vm9195_vm2, %v20101_v53  ;;  %18440 = vmatprep.mubr.bf16.mxu1 %v20166_v28  ;;  %v20105_v53 = vld [vmem:[%s27633_s4 + $0x1f8] sm:$0xff]  }
 0x5d7   :  { %27981 = vst [vmem:[#allocation138_spill] sm:$0xff] %v25504_v0  ;;  %18072 = vmatprep.mubr.msk.bf16.mxu0 %vm9195_vm2, %v20104_v6  ;;  %v25508_v2 = vpop.f32.mrf.mxu1  ;;  %v20108_v6 = vld [vmem:[%s27632_s3 + $0x200] sm:$0xff]  }
 0x5d8   :  { %27982 = vst [vmem:[#allocation139_spill] sm:$0xff] %v25508_v2  ;;  %v25513_v25 = vpop.f32.mrf.mxu0  ;;  %v20172_v0 = vld [vmem:[%s27632_s3 + $0x500] sm:$0xff]  }
 0x5d9   :  { %27983 = vst [vmem:[#allocation140_spill] sm:$0xff] %v25513_v25  ;;  %v25515_v44 = vpop.f32.mrf.mxu1 }
 0x5da   :  { %27984 = vst [vmem:[#allocation141_spill] sm:$0xff] %v25515_v44  ;;  %v25520_v21 = vpop.f32.mrf.mxu0 }
 0x5db   :  { %27985 = vst [vmem:[#allocation142_spill] sm:$0xff] %v25520_v21  ;;  %v25528_v2 = vpop.f32.mrf.mxu1 }
 0x5dc   :  { %27986 = vst [vmem:[#allocation143_spill] sm:$0xff] %v25528_v2  ;;  %v25530_v25 = vpop.f32.mrf.mxu0 }
 0x5dd   :  { %27987 = vst [vmem:[#allocation144_spill] sm:$0xff] %v25530_v25  ;;  %v25532_v44 = vpop.f32.mrf.mxu1  ;;  %18441 = vmatmul.mubr.bf16.gmra.mxu1 %v20167_v1  ;;  %v20173_v1 = vld [vmem:[%s27632_s3 + $0x508] sm:$0xff]  }
 0x5de   :  { %27988 = vst [vmem:[#allocation145_spill] sm:$0xff] %v25532_v44  ;;  %v25534_v28 = vpop.f32.mrf.mxu0  ;;  %18073 = vmatmul.mubr.msk.bf16.gmra.mxu0 %vm9195_vm2, %v20105_v53  ;;  %18444 = vmatprep.mubr.bf16.mxu1 %v20172_v0  ;;  %v20109_v53 = vld [vmem:[%s27632_s3 + $0x208] sm:$0xff]  }
 0x5df   :  { %27989 = vst [vmem:[#allocation146_spill] sm:$0xff] %v25534_v28  ;;  %18236 = vmatprep.mubr.bf16.mxu0 %v20108_v6  ;;  %v25537_v21 = vpop.f32.mrf.mxu1  ;;  %v20112_v6 = vld [vmem:[%s27632_s3 + $0x210] sm:$0xff]  }
 0x5e0   :  { %27990 = vst [vmem:[#allocation147_spill] sm:$0xff] %v25537_v21  ;;  %v25542_v20 = vpop.f32.mrf.mxu0 }
 0x5e1   :  { %27991 = vst [vmem:[#allocation148_spill] sm:$0xff] %v25542_v20  ;;  %v25544_v5 = vpop.f32.mrf.mxu1  ;;  %v20176_v20 = vld [vmem:[%s27632_s3 + $0x510] sm:$0xff]  }
 0x5e2   :  { %27992 = vst [vmem:[#allocation149_spill] sm:$0xff] %v25544_v5  ;;  %v25549_v44 = vpop.f32.mrf.mxu0 }
 0x5e3   :  { %27993 = vst [vmem:[#allocation150_spill] sm:$0xff] %v25549_v44  ;;  %v25557_v21 = vpop.f32.mrf.mxu1 }
 0x5e4   :  { %27994 = vst [vmem:[#allocation151_spill] sm:$0xff] %v25557_v21  ;;  %v25559_v2 = vpop.f32.mrf.mxu0 }
 0x5e5   :  { %27995 = vst [vmem:[#allocation152_spill] sm:$0xff] %v25559_v2  ;;  %v25561_v5 = vpop.f32.mrf.mxu1  ;;  %18445 = vmatmul.mubr.bf16.gmra.mxu1 %v20173_v1 }
 0x5e6   :  { %27996 = vst [vmem:[#allocation153_spill] sm:$0xff] %v25561_v5  ;;  %v25563_v0 = vpop.f32.mrf.mxu0  ;;  %18237 = vmatmul.mubr.bf16.vlgmr.msra.gmra.mxu0 %v20109_v53  ;;  %18448 = vmatprep.mubr.bf16.mxu1 %v20176_v20  ;;  %v20177_v5 = vld [vmem:[%s27632_s3 + $0x518] sm:$0xff]  }
 0x5e7   :  { %27997 = vst [vmem:[#allocation154_spill] sm:$0xff] %v25563_v0  ;;  %18240 = vmatprep.mubr.bf16.mxu0 %v20112_v6  ;;  %v25565_v44 = vpop.f32.mrf.mxu1  ;;  %v20113_v53 = vld [vmem:[%s27632_s3 + $0x218] sm:$0xff]   ;;  %v20116_v6 = vld [vmem:[%s27632_s3 + $0x220] sm:$0xff]  }
 0x5e8   :  { %27998 = vst [vmem:[#allocation155_spill] sm:$0xff] %v25565_v44  ;;  %v25570_v28 = vpop.f32.mrf.mxu0 }
 0x5e9   :  { %27999 = vst [vmem:[#allocation156_spill] sm:$0xff] %v25570_v28  ;;  %v25572_v25 = vpop.f32.mrf.mxu1  ;;  %v20180_v28 = vld [vmem:[%s27632_s3 + $0x520] sm:$0xff]  }
 0x5ea   :  { %28000 = vst [vmem:[#allocation157_spill] sm:$0xff] %v25572_v25  ;;  %v25577_v1 = vpop.f32.mrf.mxu0 }
 0x5eb   :  { %28001 = vst [vmem:[#allocation158_spill] sm:$0xff] %v25577_v1  ;;  %v25585_v44 = vpop.f32.mrf.mxu1 }
 0x5ec   :  { %28002 = vst [vmem:[#allocation159_spill] sm:$0xff] %v25585_v44  ;;  %v25587_v21 = vpop.f32.mrf.mxu0 }
 0x5ed   :  { %28003 = vst [vmem:[#allocation160_spill] sm:$0xff] %v25587_v21  ;;  %v25589_v25 = vpop.f32.mrf.mxu1  ;;  %18449 = vmatmul.mubr.bf16.gmra.mxu1 %v20177_v5 }
 0x5ee   :  { %28004 = vst [vmem:[#allocation161_spill] sm:$0xff] %v25589_v25  ;;  %v25591_v20 = vpop.f32.mrf.mxu0  ;;  %18241 = vmatmul.mubr.bf16.gmra.mxu0 %v20113_v53  ;;  %18452 = vmatprep.mubr.bf16.mxu1 %v20180_v28  ;;  %v20181_v25 = vld [vmem:[%s27632_s3 + $0x528] sm:$0xff]  }
 0x5ef   :  { %28005 = vst [vmem:[#allocation162_spill] sm:$0xff] %v25591_v20  ;;  %18244 = vmatprep.mubr.bf16.mxu0 %v20116_v6  ;;  %v25593_v1 = vpop.f32.mrf.mxu1  ;;  %v20117_v53 = vld [vmem:[%s27632_s3 + $0x228] sm:$0xff]   ;;  %v20120_v6 = vld [vmem:[%s27632_s3 + $0x230] sm:$0xff]  }
 0x5f0   :  { %28006 = vst [vmem:[#allocation163_spill] sm:$0xff] %v25593_v1  ;;  %v25598_v0 = vpop.f32.mrf.mxu0 }
 0x5f1   :  { %28007 = vst [vmem:[#allocation164_spill] sm:$0xff] %v25598_v0  ;;  %v25600_v2 = vpop.f32.mrf.mxu1  ;;  %v20184_v0 = vld [vmem:[%s27632_s3 + $0x530] sm:$0xff]  }
 0x5f2   :  { %28008 = vst [vmem:[#allocation165_spill] sm:$0xff] %v25600_v2  ;;  %v25605_v5 = vpop.f32.mrf.mxu0 }
 0x5f3   :  { %28009 = vst [vmem:[#allocation166_spill] sm:$0xff] %v25605_v5  ;;  %v25613_v1 = vpop.f32.mrf.mxu1 }
 0x5f4   :  { %28010 = vst [vmem:[#allocation167_spill] sm:$0xff] %v25613_v1  ;;  %v25615_v44 = vpop.f32.mrf.mxu0 }
 0x5f5   :  { %28011 = vst [vmem:[#allocation168_spill] sm:$0xff] %v25615_v44  ;;  %v25617_v2 = vpop.f32.mrf.mxu1  ;;  %18453 = vmatmul.mubr.bf16.gmra.mxu1 %v20181_v25 }
 0x5f6   :  { %28012 = vst [vmem:[#allocation169_spill] sm:$0xff] %v25617_v2  ;;  %v25619_v28 = vpop.f32.mrf.mxu0  ;;  %18245 = vmatmul.mubr.bf16.gmra.mxu0 %v20117_v53  ;;  %18456 = vmatprep.mubr.bf16.mxu1 %v20184_v0  ;;  %v20185_v2 = vld [vmem:[%s27632_s3 + $0x538] sm:$0xff]  }
 0x5f7   :  { %28013 = vst [vmem:[#allocation170_spill] sm:$0xff] %v25619_v28  ;;  %18248 = vmatprep.mubr.bf16.mxu0 %v20120_v6  ;;  %v25621_v5 = vpop.f32.mrf.mxu1  ;;  %v20121_v53 = vld [vmem:[%s27632_s3 + $0x238] sm:$0xff]   ;;  %v20124_v6 = vld [vmem:[%s27632_s3 + $0x240] sm:$0xff]  }
 0x5f8   :  { %28014 = vst [vmem:[#allocation171_spill] sm:$0xff] %v25621_v5  ;;  %v25626_v20 = vpop.f32.mrf.mxu0 }
 0x5f9   :  { %28015 = vst [vmem:[#allocation172_spill] sm:$0xff] %v25626_v20  ;;  %v25628_v21 = vpop.f32.mrf.mxu1  ;;  %v20188_v20 = vld [vmem:[%s27632_s3 + $0x540] sm:$0xff]  }
 0x5fa   :  { %28016 = vst [vmem:[#allocation173_spill] sm:$0xff] %v25628_v21  ;;  %v25633_v25 = vpop.f32.mrf.mxu0 }
 0x5fb   :  { %28017 = vst [vmem:[#allocation174_spill] sm:$0xff] %v25633_v25  ;;  %v25641_v5 = vpop.f32.mrf.mxu1 }
 0x5fc   :  { %28018 = vst [vmem:[#allocation175_spill] sm:$0xff] %v25641_v5  ;;  %v25643_v1 = vpop.f32.mrf.mxu0 }
 0x5fd   :  { %28019 = vst [vmem:[#allocation176_spill] sm:$0xff] %v25643_v1  ;;  %v25645_v21 = vpop.f32.mrf.mxu1  ;;  %18457 = vmatmul.mubr.bf16.gmra.mxu1 %v20185_v2 }
 0x5fe   :  { %28020 = vst [vmem:[#allocation177_spill] sm:$0xff] %v25645_v21  ;;  %v25647_v0 = vpop.f32.mrf.mxu0  ;;  %18249 = vmatmul.mubr.bf16.gmra.mxu0 %v20121_v53  ;;  %18460 = vmatprep.mubr.bf16.mxu1 %v20188_v20  ;;  %v20189_v21 = vld [vmem:[%s27632_s3 + $0x548] sm:$0xff]  }
 0x5ff   :  { %28021 = vst [vmem:[#allocation178_spill] sm:$0xff] %v25647_v0  ;;  %18252 = vmatprep.mubr.bf16.mxu0 %v20124_v6  ;;  %v25649_v25 = vpop.f32.mrf.mxu1  ;;  %v20125_v53 = vld [vmem:[%s27632_s3 + $0x248] sm:$0xff]   ;;  %v20128_v6 = vld [vmem:[%s27632_s3 + $0x250] sm:$0xff]  }
 0x600   :  { %28022 = vst [vmem:[#allocation179_spill] sm:$0xff] %v25649_v25  ;;  %v25654_v28 = vpop.f32.mrf.mxu0 }
 0x601   :  { %28023 = vst [vmem:[#allocation180_spill] sm:$0xff] %v25654_v28  ;;  %v25656_v44 = vpop.f32.mrf.mxu1  ;;  %v20192_v28 = vld [vmem:[%s27632_s3 + $0x550] sm:$0xff]  }
 0x602   :  { %28024 = vst [vmem:[#allocation181_spill] sm:$0xff] %v25656_v44  ;;  %v25661_v2 = vpop.f32.mrf.mxu0 }
 0x603   :  { %28025 = vst [vmem:[#allocation182_spill] sm:$0xff] %v25661_v2  ;;  %v25669_v25 = vpop.f32.mrf.mxu1 }
 0x604   :  { %28026 = vst [vmem:[#allocation183_spill] sm:$0xff] %v25669_v25  ;;  %v25671_v5 = vpop.f32.mrf.mxu0 }
 0x605   :  { %28027 = vst [vmem:[#allocation184_spill] sm:$0xff] %v25671_v5  ;;  %v25673_v44 = vpop.f32.mrf.mxu1  ;;  %18461 = vmatmul.mubr.bf16.gmra.mxu1 %v20189_v21 }
 0x606   :  { %28028 = vst [vmem:[#allocation185_spill] sm:$0xff] %v25673_v44  ;;  %v25675_v20 = vpop.f32.mrf.mxu0  ;;  %18253 = vmatmul.mubr.bf16.gmra.mxu0 %v20125_v53  ;;  %18464 = vmatprep.mubr.bf16.mxu1 %v20192_v28  ;;  %v20193_v44 = vld [vmem:[%s27632_s3 + $0x558] sm:$0xff]  }
 0x607   :  { %28029 = vst [vmem:[#allocation186_spill] sm:$0xff] %v25675_v20  ;;  %18256 = vmatprep.mubr.bf16.mxu0 %v20128_v6  ;;  %v25677_v2 = vpop.f32.mrf.mxu1  ;;  %v20129_v53 = vld [vmem:[%s27632_s3 + $0x258] sm:$0xff]   ;;  %v20132_v6 = vld [vmem:[%s27632_s3 + $0x260] sm:$0xff]  }
 0x608   :  { %28030 = vst [vmem:[#allocation187_spill] sm:$0xff] %v25677_v2  ;;  %v25682_v0 = vpop.f32.mrf.mxu0 }
 0x609   :  { %28031 = vst [vmem:[#allocation188_spill] sm:$0xff] %v25682_v0  ;;  %v25684_v1 = vpop.f32.mrf.mxu1  ;;  %v20196_v0 = vld [vmem:[%s27632_s3 + $0x560] sm:$0xff]  }
 0x60a   :  { %28032 = vst [vmem:[#allocation189_spill] sm:$0xff] %v25684_v1  ;;  %v25689_v21 = vpop.f32.mrf.mxu0 }
 0x60b   :  { %28033 = vst [vmem:[#allocation190_spill] sm:$0xff] %v25689_v21  ;;  %v25697_v2 = vpop.f32.mrf.mxu1 }
 0x60c   :  { %28034 = vst [vmem:[#allocation191_spill] sm:$0xff] %v25697_v2  ;;  %v25699_v25 = vpop.f32.mrf.mxu0 }
 0x60d   :  { %28035 = vst [vmem:[#allocation192_spill] sm:$0xff] %v25699_v25  ;;  %v25701_v1 = vpop.f32.mrf.mxu1  ;;  %18465 = vmatmul.mubr.bf16.gmra.mxu1 %v20193_v44 }
 0x60e   :  { %28036 = vst [vmem:[#allocation193_spill] sm:$0xff] %v25701_v1  ;;  %v25703_v28 = vpop.f32.mrf.mxu0  ;;  %18257 = vmatmul.mubr.bf16.gmra.mxu0 %v20129_v53  ;;  %18468 = vmatprep.mubr.bf16.mxu1 %v20196_v0  ;;  %v20197_v1 = vld [vmem:[%s27632_s3 + $0x568] sm:$0xff]  }
 0x60f   :  { %28037 = vst [vmem:[#allocation194_spill] sm:$0xff] %v25703_v28  ;;  %18260 = vmatprep.mubr.bf16.mxu0 %v20132_v6  ;;  %v25705_v21 = vpop.f32.mrf.mxu1  ;;  %v20133_v53 = vld [vmem:[%s27632_s3 + $0x268] sm:$0xff]   ;;  %v20136_v6 = vld [vmem:[%s27632_s3 + $0x270] sm:$0xff]  }
 0x610   :  { %28038 = vst [vmem:[#allocation195_spill] sm:$0xff] %v25705_v21  ;;  %v25710_v20 = vpop.f32.mrf.mxu0 }
 0x611   :  { %28039 = vst [vmem:[#allocation196_spill] sm:$0xff] %v25710_v20  ;;  %v25712_v5 = vpop.f32.mrf.mxu1  ;;  %v20200_v20 = vld [vmem:[%s27632_s3 + $0x570] sm:$0xff]  }
 0x612   :  { %28040 = vst [vmem:[#allocation197_spill] sm:$0xff] %v25712_v5  ;;  %v25717_v44 = vpop.f32.mrf.mxu0 }
 0x613   :  { %28041 = vst [vmem:[#allocation198_spill] sm:$0xff] %v25717_v44  ;;  %v25725_v21 = vpop.f32.mrf.mxu1 }
 0x614   :  { %28042 = vst [vmem:[#allocation199_spill] sm:$0xff] %v25725_v21  ;;  %v25727_v2 = vpop.f32.mrf.mxu0 }
 0x615   :  { %28043 = vst [vmem:[#allocation200_spill] sm:$0xff] %v25727_v2  ;;  %v25729_v5 = vpop.f32.mrf.mxu1  ;;  %18469 = vmatmul.mubr.bf16.gmra.mxu1 %v20197_v1 }
 0x616   :  { %28044 = vst [vmem:[#allocation201_spill] sm:$0xff] %v25729_v5  ;;  %v25731_v0 = vpop.f32.mrf.mxu0  ;;  %18261 = vmatmul.mubr.bf16.gmra.mxu0 %v20133_v53  ;;  %18472 = vmatprep.mubr.bf16.mxu1 %v20200_v20  ;;  %v20201_v5 = vld [vmem:[%s27632_s3 + $0x578] sm:$0xff]  }
 0x617   :  { %28045 = vst [vmem:[#allocation202_spill] sm:$0xff] %v25731_v0  ;;  %18264 = vmatprep.mubr.bf16.mxu0 %v20136_v6  ;;  %v25733_v44 = vpop.f32.mrf.mxu1  ;;  %v20137_v53 = vld [vmem:[%s27632_s3 + $0x278] sm:$0xff]   ;;  %v20140_v6 = vld [vmem:[%s27632_s3 + $0x280] sm:$0xff]  }
 0x618   :  { %28046 = vst [vmem:[#allocation203_spill] sm:$0xff] %v25733_v44  ;;  %v25738_v28 = vpop.f32.mrf.mxu0 }
 0x619   :  { %28047 = vst [vmem:[#allocation204_spill] sm:$0xff] %v25738_v28  ;;  %v25740_v25 = vpop.f32.mrf.mxu1  ;;  %v20204_v28 = vld [vmem:[%s27632_s3 + $0x580] sm:$0xff]  }
 0x61a   :  { %28048 = vst [vmem:[#allocation205_spill] sm:$0xff] %v25740_v25  ;;  %v25745_v1 = vpop.f32.mrf.mxu0 }
 0x61b   :  { %28049 = vst [vmem:[#allocation206_spill] sm:$0xff] %v25745_v1  ;;  %v25753_v44 = vpop.f32.mrf.mxu1 }
 0x61c   :  { %28050 = vst [vmem:[#allocation207_spill] sm:$0xff] %v25753_v44  ;;  %v25755_v21 = vpop.f32.mrf.mxu0 }
 0x61d   :  { %28051 = vst [vmem:[#allocation208_spill] sm:$0xff] %v25755_v21  ;;  %v25757_v25 = vpop.f32.mrf.mxu1  ;;  %18473 = vmatmul.mubr.bf16.gmra.mxu1 %v20201_v5 }
 0x61e   :  { %28052 = vst [vmem:[#allocation209_spill] sm:$0xff] %v25757_v25  ;;  %v25759_v20 = vpop.f32.mrf.mxu0  ;;  %18265 = vmatmul.mubr.bf16.gmra.mxu0 %v20137_v53  ;;  %18476 = vmatprep.mubr.bf16.mxu1 %v20204_v28  ;;  %v20205_v25 = vld [vmem:[%s27632_s3 + $0x588] sm:$0xff]  }
 0x61f   :  { %28053 = vst [vmem:[#allocation210_spill] sm:$0xff] %v25759_v20  ;;  %18268 = vmatprep.mubr.bf16.mxu0 %v20140_v6  ;;  %v25761_v1 = vpop.f32.mrf.mxu1  ;;  %v20141_v53 = vld [vmem:[%s27632_s3 + $0x288] sm:$0xff]   ;;  %v20144_v6 = vld [vmem:[%s27632_s3 + $0x290] sm:$0xff]  }
 0x620   :  { %28054 = vst [vmem:[#allocation211_spill] sm:$0xff] %v25761_v1  ;;  %v25766_v0 = vpop.f32.mrf.mxu0 }
 0x621   :  { %28055 = vst [vmem:[#allocation212_spill] sm:$0xff] %v25766_v0  ;;  %v25768_v2 = vpop.f32.mrf.mxu1  ;;  %v20208_v0 = vld [vmem:[%s27632_s3 + $0x590] sm:$0xff]  }
 0x622   :  { %28056 = vst [vmem:[#allocation213_spill] sm:$0xff] %v25768_v2  ;;  %v25773_v5 = vpop.f32.mrf.mxu0 }
 0x623   :  { %28057 = vst [vmem:[#allocation214_spill] sm:$0xff] %v25773_v5  ;;  %v25781_v1 = vpop.f32.mrf.mxu1 }
 0x624   :  { %28058 = vst [vmem:[#allocation215_spill] sm:$0xff] %v25781_v1  ;;  %v25783_v44 = vpop.f32.mrf.mxu0  ;;  %v20209_v1 = vld [vmem:[%s27632_s3 + $0x598] sm:$0xff]  }
 0x625   :  { %28059 = vst [vmem:[#allocation216_spill] sm:$0xff] %v25783_v44  ;;  %v25785_v2 = vpop.f32.mrf.mxu1  ;;  %18477 = vmatmul.mubr.bf16.gmra.mxu1 %v20205_v25 }
 0x626   :  { %v25787_v28 = vpop.f32.mrf.mxu0  ;;  %18269 = vmatmul.mubr.bf16.gmra.mxu0 %v20141_v53  ;;  %18480 = vmatprep.mubr.bf16.mxu1 %v20208_v0  ;;  %v20145_v53 = vld [vmem:[%s27632_s3 + $0x298] sm:$0xff]  }
 0x627   :  { %28060 = vst [vmem:[#allocation217_spill] sm:$0xff] %v25787_v28  ;;  %18272 = vmatprep.mubr.bf16.mxu0 %v20144_v6  ;;  %v25789_v5 = vpop.f32.mrf.mxu1  ;;  %v20148_v6 = vld [vmem:[%s27632_s3 + $0x2a0] sm:$0xff]  }
 0x628   :  { %v25794_v20 = vpop.f32.mrf.mxu0 }
 0x629   :  { %28061 = vst [vmem:[#allocation218_spill] sm:$0xff] %v25794_v20  ;;  %v25796_v21 = vpop.f32.mrf.mxu1 }
 0x62a   :  { %v25801_v25 = vpop.f32.mrf.mxu0 }
 0x62b   :  { %28062 = vst [vmem:[#allocation219_spill] sm:$0xff] %v25801_v25  ;;  %v25809_v28 = vpop.f32.mrf.mxu1 }
 0x62c   :  { %v25811_v20 = vpop.f32.mrf.mxu0 }
 0x62d   :  { %28063 = vst [vmem:[#allocation220_spill] sm:$0xff] %v25811_v20  ;;  %v25813_v44 = vpop.f32.mrf.mxu1  ;;  %18481 = vmatmul.mubr.bf16.gmra.mxu1 %v20209_v1  ;;  %v20213_v20 = vld [vmem:[%s27632_s3 + $0x5a8] sm:$0xff]  }
 0x62e   :  { %v25815_v0 = vpop.f32.mrf.mxu0  ;;  %18273 = vmatmul.mubr.bf16.gmra.mxu0 %v20145_v53  ;;  %18484 = vmatprep.mubr.bf16.mxu1 %v20212_v63  ;;  %v20149_v53 = vld [vmem:[%s27632_s3 + $0x2a8] sm:$0xff]  }
 0x62f   :  { %28064 = vst [vmem:[#allocation221_spill] sm:$0xff] %v25815_v0  ;;  %18276 = vmatprep.mubr.bf16.mxu0 %v20148_v6  ;;  %v25817_v25 = vpop.f32.mrf.mxu1  ;;  %v20152_v6 = vld [vmem:[%s27632_s3 + $0x2b0] sm:$0xff]  }
 0x630   :  { %v25822_v26 = vpop.f32.mrf.mxu0 }
 0x631   :  { %28065 = vst [vmem:[#allocation222_spill] sm:$0xff] %v25822_v26  ;;  %v25824_v58 = vpop.f32.mrf.mxu1 }
 0x632   :  { %v25829_v1 = vpop.f32.mrf.mxu0 }
 0x633   :  { %28066 = vst [vmem:[#allocation223_spill] sm:$0xff] %v25829_v1  ;;  %v25837_v0 = vpop.f32.mrf.mxu1 }
 0x634   :  { %v25839_v26 = vpop.f32.mrf.mxu0 }
 0x635   :  { %28067 = vst [vmem:[#allocation224_spill] sm:$0xff] %v25839_v26  ;;  %v25841_v55 = vpop.f32.mrf.mxu1  ;;  %18485 = vmatmul.mubr.bf16.gmra.mxu1 %v20213_v20  ;;  %v20217_v26 = vld [vmem:[%s27632_s3 + $0x5b8] sm:$0xff]  }
 0x636   :  { %v25843_v63 = vpop.f32.mrf.mxu0  ;;  %18277 = vmatmul.mubr.bf16.gmra.mxu0 %v20149_v53  ;;  %18488 = vmatprep.mubr.bf16.mxu1 %v20216_v11  ;;  %v20153_v53 = vld [vmem:[%s27632_s3 + $0x2b8] sm:$0xff]  }
 0x637   :  { %28068 = vst [vmem:[#allocation225_spill] sm:$0xff] %v25843_v63  ;;  %18280 = vmatprep.mubr.bf16.mxu0 %v20152_v6  ;;  %v25845_v1 = vpop.f32.mrf.mxu1  ;;  %v20156_v6 = vld [vmem:[%s27632_s3 + $0x2c0] sm:$0xff]  }
 0x638   :  { %v25850_v61 = vpop.f32.mrf.mxu0 }
 0x639   :  { %28069 = vst [vmem:[#allocation226_spill] sm:$0xff] %v25850_v61  ;;  %v25852_v43 = vpop.f32.mrf.mxu1 }
 0x63a   :  { %v25857_v20 = vpop.f32.mrf.mxu0 }
 0x63b   :  { %28070 = vst [vmem:[#allocation227_spill] sm:$0xff] %v25857_v20  ;;  %v25865_v63 = vpop.f32.mrf.mxu1 }
 0x63c   :  { %v25867_v61 = vpop.f32.mrf.mxu0 }
 0x63d   :  { %28071 = vst [vmem:[#allocation228_spill] sm:$0xff] %v25867_v61  ;;  %v25869_v60 = vpop.f32.mrf.mxu1  ;;  %18489 = vmatmul.mubr.bf16.gmra.mxu1 %v20217_v26  ;;  %v20221_v61 = vld [vmem:[%s27632_s3 + $0x5c8] sm:$0xff]  }
 0x63e   :  { %28072 = vst [vmem:[#allocation229_spill] sm:$0xff] %v25869_v60  ;;  %v25871_v11 = vpop.f32.mrf.mxu0  ;;  %18281 = vmatmul.mubr.bf16.gmra.mxu0 %v20153_v53  ;;  %18492 = vmatprep.mubr.bf16.mxu1 %v20220_v34  ;;  %v20157_v53 = vld [vmem:[%s27632_s3 + $0x2c8] sm:$0xff]  }
 0x63f   :  { %28073 = vst [vmem:[#allocation230_spill] sm:$0xff] %v25871_v11  ;;  %18284 = vmatprep.mubr.bf16.mxu0 %v20156_v6  ;;  %v25873_v20 = vpop.f32.mrf.mxu1  ;;  %v20160_v6 = vld [vmem:[%s27632_s3 + $0x2d0] sm:$0xff]  }
 0x640   :  { %28074 = vst [vmem:[#allocation231_spill] sm:$0xff] %v25873_v20  ;;  %v25878_v19 = vpop.f32.mrf.mxu0  ;;  %v20224_v20 = vld [vmem:[%s27632_s3 + $0x5d0] sm:$0xff]  }
 0x641   :  { %28075 = vst [vmem:[#allocation232_spill] sm:$0xff] %v25878_v19  ;;  %v25880_v33 = vpop.f32.mrf.mxu1 }
 0x642   :  { %28076 = vst [vmem:[#allocation233_spill] sm:$0xff] %v25880_v33  ;;  %v25885_v26 = vpop.f32.mrf.mxu0 }
 0x643   :  { %28077 = vst [vmem:[#allocation234_spill] sm:$0xff] %v25885_v26  ;;  %v25893_v11 = vpop.f32.mrf.mxu1 }
 0x644   :  { %28078 = vst [vmem:[#allocation235_spill] sm:$0xff] %v25893_v11  ;;  %v25895_v19 = vpop.f32.mrf.mxu0 }
 0x645   :  { %28079 = vst [vmem:[#allocation236_spill] sm:$0xff] %v25895_v19  ;;  %v25897_v33 = vpop.f32.mrf.mxu1  ;;  %18493 = vmatmul.mubr.bf16.gmra.mxu1 %v20221_v61  ;;  %v20225_v19 = vld [vmem:[%s27632_s3 + $0x5d8] sm:$0xff]  }
 0x646   :  { %28080 = vst [vmem:[#allocation237_spill] sm:$0xff] %v25897_v33  ;;  %v25899_v34 = vpop.f32.mrf.mxu0  ;;  %18285 = vmatmul.mubr.bf16.gmra.mxu0 %v20157_v53  ;;  %18496 = vmatprep.mubr.bf16.mxu1 %v20224_v20  ;;  %v20161_v53 = vld [vmem:[%s27632_s3 + $0x2d8] sm:$0xff]  }
 0x647   :  { %28081 = vst [vmem:[#allocation238_spill] sm:$0xff] %v25899_v34  ;;  %18288 = vmatprep.mubr.bf16.mxu0 %v20160_v6  ;;  %v25901_v26 = vpop.f32.mrf.mxu1  ;;  %v20164_v6 = vld [vmem:[%s27632_s3 + $0x2e0] sm:$0xff]  }
 0x648   :  { %28082 = vst [vmem:[#allocation239_spill] sm:$0xff] %v25901_v26  ;;  %v25906_v10 = vpop.f32.mrf.mxu0  ;;  %v20228_v26 = vld [vmem:[%s27632_s3 + $0x5e0] sm:$0xff]  }
 0x649   :  { %28083 = vst [vmem:[#allocation240_spill] sm:$0xff] %v25906_v10  ;;  %v25908_v60 = vpop.f32.mrf.mxu1 }
 0x64a   :  { %28084 = vst [vmem:[#allocation241_spill] sm:$0xff] %v25908_v60  ;;  %v25913_v61 = vpop.f32.mrf.mxu0 }
 0x64b   :  { %28085 = vst [vmem:[#allocation242_spill] sm:$0xff] %v25913_v61  ;;  %v25921_v34 = vpop.f32.mrf.mxu1 }
 0x64c   :  { %28086 = vst [vmem:[#allocation243_spill] sm:$0xff] %v25921_v34  ;;  %v25923_v10 = vpop.f32.mrf.mxu0 }
 0x64d   :  { %28087 = vst [vmem:[#allocation244_spill] sm:$0xff] %v25923_v10  ;;  %v25925_v60 = vpop.f32.mrf.mxu1  ;;  %18497 = vmatmul.mubr.bf16.gmra.mxu1 %v20225_v19  ;;  %v20229_v10 = vld [vmem:[%s27632_s3 + $0x5e8] sm:$0xff]  }
 0x64e   :  { %28088 = vst [vmem:[#allocation245_spill] sm:$0xff] %v25925_v60  ;;  %v25927_v20 = vpop.f32.mrf.mxu0  ;;  %18289 = vmatmul.mubr.bf16.gmra.mxu0 %v20161_v53  ;;  %18500 = vmatprep.mubr.bf16.mxu1 %v20228_v26  ;;  %v20165_v53 = vld [vmem:[%s27632_s3 + $0x2e8] sm:$0xff]  }
 0x64f   :  { %28089 = vst [vmem:[#allocation246_spill] sm:$0xff] %v25927_v20  ;;  %18292 = vmatprep.mubr.bf16.mxu0 %v20164_v6  ;;  %v25929_v61 = vpop.f32.mrf.mxu1  ;;  %v20168_v6 = vld [vmem:[%s27632_s3 + $0x2f0] sm:$0xff]  }
 0x650   :  { %28090 = vst [vmem:[#allocation247_spill] sm:$0xff] %v25929_v61  ;;  %v25934_v33 = vpop.f32.mrf.mxu0  ;;  %v20232_v61 = vld [vmem:[%s27632_s3 + $0x5f0] sm:$0xff]  }
 0x651   :  { %28091 = vst [vmem:[#allocation248_spill] sm:$0xff] %v25934_v33  ;;  %v25936_v11 = vpop.f32.mrf.mxu1 }
 0x652   :  { %28092 = vst [vmem:[#allocation249_spill] sm:$0xff] %v25936_v11  ;;  %v25941_v19 = vpop.f32.mrf.mxu0 }
 0x653   :  { %28093 = vst [vmem:[#allocation250_spill] sm:$0xff] %v25941_v19  ;;  %v25949_v20 = vpop.f32.mrf.mxu1 }
 0x654   :  { %28094 = vst [vmem:[#allocation251_spill] sm:$0xff] %v25949_v20  ;;  %v25951_v33 = vpop.f32.mrf.mxu0 }
 0x655   :  { %28095 = vst [vmem:[#allocation252_spill] sm:$0xff] %v25951_v33  ;;  %v25953_v11 = vpop.f32.mrf.mxu1  ;;  %18501 = vmatmul.mubr.bf16.gmra.mxu1 %v20229_v10  ;;  %v20233_v33 = vld [vmem:[%s27632_s3 + $0x5f8] sm:$0xff]  }
 0x656   :  { %28096 = vst [vmem:[#allocation253_spill] sm:$0xff] %v25953_v11  ;;  %v25955_v26 = vpop.f32.mrf.mxu0  ;;  %18293 = vmatmul.mubr.bf16.gmra.mxu0 %v20165_v53  ;;  %18504 = vmatprep.mubr.bf16.mxu1 %v20232_v61  ;;  %v20169_v53 = vld [vmem:[%s27632_s3 + $0x2f8] sm:$0xff]  }
 0x657   :  { %28097 = vst [vmem:[#allocation254_spill] sm:$0xff] %v25955_v26  ;;  %18296 = vmatprep.mubr.bf16.mxu0 %v20168_v6  ;;  %v25957_v19 = vpop.f32.mrf.mxu1  ;;  %v20170_v6 = vld [vmem:[%s27632_s3 + $0x300] sm:$0xff]  }
 0x658   :  { %28098 = vst [vmem:[#allocation255_spill] sm:$0xff] %v25957_v19  ;;  %v25962_v60 = vpop.f32.mrf.mxu0 }
 0x659   :  { %28099 = vst [vmem:[#allocation256_spill] sm:$0xff] %v25962_v60  ;;  %v25964_v34 = vpop.f32.mrf.mxu1 }
 0x65a   :  { %28100 = vst [vmem:[#allocation257_spill] sm:$0xff] %v25964_v34  ;;  %v25969_v10 = vpop.f32.mrf.mxu0 }
 0x65b   :  { %28101 = vst [vmem:[#allocation258_spill] sm:$0xff] %v25969_v10  ;;  %v25977_v26 = vpop.f32.mrf.mxu1 }
 0x65c   :  { %28102 = vst [vmem:[#allocation259_spill] sm:$0xff] %v25977_v26  ;;  %v25979_v60 = vpop.f32.mrf.mxu0  ;;  %v20171_v26 = vld [vmem:[%s27632_s3 + $0x308] sm:$0xff]  }
 0x65d   :  { %28103 = vst [vmem:[#allocation260_spill] sm:$0xff] %v25979_v60  ;;  %v25981_v34 = vpop.f32.mrf.mxu1  ;;  %18505 = vmatmul.mubr.bf16.gmra.mxu1 %v20233_v33  ;;  %v20174_v33 = vld [vmem:[%s27632_s3 + $0x310] sm:$0xff]  }
 0x65e   :  { %28104 = vst [vmem:[#allocation261_spill] sm:$0xff] %v25981_v34  ;;  %v25983_v61 = vpop.f32.mrf.mxu0  ;;  %18297 = vmatmul.mubr.bf16.gmra.mxu0 %v20169_v53 }
 0x65f   :  { %28105 = vst [vmem:[#allocation262_spill] sm:$0xff] %v25983_v61  ;;  %18300 = vmatprep.mubr.bf16.mxu0 %v20170_v6  ;;  %v25985_v10 = vpop.f32.mrf.mxu1 }
 0x660   :  { %28106 = vst [vmem:[#allocation263_spill] sm:$0xff] %v25985_v10  ;;  %v25987_v19 = vpop.f32.mrf.mxu0 }
 0x661   :  { %28107 = vst [vmem:[#allocation264_spill] sm:$0xff] %v25987_v19  ;;  %v25989_v11 = vpop.f32.mrf.mxu1 }
 0x662   :  { %28108 = vst [vmem:[#allocation265_spill] sm:$0xff] %v25989_v11  ;;  %v25991_v20 = vpop.f32.mrf.mxu0 }
 0x663   :  { %28109 = vst [vmem:[#allocation266_spill] sm:$0xff] %v25991_v20  ;;  %v25999_v60 = vpop.f32.mrf.mxu1 }
 0x664   :  { %28110 = vst [vmem:[#allocation267_spill] sm:$0xff] %v25999_v60  ;;  %v26001_v53 = vpop.f32.mrf.mxu0  ;;  %v20175_v60 = vld [vmem:[%s27632_s3 + $0x318] sm:$0xff]  }
 0x665   :  { %28111 = vst [vmem:[#allocation268_spill] sm:$0xff] %v26001_v53  ;;  %v26003_v6 = vpop.f32.mrf.mxu1  ;;  %v20178_v53 = vld [vmem:[%s27632_s3 + $0x320] sm:$0xff]  }
 0x666   :  { %28112 = vst [vmem:[#allocation269_spill] sm:$0xff] %v26003_v6  ;;  %v26005_v61 = vpop.f32.mrf.mxu0  ;;  %18301 = vmatmul.mubr.bf16.gmra.mxu0 %v20171_v26 }
 0x667   :  { %28113 = vst [vmem:[#allocation270_spill] sm:$0xff] %v26005_v61  ;;  %18304 = vmatprep.mubr.bf16.mxu0 %v20174_v33  ;;  %v26007_v19 = vpop.f32.mrf.mxu1  ;;  %v26025_v33 = vpop.permute.xlu0 %10095 }
 0x668   :  { %28114 = vst [vmem:[#allocation271_spill] sm:$0xff] %v26007_v19  ;;  %v26009_v20 = vpop.f32.mrf.mxu0  ;;  %28120 = vst [vmem:[#allocation277_spill] sm:$0xff] %v26025_v33 }
 0x669   :  { %28115 = vst [vmem:[#allocation272_spill] sm:$0xff] %v26009_v20  ;;  %v26011_v11 = vpop.f32.mrf.mxu1 }
 0x66a   :  { %28116 = vst [vmem:[#allocation273_spill] sm:$0xff] %v26011_v11  ;;  %v26013_v10 = vpop.f32.mrf.mxu0 }
 0x66b   :  { %28117 = vst [vmem:[#allocation274_spill] sm:$0xff] %v26013_v10  ;;  %v26021_v6 = vpop.f32.mrf.mxu1  ;;  %v26031_v10 = vpop.permute.xlu1 %10100 }
 0x66c   :  { %28118 = vst [vmem:[#allocation275_spill] sm:$0xff] %v26021_v6  ;;  %v26023_v26 = vpop.f32.mrf.mxu0  ;;  %28123 = vst [vmem:[#allocation280_spill] sm:$0xff] %v26031_v10  ;;  %v26044_v6 = vpop.permute.xlu0 %10405 }
 0x66d   :  { %28119 = vst [vmem:[#allocation276_spill] sm:$0xff] %v26023_v26  ;;  %v26027_v61 = vpop.f32.mrf.mxu1  ;;  %v20179_v26 = vld [vmem:[%s27632_s3 + $0x328] sm:$0xff]   ;;  %28128 = vst [vmem:[#allocation285_spill] sm:$0xff] %v26044_v6 }
 0x66e   :  { %28121 = vst [vmem:[#allocation278_spill] sm:$0xff] %v26027_v61  ;;  %v26029_v20 = vpop.f32.mrf.mxu0  ;;  %18305 = vmatmul.mubr.bf16.gmra.mxu0 %v20175_v60  ;;  %v20182_v60 = vld [vmem:[%s27632_s3 + $0x330] sm:$0xff]  }
 0x66f   :  { %28122 = vst [vmem:[#allocation279_spill] sm:$0xff] %v26029_v20  ;;  %18308 = vmatprep.mubr.bf16.mxu0 %v20178_v53  ;;  %v26033_v11 = vpop.f32.mrf.mxu1 }
 0x670   :  { %28124 = vst [vmem:[#allocation281_spill] sm:$0xff] %v26033_v11  ;;  %v26035_v19 = vpop.f32.mrf.mxu0  ;;  %v26053_v11 = vpop.permute.xlu1 %10410 }
 0x671   :  { %28125 = vst [vmem:[#allocation282_spill] sm:$0xff] %v26035_v19  ;;  %v26037_v34 = vpop.f32.mrf.mxu1  ;;  %28131 = vst [vmem:[#allocation288_spill] sm:$0xff] %v26053_v11  ;;  %v26063_v6 = vpop.permute.xlu0 %10325 }
 0x672   :  { %28126 = vst [vmem:[#allocation283_spill] sm:$0xff] %v26037_v34  ;;  %v26039_v9 = vpop.f32.mrf.mxu0  ;;  %28136 = vst [vmem:[#allocation293_spill] sm:$0xff] %v26063_v6 }
 0x673   :  { %28127 = vst [vmem:[#allocation284_spill] sm:$0xff] %v26039_v9  ;;  %v26049_v20 = vpop.f32.mrf.mxu1 }
 0x674   :  { %28129 = vst [vmem:[#allocation286_spill] sm:$0xff] %v26049_v20  ;;  %v26051_v53 = vpop.f32.mrf.mxu0  ;;  %v26072_v11 = vpop.permute.xlu1 %10330 }
 0x675   :  { %28130 = vst [vmem:[#allocation287_spill] sm:$0xff] %v26051_v53  ;;  %v26055_v19 = vpop.f32.mrf.mxu1  ;;  %v20183_v53 = vld [vmem:[%s27632_s3 + $0x338] sm:$0xff]   ;;  %28139 = vst [vmem:[#allocation296_spill] sm:$0xff] %v26072_v11 }
 0x676   :  { %28132 = vst [vmem:[#allocation289_spill] sm:$0xff] %v26055_v19  ;;  %v26057_v34 = vpop.f32.mrf.mxu0  ;;  %18309 = vmatmul.mubr.bf16.gmra.mxu0 %v20179_v26  ;;  %v20186_v26 = vld [vmem:[%s27632_s3 + $0x340] sm:$0xff]  }
 0x677   :  { %28133 = vst [vmem:[#allocation290_spill] sm:$0xff] %v26057_v34  ;;  %18312 = vmatprep.mubr.bf16.mxu0 %v20182_v60  ;;  %v26059_v9 = vpop.f32.mrf.mxu1 }
 0x678   :  { %28134 = vst [vmem:[#allocation291_spill] sm:$0xff] %v26059_v9  ;;  %v26061_v61 = vpop.f32.mrf.mxu0  ;;  %v26091_v11 = vpop.permute.xlu1 %10570 }
 0x679   :  { %28135 = vst [vmem:[#allocation292_spill] sm:$0xff] %v26061_v61  ;;  %v26065_v10 = vpop.f32.mrf.mxu1  ;;  %28147 = vst [vmem:[#allocation304_spill] sm:$0xff] %v26091_v11 }
 0x67a   :  { %28137 = vst [vmem:[#allocation294_spill] sm:$0xff] %v26065_v10  ;;  %v26067_v33 = vpop.f32.mrf.mxu0 }
 0x67b   :  { %28138 = vst [vmem:[#allocation295_spill] sm:$0xff] %v26067_v33  ;;  %v26077_v60 = vpop.f32.mrf.mxu1  ;;  %v26085_v33 = vpop.permute.xlu0 %10565 }
 0x67c   :  { %28140 = vst [vmem:[#allocation297_spill] sm:$0xff] %v26077_v60  ;;  %v26079_v34 = vpop.f32.mrf.mxu0  ;;  %28144 = vst [vmem:[#allocation301_spill] sm:$0xff] %v26085_v33 }
 0x67d   :  { %28141 = vst [vmem:[#allocation298_spill] sm:$0xff] %v26079_v34  ;;  %v26081_v61 = vpop.f32.mrf.mxu1  ;;  %v20187_v34 = vld [vmem:[%s27632_s3 + $0x348] sm:$0xff]  }
 0x67e   :  { %28142 = vst [vmem:[#allocation299_spill] sm:$0xff] %v26081_v61  ;;  %v26083_v6 = vpop.f32.mrf.mxu0  ;;  %18313 = vmatmul.mubr.bf16.gmra.mxu0 %v20183_v53  ;;  %v20190_v53 = vld [vmem:[%s27632_s3 + $0x350] sm:$0xff]  }
 0x67f   :  { %28143 = vst [vmem:[#allocation300_spill] sm:$0xff] %v26083_v6  ;;  %18316 = vmatprep.mubr.bf16.mxu0 %v20186_v26  ;;  %v26087_v10 = vpop.f32.mrf.mxu1  ;;  %v26107_v6 = vpop.permute.xlu0 %10485 }
 0x680   :  { %28145 = vst [vmem:[#allocation302_spill] sm:$0xff] %v26087_v10  ;;  %v26089_v9 = vpop.f32.mrf.mxu0  ;;  %28152 = vst [vmem:[#allocation309_spill] sm:$0xff] %v26107_v6 }
 0x681   :  { %28146 = vst [vmem:[#allocation303_spill] sm:$0xff] %v26089_v9  ;;  %v26093_v19 = vpop.f32.mrf.mxu1 }
 0x682   :  { %28148 = vst [vmem:[#allocation305_spill] sm:$0xff] %v26093_v19  ;;  %v26095_v20 = vpop.f32.mrf.mxu0 }
 0x683   :  { %28149 = vst [vmem:[#allocation306_spill] sm:$0xff] %v26095_v20  ;;  %v26103_v33 = vpop.f32.mrf.mxu1  ;;  %v26113_v20 = vpop.permute.xlu1 %10490 }
 0x684   :  { %28150 = vst [vmem:[#allocation307_spill] sm:$0xff] %v26103_v33  ;;  %v26105_v26 = vpop.f32.mrf.mxu0  ;;  %28155 = vst [vmem:[#allocation312_spill] sm:$0xff] %v26113_v20  ;;  %v26126_v6 = vpop.permute.xlu0 %10395 }
 0x685   :  { %28151 = vst [vmem:[#allocation308_spill] sm:$0xff] %v26105_v26  ;;  %v26109_v9 = vpop.f32.mrf.mxu1  ;;  %v20191_v26 = vld [vmem:[%s27632_s3 + $0x358] sm:$0xff]   ;;  %28160 = vst [vmem:[#allocation317_spill] sm:$0xff] %v26126_v6 }
 0x686   :  { %28153 = vst [vmem:[#allocation310_spill] sm:$0xff] %v26109_v9  ;;  %v26111_v11 = vpop.f32.mrf.mxu0  ;;  %18317 = vmatmul.mubr.bf16.gmra.mxu0 %v20187_v34  ;;  %v20194_v34 = vld [vmem:[%s27632_s3 + $0x360] sm:$0xff]  }
 0x687   :  { %28154 = vst [vmem:[#allocation311_spill] sm:$0xff] %v26111_v11  ;;  %18320 = vmatprep.mubr.bf16.mxu0 %v20190_v53  ;;  %v26115_v19 = vpop.f32.mrf.mxu1  ;;  %v26135_v20 = vpop.permute.xlu1 %10400 }
 0x688   :  { %28156 = vst [vmem:[#allocation313_spill] sm:$0xff] %v26115_v19  ;;  %v26117_v10 = vpop.f32.mrf.mxu0  ;;  %28163 = vst [vmem:[#allocation320_spill] sm:$0xff] %v26135_v20  ;;  %v26145_v6 = vpop.permute.xlu0 %10315 }
 0x689   :  { %28157 = vst [vmem:[#allocation314_spill] sm:$0xff] %v26117_v10  ;;  %v26119_v61 = vpop.f32.mrf.mxu1  ;;  %28168 = vst [vmem:[#allocation325_spill] sm:$0xff] %v26145_v6 }
 0x68a   :  { %28158 = vst [vmem:[#allocation315_spill] sm:$0xff] %v26119_v61  ;;  %v26121_v60 = vpop.f32.mrf.mxu0 }
 0x68b   :  { %28159 = vst [vmem:[#allocation316_spill] sm:$0xff] %v26121_v60  ;;  %v26131_v11 = vpop.f32.mrf.mxu1  ;;  %v26154_v20 = vpop.permute.xlu1 %10320 }
 0x68c   :  { %28161 = vst [vmem:[#allocation318_spill] sm:$0xff] %v26131_v11  ;;  %v26133_v53 = vpop.f32.mrf.mxu0  ;;  %28171 = vst [vmem:[#allocation328_spill] sm:$0xff] %v26154_v20 }
 0x68d   :  { %28162 = vst [vmem:[#allocation319_spill] sm:$0xff] %v26133_v53  ;;  %v26137_v10 = vpop.f32.mrf.mxu1  ;;  %v20195_v53 = vld [vmem:[%s27632_s3 + $0x368] sm:$0xff]  }
 0x68e   :  { %28164 = vst [vmem:[#allocation321_spill] sm:$0xff] %v26137_v10  ;;  %v26139_v61 = vpop.f32.mrf.mxu0  ;;  %18321 = vmatmul.mubr.bf16.gmra.mxu0 %v20191_v26  ;;  %v20198_v26 = vld [vmem:[%s27632_s3 + $0x370] sm:$0xff]  }
 0x68f   :  { %28165 = vst [vmem:[#allocation322_spill] sm:$0xff] %v26139_v61  ;;  %18324 = vmatprep.mubr.bf16.mxu0 %v20194_v34  ;;  %v26141_v60 = vpop.f32.mrf.mxu1  ;;  %v26173_v20 = vpop.permute.xlu1 %10560 }
 0x690   :  { %28166 = vst [vmem:[#allocation323_spill] sm:$0xff] %v26141_v60  ;;  %v26143_v19 = vpop.f32.mrf.mxu0  ;;  %28179 = vst [vmem:[#allocation336_spill] sm:$0xff] %v26173_v20 }
 0x691   :  { %28167 = vst [vmem:[#allocation324_spill] sm:$0xff] %v26143_v19  ;;  %v26147_v9 = vpop.f32.mrf.mxu1 }
 0x692   :  { %28169 = vst [vmem:[#allocation326_spill] sm:$0xff] %v26147_v9  ;;  %v26149_v33 = vpop.f32.mrf.mxu0 }
 0x693   :  { %28170 = vst [vmem:[#allocation327_spill] sm:$0xff] %v26149_v33  ;;  %v26159_v34 = vpop.f32.mrf.mxu1  ;;  %v26167_v33 = vpop.permute.xlu0 %10555 }
 0x694   :  { %28172 = vst [vmem:[#allocation329_spill] sm:$0xff] %v26159_v34  ;;  %v26161_v61 = vpop.f32.mrf.mxu0  ;;  %28176 = vst [vmem:[#allocation333_spill] sm:$0xff] %v26167_v33 }
 0x695   :  { %28173 = vst [vmem:[#allocation330_spill] sm:$0xff] %v26161_v61  ;;  %v26163_v19 = vpop.f32.mrf.mxu1  ;;  %v20199_v61 = vld [vmem:[%s27632_s3 + $0x378] sm:$0xff]  }
 0x696   :  { %28174 = vst [vmem:[#allocation331_spill] sm:$0xff] %v26163_v19  ;;  %v26165_v6 = vpop.f32.mrf.mxu0  ;;  %18325 = vmatmul.mubr.bf16.gmra.mxu0 %v20195_v53  ;;  %v20202_v53 = vld [vmem:[%s27632_s3 + $0x380] sm:$0xff]   ;;  %v28190_v19 = vld [vmem:[#allocation113_spill] sm:$0xff] }
 0x697   :  { %28175 = vst [vmem:[#allocation332_spill] sm:$0xff] %v26165_v6  ;;  %18328 = vmatprep.mubr.bf16.mxu0 %v20198_v26  ;;  %v26169_v9 = vpop.f32.mrf.mxu1  ;;  %v26189_v6 = vpop.permute.xlu0 %10475  ;;  %v10575_v34 = vadd.f32 %v25293_v51, %v28190_v19  ;;  %v10576_v51 = vadd.f32 %v25314_v62, %v25278_v46  ;;  %v10579_v46 = vadd.f32 %v25333_v50, %v28197_v57 }
 0x698   :  { %28177 = vst [vmem:[#allocation334_spill] sm:$0xff] %v26169_v9  ;;  %v26171_v60 = vpop.f32.mrf.mxu0  ;;  %28184 = vst [vmem:[#allocation341_spill] sm:$0xff] %v26189_v6  ;;  %v10580_v50 = vadd.f32 %v25352_v13, %v25109_v31 }
 0x699   :  { %28178 = vst [vmem:[#allocation335_spill] sm:$0xff] %v26171_v60  ;;  %v26175_v10 = vpop.f32.mrf.mxu1 }
 0x69a   :  { %28180 = vst [vmem:[#allocation337_spill] sm:$0xff] %v26175_v10  ;;  %v26177_v11 = vpop.f32.mrf.mxu0 }
 0x69b   :  { %28181 = vst [vmem:[#allocation338_spill] sm:$0xff] %v26177_v11  ;;  %v26185_v33 = vpop.f32.mrf.mxu1  ;;  %v26195_v11 = vpop.permute.xlu1 %10480 }
 0x69c   :  { %28182 = vst [vmem:[#allocation339_spill] sm:$0xff] %v26185_v33  ;;  %v26187_v26 = vpop.f32.mrf.mxu0  ;;  %28187 = vst [vmem:[#allocation344_spill] sm:$0xff] %v26195_v11 }
 0x69d   :  { %28183 = vst [vmem:[#allocation340_spill] sm:$0xff] %v26187_v26  ;;  %v26191_v60 = vpop.f32.mrf.mxu1  ;;  %v20203_v26 = vld [vmem:[%s27632_s3 + $0x388] sm:$0xff]  }
 0x69e   :  { %28185 = vst [vmem:[#allocation342_spill] sm:$0xff] %v26191_v60  ;;  %v26193_v20 = vpop.f32.mrf.mxu0  ;;  %18329 = vmatmul.mubr.bf16.gmra.mxu0 %v20199_v61  ;;  %v28194_v61 = vld [vmem:[#allocation130_spill] sm:$0xff] }
 0x69f   :  { %28186 = vst [vmem:[#allocation343_spill] sm:$0xff] %v26193_v20  ;;  %18332 = vmatprep.mubr.bf16.mxu0 %v20202_v53  ;;  %v26197_v10 = vpop.f32.mrf.mxu1  ;;  %v26210_v20 = vpop.permute.xlu0 %10385  ;;  %v10573_v53 = vadd.f32 %v28194_v61, %v25307_v3  ;;  %v10574_v3 = vadd.f32 %v25390_v40, %v25327_v4  ;;  %v20207_v4 = vld [vmem:[%s27632_s3 + $0x398] sm:$0xff]  }
 0x6a0   :  { %28188 = vst [vmem:[#allocation345_spill] sm:$0xff] %v26197_v10  ;;  %v26199_v9 = vpop.f32.mrf.mxu0  ;;  %28193 = vst [vmem:[#allocation348_spill] sm:$0xff] %v26210_v20  ;;  %v26221_v19 = vpop.permute.xlu1 %10390 }
 0x6a1   :  { %28189 = vst [vmem:[#allocation346_spill] sm:$0xff] %v26199_v9  ;;  %v26208_v6 = vpop.f32.mrf.mxu1  ;;  %v20206_v9 = vld [vmem:[%s27632_s3 + $0x390] sm:$0xff]   ;;  %28196 = vst [vmem:[#allocation349_spill] sm:$0xff] %v26221_v19  ;;  %v11766_v20 = vadd.f32 %v24870_v14, %v10573_v53  ;;  %v11767_v57 = vadd.f32 %v24887_v27, %v10574_v3  ;;  %v11772_v53 = vadd.f32 %v24894_v35, %v10579_v46 }
 0x6a2   :  { %v26203_v33 = vpop.f32.mrf.mxu0  ;;  %28192 = vst [vmem:[#allocation347_spill] sm:$0xff] %v26208_v6 }
 0x6a3   :  { %28191 = vst [vmem:[#allocation113_spill] sm:$0xff] %v26203_v33  ;;  %v11768_v33 = vadd.f32 %v24865_v36, %v10575_v34  ;;  %v26224_v6 = vpop.f32.mrf.mxu1  ;;  %v11769_v36 = vadd.f32 %v24879_v41, %v10576_v51  ;;  %v28198_v34 = vld [vmem:[#allocation99_spill] sm:$0xff]  ;;  %v20210_v41 = vld [vmem:[%s27632_s3 + $0x3a0] sm:$0xff]  }
 0x6a4   :  { %v26217_v11 = vpop.f32.mrf.mxu0  ;;  %v26241_v14 = vpop.permute.xlu1 %10310 }
 0x6a5   :  { %28195 = vst [vmem:[#allocation130_spill] sm:$0xff] %v26217_v11  ;;  %v26229_v11 = vpop.permute.xlu0 %10305  ;;  %v26239_v40 = vpop.f32.mrf.mxu1 }
 0x6a6   :  { %v18238_v10 = vpop.f32.mrf.mxu0  ;;  %18333 = vmatmul.mubr.bf16.gmra.mxu0 %v20203_v26  ;;  %v10577_v26 = vadd.f32 %v28198_v34, %v25345_v18 }
 0x6a7   :  { %v12962_v61 = vadd.f32 %v18238_v10, %v11768_v33  ;;  %18336 = vmatprep.mubr.bf16.mxu0 %v20206_v9 }
 0x6a8   :  { %v12449_v60 = vpop.f32.mrf.mxu0  ;;  %v11770_v27 = vadd.f32 %v24900_v17, %v10577_v26  ;;  %v28202_v26 = vld [vmem:[#allocation83_spill] sm:$0xff] }
 0x6a9   :  { %v12960_v62 = vadd.f32 %v12449_v60, %v11766_v20  ;;  %v14156_v9 = vadd.f32 %v25785_v2, %v12962_v61  ;;  %v10578_v2 = vadd.f32 %v25186_v54, %v25367_v38  ;;  %v26258_v3 = vpop.permute.xlu0 %10545  ;;  %v11773_v54 = vadd.f32 %v24909_v42, %v10580_v50  ;;  %v26264_v38 = vpop.permute.xlu1 %10550  ;;  %v20214_v50 = vld [vmem:[%s27632_s3 + $0x3b0] sm:$0xff]  }
 0x6aa   :  { %v18239_v19 = vpop.f32.mrf.mxu0  ;;  %28199 = vst [vmem:[#allocation92_spill] sm:$0xff] %v26258_v3  ;;  %28201 = vst [vmem:[#allocation99_spill] sm:$0xff] %v26264_v38 }
 0x6ab   :  { %v12963_v10 = vadd.f32 %v18239_v19, %v11769_v36  ;;  %v14154_v20 = vadd.f32 %v25789_v5, %v12960_v62  ;;  %v26256_v19 = vpop.f32.mrf.mxu1  ;;  %v14284_v31 = vmax.f32 %v14156_v9, 0.0 }
 0x6ac   :  { %v12452_v18 = vpop.f32.mrf.mxu0 }
 0x6ad   :  { %v14157_v33 = vadd.f32 %v25796_v21, %v12963_v10  ;;  %v12961_v60 = vadd.f32 %v12452_v18, %v11767_v57  ;;  %v28200_v21 = vld [vmem:[#allocation72_spill] sm:$0xff]  ;;  %v14282_v62 = vmax.f32 %v14154_v20, 0.0  ;;  %v26273_v10 = vpop.f32.mrf.mxu1  ;;  %v26284_v20 = vpop.permute.xlu0 %10465 }
 0x6ae   :  { %v18242_v51 = vpop.f32.mrf.mxu0  ;;  %18337 = vmatmul.mubr.bf16.gmra.mxu0 %v20207_v4  ;;  %v10583_v35 = vadd.f32 %v25371_v7, %v28200_v21  ;;  %v10581_v4 = vadd.f32 %v28202_v26, %v25383_v45  ;;  %v10584_v45 = vadd.f32 %v25392_v47, %v24857_v30  ;;  %28203 = vst [vmem:[#allocation72_spill] sm:$0xff] %v26284_v20  ;;  %v26294_v30 = vpop.permute.xlu1 %10470  ;;  %v28276_v20 = vld [vmem:[#allocation46_spill] sm:$0xff] }
 0x6af   :  { %v14285_v13 = vmax.f32 %v14157_v33, 0.0  ;;  %v14155_v5 = vadd.f32 %v25809_v28, %v12961_v60  ;;  %v12966_v61 = vadd.f32 %v18242_v51, %v11772_v53  ;;  %18340 = vmatprep.mubr.bf16.mxu0 %v20210_v41  ;;  %v20211_v28 = vld [vmem:[%s27632_s3 + $0x3a8] sm:$0xff]   ;;  %v11771_v41 = vadd.f32 %v24919_v16, %v10578_v2  ;;  %28204 = vst [vmem:[#allocation83_spill] sm:$0xff] %v26294_v30 }
 0x6b0   :  { %v12465_v46 = vpop.f32.mrf.mxu0  ;;  %v10582_v16 = vadd.f32 %v25029_v52, %v25405_v56  ;;  %v11774_v51 = vadd.f32 %v24927_v15, %v10581_v4  ;;  %v11777_v52 = vadd.f32 %v24936_v24, %v10584_v45  ;;  %v10588_v4 = vadd.f32 %v25430_v29, %v24710_v59 }
 0x6b1   :  { %v26266_v17 = vpack.c.bf16 %v14285_v13, %v14284_v31  ;;  %v14283_v36 = vmax.f32 %v14155_v5, 0.0  ;;  %v12964_v34 = vadd.f32 %v12465_v46, %v11770_v27  ;;  %v14160_v42 = vadd.f32 %v25813_v44, %v12966_v61  ;;  %v26292_v27 = vpop.f32.mrf.mxu1 }
 0x6b2   :  { %v18243_v9 = vpop.f32.mrf.mxu0  ;;  %v11776_v44 = vadd.f32 %v24924_v32, %v10583_v35  ;;  %v28206_v35 = vld [vmem:[#allocation62_spill] sm:$0xff]  ;;  %v11775_v26 = vadd.f32 %v24941_v12, %v10582_v16  ;;  %v10586_v12 = vadd.f32 %v24789_v23, %v25440_v48 }
 0x6b3   :  { %v26275_v7 = vpack.c.bf16 %v14283_v36, %v14282_v62  ;;  %v12967_v57 = vadd.f32 %v18243_v9, %v11773_v54  ;;  %v14158_v33 = vadd.f32 %v25817_v25, %v12964_v34  ;;  %v14288_v47 = vmax.f32 %v14160_v42, 0.0  ;;  %v26307_v62 = vpop.f32.mrf.mxu1  ;;  %v26309_v36 = vpop.permute.xlu0 %10375 }
 0x6b4   :  { %v12468_v18 = vpop.f32.mrf.mxu0  ;;  %v10585_v46 = vadd.f32 %v28206_v35, %v25423_v8  ;;  %v20218_v8 = vld [vmem:[%s27632_s3 + $0x3c0] sm:$0xff]  }
 0x6b5   :  { %v14161_v60 = vadd.f32 %v25824_v58, %v12967_v57  ;;  %v12965_v53 = vadd.f32 %v12468_v18, %v11771_v41  ;;  %v28205_v58 = vld [vmem:[#allocation56_spill] sm:$0xff]  ;;  %v14286_v56 = vmax.f32 %v14158_v33, 0.0  ;;  %v26328_v18 = vpop.f32.mrf.mxu1  ;;  %v28215_v35 = vld [vmem:[#allocation54_spill] sm:$0xff] }
 0x6b6   :  { %v18246_v2 = vpop.f32.mrf.mxu0  ;;  %18341 = vmatmul.mubr.bf16.gmra.mxu0 %v20211_v28  ;;  %v10587_v32 = vadd.f32 %v25409_v22, %v28205_v58  ;;  %28207 = vst [vmem:[#allocation56_spill] sm:$0xff] %v26309_v36  ;;  %v26320_v28 = vpop.permute.xlu1 %10380  ;;  %v11778_v45 = vadd.f32 %v24949_v49, %v10585_v46  ;;  %v28216_v46 = vld [vmem:[#allocation97_spill] sm:$0xff]  ;;  %v28277_v36 = vld [vmem:[#allocation152_spill] sm:$0xff] }
 0x6b7   :  { %v14289_v31 = vmax.f32 %v14161_v60, 0.0  ;;  %v14159_v25 = vadd.f32 %v25837_v0, %v12965_v53  ;;  %v12970_v13 = vadd.f32 %v18246_v2, %v11776_v44  ;;  %18344 = vmatprep.mubr.bf16.mxu0 %v20214_v50  ;;  %v20215_v0 = vld [vmem:[%s27632_s3 + $0x3b8] sm:$0xff]   ;;  %28208 = vst [vmem:[#allocation62_spill] sm:$0xff] %v26320_v28  ;;  %v26334_v16 = vpop.permute.xlu0 %10295 }
 0x6b8   :  { %v12481_v5 = vpop.f32.mrf.mxu0 }
 0x6b9   :  { %v26300_v61 = vpack.c.bf16 %v14289_v31, %v14288_v47  ;;  %v14287_v15 = vmax.f32 %v14159_v25, 0.0  ;;  %v12968_v21 = vadd.f32 %v12481_v5, %v11774_v51  ;;  %v14164_v24 = vadd.f32 %v25841_v55, %v12970_v13  ;;  %v28211_v51 = vld [vmem:[#allocation49_spill] sm:$0xff]  ;;  %v28212_v47 = vld [vmem:[#allocation126_spill] sm:$0xff]  ;;  %v26343_v13 = vpop.f32.mrf.mxu1 }
 0x6ba   :  { %v18247_v54 = vpop.f32.mrf.mxu0  ;;  %v11780_v55 = vadd.f32 %v24946_v37, %v10587_v32  ;;  %v28210_v37 = vld [vmem:[#allocation63_spill] sm:$0xff]  ;;  %v10589_v31 = vadd.f32 %v28212_v47, %v28211_v51  ;;  %v28213_v32 = vld [vmem:[#allocation229_spill] sm:$0xff]  ;;  %v28229_v47 = vld [vmem:[#allocation98_spill] sm:$0xff] }
 0x6bb   :  { %v26311_v22 = vpack.c.bf16 %v14287_v15, %v14286_v56  ;;  %v12971_v34 = vadd.f32 %v18247_v54, %v11777_v52  ;;  %v14162_v42 = vadd.f32 %v25845_v1, %v12968_v21  ;;  %v14292_v59 = vmax.f32 %v14164_v24, 0.0  ;;  %v28209_v1 = vld [vmem:[#allocation109_spill] sm:$0xff]  ;;  %v28214_v56 = vld [vmem:[#allocation22_spill] sm:$0xff]  ;;  %v20222_v21 = vld [vmem:[%s27632_s3 + $0x3d0] sm:$0xff]  }
 0x6bc   :  { %v12484_v9 = vpop.f32.mrf.mxu0  ;;  %v11781_v44 = vadd.f32 %v28210_v37, %v10588_v4  ;;  %v11779_v15 = vadd.f32 %v28214_v56, %v10586_v12  ;;  %v10592_v54 = vadd.f32 %v28216_v46, %v28215_v35  ;;  %v28217_v24 = vld [vmem:[#allocation231_spill] sm:$0xff]  ;;  %v28222_v12 = vld [vmem:[#allocation6_spill] sm:$0xff] }
 0x6bd   :  { %v14165_v57 = vadd.f32 %v25852_v43, %v12971_v34  ;;  %v12969_v41 = vadd.f32 %v12484_v9, %v11775_v26  ;;  %v10591_v43 = vadd.f32 %v25444_v39, %v28209_v1  ;;  %v14290_v23 = vmax.f32 %v14162_v42, 0.0  ;;  %v26345_v39 = vpop.permute.xlu1 %10300  ;;  %v28218_v26 = vld [vmem:[#allocation233_spill] sm:$0xff]  ;;  %v28219_v9 = vld [vmem:[#allocation42_spill] sm:$0xff]  ;;  %v28224_v1 = vld [vmem:[#allocation235_spill] sm:$0xff] }
 0x6be   :  { %v18250_v50 = vpop.f32.mrf.mxu0  ;;  %18345 = vmatmul.mubr.bf16.gmra.mxu0 %v20215_v0 }
 0x6bf   :  { %v14293_v29 = vmax.f32 %v14165_v57, 0.0  ;;  %v14163_v33 = vadd.f32 %v25865_v63, %v12969_v41  ;;  %v12974_v60 = vadd.f32 %v18250_v50, %v11780_v55  ;;  %18348 = vmatprep.mubr.bf16.mxu0 %v20218_v8  ;;  %v20219_v63 = vld [vmem:[%s27632_s3 + $0x3c8] sm:$0xff]   ;;  %v11784_v42 = vadd.f32 %v28219_v9, %v10591_v43  ;;  %v28220_v57 = vld [vmem:[#allocation40_spill] sm:$0xff]  ;;  %v28221_v41 = vld [vmem:[#allocation81_spill] sm:$0xff] }
 0x6c0   :  { %v12497_v53 = vpop.f32.mrf.mxu0  ;;  %v10590_v55 = vadd.f32 %v28221_v41, %v28220_v57  ;;  %v26370_v43 = vld [vmem:[%s27634_s6 + $0x8] sm:$0xff]  ;;  %v28234_v9 = vld [vmem:[#allocation104_spill] sm:$0xff]  ;;  %v20226_v57 = vld [vmem:[%s27632_s3 + $0x3e0] sm:$0xff]  }
 0x6c1   :  { %v26336_v48 = vpack.c.bf16 %v14293_v29, %v14292_v59  ;;  %v14291_v49 = vmax.f32 %v14163_v33, 0.0  ;;  %v12972_v2 = vadd.f32 %v12497_v53, %v11778_v45  ;;  %v14168_v5 = vadd.f32 %v28213_v32, %v12974_v60  ;;  %v26362_v59 = vpop.f32.mrf.mxu1  ;;  %v26364_v29 = vpop.permute.xlu0 %10535  ;;  %28225 = vst [vmem:[#allocation63_spill] sm:$0xff] %v26370_v43  ;;  %v28235_v41 = vld [vmem:[#allocation76_spill] sm:$0xff] }
 0x6c2   :  { %v18251_v25 = vpop.f32.mrf.mxu0  ;;  %v11782_v45 = vadd.f32 %v28222_v12, %v10589_v31  ;;  %28223 = vst [vmem:[#allocation109_spill] sm:$0xff] %v26364_v29  ;;  %v11785_v31 = vadd.f32 %v28229_v47, %v10592_v54  ;;  %v28241_v47 = vld [vmem:[#allocation136_spill] sm:$0xff]  ;;  %v28263_v29 = vld [vmem:[#allocation251_spill] sm:$0xff] }
 0x6c3   :  { %v26347_v58 = vpack.c.bf16 %v14291_v49, %v14290_v23  ;;  %v12975_v52 = vadd.f32 %v18251_v25, %v11781_v44  ;;  %v14166_v34 = vadd.f32 %v28217_v24, %v12972_v2  ;;  %v14296_v33 = vmax.f32 %v14168_v5, 0.0  ;;  %v26375_v44 = vld [vmem:[%s27634_s6 + $0x28] sm:$0xff]  ;;  %v28227_v23 = vld [vmem:[#allocation90_spill] sm:$0xff]  ;;  %v28228_v49 = vld [vmem:[#allocation41_spill] sm:$0xff]  ;;  %v26391_v24 = vpop.f32.mrf.mxu1 }
 0x6c4   :  { %v12500_v0 = vpop.f32.mrf.mxu0  ;;  %28226 = vst [vmem:[#allocation49_spill] sm:$0xff] %v26375_v44  ;;  %v10595_v2 = vadd.f32 %v28228_v49, %v28227_v23  ;;  %v17324_v25 = vcombine.high %v26370_v43, %v26375_v44  ;;  %v28282_v44 = vld [vmem:[#allocation259_spill] sm:$0xff] }
 0x6c5   :  { %v14169_v8 = vadd.f32 %v28218_v26, %v12975_v52  ;;  %v12973_v4 = vadd.f32 %v12500_v0, %v11779_v15  ;;  %v14294_v32 = vmax.f32 %v14166_v34, 0.0  ;;  %v28231_v15 = vld [vmem:[#allocation132_spill] sm:$0xff]  ;;  %v20223_v0 = vld [vmem:[%s27632_s3 + $0x3d8] sm:$0xff]  }
 0x6c6   :  { %v18254_v50 = vpop.f32.mrf.mxu0  ;;  %18349 = vmatmul.mubr.bf16.gmra.mxu0 %v20219_v63  ;;  %v26382_v63 = vpop.permute.xlu1 %10540  ;;  %15083 = vmatprep.mubr.bf16.mxu1 %v17324_v25  ;;  %v28233_v34 = vld [vmem:[#allocation237_spill] sm:$0xff] }
 0x6c7   :  { %v14297_v60 = vmax.f32 %v14169_v8, 0.0  ;;  %v14167_v53 = vadd.f32 %v28224_v1, %v12973_v4  ;;  %v12978_v37 = vadd.f32 %v18254_v50, %v11784_v42  ;;  %18352 = vmatprep.mubr.bf16.mxu0 %v20222_v21  ;;  %28230 = vst [vmem:[#allocation126_spill] sm:$0xff] %v26382_v63  ;;  %v28232_v21 = vld [vmem:[#allocation96_spill] sm:$0xff]  ;;  %v11783_v42 = vadd.f32 %v28234_v9, %v10590_v55  ;;  %v28236_v50 = vld [vmem:[#allocation134_spill] sm:$0xff]  ;;  %v28245_v9 = vld [vmem:[#allocation243_spill] sm:$0xff] }
 0x6c8   :  { %v12513_v51 = vpop.f32.mrf.mxu0  ;;  %v10593_v35 = vadd.f32 %v28232_v21, %v28231_v15  ;;  %v10596_v12 = vadd.f32 %v28236_v50, %v28235_v41  ;;  %v26412_v15 = vpop.f32.mrf.mxu1 }
 0x6c9   :  { %v26384_v5 = vpack.c.bf16 %v14297_v60, %v14296_v33  ;;  %v14295_v52 = vmax.f32 %v14167_v53, 0.0  ;;  %v12976_v56 = vadd.f32 %v12513_v51, %v11782_v45  ;;  %v14172_v8 = vadd.f32 %v28233_v34, %v12978_v37  ;;  %v26404_v33 = vpop.permute.xlu0 %10455  ;;  %v28238_v60 = vld [vmem:[#allocation239_spill] sm:$0xff]  ;;  %v28239_v53 = vld [vmem:[#allocation241_spill] sm:$0xff] }
 0x6ca   :  { %v18255_v46 = vpop.f32.mrf.mxu0  ;;  %28237 = vst [vmem:[#allocation229_spill] sm:$0xff] %v26404_v33  ;;  %v28240_v51 = vld [vmem:[#allocation67_spill] sm:$0xff]  ;;  %v26414_v21 = vpop.permute.xlu1 %10460 }
 0x6cb   :  { %v26395_v26 = vpack.c.bf16 %v14295_v52, %v14294_v32  ;;  %v12979_v4 = vadd.f32 %v18255_v46, %v11785_v31  ;;  %v14170_v1 = vadd.f32 %v28238_v60, %v12976_v56  ;;  %v11788_v37 = vadd.f32 %v28240_v51, %v10595_v2  ;;  %v28242_v31 = vld [vmem:[#allocation29_spill] sm:$0xff]  ;;  %v28243_v32 = vld [vmem:[#allocation24_spill] sm:$0xff]  ;;  %28244 = vst [vmem:[#allocation22_spill] sm:$0xff] %v26414_v21 }
 0x6cc   :  { %v12516_v45 = vpop.f32.mrf.mxu0  ;;  %v10594_v55 = vadd.f32 %v28242_v31, %v28241_v47  ;;  %v11786_v52 = vadd.f32 %v28243_v32, %v10593_v35  ;;  %v14300_v46 = vmax.f32 %v14172_v8, 0.0  ;;  %v28249_v47 = vld [vmem:[#allocation140_spill] sm:$0xff] }
 0x6cd   :  { %v14173_v23 = vadd.f32 %v28239_v53, %v12979_v4  ;;  %v12977_v49 = vadd.f32 %v12516_v45, %v11783_v42  ;;  %v28246_v4 = vld [vmem:[#allocation69_spill] sm:$0xff]  ;;  %v28247_v42 = vld [vmem:[#allocation138_spill] sm:$0xff]  ;;  %v28248_v45 = vld [vmem:[#allocation44_spill] sm:$0xff]  ;;  %v14298_v53 = vmax.f32 %v14170_v1, 0.0 }
 0x6ce   :  { %v18258_v25 = vpop.f32.mrf.mxu0  ;;  %18353 = vmatmul.mubr.bf16.gmra.mxu0 %v20223_v0  ;;  %v10599_v2 = vadd.f32 %v28247_v42, %v28246_v4  ;;  %v11789_v60 = vadd.f32 %v28248_v45, %v10596_v12  ;;  %v28250_v31 = vld [vmem:[#allocation80_spill] sm:$0xff]  ;;  %v28257_v45 = vld [vmem:[#allocation247_spill] sm:$0xff] }
 0x6cf   :  { %v14301_v34 = vmax.f32 %v14173_v23, 0.0  ;;  %v14171_v56 = vadd.f32 %v28245_v9, %v12977_v49  ;;  %v12982_v41 = vadd.f32 %v18258_v25, %v11788_v37  ;;  %18356 = vmatprep.mubr.bf16.mxu0 %v20226_v57  ;;  %v10597_v32 = vadd.f32 %v28250_v31, %v28249_v47  ;;  %v20227_v23 = vld [vmem:[%s27632_s3 + $0x3e8] sm:$0xff]   ;;  %v26427_v57 = vpop.f32.mrf.mxu1  ;;  %v26429_v49 = vpop.permute.xlu0 %10365  ;;  %v28252_v37 = vld [vmem:[#allocation245_spill] sm:$0xff]  ;;  %v28253_v1 = vld [vmem:[#allocation8_spill] sm:$0xff] }
 0x6d0   :  { %v12529_v50 = vpop.f32.mrf.mxu0  ;;  %28251 = vst [vmem:[#allocation54_spill] sm:$0xff] %v26429_v49  ;;  %v11787_v9 = vadd.f32 %v28253_v1, %v10594_v55  ;;  %v28258_v31 = vld [vmem:[#allocation249_spill] sm:$0xff]  ;;  %v28260_v55 = vld [vmem:[#allocation144_spill] sm:$0xff] }
 0x6d1   :  { %v14299_v0 = vmax.f32 %v14171_v56, 0.0  ;;  %v12980_v51 = vadd.f32 %v12529_v50, %v11786_v52  ;;  %v26420_v35 = vpack.c.bf16 %v14301_v34, %v14300_v46  ;;  %v14176_v25 = vadd.f32 %v28252_v37, %v12982_v41  ;;  %v20230_v52 = vld [vmem:[%s27632_s3 + $0x3f0] sm:$0xff]   ;;  %v28254_v34 = vld [vmem:[#allocation3_spill] sm:$0xff]  ;;  %v28255_v56 = vld [vmem:[#allocation142_spill] sm:$0xff]  ;;  %v26440_v50 = vpop.permute.xlu1 %10370  ;;  %v26448_v38 = vpop.f32.mrf.mxu1 }
 0x6d2   :  { %v18259_v8 = vpop.f32.mrf.mxu0  ;;  %v10600_v4 = vadd.f32 %v28255_v56, %v28254_v34  ;;  %28256 = vst [vmem:[#allocation97_spill] sm:$0xff] %v26440_v50  ;;  %v28261_v37 = vld [vmem:[#allocation2_spill] sm:$0xff]  ;;  %v28278_v50 = vld [vmem:[#allocation20_spill] sm:$0xff] }
 0x6d3   :  { %v12983_v12 = vadd.f32 %v18259_v8, %v11789_v60  ;;  %v26436_v46 = vpack.c.bf16 %v14299_v0, %v14298_v53  ;;  %v14174_v47 = vadd.f32 %v28257_v45, %v12980_v51  ;;  %v28259_v60 = vld [vmem:[#allocation103_spill] sm:$0xff]  ;;  %v10598_v1 = vadd.f32 %v28261_v37, %v28260_v55  ;;  %v28262_v53 = vld [vmem:[#allocation112_spill] sm:$0xff]  ;;  %v20231_v37 = vld [vmem:[%s27632_s3 + $0x3f8] sm:$0xff]  }
 0x6d4   :  { %v12532_v42 = vpop.f32.mrf.mxu0  ;;  %v11792_v8 = vadd.f32 %v28259_v60, %v10599_v2  ;;  %v11790_v0 = vadd.f32 %v28262_v53, %v10597_v32  ;;  %v14304_v34 = vmax.f32 %v14176_v25, 0.0  ;;  %v28264_v51 = vld [vmem:[#allocation60_spill] sm:$0xff]  ;;  %v28266_v2 = vld [vmem:[#allocation70_spill] sm:$0xff]  ;;  %v26474_v53 = vpop.f32.mrf.mxu1 }
 0x6d5   :  { %v14177_v54 = vadd.f32 %v28258_v31, %v12983_v12  ;;  %v12981_v41 = vadd.f32 %v12532_v42, %v11787_v9  ;;  %v28265_v12 = vld [vmem:[#allocation146_spill] sm:$0xff]  ;;  %v11793_v45 = vadd.f32 %v28266_v2, %v10600_v4  ;;  %v28267_v31 = vld [vmem:[#allocation148_spill] sm:$0xff]  ;;  %28270 = vst [vmem:[#allocation231_spill] sm:$0xff] %v26474_v53 }
 0x6d6   :  { %v18262_v63 = vpop.f32.mrf.mxu0  ;;  %18357 = vmatmul.mubr.bf16.gmra.mxu0 %v20227_v23  ;;  %v10603_v9 = vadd.f32 %v28265_v12, %v28264_v51  ;;  %v26457_v23 = vld [vmem:[%s27634_s6] sm:$0xff]  ;;  %v26476_v51 = vpop.permute.xlu1 %10290  ;;  %v28271_v12 = vld [vmem:[#allocation253_spill] sm:$0xff] }
 0x6d7   :  { %v14305_v56 = vmax.f32 %v14177_v54, 0.0  ;;  %v14175_v3 = vadd.f32 %v28263_v29, %v12981_v41  ;;  %v12986_v21 = vadd.f32 %v18262_v63, %v11792_v8  ;;  %18360 = vmatprep.mubr.bf16.mxu0 %v20230_v52  ;;  %v26462_v32 = vld [vmem:[%s27634_s6 + $0x20] sm:$0xff]  ;;  %v26464_v54 = vpop.permute.xlu0 %10285  ;;  %v14302_v29 = vmax.f32 %v14174_v47, 0.0  ;;  %v28268_v41 = vld [vmem:[#allocation61_spill] sm:$0xff] }
 0x6d8   :  { %v12545_v42 = vpop.f32.mrf.mxu0  ;;  %v10601_v4 = vadd.f32 %v28268_v41, %v28267_v31  ;;  %v28269_v8 = vld [vmem:[#allocation26_spill] sm:$0xff]  ;;  %v28274_v31 = vld [vmem:[#allocation255_spill] sm:$0xff]  ;;  %v11796_v28 = vadd.f32 %v28276_v20, %v10603_v9 }
 0x6d9   :  { %v14303_v63 = vmax.f32 %v14175_v3, 0.0  ;;  %v12984_v25 = vadd.f32 %v12545_v42, %v11790_v0  ;;  %v26466_v52 = vpack.c.bf16 %v14305_v56, %v14304_v34  ;;  %v11791_v55 = vadd.f32 %v28269_v8, %v10598_v1  ;;  %v28272_v56 = vld [vmem:[#allocation21_spill] sm:$0xff]  ;;  %v28273_v42 = vld [vmem:[#allocation150_spill] sm:$0xff] }
 0x6da   :  { %v18263_v60 = vpop.f32.mrf.mxu0  ;;  %v14180_v47 = vadd.f32 %v28271_v12, %v12986_v21  ;;  %v17322_v34 = vcombine.high %v26457_v23, %v26462_v32  ;;  %v10604_v2 = vadd.f32 %v28273_v42, %v28272_v56  ;;  %v28275_v8 = vld [vmem:[#allocation257_spill] sm:$0xff]  ;;  %v10602_v21 = vadd.f32 %v28278_v50, %v28277_v36  ;;  %v26499_v50 = vpop.permute.xlu1 %10530 }
 0x6db   :  { %v12987_v3 = vadd.f32 %v18263_v60, %v11793_v45  ;;  %v26479_v0 = vpack.c.bf16 %v14303_v63, %v14302_v29  ;;  %v14178_v41 = vadd.f32 %v28274_v31, %v12984_v25  ;;  %v28279_v29 = vld [vmem:[#allocation10_spill] sm:$0xff]  ;;  %v26491_v60 = vpop.f32.mrf.mxu1  ;;  %v26493_v12 = vpop.permute.xlu0 %10525  ;;  %28286 = vst [vmem:[#allocation40_spill] sm:$0xff] %v26499_v50  ;;  %v28297_v50 = vld [vmem:[#allocation12_spill] sm:$0xff] }
 0x6dc   :  { %v12548_v1 = vpop.f32.mrf.mxu0  ;;  %v11794_v63 = vadd.f32 %v28279_v29, %v10601_v4  ;;  %28280 = vst [vmem:[#allocation233_spill] sm:$0xff] %v26491_v60  ;;  %28281 = vst [vmem:[#allocation42_spill] sm:$0xff] %v26493_v12  ;;  %v14308_v56 = vmax.f32 %v14180_v47, 0.0  ;;  %v28287_v12 = vld [vmem:[#allocation156_spill] sm:$0xff]  ;;  %v28288_v47 = vld [vmem:[#allocation277_spill] sm:$0xff] }
 0x6dd   :  { %v14181_v30 = vadd.f32 %v28275_v8, %v12987_v3  ;;  %v12985_v33 = vadd.f32 %v12548_v1, %v11791_v55  ;;  %v28283_v55 = vld [vmem:[#allocation122_spill] sm:$0xff]  ;;  %v28285_v1 = vld [vmem:[#allocation28_spill] sm:$0xff] }
 0x6de   :  { %v18266_v45 = vpop.f32.mrf.mxu0  ;;  %18361 = vmatmul.mubr.bf16.gmra.mxu0 %v20231_v37  ;;  %v28284_v3 = vld [vmem:[#allocation154_spill] sm:$0xff]  ;;  %v11797_v36 = vadd.f32 %v28285_v1, %v10604_v2  ;;  %v14306_v37 = vmax.f32 %v14178_v41, 0.0 }
 0x6df   :  { %v14309_v42 = vmax.f32 %v14181_v30, 0.0  ;;  %v14179_v25 = vadd.f32 %v28282_v44, %v12985_v33  ;;  %v12990_v31 = vadd.f32 %v18266_v45, %v11796_v28  ;;  %14986 = vmatprep.mubr.bf16.mxu0 %v17322_v34  ;;  %v10607_v20 = vadd.f32 %v28284_v3, %v28283_v55  ;;  %v26505_v44 = vpop.f32.mrf.mxu1  ;;  %v28290_v28 = vld [vmem:[#allocation261_spill] sm:$0xff]  ;;  %v28291_v45 = vld [vmem:[#allocation48_spill] sm:$0xff]  ;;  %v28292_v2 = vld [vmem:[#allocation106_spill] sm:$0xff] }
 0x6e0   :  { %v12561_v9 = vpop.f32.mrf.mxu0  ;;  %v10605_v30 = vadd.f32 %v28288_v47, %v28287_v12  ;;  %28289 = vst [vmem:[#allocation81_spill] sm:$0xff] %v26505_v44  ;;  %v11795_v55 = vadd.f32 %v28291_v45, %v10602_v21  ;;  %v28293_v1 = vld [vmem:[#allocation158_spill] sm:$0xff]  ;;  %v28298_v44 = vld [vmem:[#allocation160_spill] sm:$0xff]  ;;  %v28300_v21 = vld [vmem:[#allocation119_spill] sm:$0xff] }
 0x6e1   :  { %v14307_v4 = vmax.f32 %v14179_v25, 0.0  ;;  %v12988_v8 = vadd.f32 %v12561_v9, %v11794_v63  ;;  %v26501_v29 = vpack.c.bf16 %v14309_v42, %v14308_v56  ;;  %v14184_v33 = vadd.f32 %v28290_v28, %v12990_v31  ;;  %v26513_v63 = vpop.permute.xlu0 %10445  ;;  %v28295_v56 = vld [vmem:[#allocation263_spill] sm:$0xff]  ;;  %v28296_v9 = vld [vmem:[#allocation265_spill] sm:$0xff]  ;;  %v28299_v31 = vld [vmem:[#allocation280_spill] sm:$0xff]  ;;  %v26523_v28 = vpop.permute.xlu1 %10450 }
 0x6e2   :  { %v18267_v43 = vpop.f32.mrf.mxu0  ;;  %v10608_v41 = vadd.f32 %v28293_v1, %v28292_v2  ;;  %28294 = vst [vmem:[#allocation6_spill] sm:$0xff] %v26513_v63  ;;  %v11800_v49 = vadd.f32 %v28297_v50, %v10607_v20  ;;  %28302 = vst [vmem:[#allocation90_spill] sm:$0xff] %v26523_v28  ;;  %v28303_v1 = vld [vmem:[#allocation267_spill] sm:$0xff] }
 0x6e3   :  { %v12991_v34 = vadd.f32 %v18267_v43, %v11797_v36  ;;  %v26509_v3 = vpack.c.bf16 %v14307_v4, %v14306_v37  ;;  %v14182_v42 = vadd.f32 %v28295_v56, %v12988_v8  ;;  %v10606_v43 = vadd.f32 %v28299_v31, %v28298_v44  ;;  %v26521_v4 = vpop.f32.mrf.mxu1  ;;  %v28304_v56 = vld [vmem:[#allocation95_spill] sm:$0xff] }
 0x6e4   :  { %v12564_v25 = vpop.f32.mrf.mxu0  ;;  %v11798_v37 = vadd.f32 %v28300_v21, %v10605_v30  ;;  %28301 = vst [vmem:[#allocation235_spill] sm:$0xff] %v26521_v4  ;;  %v14312_v45 = vmax.f32 %v14184_v33, 0.0  ;;  %v28306_v20 = vld [vmem:[#allocation115_spill] sm:$0xff]  ;;  %v28307_v30 = vld [vmem:[#allocation164_spill] sm:$0xff] }
 0x6e5   :  { %v14185_v12 = vadd.f32 %v28296_v9, %v12991_v34  ;;  %v12989_v47 = vadd.f32 %v12564_v25, %v11795_v55  ;;  %v28305_v34 = vld [vmem:[#allocation162_spill] sm:$0xff]  ;;  %v11801_v50 = vadd.f32 %v28306_v20, %v10608_v41  ;;  %v14310_v9 = vmax.f32 %v14182_v42, 0.0  ;;  %v28308_v21 = vld [vmem:[#allocation107_spill] sm:$0xff]  ;;  %v26531_v28 = vpop.f32.mrf.mxu1  ;;  %v26533_v33 = vpop.permute.xlu0 %10355 }
 0x6e6   :  { %v18270_v36 = vpop.f32.mrf.mxu0  ;;  %v10611_v55 = vadd.f32 %v28305_v34, %v28304_v56  ;;  %v10609_v4 = vadd.f32 %v28308_v21, %v28307_v30  ;;  %28309 = vst [vmem:[#allocation41_spill] sm:$0xff] %v26531_v28  ;;  %28310 = vst [vmem:[#allocation98_spill] sm:$0xff] %v26533_v33  ;;  %v28313_v41 = vld [vmem:[#allocation114_spill] sm:$0xff] }
 0x6e7   :  { %v14313_v2 = vmax.f32 %v14185_v12, 0.0  ;;  %v14183_v63 = vadd.f32 %v28303_v1, %v12989_v47  ;;  %v12994_v8 = vadd.f32 %v18270_v36, %v11800_v49  ;;  %v28311_v12 = vld [vmem:[#allocation269_spill] sm:$0xff]  ;;  %v28312_v36 = vld [vmem:[#allocation124_spill] sm:$0xff]  ;;  %v28314_v42 = vld [vmem:[#allocation166_spill] sm:$0xff] }
 0x6e8   :  { %v12577_v25 = vpop.f32.mrf.mxu0  ;;  %v11799_v1 = vadd.f32 %v28312_v36, %v10606_v43  ;;  %v28399_v28 = vld [vmem:[#allocation78_spill] sm:$0xff] }
 0x6e9   :  { %v14311_v44 = vmax.f32 %v14183_v63, 0.0  ;;  %v12992_v31 = vadd.f32 %v12577_v25, %v11798_v37  ;;  %v14489_v60 = vpack.c.bf16 %v14313_v2, %v14312_v45  ;;  %v14188_v49 = vadd.f32 %v28311_v12, %v12994_v8  ;;  %v26540_v45 = vpop.permute.xlu1 %10360  ;;  %v28316_v2 = vld [vmem:[#allocation271_spill] sm:$0xff]  ;;  %v28317_v25 = vld [vmem:[#allocation273_spill] sm:$0xff]  ;;  %v28318_v8 = vld [vmem:[#allocation30_spill] sm:$0xff]  ;;  %v26548_v12 = vpop.f32.mrf.mxu1 }
 0x6ea   :  { %v18271_v53 = vpop.f32.mrf.mxu0  ;;  %v10612_v63 = vadd.f32 %v28314_v42, %v28313_v41  ;;  %28315 = vst [vmem:[#allocation132_spill] sm:$0xff] %v26540_v45  ;;  %28322 = vst [vmem:[#allocation96_spill] sm:$0xff] %v26548_v12  ;;  %v28323_v41 = vld [vmem:[#allocation275_spill] sm:$0xff] }
 0x6eb   :  { %v12995_v47 = vadd.f32 %v18271_v53, %v11801_v50  ;;  %17674 = vmatprep.subr.bf16.mxu0 %v14489_v60  ;;  %v14488_v56 = vpack.c.bf16 %v14311_v44, %v14310_v9  ;;  %v14186_v34 = vadd.f32 %v28316_v2, %v12992_v31  ;;  %v11804_v53 = vadd.f32 %v28318_v8, %v10611_v55  ;;  %v28319_v60 = vld [vmem:[#allocation168_spill] sm:$0xff]  ;;  %v28320_v50 = vld [vmem:[#allocation51_spill] sm:$0xff]  ;;  %v28321_v44 = vld [vmem:[#allocation50_spill] sm:$0xff] }
 0x6ec   :  { %v12580_v37 = vpop.f32.mrf.mxu0  ;;  %17675 = vmatpush3.bf16.msra.mxu0 %v26384_v5  ;;  %v10610_v43 = vadd.f32 %v28320_v50, %v28319_v60  ;;  %v11802_v21 = vadd.f32 %v28321_v44, %v10609_v4  ;;  %v14316_v36 = vmax.f32 %v14188_v49, 0.0  ;;  %v28324_v31 = vld [vmem:[#allocation77_spill] sm:$0xff]  ;;  %v28325_v2 = vld [vmem:[#allocation170_spill] sm:$0xff]  ;;  %v28328_v49 = vld [vmem:[#allocation172_spill] sm:$0xff]  ;;  %v26562_v50 = vpop.f32.mrf.mxu1 }
 0x6ed   :  { %v14189_v20 = vadd.f32 %v28317_v25, %v12995_v47  ;;  %v12993_v30 = vadd.f32 %v12580_v37, %v11799_v1  ;;  %17676 = vmatprep.subr.bf16.mxu0 %v14488_v56  ;;  %v10615_v47 = vadd.f32 %v28325_v2, %v28324_v31  ;;  %v28326_v55 = vld [vmem:[#allocation14_spill] sm:$0xff]  ;;  %v26555_v37 = vpop.permute.xlu0 %10275  ;;  %v14314_v25 = vmax.f32 %v14186_v34, 0.0  ;;  %28330 = vst [vmem:[#allocation104_spill] sm:$0xff] %v26562_v50  ;;  %v28333_v34 = vld [vmem:[#allocation79_spill] sm:$0xff] }
 0x6ee   :  { %v18274_v9 = vpop.f32.mrf.mxu0  ;;  %v11805_v56 = vadd.f32 %v28326_v55, %v10612_v63  ;;  %v28332_v63 = vld [vmem:[#allocation278_spill] sm:$0xff]  ;;  %v28398_v50 = vld [vmem:[#allocation315_spill] sm:$0xff] }
 0x6ef   :  { %v14317_v5 = vmax.f32 %v14189_v20, 0.0  ;;  %v14187_v42 = vadd.f32 %v28323_v41, %v12993_v30  ;;  %v12998_v45 = vadd.f32 %v18274_v9, %v11804_v53  ;;  %v28329_v20 = vld [vmem:[#allocation88_spill] sm:$0xff]  ;;  %v26564_v9 = vpop.permute.xlu1 %10280 }
 0x6f0   :  { %v12593_v1 = vpop.f32.mrf.mxu0  ;;  %17677 = vmatpush3.bf16.msra.mxu0 %v26395_v26  ;;  %v10613_v30 = vadd.f32 %v28329_v20, %v28328_v49  ;;  %v28339_v20 = vld [vmem:[#allocation176_spill] sm:$0xff] }
 0x6f1   :  { %v26557_v8 = vpack.c.bf16 %v14317_v5, %v14316_v36  ;;  %v14315_v4 = vmax.f32 %v14187_v42, 0.0  ;;  %v12996_v60 = vadd.f32 %v12593_v1, %v11802_v21  ;;  %17678 = vmatprep.subr.bf16.mxu0 %v26501_v29  ;;  %v14192_v44 = vadd.f32 %v28332_v63, %v12998_v45  ;;  %v28334_v5 = vld [vmem:[#allocation38_spill] sm:$0xff]  ;;  %v28336_v29 = vld [vmem:[#allocation281_spill] sm:$0xff]  ;;  %v28337_v1 = vld [vmem:[#allocation283_spill] sm:$0xff] }
 0x6f2   :  { %v18275_v53 = vpop.f32.mrf.mxu0  ;;  %v11803_v36 = vadd.f32 %v28333_v34, %v10610_v43  ;;  %v28335_v42 = vld [vmem:[#allocation174_spill] sm:$0xff]  ;;  %v28340_v45 = vld [vmem:[#allocation111_spill] sm:$0xff]  ;;  %v28341_v43 = vld [vmem:[#allocation52_spill] sm:$0xff]  ;;  %v26580_v34 = vpop.f32.mrf.mxu1 }
 0x6f3   :  { %28327 = vst [vmem:[#allocation237_spill] sm:$0xff] %v26557_v8  ;;  %v26566_v26 = vpack.c.bf16 %v14315_v4, %v14314_v25  ;;  %v12999_v41 = vadd.f32 %v18275_v53, %v11805_v56  ;;  %v10616_v21 = vadd.f32 %v28335_v42, %v28334_v5  ;;  %v14190_v2 = vadd.f32 %v28336_v29, %v12996_v60  ;;  %v28338_v25 = vld [vmem:[#allocation32_spill] sm:$0xff]  ;;  %v26582_v5 = vpop.permute.xlu0 %10515  ;;  %v28344_v60 = vld [vmem:[#allocation286_spill] sm:$0xff]  ;;  %v28422_v8 = vld [vmem:[#allocation125_spill] sm:$0xff] }
 0x6f4   :  { %v12596_v31 = vpop.f32.mrf.mxu0  ;;  %17679 = vmatpush3.bf16.msra.mxu0 %v26336_v48  ;;  %v11808_v4 = vadd.f32 %v28338_v25, %v10615_v47  ;;  %v10614_v56 = vadd.f32 %v28340_v45, %v28339_v20  ;;  %v11806_v63 = vadd.f32 %v28341_v43, %v10613_v30  ;;  %28342 = vst [vmem:[#allocation134_spill] sm:$0xff] %v26580_v34  ;;  %28343 = vst [vmem:[#allocation239_spill] sm:$0xff] %v26582_v5  ;;  %v28347_v47 = vld [vmem:[#allocation120_spill] sm:$0xff]  ;;  %v26589_v20 = vpop.permute.xlu1 %10520 }
 0x6f5   :  { %28331 = vst [vmem:[#allocation76_spill] sm:$0xff] %v26566_v26  ;;  %v14193_v55 = vadd.f32 %v28337_v1, %v12999_v41  ;;  %v12997_v49 = vadd.f32 %v12596_v31, %v11803_v36  ;;  %17680 = vmatprep.subr.bf16.mxu0 %v26509_v3  ;;  %v14320_v48 = vmax.f32 %v14192_v44, 0.0  ;;  %v28345_v36 = vld [vmem:[#allocation59_spill] sm:$0xff]  ;;  %v28346_v31 = vld [vmem:[#allocation178_spill] sm:$0xff]  ;;  %v11809_v25 = vadd.f32 %v28347_v47, %v10616_v21  ;;  %v28349_v44 = vld [vmem:[#allocation180_spill] sm:$0xff] }
 0x6f6   :  { %v18278_v53 = vpop.f32.mrf.mxu0  ;;  %v10619_v3 = vadd.f32 %v28346_v31, %v28345_v36  ;;  %28348 = vst [vmem:[#allocation241_spill] sm:$0xff] %v26589_v20  ;;  %v14318_v30 = vmax.f32 %v14190_v2, 0.0  ;;  %v28353_v31 = vld [vmem:[#allocation129_spill] sm:$0xff] }
 0x6f7   :  { %v14321_v42 = vmax.f32 %v14193_v55, 0.0  ;;  %v14191_v29 = vadd.f32 %v28344_v60, %v12997_v49  ;;  %v13002_v41 = vadd.f32 %v18278_v53, %v11808_v4  ;;  %v28350_v55 = vld [vmem:[#allocation66_spill] sm:$0xff]  ;;  %v26596_v53 = vpop.f32.mrf.mxu1  ;;  %v11807_v47 = vadd.f32 %v28353_v31, %v10614_v56  ;;  %v28354_v2 = vld [vmem:[#allocation57_spill] sm:$0xff] }
 0x6f8   :  { %v12609_v1 = vpop.f32.mrf.mxu0  ;;  %17681 = vmatpush3.bf16.msra.mxu0 %v26347_v58  ;;  %v10617_v49 = vadd.f32 %v28350_v55, %v28349_v44  ;;  %28351 = vst [vmem:[#allocation67_spill] sm:$0xff] %v26596_v53  ;;  %v28352_v58 = vld [vmem:[#allocation289_spill] sm:$0xff]  ;;  %v28358_v44 = vld [vmem:[#allocation294_spill] sm:$0xff] }
 0x6f9   :  { %v26591_v45 = vpack.c.bf16 %v14321_v42, %v14320_v48  ;;  %v14319_v43 = vmax.f32 %v14191_v29, 0.0  ;;  %v13000_v5 = vadd.f32 %v12609_v1, %v11806_v63  ;;  %17682 = vmatprep.subr.bf16.mxu0 %v26466_v52  ;;  %v14196_v36 = vadd.f32 %v28352_v58, %v13002_v41  ;;  %v28355_v48 = vld [vmem:[#allocation182_spill] sm:$0xff]  ;;  %v26605_v52 = vpop.permute.xlu0 %10435  ;;  %v28357_v63 = vld [vmem:[#allocation291_spill] sm:$0xff] }
 0x6fa   :  { %v18279_v4 = vpop.f32.mrf.mxu0  ;;  %v10620_v42 = vadd.f32 %v28355_v48, %v28354_v2  ;;  %28356 = vst [vmem:[#allocation136_spill] sm:$0xff] %v26605_v52  ;;  %v28362_v58 = vld [vmem:[#allocation71_spill] sm:$0xff]  ;;  %v26614_v2 = vpop.f32.mrf.mxu1 }
 0x6fb   :  { %v26598_v60 = vpack.c.bf16 %v14319_v43, %v14318_v30  ;;  %v13003_v21 = vadd.f32 %v18279_v4, %v11809_v25  ;;  %v14194_v1 = vadd.f32 %v28357_v63, %v13000_v5  ;;  %v28359_v30 = vld [vmem:[#allocation108_spill] sm:$0xff]  ;;  %v28361_v43 = vld [vmem:[#allocation39_spill] sm:$0xff]  ;;  %v11810_v31 = vadd.f32 %v28362_v58, %v10617_v49  ;;  %28363 = vst [vmem:[#allocation29_spill] sm:$0xff] %v26614_v2  ;;  %v28365_v5 = vld [vmem:[#allocation297_spill] sm:$0xff] }
 0x6fc   :  { %v12612_v29 = vpop.f32.mrf.mxu0  ;;  %17683 = vmatpush3.bf16.msra.mxu0 %v26300_v61  ;;  %v11812_v41 = vadd.f32 %v28359_v30, %v10619_v3  ;;  %v28360_v25 = vld [vmem:[#allocation184_spill] sm:$0xff]  ;;  %v26616_v61 = vpop.permute.xlu1 %10440  ;;  %v14324_v48 = vmax.f32 %v14196_v36, 0.0  ;;  %v28368_v3 = vld [vmem:[#allocation27_spill] sm:$0xff] }
 0x6fd   :  { %v14197_v55 = vadd.f32 %v28358_v44, %v13003_v21  ;;  %v13001_v20 = vadd.f32 %v12612_v29, %v11807_v47  ;;  %17684 = vmatprep.subr.bf16.mxu0 %v26479_v0  ;;  %v10618_v56 = vadd.f32 %v28361_v43, %v28360_v25  ;;  %28364 = vst [vmem:[#allocation24_spill] sm:$0xff] %v26616_v61  ;;  %v28366_v47 = vld [vmem:[#allocation117_spill] sm:$0xff]  ;;  %v28367_v29 = vld [vmem:[#allocation186_spill] sm:$0xff]  ;;  %v14322_v25 = vmax.f32 %v14194_v1, 0.0  ;;  %v28369_v36 = vld [vmem:[#allocation188_spill] sm:$0xff] }
 0x6fe   :  { %v18282_v4 = vpop.f32.mrf.mxu0  ;;  %v10623_v0 = vadd.f32 %v28367_v29, %v28366_v47  ;;  %v11813_v30 = vadd.f32 %v28368_v3, %v10620_v42  ;;  %v28373_v1 = vld [vmem:[#allocation75_spill] sm:$0xff] }
 0x6ff   :  { %v14325_v52 = vmax.f32 %v14197_v55, 0.0  ;;  %v14195_v63 = vadd.f32 %v28365_v5, %v13001_v20  ;;  %v13006_v21 = vadd.f32 %v18282_v4, %v11812_v41  ;;  %v28370_v55 = vld [vmem:[#allocation131_spill] sm:$0xff]  ;;  %v26628_v41 = vpop.f32.mrf.mxu1  ;;  %v26630_v4 = vpop.permute.xlu0 %10345 }
 0x700   :  { %v12625_v44 = vpop.f32.mrf.mxu0  ;;  %17685 = vmatpush3.bf16.msra.mxu0 %v26311_v22  ;;  %v10621_v61 = vadd.f32 %v28370_v55, %v28369_v36  ;;  %28371 = vst [vmem:[#allocation243_spill] sm:$0xff] %v26628_v41  ;;  %v28372_v22 = vld [vmem:[#allocation299_spill] sm:$0xff]  ;;  %v28378_v36 = vld [vmem:[#allocation305_spill] sm:$0xff] }
 0x701   :  { %v26623_v43 = vpack.c.bf16 %v14325_v52, %v14324_v48  ;;  %v14323_v49 = vmax.f32 %v14195_v63, 0.0  ;;  %v13004_v58 = vadd.f32 %v12625_v44, %v11810_v31  ;;  %17686 = vmatprep.subr.bf16.mxu0 %v26420_v35  ;;  %v14200_v47 = vadd.f32 %v28372_v22, %v13006_v21  ;;  %v28374_v48 = vld [vmem:[#allocation55_spill] sm:$0xff]  ;;  %v28375_v63 = vld [vmem:[#allocation190_spill] sm:$0xff]  ;;  %v26639_v35 = vpop.permute.xlu1 %10350 }
 0x702   :  { %v18283_v20 = vpop.f32.mrf.mxu0  ;;  %v11811_v52 = vadd.f32 %v28373_v1, %v10618_v56  ;;  %v10624_v31 = vadd.f32 %v28375_v63, %v28374_v48  ;;  %28376 = vst [vmem:[#allocation69_spill] sm:$0xff] %v26639_v35  ;;  %v28377_v44 = vld [vmem:[#allocation302_spill] sm:$0xff]  ;;  %v28382_v22 = vld [vmem:[#allocation7_spill] sm:$0xff] }
 0x703   :  { %v26632_v5 = vpack.c.bf16 %v14323_v49, %v14322_v25  ;;  %v13007_v42 = vadd.f32 %v18283_v20, %v11813_v30  ;;  %v14198_v3 = vadd.f32 %v28377_v44, %v13004_v58  ;;  %v28379_v25 = vld [vmem:[#allocation43_spill] sm:$0xff]  ;;  %v26648_v56 = vld [vmem:[%s27634_s6 + $0x40] sm:$0xff]  ;;  %v28380_v30 = vld [vmem:[#allocation192_spill] sm:$0xff]  ;;  %v14328_v1 = vmax.f32 %v14200_v47, 0.0 }
 0x704   :  { %v12628_v29 = vpop.f32.mrf.mxu0  ;;  %17687 = vmatpush3.bf16.msra.mxu0 %v26266_v17  ;;  %v11816_v21 = vadd.f32 %v28379_v25, %v10623_v0  ;;  %v26653_v17 = vld [vmem:[%s27634_s6 + $0x60] sm:$0xff]  ;;  %v28381_v49 = vld [vmem:[#allocation121_spill] sm:$0xff]  ;;  %v26660_v0 = vpop.f32.mrf.mxu1  ;;  %v28384_v48 = vld [vmem:[#allocation307_spill] sm:$0xff] }
 0x705   :  { %v14201_v55 = vadd.f32 %v28378_v36, %v13007_v42  ;;  %v13005_v41 = vadd.f32 %v12628_v29, %v11811_v52  ;;  %17688 = vmatprep.subr.bf16.mxu0 %v26436_v46  ;;  %v10622_v58 = vadd.f32 %v28381_v49, %v28380_v30  ;;  %v11814_v42 = vadd.f32 %v28382_v22, %v10621_v61  ;;  %v26666_v44 = vld [vmem:[%s27634_s6 + $0x10] sm:$0xff]  ;;  %v28387_v61 = vld [vmem:[#allocation94_spill] sm:$0xff]  ;;  %v28389_v47 = vld [vmem:[#allocation45_spill] sm:$0xff] }
 0x706   :  { %v18286_v20 = vpop.f32.mrf.mxu0  ;;  %v17321_v46 = vcombine.low %v26457_v23, %v26462_v32  ;;  %28383 = vst [vmem:[#allocation138_spill] sm:$0xff] %v26660_v0  ;;  %28385 = vst [vmem:[#allocation44_spill] sm:$0xff] %v26666_v44  ;;  %v26671_v36 = vld [vmem:[%s27634_s6 + $0x30] sm:$0xff]  ;;  %v28388_v25 = vld [vmem:[#allocation194_spill] sm:$0xff]  ;;  %v14326_v30 = vmax.f32 %v14198_v3, 0.0 }
 0x707   :  { %v14329_v52 = vmax.f32 %v14201_v55, 0.0  ;;  %v14199_v63 = vadd.f32 %v28384_v48, %v13005_v41  ;;  %v13010_v29 = vadd.f32 %v18286_v20, %v11816_v21  ;;  %28386 = vst [vmem:[#allocation140_spill] sm:$0xff] %v26671_v36  ;;  %v10627_v23 = vadd.f32 %v28388_v25, %v28387_v61  ;;  %v26679_v21 = vpop.permute.xlu0 %10265  ;;  %v28390_v48 = vld [vmem:[#allocation196_spill] sm:$0xff]  ;;  %v28391_v0 = vld [vmem:[#allocation102_spill] sm:$0xff]  ;;  %v26685_v61 = vpop.f32.mrf.mxu1 }
 0x708   :  { %v12641_v32 = vpop.f32.mrf.mxu0  ;;  %17689 = vmatpush3.bf16.msra.mxu0 %v26275_v7  ;;  %v11817_v55 = vadd.f32 %v28389_v47, %v10624_v31  ;;  %v17330_v41 = vcombine.high %v26648_v56, %v26653_v17  ;;  %v10625_v2 = vadd.f32 %v28391_v0, %v28390_v48  ;;  %28392 = vst [vmem:[#allocation80_spill] sm:$0xff] %v26685_v61  ;;  %v26689_v31 = vpop.permute.xlu1 %10270  ;;  %v28393_v47 = vld [vmem:[#allocation310_spill] sm:$0xff]  ;;  %v28397_v48 = vld [vmem:[#allocation313_spill] sm:$0xff] }
 0x709   :  { %v26681_v49 = vpack.c.bf16 %v14329_v52, %v14328_v1  ;;  %v14327_v20 = vmax.f32 %v14199_v63, 0.0  ;;  %v13008_v22 = vadd.f32 %v12641_v32, %v11814_v42  ;;  %v14204_v34 = vadd.f32 %v28393_v47, %v13010_v29  ;;  %v28394_v1 = vld [vmem:[#allocation9_spill] sm:$0xff]  ;;  %v28395_v42 = vld [vmem:[#allocation16_spill] sm:$0xff]  ;;  %v28396_v63 = vld [vmem:[#allocation198_spill] sm:$0xff] }
 0x70a   :  { %v18287_v53 = vpop.f32.mrf.mxu0  ;;  %v11815_v52 = vadd.f32 %v28394_v1, %v10622_v58  ;;  %v10628_v32 = vadd.f32 %v28396_v63, %v28395_v42  ;;  %v11820_v33 = vadd.f32 %v28399_v28, %v10627_v23  ;;  %v26703_v29 = vld [vmem:[%s27634_s6 + $0x80] sm:$0xff]  ;;  %v28400_v58 = vld [vmem:[#allocation200_spill] sm:$0xff] }
 0x70b   :  { %v26691_v25 = vpack.c.bf16 %v14327_v20, %v14326_v30  ;;  %v13011_v3 = vadd.f32 %v18287_v53, %v11817_v55  ;;  %14987 = vmatmul.mubr.bf16.vlgmr.msra.gmra.mxu0 %v17321_v46  ;;  %v14202_v61 = vadd.f32 %v28397_v48, %v13008_v22  ;;  %v14430_v53 = vld [vmem:[%s27634_s6 + $0xa0] sm:$0xff]  ;;  %v28401_v46 = vld [vmem:[#allocation127_spill] sm:$0xff]  ;;  %v26713_v22 = vpop.f32.mrf.mxu1  ;;  %v26715_v28 = vpop.permute.xlu0 %10505  ;;  %v14332_v23 = vmax.f32 %v14204_v34, 0.0  ;;  %v28411_v34 = vld [vmem:[#allocation204_spill] sm:$0xff] }
 0x70c   :  { %v12644_v0 = vpop.f32.mrf.mxu0  ;;  %14994 = vmatprep.mubr.bf16.mxu0 %v17330_v41  ;;  %v10626_v55 = vadd.f32 %v28401_v46, %v28400_v58  ;;  %v28402_v30 = vld [vmem:[#allocation31_spill] sm:$0xff]  ;;  %28403 = vst [vmem:[#allocation245_spill] sm:$0xff] %v26713_v22  ;;  %28404 = vst [vmem:[#allocation8_spill] sm:$0xff] %v26715_v28  ;;  %v28406_v42 = vld [vmem:[#allocation74_spill] sm:$0xff] }
 0x70d   :  { %v14205_v12 = vadd.f32 %v28398_v50, %v13011_v3  ;;  %v13009_v7 = vadd.f32 %v12644_v0, %v11815_v52  ;;  %v11818_v20 = vadd.f32 %v28402_v30, %v10625_v2  ;;  %v17329_v50 = vcombine.low %v26648_v56, %v26653_v17  ;;  %v28405_v3 = vld [vmem:[#allocation318_spill] sm:$0xff]  ;;  %v26722_v30 = vpop.permute.xlu1 %10510 }
 0x70e   :  { %v18290_v41 = vpop.f32.mrf.mxu0  ;;  %v28407_v63 = vld [vmem:[#allocation202_spill] sm:$0xff]  ;;  %v17338_v2 = vcombine.high %v26703_v29, %v14430_v53  ;;  %28409 = vst [vmem:[#allocation3_spill] sm:$0xff] %v26722_v30  ;;  %v14330_v56 = vmax.f32 %v14202_v61, 0.0  ;;  %v28417_v30 = vld [vmem:[#allocation89_spill] sm:$0xff] }
 0x70f   :  { %v14333_v47 = vmax.f32 %v14205_v12, 0.0  ;;  %v14203_v1 = vadd.f32 %v28405_v3, %v13009_v7  ;;  %v13014_v52 = vadd.f32 %v18290_v41, %v11820_v33  ;;  %v10631_v0 = vadd.f32 %v28407_v63, %v28406_v42  ;;  %v28408_v58 = vld [vmem:[#allocation82_spill] sm:$0xff]  ;;  %v28412_v12 = vld [vmem:[#allocation85_spill] sm:$0xff]  ;;  %v26728_v33 = vpop.f32.mrf.mxu1 }
 0x710   :  { %v12657_v48 = vpop.f32.mrf.mxu0  ;;  %v11821_v46 = vadd.f32 %v28408_v58, %v10628_v32  ;;  %v10629_v28 = vadd.f32 %v28412_v12, %v28411_v34  ;;  %28413 = vst [vmem:[#allocation247_spill] sm:$0xff] %v26728_v33  ;;  %v28414_v41 = vld [vmem:[#allocation321_spill] sm:$0xff]  ;;  %v28415_v32 = vld [vmem:[#allocation34_spill] sm:$0xff] }
 0x711   :  { %v14331_v17 = vmax.f32 %v14203_v1, 0.0  ;;  %v13012_v22 = vadd.f32 %v12657_v48, %v11818_v20  ;;  %v26724_v26 = vpack.c.bf16 %v14333_v47, %v14332_v23  ;;  %v14208_v3 = vadd.f32 %v28414_v41, %v13014_v52  ;;  %v28418_v61 = vld [vmem:[#allocation206_spill] sm:$0xff]  ;;  %v26736_v23 = vpop.permute.xlu0 %10425  ;;  %v28420_v47 = vld [vmem:[#allocation323_spill] sm:$0xff]  ;;  %v26753_v41 = vpop.f32.mrf.mxu1 }
 0x712   :  { %v18291_v7 = vpop.f32.mrf.mxu0  ;;  %v11819_v63 = vadd.f32 %v28415_v32, %v10626_v55  ;;  %v10632_v1 = vadd.f32 %v28418_v61, %v28417_v30  ;;  %28419 = vst [vmem:[#allocation103_spill] sm:$0xff] %v26736_v23  ;;  %v28421_v34 = vld [vmem:[#allocation326_spill] sm:$0xff]  ;;  %v11824_v52 = vadd.f32 %v28422_v8, %v10631_v0  ;;  %28426 = vst [vmem:[#allocation144_spill] sm:$0xff] %v26753_v41  ;;  %v26755_v8 = vpop.permute.xlu1 %10430  ;;  %v28428_v32 = vld [vmem:[#allocation329_spill] sm:$0xff] }
 0x713   :  { %28410 = vst [vmem:[#allocation142_spill] sm:$0xff] %v26724_v26  ;;  %v13015_v42 = vadd.f32 %v18291_v7, %v11821_v46  ;;  %14995 = vmatmul.mubr.bf16.gmra.mxu0 %v17329_v50  ;;  %v26732_v58 = vpack.c.bf16 %v14331_v17, %v14330_v56  ;;  %v14206_v48 = vadd.f32 %v28420_v47, %v13012_v22  ;;  %v26744_v55 = vld [vmem:[%s27634_s6 + $0xc0] sm:$0xff]  ;;  %v28423_v46 = vld [vmem:[#allocation208_spill] sm:$0xff]  ;;  %v28425_v17 = vld [vmem:[#allocation15_spill] sm:$0xff]  ;;  %v14336_v0 = vmax.f32 %v14208_v3, 0.0  ;;  %v26766_v35 = vpop.f32.mrf.mxu1 }
 0x714   :  { %v12660_v20 = vpop.f32.mrf.mxu0  ;;  %15002 = vmatprep.mubr.bf16.mxu0 %v17338_v2  ;;  %v14438_v50 = vld [vmem:[%s27634_s6 + $0xe0] sm:$0xff]  ;;  %v28424_v2 = vld [vmem:[#allocation73_spill] sm:$0xff]  ;;  %v11822_v22 = vadd.f32 %v28425_v17, %v10629_v28  ;;  %v17337_v7 = vcombine.low %v26703_v29, %v14430_v53  ;;  %28427 = vst [vmem:[#allocation2_spill] sm:$0xff] %v26755_v8  ;;  %v28432_v41 = vld [vmem:[#allocation212_spill] sm:$0xff] }
 0x715   :  { %28416 = vst [vmem:[#allocation249_spill] sm:$0xff] %v26732_v58  ;;  %v14209_v12 = vadd.f32 %v28421_v34, %v13015_v42  ;;  %v13013_v33 = vadd.f32 %v12660_v20, %v11819_v63  ;;  %v10630_v30 = vadd.f32 %v28424_v2, %v28423_v46  ;;  %v28429_v20 = vld [vmem:[#allocation58_spill] sm:$0xff]  ;;  %v28431_v58 = vld [vmem:[#allocation53_spill] sm:$0xff]  ;;  %v17346_v2 = vcombine.high %v26744_v55, %v14438_v50  ;;  %v28433_v8 = vld [vmem:[#allocation64_spill] sm:$0xff] }
 0x716   :  { %v18294_v56 = vpop.f32.mrf.mxu0  ;;  %v28430_v47 = vld [vmem:[#allocation210_spill] sm:$0xff]  ;;  %v11825_v46 = vadd.f32 %v28431_v58, %v10632_v1  ;;  %v14334_v28 = vmax.f32 %v14206_v48, 0.0  ;;  %v10633_v3 = vadd.f32 %v28433_v8, %v28432_v41  ;;  %28434 = vst [vmem:[#allocation112_spill] sm:$0xff] %v26766_v35  ;;  %v28437_v58 = vld [vmem:[#allocation17_spill] sm:$0xff]  ;;  %v28438_v48 = vld [vmem:[#allocation91_spill] sm:$0xff] }
 0x717   :  { %v14337_v42 = vmax.f32 %v14209_v12, 0.0  ;;  %v14207_v63 = vadd.f32 %v28428_v32, %v13013_v33  ;;  %v13018_v61 = vadd.f32 %v18294_v56, %v11824_v52  ;;  %v10635_v34 = vadd.f32 %v28430_v47, %v28429_v20  ;;  %v26768_v33 = vpop.permute.xlu0 %10335  ;;  %v28436_v52 = vld [vmem:[#allocation331_spill] sm:$0xff]  ;;  %v28441_v41 = vld [vmem:[#allocation334_spill] sm:$0xff] }
 0x718   :  { %v12673_v23 = vpop.f32.mrf.mxu0  ;;  %28435 = vst [vmem:[#allocation251_spill] sm:$0xff] %v26768_v33  ;;  %v11823_v1 = vadd.f32 %v28437_v58, %v10630_v30  ;;  %v28443_v33 = vld [vmem:[#allocation18_spill] sm:$0xff] }
 0x719   :  { %v14335_v17 = vmax.f32 %v14207_v63, 0.0  ;;  %v13016_v29 = vadd.f32 %v12673_v23, %v11822_v22  ;;  %v26762_v53 = vpack.c.bf16 %v14337_v42, %v14336_v0  ;;  %v14212_v56 = vadd.f32 %v28436_v52, %v13018_v61  ;;  %v28439_v23 = vld [vmem:[#allocation214_spill] sm:$0xff]  ;;  %v26776_v42 = vpop.permute.xlu1 %10340  ;;  %v28442_v63 = vld [vmem:[#allocation337_spill] sm:$0xff] }
 0x71a   :  { %v18295_v12 = vpop.f32.mrf.mxu0  ;;  %v10636_v22 = vadd.f32 %v28439_v23, %v28438_v48  ;;  %28440 = vst [vmem:[#allocation60_spill] sm:$0xff] %v26776_v42  ;;  %v11828_v61 = vadd.f32 %v28443_v33, %v10635_v34  ;;  %v14442_v30 = vld [vmem:[%s27634_s6 + $0x100] sm:$0xff]  ;;  %v28447_v33 = vld [vmem:[#allocation339_spill] sm:$0xff]  ;;  %v28448_v23 = vld [vmem:[#allocation217_spill] sm:$0xff] }
 0x71b   :  { %v13019_v32 = vadd.f32 %v18295_v12, %v11825_v46  ;;  %15003 = vmatmul.mubr.bf16.gmra.mxu0 %v17337_v7  ;;  %v26772_v20 = vpack.c.bf16 %v14335_v17, %v14334_v28  ;;  %v14210_v8 = vadd.f32 %v28441_v41, %v13016_v29  ;;  %v14446_v7 = vld [vmem:[%s27634_s6 + $0x120] sm:$0xff]  ;;  %v28444_v46 = vld [vmem:[#allocation216_spill] sm:$0xff]  ;;  %v28445_v28 = vld [vmem:[#allocation93_spill] sm:$0xff]  ;;  %v17345_v29 = vcombine.low %v26744_v55, %v14438_v50 }
 0x71c   :  { %v12676_v0 = vpop.f32.mrf.mxu0  ;;  %15010 = vmatprep.mubr.bf16.mxu0 %v17346_v2  ;;  %v10634_v2 = vadd.f32 %v28445_v28, %v28444_v46  ;;  %v28446_v12 = vld [vmem:[#allocation84_spill] sm:$0xff]  ;;  %v14340_v58 = vmax.f32 %v14212_v56, 0.0  ;;  %v17354_v26 = vcombine.high %v14442_v30, %v14446_v7  ;;  %v10256_v46 = vpop.permute.xlu0 %10255  ;;  %v28450_v55 = vld [vmem:[#allocation218_spill] sm:$0xff] }
 0x71d   :  { %v14213_v47 = vadd.f32 %v28442_v63, %v13019_v32  ;;  %v13017_v35 = vadd.f32 %v12676_v0, %v11823_v1  ;;  %v11826_v52 = vadd.f32 %v28446_v12, %v10633_v3  ;;  %v26791_v32 = vpop.f32.mrf.mxu1  ;;  %v10639_v0 = vadd.f32 %v28448_v23, %v26679_v21  ;;  %v28449_v63 = vld [vmem:[#allocation35_spill] sm:$0xff]  ;;  %v28453_v21 = vld [vmem:[#allocation86_spill] sm:$0xff] }
 0x71e   :  { %v18298_v17 = vpop.f32.mrf.mxu0  ;;  %v11829_v42 = vadd.f32 %v28449_v63, %v10636_v22  ;;  %v14338_v28 = vmax.f32 %v14210_v8, 0.0  ;;  %v10637_v50 = vadd.f32 %v10256_v46, %v28450_v55  ;;  %v11827_v23 = vadd.f32 %v28453_v21, %v10634_v2  ;;  %v28454_v8 = vld [vmem:[#allocation219_spill] sm:$0xff]  ;;  %v28457_v55 = vld [vmem:[#allocation36_spill] sm:$0xff]  ;;  %v28460_v21 = vld [vmem:[#allocation221_spill] sm:$0xff] }
 0x71f   :  { %v14341_v34 = vmax.f32 %v14213_v47, 0.0  ;;  %v14211_v1 = vadd.f32 %v28447_v33, %v13017_v35  ;;  %v13022_v48 = vadd.f32 %v18298_v17, %v11828_v61  ;;  %v26800_v47 = vpop.f32.mrf.mxu1  ;;  %v10261_v35 = vpop.permute.xlu1 %10260  ;;  %v28452_v61 = vld [vmem:[#allocation342_spill] sm:$0xff] }
 0x720   :  { %v12689_v41 = vpop.f32.mrf.mxu0  ;;  %28451 = vst [vmem:[#allocation146_spill] sm:$0xff] %v26800_v47  ;;  %v11832_v47 = vadd.f32 %v28457_v55, %v10639_v0 }
 0x721   :  { %v14339_v44 = vmax.f32 %v14211_v1, 0.0  ;;  %v13020_v3 = vadd.f32 %v12689_v41, %v11826_v52  ;;  %v26797_v12 = vpack.c.bf16 %v14341_v34, %v14340_v58  ;;  %v14216_v17 = vadd.f32 %v28452_v61, %v13022_v48  ;;  %v28455_v58 = vld [vmem:[#allocation345_spill] sm:$0xff]  ;;  %v28456_v41 = vld [vmem:[#allocation347_spill] sm:$0xff] }
 0x722   :  { %v18299_v56 = vpop.f32.mrf.mxu0  ;;  %v10640_v1 = vadd.f32 %v28454_v8, %v26689_v31  ;;  %v28458_v31 = vld [vmem:[#allocation220_spill] sm:$0xff] }
 0x723   :  { %v13023_v33 = vadd.f32 %v18299_v56, %v11829_v42  ;;  %15011 = vmatmul.mubr.bf16.gmra.mxu0 %v17345_v29  ;;  %v26804_v22 = vpack.c.bf16 %v14339_v44, %v14338_v28  ;;  %v14214_v34 = vadd.f32 %v28455_v58, %v13020_v3  ;;  %v26814_v42 = vld [vmem:[%s27634_s6 + $0x140] sm:$0xff]  ;;  %v10638_v2 = vadd.f32 %v10261_v35, %v28458_v31  ;;  %v28459_v29 = vld [vmem:[#allocation128_spill] sm:$0xff]  ;;  %v26823_v3 = vpop.f32.mrf.mxu1  ;;  %v28463_v31 = vld [vmem:[#allocation87_spill] sm:$0xff] }
 0x724   :  { %v12692_v52 = vpop.f32.mrf.mxu0  ;;  %15018 = vmatprep.mubr.bf16.mxu0 %v17354_v26  ;;  %v26819_v44 = vld [vmem:[%s27634_s6 + $0x160] sm:$0xff]  ;;  %v11830_v48 = vadd.f32 %v28459_v29, %v10637_v50  ;;  %v17353_v28 = vcombine.low %v14442_v30, %v14446_v7  ;;  %v14344_v56 = vmax.f32 %v14216_v17, 0.0 }
 0x725   :  { %v14217_v63 = vadd.f32 %v28456_v41, %v13023_v33  ;;  %v13021_v46 = vadd.f32 %v12692_v52, %v11827_v23  ;;  %v10643_v23 = vadd.f32 %v28460_v21, %v26464_v54  ;;  %v28461_v52 = vld [vmem:[#allocation19_spill] sm:$0xff]  ;;  %v17362_v35 = vcombine.high %v26814_v42, %v26819_v44  ;;  %v28462_v7 = vld [vmem:[#allocation222_spill] sm:$0xff] }
 0x726   :  { %v18302_v26 = vpop.f32.mrf.mxu0  ;;  %v11833_v58 = vadd.f32 %v28461_v52, %v10640_v1  ;;  %v14342_v41 = vmax.f32 %v14214_v34, 0.0  ;;  %v10641_v17 = vadd.f32 %v26555_v37, %v28462_v7 }
 0x727   :  { %v14345_v0 = vmax.f32 %v14217_v63, 0.0  ;;  %v14215_v61 = vadd.f32 %v26224_v6, %v13021_v46  ;;  %v13026_v33 = vadd.f32 %v18302_v26, %v11832_v47  ;;  %v11831_v6 = vadd.f32 %v28463_v31, %v10638_v2  ;;  %v26834_v47 = vpop.f32.mrf.mxu1  ;;  %v28464_v26 = vld [vmem:[#allocation223_spill] sm:$0xff] }
 0x728   :  { %v12705_v8 = vpop.f32.mrf.mxu0  ;;  %v10644_v34 = vadd.f32 %v28464_v26, %v26476_v51  ;;  %v26851_v51 = vld [vmem:[%s27634_s6 + $0x1a0] sm:$0xff]  ;;  %v28472_v26 = vld [vmem:[#allocation227_spill] sm:$0xff] }
 0x729   :  { %v14343_v55 = vmax.f32 %v14215_v61, 0.0  ;;  %v13024_v50 = vadd.f32 %v12705_v8, %v11830_v48  ;;  %v14505_v30 = vpack.c.bf16 %v14345_v0, %v14344_v56  ;;  %v14220_v54 = vadd.f32 %v26239_v40, %v13026_v33  ;;  %v28465_v56 = vld [vmem:[#allocation37_spill] sm:$0xff]  ;;  %v26846_v40 = vld [vmem:[%s27634_s6 + $0x180] sm:$0xff]  ;;  %v26858_v21 = vpop.f32.mrf.mxu1 }
 0x72a   :  { %v18303_v63 = vpop.f32.mrf.mxu0  ;;  %v11836_v0 = vadd.f32 %v28465_v56, %v10643_v23  ;;  %v28467_v61 = vld [vmem:[#allocation110_spill] sm:$0xff] }
 0x72b   :  { %v13027_v46 = vadd.f32 %v18303_v63, %v11833_v58  ;;  %15019 = vmatmul.mubr.bf16.gmra.mxu0 %v17353_v28  ;;  %17738 = vmatprep.subr.bf16.mxu1 %v14505_v30  ;;  %v14504_v1 = vpack.c.bf16 %v14343_v55, %v14342_v41  ;;  %v14218_v37 = vadd.f32 %v26256_v19, %v13024_v50  ;;  %v14348_v23 = vmax.f32 %v14220_v54, 0.0  ;;  %v28470_v63 = vld [vmem:[#allocation226_spill] sm:$0xff] }
 0x72c   :  { %v12708_v29 = vpop.f32.mrf.mxu0  ;;  %17739 = vmatpush3.bf16.msra.mxu1 %v26681_v49  ;;  %15026 = vmatprep.mubr.bf16.mxu0 %v17362_v35  ;;  %v28466_v49 = vld [vmem:[#allocation224_spill] sm:$0xff]  ;;  %v11834_v33 = vadd.f32 %v28467_v61, %v10641_v17  ;;  %v28468_v35 = vld [vmem:[#allocation225_spill] sm:$0xff]  ;;  %v17370_v30 = vcombine.high %v26846_v40, %v26851_v51 }
 0x72d   :  { %v13025_v48 = vadd.f32 %v12708_v29, %v11831_v6  ;;  %v14221_v2 = vadd.f32 %v26273_v10, %v13027_v46  ;;  %17740 = vmatprep.subr.bf16.mxu1 %v14504_v1  ;;  %v10642_v28 = vadd.f32 %v26564_v9, %v28466_v49  ;;  %v17361_v10 = vcombine.low %v26814_v42, %v26819_v44  ;;  %v28469_v9 = vld [vmem:[#allocation118_spill] sm:$0xff]  ;;  %v28471_v46 = vld [vmem:[#allocation123_spill] sm:$0xff] }
 0x72e   :  { %v18306_v19 = vpop.f32.mrf.mxu0  ;;  %v10647_v41 = vadd.f32 %v28468_v35, %v26229_v11  ;;  %v11837_v50 = vadd.f32 %v28469_v9, %v10644_v34  ;;  %v14346_v7 = vmax.f32 %v14218_v37, 0.0  ;;  %v26872_v11 = vpop.f32.mrf.mxu1  ;;  %v10648_v34 = vadd.f32 %v28472_v26, %v26241_v14  ;;  %v14470_v14 = vld [vmem:[%s27634_s6 + $0x1e0] sm:$0xff]  ;;  %v28479_v9 = vld [vmem:[#allocation232_spill] sm:$0xff] }
 0x72f   :  { %v14349_v8 = vmax.f32 %v14221_v2, 0.0  ;;  %v13030_v52 = vadd.f32 %v18306_v19, %v11836_v0  ;;  %v14219_v58 = vadd.f32 %v26292_v27, %v13025_v48  ;;  %v10645_v27 = vadd.f32 %v26334_v16, %v28470_v63  ;;  %v28473_v48 = vld [vmem:[#allocation33_spill] sm:$0xff]  ;;  %v26888_v2 = vld [vmem:[%s27634_s6 + $0x1c0] sm:$0xff]  ;;  %v28481_v63 = vld [vmem:[#allocation100_spill] sm:$0xff] }
 0x730   :  { %v12721_v55 = vpop.f32.mrf.mxu0  ;;  %17741 = vmatpush3.bf16.msra.mxu1 %v26691_v25  ;;  %v11835_v1 = vadd.f32 %v28471_v46, %v10642_v28  ;;  %v28475_v0 = vld [vmem:[#allocation65_spill] sm:$0xff]  ;;  %v17378_v35 = vcombine.high %v26888_v2, %v14470_v14 }
 0x731   :  { %v26867_v42 = vpack.c.bf16 %v14349_v8, %v14348_v23  ;;  %v14347_v44 = vmax.f32 %v14219_v58, 0.0  ;;  %v13028_v17 = vadd.f32 %v12721_v55, %v11834_v33  ;;  %17742 = vmatprep.subr.bf16.mxu1 %v26797_v12  ;;  %v14224_v25 = vadd.f32 %v26307_v62, %v13030_v52  ;;  %v28477_v23 = vld [vmem:[#allocation230_spill] sm:$0xff] }
 0x732   :  { %v18307_v31 = vpop.f32.mrf.mxu0  ;;  %v11840_v62 = vadd.f32 %v28473_v48, %v10647_v41  ;;  %v11838_v49 = vadd.f32 %v28475_v0, %v10645_v27  ;;  %v28487_v48 = vld [vmem:[#allocation116_spill] sm:$0xff] }
 0x733   :  { %v26874_v6 = vpack.c.bf16 %v14347_v44, %v14346_v7  ;;  %v13031_v54 = vadd.f32 %v18307_v31, %v11837_v50  ;;  %15027 = vmatmul.mubr.bf16.gmra.mxu0 %v17361_v10  ;;  %v14222_v16 = vadd.f32 %v26328_v18, %v13028_v17  ;;  %v14352_v28 = vmax.f32 %v14224_v25, 0.0  ;;  %v28476_v10 = vld [vmem:[#allocation293_spill] sm:$0xff]  ;;  %v28482_v31 = vld [vmem:[#allocation296_spill] sm:$0xff]  ;;  %v28483_v25 = vld [vmem:[#allocation234_spill] sm:$0xff] }
 0x734   :  { %v12724_v29 = vpop.f32.mrf.mxu0  ;;  %17743 = vmatpush3.bf16.msra.mxu1 %v26623_v43  ;;  %15034 = vmatprep.mubr.bf16.mxu0 %v17370_v30  ;;  %v28474_v43 = vld [vmem:[#allocation228_spill] sm:$0xff]  ;;  %v10651_v8 = vadd.f32 %v28477_v23, %v28476_v10  ;;  %v28480_v50 = vld [vmem:[#allocation325_spill] sm:$0xff]  ;;  %v28491_v23 = vld [vmem:[#allocation142_spill] sm:$0xff] }
 0x735   :  { %v13029_v12 = vadd.f32 %v12724_v29, %v11835_v1  ;;  %v14225_v37 = vadd.f32 %v26343_v13, %v13031_v54  ;;  %17744 = vmatprep.subr.bf16.mxu1 %v26804_v22  ;;  %v10646_v56 = vadd.f32 %v26345_v39, %v28474_v43  ;;  %v17369_v13 = vcombine.low %v26846_v40, %v26851_v51  ;;  %v26898_v22 = vpop.f32.mrf.mxu1  ;;  %v28478_v39 = vld [vmem:[#allocation23_spill] sm:$0xff]  ;;  %v28485_v29 = vld [vmem:[#allocation236_spill] sm:$0xff] }
 0x736   :  { %v18310_v18 = vpop.f32.mrf.mxu0  ;;  %v11841_v58 = vadd.f32 %v28478_v39, %v10648_v34  ;;  %v14350_v41 = vmax.f32 %v14222_v16, 0.0  ;;  %v10652_v54 = vadd.f32 %v28483_v25, %v28482_v31  ;;  %v28484_v34 = vld [vmem:[#allocation105_spill] sm:$0xff]  ;;  %v28486_v16 = vld [vmem:[#allocation328_spill] sm:$0xff]  ;;  %v17377_v43 = vcombine.low %v26888_v2, %v14470_v14 }
 0x737   :  { %v14353_v19 = vmax.f32 %v14225_v37, 0.0  ;;  %v13034_v61 = vadd.f32 %v18310_v18, %v11840_v62  ;;  %v14223_v33 = vadd.f32 %v26362_v59, %v13029_v12  ;;  %v10649_v59 = vadd.f32 %v28480_v50, %v28479_v9  ;;  %v26911_v7 = vpop.f32.mrf.mxu1  ;;  %v28496_v9 = vld [vmem:[#allocation69_spill] sm:$0xff]  ;;  %v28497_v50 = vld [vmem:[#allocation242_spill] sm:$0xff] }
 0x738   :  { %v12737_v52 = vpop.f32.mrf.mxu0  ;;  %17745 = vmatpush3.bf16.msra.mxu1 %v26632_v5  ;;  %v11839_v27 = vadd.f32 %v28481_v63, %v10646_v56  ;;  %v10650_v12 = vadd.f32 %v28486_v16, %v28485_v29  ;;  %v28500_v31 = vld [vmem:[#allocation81_spill] sm:$0xff] }
 0x739   :  { %v26906_v55 = vpack.c.bf16 %v14353_v19, %v14352_v28  ;;  %v14351_v40 = vmax.f32 %v14223_v33, 0.0  ;;  %v13032_v51 = vadd.f32 %v12737_v52, %v11838_v49  ;;  %17746 = vmatprep.subr.bf16.mxu1 %v26762_v53  ;;  %v14228_v5 = vadd.f32 %v26391_v24, %v13034_v61  ;;  %v26928_v56 = vpop.f32.mrf.mxu1  ;;  %v28490_v19 = vld [vmem:[#allocation44_spill] sm:$0xff] }
 0x73a   :  { %v18311_v30 = vpop.f32.mrf.mxu0  ;;  %v11844_v24 = vadd.f32 %v28484_v34, %v10651_v8  ;;  %v11842_v62 = vadd.f32 %v28487_v48, %v10649_v59  ;;  %v17326_v61 = vcombine.high %v28490_v19, %v26671_v36  ;;  %v28492_v8 = vld [vmem:[#allocation240_spill] sm:$0xff]  ;;  %v10656_v59 = vadd.f32 %v28497_v50, %v28496_v9  ;;  %v28513_v50 = vld [vmem:[#allocation41_spill] sm:$0xff] }
 0x73b   :  { %v26913_v44 = vpack.c.bf16 %v14351_v40, %v14350_v41  ;;  %v13035_v17 = vadd.f32 %v18311_v30, %v11841_v58  ;;  %15035 = vmatmul.mubr.bf16.gmra.mxu0 %v17369_v13  ;;  %v14226_v53 = vadd.f32 %v26412_v15, %v13032_v51  ;;  %v28489_v13 = vld [vmem:[#allocation68_spill] sm:$0xff]  ;;  %v28495_v40 = vld [vmem:[#allocation25_spill] sm:$0xff] }
 0x73c   :  { %v12740_v46 = vpop.f32.mrf.mxu0  ;;  %17747 = vmatpush3.bf16.msra.mxu1 %v26591_v45  ;;  %15042 = vmatprep.mubr.bf16.mxu0 %v17378_v35  ;;  %v14356_v45 = vmax.f32 %v14228_v5, 0.0  ;;  %v11845_v28 = vadd.f32 %v28489_v13, %v10652_v54  ;;  %v11843_v51 = vadd.f32 %v28495_v40, %v10650_v12  ;;  %v28498_v5 = vld [vmem:[#allocation237_spill] sm:$0xff]  ;;  %v28503_v34 = vld [vmem:[#allocation244_spill] sm:$0xff]  ;;  %v28505_v12 = vld [vmem:[#allocation11_spill] sm:$0xff] }
 0x73d   :  { %v13033_v1 = vadd.f32 %v12740_v46, %v11839_v27  ;;  %v14229_v26 = vadd.f32 %v26427_v57, %v13035_v17  ;;  %17748 = vmatprep.subr.bf16.mxu1 %v26772_v20  ;;  %v28488_v57 = vld [vmem:[#allocation238_spill] sm:$0xff]  ;;  %v14354_v33 = vmax.f32 %v14226_v53, 0.0  ;;  %v28499_v17 = vld [vmem:[#allocation233_spill] sm:$0xff]  ;;  %v28502_v46 = vld [vmem:[#allocation47_spill] sm:$0xff] }
 0x73e   :  { %v18314_v37 = vpop.f32.mrf.mxu0  ;;  %v10655_v20 = vadd.f32 %v28488_v57, %v26630_v4  ;;  %v26942_v4 = vpop.f32.mrf.mxu1  ;;  %v28501_v54 = vld [vmem:[#allocation249_spill] sm:$0xff] }
 0x73f   :  { %v14357_v18 = vmax.f32 %v14229_v26, 0.0  ;;  %v13038_v15 = vadd.f32 %v18314_v37, %v11844_v24  ;;  %v14227_v0 = vadd.f32 %v26448_v38, %v13033_v1  ;;  %v28493_v38 = vld [vmem:[#allocation251_spill] sm:$0xff]  ;;  %v28504_v24 = vld [vmem:[#allocation60_spill] sm:$0xff]  ;;  %v26975_v57 = vld [vmem:[%s27634_s6 + $0x38] sm:$0xff] }
 0x740   :  { %v12753_v49 = vpop.f32.mrf.mxu0  ;;  %17749 = vmatpush3.bf16.msra.mxu1 %v26598_v60  ;;  %v10653_v52 = vadd.f32 %v28493_v38, %v28492_v8  ;;  %v28494_v60 = vld [vmem:[#allocation231_spill] sm:$0xff]  ;;  %v11848_v53 = vadd.f32 %v28502_v46, %v10655_v20  ;;  %v10654_v29 = vadd.f32 %v28504_v24, %v28503_v34  ;;  %v26964_v48 = vpop.f32.mrf.mxu1  ;;  %v28507_v20 = vld [vmem:[#allocation54_spill] sm:$0xff]  ;;  %v28520_v34 = vld [vmem:[#allocation96_spill] sm:$0xff] }
 0x741   :  { %v26937_v2 = vpack.c.bf16 %v14357_v18, %v14356_v45  ;;  %v14355_v14 = vmax.f32 %v14227_v0, 0.0  ;;  %v13036_v10 = vadd.f32 %v12753_v49, %v11842_v62  ;;  %17750 = vmatprep.subr.bf16.mxu1 %v28491_v23  ;;  %v14232_v35 = vadd.f32 %v28494_v60, %v13038_v15  ;;  %v14419_v1 = vld [vmem:[%s27634_s6 + $0x48] sm:$0xff]  ;;  %v26970_v0 = vld [vmem:[%s27634_s6 + $0x18] sm:$0xff]  ;;  %v28508_v49 = vld [vmem:[#allocation246_spill] sm:$0xff] }
 0x742   :  { %v18315_v39 = vpop.f32.mrf.mxu0  ;;  %v14423_v26 = vld [vmem:[%s27634_s6 + $0x68] sm:$0xff]  ;;  %v11846_v37 = vadd.f32 %v28505_v12, %v10653_v52  ;;  %v10659_v13 = vadd.f32 %v28508_v49, %v28507_v20  ;;  %v28511_v60 = vld [vmem:[#allocation248_spill] sm:$0xff] }
 0x743   :  { %v26944_v58 = vpack.c.bf16 %v14355_v14, %v14354_v33  ;;  %v13039_v41 = vadd.f32 %v18315_v39, %v11845_v28  ;;  %15043 = vmatmul.mubr.bf16.gmra.mxu0 %v17377_v43  ;;  %v14230_v63 = vadd.f32 %v28499_v17, %v13036_v10  ;;  %v14360_v62 = vmax.f32 %v14232_v35, 0.0  ;;  %v28506_v18 = vld [vmem:[#allocation235_spill] sm:$0xff]  ;;  %v28510_v33 = vld [vmem:[#allocation13_spill] sm:$0xff]  ;;  %v28512_v35 = vld [vmem:[#allocation98_spill] sm:$0xff] }
 0x744   :  { %v12756_v30 = vpop.f32.mrf.mxu0  ;;  %17751 = vmatpush3.bf16.msra.mxu1 %v28498_v5  ;;  %15180 = vmatprep.mubr.bf16.mxu0 %v17326_v61  ;;  %v28509_v61 = vld [vmem:[#allocation76_spill] sm:$0xff]  ;;  %v11849_v14 = vadd.f32 %v28510_v33, %v10656_v59  ;;  %v17332_v10 = vcombine.high %v14419_v1, %v14423_v26  ;;  %v28514_v5 = vld [vmem:[#allocation63_spill] sm:$0xff]  ;;  %v28515_v17 = vld [vmem:[#allocation49_spill] sm:$0xff]  ;;  %v17331_v33 = vcombine.low %v14419_v1, %v14423_v26 }
 0x745   :  { %v13037_v27 = vadd.f32 %v12756_v30, %v11843_v51  ;;  %v14233_v25 = vadd.f32 %v28500_v31, %v13039_v41  ;;  %17752 = vmatprep.subr.bf16.mxu1 %v28501_v54  ;;  %v14358_v8 = vmax.f32 %v14230_v63, 0.0  ;;  %v10657_v41 = vadd.f32 %v28512_v35, %v28511_v60  ;;  %v26987_v51 = vpop.f32.mrf.mxu1  ;;  %v28517_v63 = vld [vmem:[#allocation101_spill] sm:$0xff]  ;;  %v28519_v54 = vld [vmem:[#allocation250_spill] sm:$0xff]  ;;  %v28521_v12 = vld [vmem:[#allocation104_spill] sm:$0xff] }
 0x746   :  { %v18318_v16 = vpop.f32.mrf.mxu0  ;;  %v11847_v31 = vadd.f32 %v28517_v63, %v10654_v29  ;;  %v14431_v29 = vld [vmem:[%s27634_s6 + $0xa8] sm:$0xff]  ;;  %v28527_v60 = vld [vmem:[#allocation348_spill] sm:$0xff]  ;;  %v28528_v35 = vld [vmem:[#allocation254_spill] sm:$0xff] }
 0x747   :  { %v14361_v43 = vmax.f32 %v14233_v25, 0.0  ;;  %v13042_v45 = vadd.f32 %v18318_v16, %v11848_v53  ;;  %v14231_v15 = vadd.f32 %v28506_v18, %v13037_v27  ;;  %v28516_v27 = vcombine.low %v28514_v5, %v28515_v17  ;;  %v28518_v25 = vld [vmem:[#allocation97_spill] sm:$0xff]  ;;  %v28523_v18 = vld [vmem:[#allocation252_spill] sm:$0xff] }
 0x748   :  { %v12769_v28 = vpop.f32.mrf.mxu0  ;;  %17753 = vmatpush3.bf16.msra.mxu1 %v28509_v61  ;;  %v10660_v46 = vadd.f32 %v28519_v54, %v28518_v25  ;;  %v28530_v1 = vld [vmem:[#allocation256_spill] sm:$0xff] }
 0x749   :  { %v26983_v38 = vpack.c.bf16 %v14361_v43, %v14360_v62  ;;  %v14359_v52 = vmax.f32 %v14231_v15, 0.0  ;;  %v13040_v39 = vadd.f32 %v12769_v28, %v11846_v37  ;;  %v14236_v30 = vadd.f32 %v28513_v50, %v13042_v45  ;;  %v28522_v62 = vld [vmem:[#allocation4_spill] sm:$0xff]  ;;  %v14427_v45 = vld [vmem:[%s27634_s6 + $0x88] sm:$0xff]  ;;  %v28525_v28 = vld [vmem:[#allocation5_spill] sm:$0xff] }
 0x74a   :  { %v18319_v40 = vpop.f32.mrf.mxu0  ;;  %v11852_v43 = vadd.f32 %v28522_v62, %v10659_v13  ;;  %v28524_v15 = vld [vmem:[#allocation132_spill] sm:$0xff]  ;;  %v11850_v61 = vadd.f32 %v28525_v28, %v10657_v41  ;;  %v17340_v17 = vcombine.high %v14427_v45, %v14431_v29  ;;  %v28534_v62 = vld [vmem:[#allocation349_spill] sm:$0xff] }
 0x74b   :  { %v26989_v9 = vpack.c.bf16 %v14359_v52, %v14358_v8  ;;  %v13043_v59 = vadd.f32 %v18319_v40, %v11849_v14  ;;  %15084 = vmatmul.mubr.bf16.vlgmr.msra.gmra.mxu1 %v28516_v27  ;;  %v14234_v24 = vadd.f32 %v28520_v34, %v13040_v39  ;;  %v10658_v20 = vadd.f32 %v28524_v15, %v28523_v18  ;;  %v27010_v14 = vpop.f32.mrf.mxu1  ;;  %v28526_v52 = vld [vmem:[#allocation134_spill] sm:$0xff]  ;;  %v28531_v26 = vld [vmem:[#allocation56_spill] sm:$0xff]  ;;  %v28532_v34 = vld [vmem:[#allocation67_spill] sm:$0xff] }
 0x74c   :  { %v12772_v53 = vpop.f32.mrf.mxu0  ;;  %15091 = vmatprep.mubr.bf16.mxu1 %v17332_v10  ;;  %v14364_v10 = vmax.f32 %v14236_v30, 0.0  ;;  %v10663_v40 = vadd.f32 %v28528_v35, %v28527_v60  ;;  %v10661_v25 = vadd.f32 %v28531_v26, %v28530_v1  ;;  %v28536_v15 = vld [vmem:[#allocation29_spill] sm:$0xff] }
 0x74d   :  { %v13041_v16 = vadd.f32 %v12772_v53, %v11847_v31  ;;  %v14237_v37 = vadd.f32 %v28521_v12, %v13043_v59  ;;  %v28529_v59 = vld [vmem:[#allocation133_spill] sm:$0xff]  ;;  %v14362_v27 = vmax.f32 %v14234_v24, 0.0  ;;  %v27020_v54 = vpop.f32.mrf.mxu1  ;;  %v28535_v24 = vld [vmem:[#allocation258_spill] sm:$0xff] }
 0x74e   :  { %v18322_v49 = vpop.f32.mrf.mxu0  ;;  %v11853_v5 = vadd.f32 %v28529_v59, %v10660_v46  ;;  %v28543_v26 = vld [vmem:[#allocation285_spill] sm:$0xff] }
 0x74f   :  { %v14365_v8 = vmax.f32 %v14237_v37, 0.0  ;;  %v13046_v13 = vadd.f32 %v18322_v49, %v11852_v43  ;;  %v14235_v39 = vadd.f32 %v28526_v52, %v13041_v16  ;;  %v28533_v37 = vld [vmem:[#allocation135_spill] sm:$0xff]  ;;  %v10664_v43 = vadd.f32 %v28535_v24, %v28534_v62 }
 0x750   :  { %v12785_v50 = vpop.f32.mrf.mxu0  ;;  %v11851_v46 = vadd.f32 %v28533_v37, %v10658_v20  ;;  %v14439_v20 = vld [vmem:[%s27634_s6 + $0xe8] sm:$0xff]  ;;  %v28545_v37 = vld [vmem:[#allocation141_spill] sm:$0xff] }
 0x751   :  { %v27016_v63 = vpack.c.bf16 %v14365_v8, %v14364_v10  ;;  %v14363_v31 = vmax.f32 %v14235_v39, 0.0  ;;  %v13044_v41 = vadd.f32 %v12785_v50, %v11850_v61  ;;  %v14240_v16 = vadd.f32 %v28532_v34, %v13046_v13  ;;  %v28537_v61 = vld [vmem:[#allocation243_spill] sm:$0xff]  ;;  %v28538_v8 = vld [vmem:[#allocation137_spill] sm:$0xff]  ;;  %v28540_v39 = vld [vmem:[#allocation62_spill] sm:$0xff] }
 0x752   :  { %v18323_v30 = vpop.f32.mrf.mxu0  ;;  %v11856_v52 = vadd.f32 %v28538_v8, %v10663_v40  ;;  %v27034_v13 = vld [vmem:[%s27634_s6 + $0xc8] sm:$0xff] }
 0x753   :  { %v27022_v53 = vpack.c.bf16 %v14363_v31, %v14362_v27  ;;  %v13047_v12 = vadd.f32 %v18323_v30, %v11853_v5  ;;  %15092 = vmatmul.mubr.bf16.gmra.mxu1 %v17331_v33  ;;  %v14238_v49 = vadd.f32 %v28536_v15, %v13044_v41  ;;  %v28539_v33 = vld [vmem:[#allocation260_spill] sm:$0xff]  ;;  %v28541_v50 = vld [vmem:[#allocation139_spill] sm:$0xff]  ;;  %v17339_v5 = vcombine.low %v14427_v45, %v14431_v29  ;;  %v28542_v41 = vld [vmem:[#allocation138_spill] sm:$0xff] }
 0x754   :  { %v12788_v18 = vpop.f32.mrf.mxu0  ;;  %15099 = vmatprep.mubr.bf16.mxu1 %v17340_v17  ;;  %v10662_v60 = vadd.f32 %v28540_v39, %v28539_v33  ;;  %v11854_v59 = vadd.f32 %v28541_v50, %v10661_v25  ;;  %v27042_v17 = vpop.f32.mrf.mxu1  ;;  %v14368_v27 = vmax.f32 %v14240_v16, 0.0  ;;  %v28544_v30 = vld [vmem:[#allocation262_spill] sm:$0xff]  ;;  %v17348_v62 = vcombine.high %v27034_v13, %v14439_v20  ;;  %v28546_v29 = vld [vmem:[#allocation264_spill] sm:$0xff]  ;;  %v28547_v15 = vld [vmem:[#allocation317_spill] sm:$0xff] }
 0x755   :  { %v13045_v28 = vadd.f32 %v12788_v18, %v11851_v46  ;;  %v14241_v10 = vadd.f32 %v28537_v61, %v13047_v12  ;;  %v10667_v34 = vadd.f32 %v28544_v30, %v28543_v26  ;;  %v11857_v46 = vadd.f32 %v28545_v37, %v10664_v43  ;;  %v28549_v39 = vld [vmem:[#allocation143_spill] sm:$0xff]  ;;  %v28551_v50 = vld [vmem:[#allocation266_spill] sm:$0xff]  ;;  %v28554_v37 = vld [vmem:[#allocation145_spill] sm:$0xff] }
 0x756   :  { %v18326_v35 = vpop.f32.mrf.mxu0  ;;  %v14366_v24 = vmax.f32 %v14238_v49, 0.0  ;;  %v10665_v16 = vadd.f32 %v28547_v15, %v28546_v29  ;;  %v11855_v49 = vadd.f32 %v28549_v39, %v10662_v60  ;;  %v28553_v30 = vld [vmem:[#allocation247_spill] sm:$0xff]  ;;  %v28558_v39 = vld [vmem:[#allocation144_spill] sm:$0xff] }
 0x757   :  { %v14369_v40 = vmax.f32 %v14241_v10, 0.0  ;;  %v13050_v31 = vadd.f32 %v18326_v35, %v11856_v52  ;;  %v14239_v1 = vadd.f32 %v28542_v41, %v13045_v28  ;;  %v27053_v10 = vpop.f32.mrf.mxu1  ;;  %v27055_v28 = vpop.permute.xlu0 %10495  ;;  %v28548_v52 = vld [vmem:[#allocation80_spill] sm:$0xff]  ;;  %v28552_v41 = vld [vmem:[#allocation245_spill] sm:$0xff]  ;;  %v14447_v60 = vld [vmem:[%s27634_s6 + $0x128] sm:$0xff] }
 0x758   :  { %v12801_v12 = vpop.f32.mrf.mxu0  ;;  %v28550_v35 = vld [vmem:[#allocation288_spill] sm:$0xff]  ;;  %v28557_v29 = vld [vmem:[#allocation147_spill] sm:$0xff] }
 0x759   :  { %v27049_v18 = vpack.c.bf16 %v14369_v40, %v14368_v27  ;;  %v14367_v25 = vmax.f32 %v14239_v1, 0.0  ;;  %v13048_v45 = vadd.f32 %v12801_v12, %v11854_v59  ;;  %v14244_v33 = vadd.f32 %v28548_v52, %v13050_v31  ;;  %v27063_v40 = vpop.permute.xlu1 %10500  ;;  %v28555_v31 = vld [vmem:[#allocation268_spill] sm:$0xff] }
 0x75a   :  { %v18327_v61 = vpop.f32.mrf.mxu0  ;;  %v10668_v27 = vadd.f32 %v28551_v50, %v28550_v35  ;;  %v11858_v15 = vadd.f32 %v28557_v29, %v10665_v16  ;;  %v28559_v35 = vld [vmem:[#allocation103_spill] sm:$0xff]  ;;  %v28560_v50 = vld [vmem:[#allocation270_spill] sm:$0xff] }
 0x75b   :  { %v27057_v8 = vpack.c.bf16 %v14367_v25, %v14366_v24  ;;  %v13051_v43 = vadd.f32 %v18327_v61, %v11857_v46  ;;  %15100 = vmatmul.mubr.bf16.gmra.mxu1 %v17339_v5  ;;  %v14242_v1 = vadd.f32 %v28552_v41, %v13048_v45  ;;  %v11860_v24 = vadd.f32 %v28554_v37, %v10667_v34  ;;  %v14443_v5 = vld [vmem:[%s27634_s6 + $0x108] sm:$0xff]  ;;  %v28556_v46 = vld [vmem:[#allocation320_spill] sm:$0xff]  ;;  %v27078_v61 = vpop.f32.mrf.mxu1 }
 0x75c   :  { %v12804_v59 = vpop.f32.mrf.mxu0  ;;  %15107 = vmatprep.mubr.bf16.mxu1 %v17348_v62  ;;  %v10666_v62 = vadd.f32 %v28556_v46, %v28555_v31  ;;  %v17347_v45 = vcombine.low %v27034_v13, %v14439_v20  ;;  %v14372_v52 = vmax.f32 %v14244_v33, 0.0  ;;  %v17356_v23 = vcombine.high %v14443_v5, %v14447_v60  ;;  %v10416_v31 = vpop.permute.xlu0 %10415  ;;  %v28562_v20 = vld [vmem:[#allocation272_spill] sm:$0xff] }
 0x75d   :  { %v13049_v26 = vadd.f32 %v12804_v59, %v11855_v49  ;;  %v14245_v12 = vadd.f32 %v28553_v30, %v13051_v43  ;;  %v10671_v59 = vadd.f32 %v28560_v50, %v28559_v35  ;;  %v28561_v30 = vld [vmem:[#allocation149_spill] sm:$0xff]  ;;  %v14370_v46 = vmax.f32 %v14242_v1, 0.0  ;;  %v28566_v1 = vld [vmem:[#allocation274_spill] sm:$0xff] }
 0x75e   :  { %v18330_v25 = vpop.f32.mrf.mxu0  ;;  %v11861_v37 = vadd.f32 %v28561_v30, %v10668_v27  ;;  %v10669_v29 = vadd.f32 %v10416_v31, %v28562_v20  ;;  %v28564_v27 = vld [vmem:[#allocation151_spill] sm:$0xff]  ;;  %v28565_v30 = vld [vmem:[#allocation2_spill] sm:$0xff]  ;;  %v28568_v20 = vld [vmem:[#allocation153_spill] sm:$0xff] }
 0x75f   :  { %v14373_v34 = vmax.f32 %v14245_v12, 0.0  ;;  %v13054_v43 = vadd.f32 %v18330_v25, %v11860_v24  ;;  %v14243_v49 = vadd.f32 %v28558_v39, %v13049_v26  ;;  %v27087_v12 = vpop.f32.mrf.mxu1  ;;  %v10421_v24 = vpop.permute.xlu1 %10420  ;;  %v28563_v25 = vld [vmem:[#allocation112_spill] sm:$0xff]  ;;  %v11859_v50 = vadd.f32 %v28564_v27, %v10666_v62  ;;  %v27106_v62 = vld [vmem:[%s27634_s6 + $0x168] sm:$0xff]  ;;  %v28571_v27 = vld [vmem:[#allocation6_spill] sm:$0xff] }
 0x760   :  { %v12817_v41 = vpop.f32.mrf.mxu0  ;;  %v11864_v19 = vadd.f32 %v28568_v20, %v10671_v59 }
 0x761   :  { %v27084_v36 = vpack.c.bf16 %v14373_v34, %v14372_v52  ;;  %v14371_v16 = vmax.f32 %v14243_v49, 0.0  ;;  %v13052_v13 = vadd.f32 %v12817_v41, %v11858_v15  ;;  %v14248_v39 = vadd.f32 %v28563_v25, %v13054_v43  ;;  %v28567_v41 = vld [vmem:[#allocation146_spill] sm:$0xff]  ;;  %v27101_v43 = vld [vmem:[%s27634_s6 + $0x148] sm:$0xff] }
 0x762   :  { %v18331_v33 = vpop.f32.mrf.mxu0  ;;  %v10672_v52 = vadd.f32 %v28566_v1, %v28565_v30 }
 0x763   :  { %v27089_v26 = vpack.c.bf16 %v14371_v16, %v14370_v46  ;;  %v13055_v35 = vadd.f32 %v18331_v33, %v11861_v37  ;;  %15108 = vmatmul.mubr.bf16.gmra.mxu1 %v17347_v45  ;;  %v14246_v15 = vadd.f32 %v26791_v32, %v13052_v13  ;;  %v28569_v45 = vld [vmem:[#allocation276_spill] sm:$0xff]  ;;  %v28570_v46 = vld [vmem:[#allocation155_spill] sm:$0xff]  ;;  %v17355_v16 = vcombine.low %v14443_v5, %v14447_v60  ;;  %v27110_v13 = vpop.f32.mrf.mxu1  ;;  %v28574_v60 = vld [vmem:[#allocation282_spill] sm:$0xff] }
 0x764   :  { %v12820_v34 = vpop.f32.mrf.mxu0  ;;  %15115 = vmatprep.mubr.bf16.mxu1 %v17356_v23  ;;  %v10670_v37 = vadd.f32 %v10421_v24, %v28569_v45  ;;  %v11862_v32 = vadd.f32 %v28570_v46, %v10669_v29  ;;  %v14376_v33 = vmax.f32 %v14248_v39, 0.0  ;;  %v17364_v24 = vcombine.high %v27101_v43, %v27106_v62  ;;  %v28575_v46 = vld [vmem:[#allocation136_spill] sm:$0xff] }
 0x765   :  { %v13053_v49 = vadd.f32 %v12820_v34, %v11859_v50  ;;  %v14249_v31 = vadd.f32 %v28567_v41, %v13055_v35  ;;  %v28572_v50 = vld [vmem:[#allocation279_spill] sm:$0xff]  ;;  %v28573_v34 = vld [vmem:[#allocation157_spill] sm:$0xff]  ;;  %v14374_v20 = vmax.f32 %v14246_v15, 0.0  ;;  %v10673_v39 = vadd.f32 %v28575_v46, %v28574_v60  ;;  %v28583_v46 = vld [vmem:[#allocation72_spill] sm:$0xff] }
 0x766   :  { %v18334_v23 = vpop.f32.mrf.mxu0  ;;  %v10675_v30 = vadd.f32 %v28572_v50, %v28571_v27  ;;  %v11865_v41 = vadd.f32 %v28573_v34, %v10672_v52  ;;  %v28577_v52 = vld [vmem:[#allocation90_spill] sm:$0xff]  ;;  %v28578_v34 = vld [vmem:[#allocation284_spill] sm:$0xff] }
 0x767   :  { %v14377_v59 = vmax.f32 %v14249_v31, 0.0  ;;  %v13058_v25 = vadd.f32 %v18334_v23, %v11864_v19  ;;  %v14247_v35 = vadd.f32 %v26823_v3, %v13053_v49  ;;  %v28576_v19 = vld [vmem:[#allocation159_spill] sm:$0xff]  ;;  %v27121_v3 = vpop.f32.mrf.mxu1  ;;  %v10676_v15 = vadd.f32 %v28578_v34, %v28577_v52  ;;  %v28586_v34 = vld [vmem:[#allocation292_spill] sm:$0xff] }
 0x768   :  { %v12833_v1 = vpop.f32.mrf.mxu0  ;;  %v11863_v23 = vadd.f32 %v28576_v19, %v10670_v37 }
 0x769   :  { %v14521_v45 = vpack.c.bf16 %v14377_v59, %v14376_v33  ;;  %v14375_v29 = vmax.f32 %v14247_v35, 0.0  ;;  %v13056_v5 = vadd.f32 %v12833_v1, %v11862_v32  ;;  %v14252_v27 = vadd.f32 %v26834_v47, %v13058_v25  ;;  %v28579_v35 = vld [vmem:[#allocation161_spill] sm:$0xff]  ;;  %v27133_v47 = vld [vmem:[%s27634_s6 + $0x188] sm:$0xff]  ;;  %v28581_v25 = vld [vmem:[#allocation24_spill] sm:$0xff] }
 0x76a   :  { %v18335_v31 = vpop.f32.mrf.mxu0  ;;  %v11868_v1 = vadd.f32 %v28579_v35, %v10675_v30  ;;  %v27145_v30 = vpop.f32.mrf.mxu1 }
 0x76b   :  { %v14520_v49 = vpack.c.bf16 %v14375_v29, %v14374_v20  ;;  %v13059_v50 = vadd.f32 %v18335_v31, %v11865_v41  ;;  %15116 = vmatmul.mubr.bf16.gmra.mxu1 %v17355_v16  ;;  %17802 = vmatprep.subr.bf16.mxu0 %v14521_v45  ;;  %v14250_v32 = vadd.f32 %v26858_v21, %v13056_v5  ;;  %v27138_v16 = vld [vmem:[%s27634_s6 + $0x1a8] sm:$0xff]  ;;  %v14380_v45 = vmax.f32 %v14252_v27, 0.0  ;;  %v28584_v31 = vld [vmem:[#allocation290_spill] sm:$0xff] }
 0x76c   :  { %v12836_v33 = vpop.f32.mrf.mxu0  ;;  %17803 = vmatpush3.bf16.msra.mxu0 %v26983_v38  ;;  %15123 = vmatprep.mubr.bf16.mxu1 %v17364_v24  ;;  %v28580_v38 = vld [vmem:[#allocation287_spill] sm:$0xff]  ;;  %v10679_v19 = vadd.f32 %v28584_v31, %v28583_v46 }
 0x76d   :  { %v13057_v59 = vadd.f32 %v12836_v33, %v11863_v23  ;;  %v14253_v37 = vadd.f32 %v26872_v11, %v13059_v50  ;;  %17804 = vmatprep.subr.bf16.mxu0 %v14520_v49  ;;  %v10674_v41 = vadd.f32 %v28581_v25, %v28580_v38  ;;  %v28582_v24 = vld [vmem:[#allocation163_spill] sm:$0xff]  ;;  %v17363_v11 = vcombine.low %v27101_v43, %v27106_v62  ;;  %v28585_v49 = vld [vmem:[#allocation165_spill] sm:$0xff] }
 0x76e   :  { %v18338_v21 = vpop.f32.mrf.mxu0  ;;  %v11866_v20 = vadd.f32 %v28582_v24, %v10673_v39  ;;  %v11869_v50 = vadd.f32 %v28585_v49, %v10676_v15  ;;  %v17372_v39 = vcombine.high %v27133_v47, %v27138_v16  ;;  %v14378_v52 = vmax.f32 %v14250_v32, 0.0  ;;  %v28589_v38 = vld [vmem:[#allocation83_spill] sm:$0xff] }
 0x76f   :  { %v14381_v29 = vmax.f32 %v14253_v37, 0.0  ;;  %v13062_v5 = vadd.f32 %v18338_v21, %v11868_v1  ;;  %v14251_v60 = vadd.f32 %v26898_v22, %v13057_v59  ;;  %v28587_v22 = vld [vmem:[#allocation229_spill] sm:$0xff]  ;;  %v27159_v37 = vpop.f32.mrf.mxu1  ;;  %v28588_v1 = vld [vmem:[#allocation167_spill] sm:$0xff] }
 0x770   :  { %v12849_v23 = vpop.f32.mrf.mxu0  ;;  %17805 = vmatpush3.bf16.msra.mxu0 %v26989_v9  ;;  %v10677_v33 = vadd.f32 %v28587_v22, %v28586_v34  ;;  %v11867_v32 = vadd.f32 %v28588_v1, %v10674_v41  ;;  %v28590_v25 = vld [vmem:[#allocation295_spill] sm:$0xff]  ;;  %v28597_v34 = vld [vmem:[#allocation173_spill] sm:$0xff] }
 0x771   :  { %v27154_v43 = vpack.c.bf16 %v14381_v29, %v14380_v45  ;;  %v14379_v62 = vmax.f32 %v14251_v60, 0.0  ;;  %v13060_v27 = vadd.f32 %v12849_v23, %v11866_v20  ;;  %17806 = vmatprep.subr.bf16.mxu0 %v27084_v36  ;;  %v14256_v9 = vadd.f32 %v26911_v7, %v13062_v5  ;;  %v28591_v29 = vld [vmem:[#allocation169_spill] sm:$0xff]  ;;  %v27175_v41 = vld [vmem:[%s27634_s6 + $0x1c8] sm:$0xff]  ;;  %v28593_v5 = vld [vmem:[#allocation22_spill] sm:$0xff] }
 0x772   :  { %v18339_v59 = vpop.f32.mrf.mxu0  ;;  %v10680_v21 = vadd.f32 %v28590_v25, %v28589_v38  ;;  %v11872_v7 = vadd.f32 %v28591_v29, %v10679_v19  ;;  %v28594_v46 = vld [vmem:[#allocation171_spill] sm:$0xff]  ;;  %v28599_v1 = vld [vmem:[#allocation341_spill] sm:$0xff] }
 0x773   :  { %v27161_v35 = vpack.c.bf16 %v14379_v62, %v14378_v52  ;;  %v13063_v15 = vadd.f32 %v18339_v59, %v11869_v50  ;;  %15124 = vmatmul.mubr.bf16.gmra.mxu1 %v17363_v11  ;;  %v14254_v36 = vadd.f32 %v26928_v56, %v13060_v27  ;;  %v14471_v11 = vld [vmem:[%s27634_s6 + $0x1e8] sm:$0xff]  ;;  %v11870_v31 = vadd.f32 %v28594_v46, %v10677_v33  ;;  %v28596_v52 = vld [vmem:[#allocation300_spill] sm:$0xff] }
 0x774   :  { %v12852_v24 = vpop.f32.mrf.mxu0  ;;  %17807 = vmatpush3.bf16.msra.mxu0 %v26937_v2  ;;  %15131 = vmatprep.mubr.bf16.mxu1 %v17372_v39  ;;  %v28592_v2 = vld [vmem:[#allocation298_spill] sm:$0xff]  ;;  %v14384_v19 = vmax.f32 %v14256_v9, 0.0  ;;  %v28595_v39 = vld [vmem:[#allocation309_spill] sm:$0xff]  ;;  %v11873_v22 = vadd.f32 %v28597_v34, %v10680_v21  ;;  %v17380_v33 = vcombine.high %v27175_v41, %v14471_v11  ;;  %v28598_v9 = vld [vmem:[#allocation303_spill] sm:$0xff] }
 0x775   :  { %v13061_v20 = vadd.f32 %v12852_v24, %v11867_v32  ;;  %v14257_v45 = vadd.f32 %v26942_v4, %v13063_v15  ;;  %17808 = vmatprep.subr.bf16.mxu0 %v27089_v26  ;;  %v10678_v60 = vadd.f32 %v28593_v5, %v28592_v2  ;;  %v17371_v4 = vcombine.low %v27133_v47, %v27138_v16  ;;  %v27185_v26 = vpop.f32.mrf.mxu1  ;;  %v28600_v24 = vld [vmem:[#allocation175_spill] sm:$0xff]  ;;  %v28604_v46 = vld [vmem:[#allocation308_spill] sm:$0xff] }
 0x776   :  { %v18342_v56 = vpop.f32.mrf.mxu0  ;;  %v10683_v62 = vadd.f32 %v28596_v52, %v28595_v39  ;;  %v14382_v59 = vmax.f32 %v14254_v36, 0.0 }
 0x777   :  { %v14385_v23 = vmax.f32 %v14257_v45, 0.0  ;;  %v13066_v49 = vadd.f32 %v18342_v56, %v11872_v7  ;;  %v14255_v50 = vadd.f32 %v26964_v48, %v13061_v20  ;;  %v10681_v48 = vadd.f32 %v28599_v1, %v28598_v9  ;;  %v27198_v38 = vpop.f32.mrf.mxu1  ;;  %v28601_v20 = vld [vmem:[#allocation312_spill] sm:$0xff]  ;;  %v28602_v45 = vld [vmem:[#allocation306_spill] sm:$0xff]  ;;  %v28603_v56 = vld [vmem:[#allocation177_spill] sm:$0xff] }
 0x778   :  { %v12865_v27 = vpop.f32.mrf.mxu0  ;;  %17809 = vmatpush3.bf16.msra.mxu0 %v26944_v58  ;;  %v11871_v36 = vadd.f32 %v28600_v24, %v10678_v60  ;;  %v10684_v29 = vadd.f32 %v28602_v45, %v28601_v20  ;;  %v28612_v24 = vld [vmem:[#allocation3_spill] sm:$0xff] }
 0x779   :  { %v27193_v15 = vpack.c.bf16 %v14385_v23, %v14384_v19  ;;  %v14383_v47 = vmax.f32 %v14255_v50, 0.0  ;;  %v13064_v16 = vadd.f32 %v12865_v27, %v11870_v31  ;;  %17810 = vmatprep.subr.bf16.mxu0 %v27049_v18  ;;  %v14260_v58 = vadd.f32 %v26987_v51, %v13066_v49  ;;  %v28605_v31 = vld [vmem:[#allocation344_spill] sm:$0xff]  ;;  %v28606_v19 = vld [vmem:[#allocation179_spill] sm:$0xff]  ;;  %v27215_v50 = vpop.f32.mrf.mxu1 }
 0x77a   :  { %v18343_v32 = vpop.f32.mrf.mxu0  ;;  %v11876_v51 = vadd.f32 %v28603_v56, %v10683_v62  ;;  %v11874_v23 = vadd.f32 %v28606_v19, %v10681_v48  ;;  %v17379_v49 = vcombine.low %v27175_v41, %v14471_v11  ;;  %v28608_v27 = vld [vmem:[#allocation311_spill] sm:$0xff]  ;;  %v28609_v62 = vld [vmem:[#allocation181_spill] sm:$0xff]  ;;  %v28618_v19 = vld [vmem:[#allocation322_spill] sm:$0xff] }
 0x77b   :  { %v27200_v25 = vpack.c.bf16 %v14383_v47, %v14382_v59  ;;  %v13067_v21 = vadd.f32 %v18343_v32, %v11873_v22  ;;  %15132 = vmatmul.mubr.bf16.gmra.mxu1 %v17371_v4  ;;  %v14258_v18 = vadd.f32 %v27010_v14, %v13064_v16  ;;  %v10682_v4 = vadd.f32 %v28605_v31, %v28604_v46  ;;  %v28610_v16 = vld [vmem:[#allocation314_spill] sm:$0xff]  ;;  %v27229_v1 = vpop.f32.mrf.mxu1 }
 0x77c   :  { %v12868_v7 = vpop.f32.mrf.mxu0  ;;  %17811 = vmatpush3.bf16.msra.mxu0 %v26906_v55  ;;  %15139 = vmatprep.mubr.bf16.mxu1 %v17380_v33  ;;  %v14388_v55 = vmax.f32 %v14260_v58, 0.0  ;;  %v11877_v22 = vadd.f32 %v28609_v62, %v10684_v29  ;;  %v17328_v33 = vcombine.high %v26970_v0, %v26975_v57  ;;  %v28611_v58 = vld [vmem:[#allocation183_spill] sm:$0xff] }
 0x77d   :  { %v13065_v2 = vadd.f32 %v12868_v7, %v11871_v36  ;;  %v14261_v5 = vadd.f32 %v27020_v54, %v13067_v21  ;;  %17812 = vmatprep.subr.bf16.mxu0 %v27057_v8  ;;  %v28607_v54 = vld [vmem:[#allocation8_spill] sm:$0xff]  ;;  %v14386_v59 = vmax.f32 %v14258_v18, 0.0  ;;  %v11875_v21 = vadd.f32 %v28611_v58, %v10682_v4  ;;  %v28614_v7 = vld [vmem:[#allocation185_spill] sm:$0xff]  ;;  %v27251_v46 = vpop.f32.mrf.mxu1 }
 0x77e   :  { %v18346_v60 = vpop.f32.mrf.mxu0  ;;  %v10687_v8 = vadd.f32 %v28608_v27, %v28607_v54  ;;  %v28613_v36 = vld [vmem:[#allocation316_spill] sm:$0xff] }
 0x77f   :  { %v14389_v39 = vmax.f32 %v14261_v5, 0.0  ;;  %v13070_v14 = vadd.f32 %v18346_v60, %v11876_v51  ;;  %v14259_v52 = vadd.f32 %v27042_v17, %v13065_v2  ;;  %v10685_v17 = vadd.f32 %v27055_v28, %v28610_v16  ;;  %v14420_v18 = vld [vmem:[%s27634_s6 + $0x50] sm:$0xff]  ;;  %v28615_v5 = vld [vmem:[#allocation319_spill] sm:$0xff]  ;;  %v28617_v60 = vld [vmem:[#allocation42_spill] sm:$0xff] }
 0x780   :  { %v12881_v34 = vpop.f32.mrf.mxu0  ;;  %17813 = vmatpush3.bf16.msra.mxu0 %v26913_v44  ;;  %v10688_v20 = vadd.f32 %v28613_v36, %v28612_v24  ;;  %v14424_v2 = vld [vmem:[%s27634_s6 + $0x70] sm:$0xff] }
 0x781   :  { %v27224_v41 = vpack.c.bf16 %v14389_v39, %v14388_v55  ;;  %v14387_v11 = vmax.f32 %v14259_v52, 0.0  ;;  %v13068_v47 = vadd.f32 %v12881_v34, %v11874_v23  ;;  %17814 = vmatprep.subr.bf16.mxu0 %v27016_v63  ;;  %v14264_v44 = vadd.f32 %v27053_v10, %v13070_v14  ;;  %v28619_v55 = vld [vmem:[#allocation189_spill] sm:$0xff]  ;;  %v28621_v34 = vld [vmem:[#allocation239_spill] sm:$0xff] }
 0x782   :  { %v18347_v9 = vpop.f32.mrf.mxu0  ;;  %v11880_v10 = vadd.f32 %v28614_v7, %v10687_v8  ;;  %v10691_v23 = vadd.f32 %v28618_v19, %v28617_v60  ;;  %v11881_v39 = vadd.f32 %v28619_v55, %v10688_v20  ;;  %v17334_v14 = vcombine.high %v14420_v18, %v14424_v2  ;;  %v28620_v8 = vld [vmem:[#allocation324_spill] sm:$0xff]  ;;  %v28630_v7 = vld [vmem:[#allocation241_spill] sm:$0xff] }
 0x783   :  { %v27231_v48 = vpack.c.bf16 %v14387_v11, %v14386_v59  ;;  %v13071_v32 = vadd.f32 %v18347_v9, %v11877_v22  ;;  %15140 = vmatmul.mubr.bf16.gmra.mxu1 %v17379_v49  ;;  %v14262_v63 = vadd.f32 %v27078_v61, %v13068_v47  ;;  %v28616_v61 = vld [vmem:[#allocation187_spill] sm:$0xff]  ;;  %v10689_v62 = vadd.f32 %v28621_v34, %v28620_v8  ;;  %v28623_v47 = vld [vmem:[#allocation140_spill] sm:$0xff] }
 0x784   :  { %v12884_v45 = vpop.f32.mrf.mxu0  ;;  %17815 = vmatpush3.bf16.msra.mxu0 %v26867_v42  ;;  %15277 = vmatprep.mubr.bf16.mxu1 %v17328_v33  ;;  %v10686_v42 = vadd.f32 %v27063_v40, %v28615_v5  ;;  %v11878_v51 = vadd.f32 %v28616_v61, %v10685_v17  ;;  %v27262_v33 = vpop.f32.mrf.mxu1  ;;  %v28625_v17 = vld [vmem:[#allocation191_spill] sm:$0xff] }
 0x785   :  { %v13069_v28 = vadd.f32 %v12884_v45, %v11875_v21  ;;  %v14265_v29 = vadd.f32 %v27087_v12, %v13071_v32  ;;  %17816 = vmatprep.subr.bf16.mxu0 %v27022_v53  ;;  %v14392_v12 = vmax.f32 %v14264_v44, 0.0  ;;  %v14390_v40 = vmax.f32 %v14262_v63, 0.0  ;;  %v28626_v44 = vld [vmem:[#allocation40_spill] sm:$0xff]  ;;  %v28627_v32 = vld [vmem:[#allocation327_spill] sm:$0xff]  ;;  %v28628_v45 = vld [vmem:[#allocation193_spill] sm:$0xff] }
 0x786   :  { %v18350_v56 = vpop.f32.mrf.mxu0  ;;  %v11879_v9 = vadd.f32 %v28625_v17, %v10686_v42  ;;  %v10692_v58 = vadd.f32 %v28627_v32, %v28626_v44  ;;  %v11884_v63 = vadd.f32 %v28628_v45, %v10691_v23  ;;  %v28631_v42 = vld [vmem:[#allocation195_spill] sm:$0xff]  ;;  %v14123_v61 = vpop.f32.mrf.mxu1  ;;  %v28634_v23 = vld [vmem:[#allocation197_spill] sm:$0xff] }
 0x787   :  { %v14393_v53 = vmax.f32 %v14265_v29, 0.0  ;;  %v13074_v31 = vadd.f32 %v18350_v56, %v11880_v10  ;;  %v14263_v4 = vadd.f32 %v27110_v13, %v13069_v28  ;;  %v14432_v28 = vld [vmem:[%s27634_s6 + $0xb0] sm:$0xff]  ;;  %v28629_v29 = vld [vmem:[#allocation330_spill] sm:$0xff]  ;;  %v11882_v56 = vadd.f32 %v28631_v42, %v10689_v62 }
 0x788   :  { %v12897_v49 = vpop.f32.mrf.mxu0  ;;  %17817 = vmatpush3.bf16.msra.mxu0 %v26874_v6  ;;  %v28622_v6 = vld [vmem:[#allocation44_spill] sm:$0xff]  ;;  %v10690_v10 = vadd.f32 %v28630_v7, %v28629_v29  ;;  %v18503_v34 = vpop.f32.mrf.mxu1  ;;  %v28643_v29 = vld [vmem:[#allocation203_spill] sm:$0xff] }
 0x789   :  { %v27258_v52 = vpack.c.bf16 %v14393_v53, %v14392_v12  ;;  %v14391_v54 = vmax.f32 %v14263_v4, 0.0  ;;  %v13072_v27 = vadd.f32 %v12897_v49, %v11878_v51  ;;  %v14268_v59 = vadd.f32 %v27121_v3, %v13074_v31  ;;  %v14428_v3 = vld [vmem:[%s27634_s6 + $0x90] sm:$0xff] }
 0x78a   :  { %v18351_v22 = vpop.f32.mrf.mxu0  ;;  %v28624_v16 = vcombine.low %v28622_v6, %v28623_v47  ;;  %v28632_v31 = vld [vmem:[#allocation92_spill] sm:$0xff]  ;;  %v11885_v49 = vadd.f32 %v28634_v23, %v10692_v58  ;;  %v17342_v55 = vcombine.high %v14428_v3, %v14432_v28  ;;  %v28638_v6 = vld [vmem:[#allocation99_spill] sm:$0xff]  ;;  %v28639_v47 = vld [vmem:[#allocation338_spill] sm:$0xff] }
 0x78b   :  { %v27264_v13 = vpack.c.bf16 %v14391_v54, %v14390_v40  ;;  %v13075_v11 = vadd.f32 %v18351_v22, %v11881_v39  ;;  %v14266_v24 = vadd.f32 %v27145_v30, %v13072_v27  ;;  %v17333_v30 = vcombine.low %v14420_v18, %v14424_v2  ;;  %v28633_v4 = vld [vmem:[#allocation332_spill] sm:$0xff]  ;;  %v28635_v27 = vld [vmem:[#allocation335_spill] sm:$0xff]  ;;  %v28636_v18 = vld [vmem:[#allocation109_spill] sm:$0xff] }
 0x78c   :  { %15181 = vmatmul.mubr.bf16.vlgmr.msra.gmra.mxu0 %v28624_v16  ;;  %v12900_v21 = vpop.f32.mrf.mxu0  ;;  %v14396_v51 = vmax.f32 %v14268_v59, 0.0  ;;  %v10695_v60 = vadd.f32 %v28633_v4, %v28632_v31  ;;  %v10693_v2 = vadd.f32 %v28636_v18, %v28635_v27  ;;  %v28637_v59 = vld [vmem:[#allocation199_spill] sm:$0xff]  ;;  %v10696_v16 = vadd.f32 %v28639_v47, %v28638_v6  ;;  %v28640_v58 = vld [vmem:[#allocation201_spill] sm:$0xff] }
 0x78d   :  { %15188 = vmatprep.mubr.bf16.mxu0 %v17334_v14  ;;  %v13073_v36 = vadd.f32 %v12900_v21, %v11879_v9  ;;  %v14269_v20 = vadd.f32 %v27159_v37, %v13075_v11  ;;  %v14394_v39 = vmax.f32 %v14266_v24, 0.0  ;;  %v11883_v11 = vadd.f32 %v28637_v59, %v10690_v10  ;;  %v14440_v24 = vld [vmem:[%s27634_s6 + $0xf0] sm:$0xff]  ;;  %v14126_v10 = vpop.f32.mrf.mxu1  ;;  %v28649_v18 = vld [vmem:[#allocation207_spill] sm:$0xff] }
 0x78e   :  { %v18354_v5 = vpop.f32.mrf.mxu0  ;;  %v11888_v21 = vadd.f32 %v28640_v58, %v10695_v60  ;;  %v11886_v7 = vadd.f32 %v28643_v29, %v10693_v2 }
 0x78f   :  { %v14397_v37 = vmax.f32 %v14269_v20, 0.0  ;;  %v13078_v12 = vadd.f32 %v18354_v5, %v11884_v63  ;;  %v14267_v53 = vadd.f32 %v27185_v26, %v13073_v36  ;;  %v28641_v36 = vld [vmem:[#allocation340_spill] sm:$0xff]  ;;  %v28642_v20 = vld [vmem:[#allocation126_spill] sm:$0xff] }
 0x790   :  { %v12913_v19 = vpop.f32.mrf.mxu0  ;;  %v10694_v45 = vadd.f32 %v28642_v20, %v28641_v36  ;;  %v28655_v36 = vld [vmem:[#allocation211_spill] sm:$0xff] }
 0x791   :  { %v27289_v14 = vpack.c.bf16 %v14397_v37, %v14396_v51  ;;  %v14395_v40 = vmax.f32 %v14267_v53, 0.0  ;;  %v13076_v54 = vadd.f32 %v12913_v19, %v11882_v56  ;;  %v14272_v26 = vadd.f32 %v27198_v38, %v13078_v12  ;;  %v14436_v38 = vld [vmem:[%s27634_s6 + $0xd0] sm:$0xff]  ;;  %v28645_v51 = vld [vmem:[#allocation343_spill] sm:$0xff]  ;;  %v28646_v53 = vld [vmem:[#allocation205_spill] sm:$0xff] }
 0x792   :  { %v18355_v8 = vpop.f32.mrf.mxu0  ;;  %v11889_v31 = vadd.f32 %v28646_v53, %v10696_v16  ;;  %v17350_v4 = vcombine.high %v14436_v38, %v14440_v24  ;;  %v11887_v2 = vadd.f32 %v28649_v18, %v10694_v45  ;;  %v28652_v16 = vld [vmem:[#allocation209_spill] sm:$0xff] }
 0x793   :  { %v27293_v62 = vpack.c.bf16 %v14395_v40, %v14394_v39  ;;  %v13079_v22 = vadd.f32 %v18355_v8, %v11885_v49  ;;  %v14270_v9 = vadd.f32 %v27215_v50, %v13076_v54  ;;  %v17341_v50 = vcombine.low %v14428_v3, %v14432_v28  ;;  %v28648_v3 = vld [vmem:[#allocation333_spill] sm:$0xff]  ;;  %v18506_v40 = vpop.f32.mrf.mxu1  ;;  %v28650_v8 = vld [vmem:[#allocation304_spill] sm:$0xff] }
 0x794   :  { %15189 = vmatmul.mubr.bf16.gmra.mxu0 %v17333_v30  ;;  %v12916_v17 = vpop.f32.mrf.mxu0  ;;  %v14400_v5 = vmax.f32 %v14272_v26, 0.0  ;;  %v28644_v30 = vld [vmem:[#allocation301_spill] sm:$0xff] }
 0x795   :  { %15196 = vmatprep.mubr.bf16.mxu0 %v17342_v55  ;;  %v13077_v44 = vadd.f32 %v12916_v17, %v11883_v11  ;;  %v14273_v32 = vadd.f32 %v27229_v1, %v13079_v22  ;;  %v10699_v37 = vadd.f32 %v28645_v51, %v28644_v30  ;;  %v14398_v60 = vmax.f32 %v14270_v9, 0.0  ;;  %v28647_v55 = vld [vmem:[#allocation346_spill] sm:$0xff]  ;;  %v28651_v26 = vld [vmem:[#allocation113_spill] sm:$0xff]  ;;  %v14444_v9 = vld [vmem:[%s27634_s6 + $0x110] sm:$0xff]  ;;  %v14139_v45 = vpop.f32.mrf.mxu1 }
 0x796   :  { %v18358_v63 = vpop.f32.mrf.mxu0  ;;  %v10697_v28 = vadd.f32 %v28648_v3, %v28647_v55  ;;  %v10700_v22 = vadd.f32 %v28651_v26, %v28650_v8  ;;  %v14452_v3 = vld [vmem:[%s27634_s6 + $0x150] sm:$0xff] }
 0x797   :  { %v14401_v1 = vmax.f32 %v14273_v32, 0.0  ;;  %v13082_v42 = vadd.f32 %v18358_v63, %v11888_v21  ;;  %v14271_v56 = vadd.f32 %v27251_v46, %v13077_v44  ;;  %v11892_v17 = vadd.f32 %v28652_v16, %v10699_v37  ;;  %v28653_v44 = vld [vmem:[#allocation130_spill] sm:$0xff]  ;;  %v28654_v32 = vld [vmem:[#allocation336_spill] sm:$0xff]  ;;  %v18507_v53 = vpop.f32.mrf.mxu1 }
 0x798   :  { %v12929_v12 = vpop.f32.mrf.mxu0  ;;  %v10698_v58 = vadd.f32 %v28654_v32, %v28653_v44  ;;  %v11890_v20 = vadd.f32 %v28655_v36, %v10697_v28  ;;  %v14456_v28 = vld [vmem:[%s27634_s6 + $0x170] sm:$0xff]  ;;  %v14437_v36 = vld [vmem:[%s27634_s6 + $0xd8] sm:$0xff] }
 0x799   :  { %v27315_v19 = vpack.c.bf16 %v14401_v1, %v14400_v5  ;;  %v14399_v23 = vmax.f32 %v14271_v56, 0.0  ;;  %v13080_v49 = vadd.f32 %v12929_v12, %v11886_v7  ;;  %v14276_v46 = vadd.f32 %v27262_v33, %v13082_v42  ;;  %v14448_v33 = vld [vmem:[%s27634_s6 + $0x130] sm:$0xff]  ;;  %v28656_v5 = vld [vmem:[#allocation213_spill] sm:$0xff] }
 0x79a   :  { %v18359_v39 = vpop.f32.mrf.mxu0  ;;  %v11893_v1 = vadd.f32 %v28656_v5, %v10700_v22  ;;  %v17358_v42 = vcombine.high %v14444_v9, %v14448_v33  ;;  %v17357_v18 = vcombine.low %v14444_v9, %v14448_v33 }
 0x79b   :  { %v27319_v54 = vpack.c.bf16 %v14399_v23, %v14398_v60  ;;  %v13083_v27 = vadd.f32 %v18359_v39, %v11889_v31  ;;  %v14274_v11 = vadd.f32 %v14123_v61, %v13080_v49  ;;  %v17349_v61 = vcombine.low %v14436_v38, %v14440_v24  ;;  %v28657_v23 = vld [vmem:[#allocation215_spill] sm:$0xff]  ;;  %v14142_v39 = vpop.f32.mrf.mxu1 }
 0x79c   :  { %15197 = vmatmul.mubr.bf16.gmra.mxu0 %v17341_v50  ;;  %v12932_v59 = vpop.f32.mrf.mxu0  ;;  %v14404_v63 = vmax.f32 %v14276_v46, 0.0  ;;  %v11891_v38 = vadd.f32 %v28657_v23, %v10698_v58  ;;  %v14453_v23 = vld [vmem:[%s27634_s6 + $0x158] sm:$0xff] }
 0x79d   :  { %15204 = vmatprep.mubr.bf16.mxu0 %v17350_v4  ;;  %v13081_v6 = vadd.f32 %v12932_v59, %v11887_v2  ;;  %v14277_v47 = vadd.f32 %v18503_v34, %v13083_v27  ;;  %v14402_v56 = vmax.f32 %v14274_v11, 0.0  ;;  %v17366_v2 = vcombine.high %v14452_v3, %v14456_v28  ;;  %v14460_v11 = vld [vmem:[%s27634_s6 + $0x190] sm:$0xff] }
 0x79e   :  { %v18362_v21 = vpop.f32.mrf.mxu0 }
 0x79f   :  { %v14405_v34 = vmax.f32 %v14277_v47, 0.0  ;;  %v13086_v29 = vadd.f32 %v18362_v21, %v11892_v17  ;;  %v14275_v7 = vadd.f32 %v14126_v10, %v13081_v6  ;;  %v14464_v6 = vld [vmem:[%s27634_s6 + $0x1b0] sm:$0xff]  ;;  %v17365_v47 = vcombine.low %v14452_v3, %v14456_v28 }
 0x7a0   :  { %v12945_v50 = vpop.f32.mrf.mxu0  ;;  %v17374_v16 = vcombine.high %v14460_v11, %v14464_v6  ;;  %v14472_v17 = vld [vmem:[%s27634_s6 + $0x1f0] sm:$0xff]  ;;  %v17373_v9 = vcombine.low %v14460_v11, %v14464_v6 }
 0x7a1   :  { %v14535_v30 = vpack.c.bf16 %v14405_v34, %v14404_v63  ;;  %v14403_v51 = vmax.f32 %v14275_v7, 0.0  ;;  %v13084_v37 = vadd.f32 %v12945_v50, %v11890_v20  ;;  %v14280_v4 = vadd.f32 %v18506_v40, %v13086_v29  ;;  %v14441_v20 = vld [vmem:[%s27634_s6 + $0xf8] sm:$0xff] }
 0x7a2   :  { %v18363_v12 = vpop.f32.mrf.mxu0  ;;  %v17352_v34 = vcombine.high %v14437_v36, %v14441_v20 }
 0x7a3   :  { %v14534_v31 = vpack.c.bf16 %v14403_v51, %v14402_v56  ;;  %v13087_v60 = vadd.f32 %v18363_v12, %v11893_v1  ;;  %v14278_v49 = vadd.f32 %v14139_v45, %v13084_v37  ;;  %v14408_v46 = vmax.f32 %v14280_v4, 0.0  ;;  %v14445_v1 = vld [vmem:[%s27634_s6 + $0x118] sm:$0xff] }
 0x7a4   :  { %15205 = vmatmul.mubr.bf16.gmra.mxu0 %v17349_v61  ;;  %v12948_v24 = vpop.f32.mrf.mxu0  ;;  %v17351_v51 = vcombine.low %v14437_v36, %v14441_v20 }
 0x7a5   :  { %15212 = vmatprep.mubr.bf16.mxu0 %v17358_v42  ;;  %v13085_v10 = vadd.f32 %v12948_v24, %v11891_v38  ;;  %v14281_v55 = vadd.f32 %v18507_v53, %v13087_v60  ;;  %v14406_v8 = vmax.f32 %v14278_v49, 0.0  ;;  %v14449_v42 = vld [vmem:[%s27634_s6 + $0x138] sm:$0xff]  ;;  %v27416_v49 = vpop.permute.xlu1 %14631 }
 0x7a6   :  { %v17360_v37 = vcombine.high %v14445_v1, %v14449_v42  ;;  %v14457_v38 = vld [vmem:[%s27634_s6 + $0x178] sm:$0xff] }
 0x7a7   :  { %v14409_v40 = vmax.f32 %v14281_v55, 0.0  ;;  %v14279_v27 = vadd.f32 %v14142_v39, %v13085_v10  ;;  %v17359_v55 = vcombine.low %v14445_v1, %v14449_v42  ;;  %v17368_v3 = vcombine.high %v14453_v23, %v14457_v38 }
 0x7a8   :  { %v17367_v11 = vcombine.low %v14453_v23, %v14457_v38 }
 0x7a9   :  { %v14537_v26 = vpack.c.bf16 %v14409_v40, %v14408_v46  ;;  %v14407_v22 = vmax.f32 %v14279_v27, 0.0  ;;  %v27422_v27 = vpop.permute.xlu1 %14621 }
 0x7ab   :  { %v14536_v59 = vpack.c.bf16 %v14407_v22, %v14406_v8  ;;  %17866 = vmatprep.subr.bf16.mxu1 %v14537_v26  ;;  %v14465_v8 = vld [vmem:[%s27634_s6 + $0x1b8] sm:$0xff] }
 0x7ac   :  { %15213 = vmatmul.mubr.bf16.gmra.mxu0 %v17357_v18  ;;  %17867 = vmatpush3.bf16.msra.mxu1 %v27258_v52  ;;  %v14468_v52 = vld [vmem:[%s27634_s6 + $0x1d0] sm:$0xff] }
 0x7ad   :  { %15220 = vmatprep.mubr.bf16.mxu0 %v17366_v2  ;;  %17868 = vmatprep.subr.bf16.mxu1 %v14536_v59  ;;  %v17382_v33 = vcombine.high %v14468_v52, %v14472_v17  ;;  %v14461_v2 = vld [vmem:[%s27634_s6 + $0x198] sm:$0xff] }
 0x7ae   :  { %v17376_v6 = vcombine.high %v14461_v2, %v14465_v8 }
 0x7b0   :  { %17869 = vmatpush3.bf16.msra.mxu1 %v27264_v13 }
 0x7b1   :  { %17870 = vmatprep.subr.bf16.mxu1 %v14535_v30 }
 0x7b4   :  { %15221 = vmatmul.mubr.bf16.gmra.mxu0 %v17365_v47  ;;  %17871 = vmatpush3.bf16.msra.mxu1 %v27224_v41  ;;  %v17381_v41 = vcombine.low %v14468_v52, %v14472_v17  ;;  %v27436_v52 = vpop.permute.xlu1 %14611 }
 0x7b5   :  { %15228 = vmatprep.mubr.bf16.mxu0 %v17374_v16  ;;  %17872 = vmatprep.subr.bf16.mxu1 %v14534_v31  ;;  %v27406_v31 = vpop.permute.xlu0 %14626 }
 0x7b8   :  { %17873 = vmatpush3.bf16.msra.mxu1 %v27231_v48  ;;  %v14421_v48 = vld [vmem:[%s27634_s6 + $0x58] sm:$0xff] }
 0x7b9   :  { %17874 = vmatprep.subr.bf16.mxu1 %v27315_v19  ;;  %v27418_v28 = vpop.permute.xlu0 %14616 }
 0x7bc   :  { %15229 = vmatmul.mubr.bf16.gmra.mxu0 %v17373_v9  ;;  %17875 = vmatpush3.bf16.msra.mxu1 %v27193_v15  ;;  %v14425_v15 = vld [vmem:[%s27634_s6 + $0x78] sm:$0xff] }
 0x7bd   :  { %15236 = vmatprep.mubr.bf16.mxu0 %v17382_v33  ;;  %17876 = vmatprep.subr.bf16.mxu1 %v27319_v54  ;;  %v17336_v13 = vcombine.high %v14421_v48, %v14425_v15  ;;  %v27432_v22 = vpop.permute.xlu0 %14606 }
 0x7c0   :  { %17877 = vmatpush3.bf16.msra.mxu1 %v27200_v25  ;;  %v28658_v25 = vcombine.low %v26970_v0, %v26975_v57 }
 0x7c1   :  { %17878 = vmatprep.subr.bf16.mxu1 %v27289_v14  ;;  %v14429_v14 = vld [vmem:[%s27634_s6 + $0x98] sm:$0xff]  ;;  %v27438_v9 = vpop.permute.xlu0 %14596 }
 0x7c4   :  { %15237 = vmatmul.mubr.bf16.gmra.mxu0 %v17381_v41  ;;  %17879 = vmatpush3.bf16.msra.mxu1 %v27154_v43  ;;  %v14469_v41 = vld [vmem:[%s27634_s6 + $0x1d8] sm:$0xff] }
 0x7c5   :  { %17880 = vmatprep.subr.bf16.mxu1 %v27293_v62  ;;  %v14433_v62 = vld [vmem:[%s27634_s6 + $0xb8] sm:$0xff] }
 0x7c6   :  { %v17344_v32 = vcombine.high %v14429_v14, %v14433_v62  ;;  %v17343_v63 = vcombine.low %v14429_v14, %v14433_v62 }
 0x7c8   :  { %17881 = vmatpush3.bf16.msra.mxu1 %v27161_v35  ;;  %v17335_v35 = vcombine.low %v14421_v48, %v14425_v15  ;;  %v14473_v48 = vld [vmem:[%s27634_s6 + $0x1f8] sm:$0xff] }
 0x7c9   :  { %v17383_v36 = vcombine.low %v14469_v41, %v14473_v48 }
 0x7cb   :  { %v17690_v19 = vpop.f32.mrf.mxu0  ;;  %15278 = vmatmul.mubr.bf16.vlgmr.msra.gmra.mxu1 %v28658_v25  ;;  %v17384_v25 = vcombine.high %v14469_v41, %v14473_v48 }
 0x7cc   :  { %15285 = vmatprep.mubr.bf16.mxu1 %v17336_v13 }
 0x7cd   :  { %v17691_v43 = vpop.f32.mrf.mxu0 }
 0x7ce   :  { %v27382_v54 = vadd.f32 %v17691_v43, %v17690_v19  ;;  %v17375_v19 = vcombine.low %v14461_v2, %v14465_v8  ;;  %v27448_v43 = vpop.permute.xlu1 %14601 }
 0x7cf   :  { %v17693_v44 = vpop.f32.mrf.mxu0 }
 0x7d1   :  { %v17694_v58 = vpop.f32.mrf.mxu0 }
 0x7d2   :  { %v27384_v21 = vadd.f32 %v17694_v58, %v17693_v44  ;;  %v14587_v44 = vpop.permute.xlu0 %14586 }
 0x7d3   :  { %v17696_v0 = vpop.f32.mrf.mxu0  ;;  %15286 = vmatmul.mubr.bf16.gmra.mxu1 %v17335_v35 }
 0x7d4   :  { %15293 = vmatprep.mubr.bf16.mxu1 %v17344_v32 }
 0x7d5   :  { %v17697_v57 = vpop.f32.mrf.mxu0 }
 0x7d6   :  { %v27392_v45 = vadd.f32 %v17697_v57, %v17696_v0  ;;  %v14592_v0 = vpop.permute.xlu1 %14591  ;;  %v14577_v20 = vpop.permute.xlu0 %14576 }
 0x7d7   :  { %v17699_v61 = vpop.f32.mrf.mxu0 }
 0x7d9   :  { %v17700_v29 = vpop.f32.mrf.mxu0 }
 0x7da   :  { %v27394_v7 = vadd.f32 %v17700_v29, %v17699_v61  ;;  %v14582_v29 = vpop.permute.xlu1 %14581  ;;  %v14567_v1 = vpop.permute.xlu0 %14566 }
 0x7db   :  { %v17702_v50 = vpop.f32.mrf.mxu0  ;;  %15294 = vmatmul.mubr.bf16.gmra.mxu1 %v17343_v63  ;;  %v14997_v2 = vadd.f32 %v27392_v45, %v14567_v1 }
 0x7dc   :  { %15301 = vmatprep.mubr.bf16.mxu1 %v17352_v34 }
 0x7dd   :  { %v17703_v5 = vpop.f32.mrf.mxu0 }
 0x7de   :  { %v27402_v56 = vadd.f32 %v17703_v5, %v17702_v50  ;;  %v14572_v42 = vpop.permute.xlu1 %14571 }
 0x7df   :  { %v17705_v30 = vpop.f32.mrf.mxu0 }
 0x7e1   :  { %v17706_v12 = vpop.f32.mrf.mxu0 }
 0x7e2   :  { %v27404_v53 = vadd.f32 %v17706_v12, %v17705_v30  ;;  %v14562_v38 = vpop.permute.xlu1 %14561 }
 0x7e3   :  { %v17708_v4 = vpop.f32.mrf.mxu0  ;;  %15302 = vmatmul.mubr.bf16.gmra.mxu1 %v17351_v51  ;;  %v14557_v51 = vpop.permute.xlu0 %14556 }
 0x7e4   :  { %15309 = vmatprep.mubr.bf16.mxu1 %v17360_v37  ;;  %v14989_v12 = vadd.f32 %v27382_v54, %v14557_v51  ;;  %v15008_v45 = vadd.f32 %v27404_v53, %v14582_v29 }
 0x7e5   :  { %v17709_v60 = vpop.f32.mrf.mxu0 }
 0x7e6   :  { %v27414_v24 = vadd.f32 %v17709_v60, %v17708_v4 }
 0x7e7   :  { %v17711_v10 = vpop.f32.mrf.mxu0 }
 0x7e9   :  { %v17712_v39 = vpop.f32.mrf.mxu0 }
 0x7ea   :  { %v27420_v46 = vadd.f32 %v17712_v39, %v17711_v10 }
 0x7eb   :  { %v17714_v40 = vpop.f32.mrf.mxu0  ;;  %15310 = vmatmul.mubr.bf16.gmra.mxu1 %v17359_v55  ;;  %v14992_v55 = vadd.f32 %v27384_v21, %v14562_v38  ;;  %v15005_v21 = vadd.f32 %v27402_v56, %v14577_v20 }
 0x7ec   :  { %15317 = vmatprep.mubr.bf16.mxu1 %v17368_v3  ;;  %v15016_v56 = vadd.f32 %v27420_v46, %v14592_v0 }
 0x7ed   :  { %v17715_v18 = vpop.f32.mrf.mxu0 }
 0x7ee   :  { %v27430_v26 = vadd.f32 %v17715_v18, %v17714_v40 }
 0x7ef   :  { %v17717_v59 = vpop.f32.mrf.mxu0 }
 0x7f0   :  { %v15021_v53 = vadd.f32 %v27430_v26, %v27438_v9 }
 0x7f1   :  { %v17718_v47 = vpop.f32.mrf.mxu0 }
 0x7f2   :  { %v27434_v16 = vadd.f32 %v17718_v47, %v17717_v59 }
 0x7f3   :  { %v17720_v17 = vpop.f32.mrf.mxu0  ;;  %15318 = vmatmul.mubr.bf16.gmra.mxu1 %v17367_v11 }
 0x7f4   :  { %15325 = vmatprep.mubr.bf16.mxu1 %v17376_v6  ;;  %v15000_v6 = vadd.f32 %v27394_v7, %v14572_v42  ;;  %v15013_v7 = vadd.f32 %v27414_v24, %v14587_v44  ;;  %v15024_v44 = vadd.f32 %v27434_v16, %v27448_v43 }
 0x7f5   :  { %v17721_v33 = vpop.f32.mrf.mxu0 }
 0x7f6   :  { %v27446_v15 = vadd.f32 %v17721_v33, %v17720_v17 }
 0x7f7   :  { %v17723_v13 = vpop.f32.mrf.mxu0 }
 0x7f8   :  { %v15029_v0 = vadd.f32 %v27446_v15, %v27432_v22 }
 0x7f9   :  { %v17724_v14 = vpop.f32.mrf.mxu0 }
 0x7fa   :  { %v27450_v62 = vadd.f32 %v17724_v14, %v17723_v13 }
 0x7fb   :  { %v17726_v35 = vpop.f32.mrf.mxu0  ;;  %15326 = vmatmul.mubr.bf16.gmra.mxu1 %v17375_v19 }
 0x7fc   :  { %15333 = vmatprep.mubr.bf16.mxu1 %v17384_v25  ;;  %v15032_v9 = vadd.f32 %v27450_v62, %v27436_v52 }
 0x7fd   :  { %v17727_v32 = vpop.f32.mrf.mxu0 }
 0x7fe   :  { %v27452_v58 = vadd.f32 %v17727_v32, %v17726_v35 }
 0x7ff   :  { %v17729_v57 = vpop.f32.mrf.mxu0 }
 0x800   :  { %v15037_v43 = vadd.f32 %v27452_v58, %v27418_v28 }
 0x801   :  { %v17730_v61 = vpop.f32.mrf.mxu0 }
 0x802   :  { %v27454_v63 = vadd.f32 %v17730_v61, %v17729_v57 }
 0x803   :  { %v17732_v34 = vpop.f32.mrf.mxu0  ;;  %15334 = vmatmul.mubr.bf16.gmra.mxu1 %v17383_v36 }
 0x804   :  { %v15040_v15 = vadd.f32 %v27454_v63, %v27422_v27 }
 0x805   :  { %v17733_v50 = vpop.f32.mrf.mxu0 }
 0x806   :  { %v27456_v5 = vadd.f32 %v17733_v50, %v17732_v34 }
 0x807   :  { %v27506_v52 = vpop.f32.mrf.mxu0 }
 0x809   :  { %v27512_v58 = vpop.f32.mrf.mxu0 }
 0x80b   :  { %v17754_v30 = vpop.f32.mrf.mxu1 }
 0x80d   :  { %v17755_v37 = vpop.f32.mrf.mxu1 }
 0x80e   :  { %v17756_v4 = vadd.f32 %v17755_v37, %v17754_v30 }
 0x80f   :  { %v17757_v60 = vpop.f32.mrf.mxu1 }
 0x810   :  { %v27459_v23 = vadd.f32 %v17756_v4, %v14989_v12 }
 0x811   :  { %v17758_v10 = vpop.f32.mrf.mxu1 }
 0x812   :  { %v17759_v3 = vadd.f32 %v17758_v10, %v17757_v60 }
 0x813   :  { %v17760_v39 = vpop.f32.mrf.mxu1 }
 0x814   :  { %v27462_v40 = vadd.f32 %v17759_v3, %v14992_v55 }
 0x815   :  { %v17761_v18 = vpop.f32.mrf.mxu1 }
 0x816   :  { %v17762_v8 = vadd.f32 %v17761_v18, %v17760_v39 }
 0x817   :  { %v17763_v59 = vpop.f32.mrf.mxu1 }
 0x818   :  { %v27465_v11 = vadd.f32 %v17762_v8, %v14997_v2 }
 0x819   :  { %v17764_v54 = vpop.f32.mrf.mxu1 }
 0x81a   :  { %v17765_v47 = vadd.f32 %v17764_v54, %v17763_v59 }
 0x81b   :  { %v17766_v17 = vpop.f32.mrf.mxu1 }
 0x81c   :  { %v27468_v33 = vadd.f32 %v17765_v47, %v15000_v6 }
 0x81d   :  { %v17767_v41 = vpop.f32.mrf.mxu1 }
 0x81e   :  { %v17768_v48 = vadd.f32 %v17767_v41, %v17766_v17  ;;  %v15045_v17 = vadd.f32 %v27456_v5, %v27406_v31 }
 0x81f   :  { %v17769_v13 = vpop.f32.mrf.mxu1 }
 0x820   :  { %v27471_v19 = vadd.f32 %v17768_v48, %v15005_v21 }
 0x821   :  { %v17770_v25 = vpop.f32.mrf.mxu1 }
 0x822   :  { %v17771_v14 = vadd.f32 %v17770_v25, %v17769_v13 }
 0x823   :  { %v17772_v35 = vpop.f32.mrf.mxu1 }
 0x824   :  { %v27474_v32 = vadd.f32 %v17771_v14, %v15008_v45 }
 0x825   :  { %v17773_v57 = vpop.f32.mrf.mxu1 }
 0x826   :  { %v17774_v36 = vadd.f32 %v17773_v57, %v17772_v35 }
 0x827   :  { %v17775_v61 = vpop.f32.mrf.mxu1 }
 0x828   :  { %v27477_v34 = vadd.f32 %v17774_v36, %v15013_v7 }
 0x829   :  { %v17776_v50 = vpop.f32.mrf.mxu1 }
 0x82a   :  { %v17777_v20 = vadd.f32 %v17776_v50, %v17775_v61 }
 0x82b   :  { %v17778_v1 = vpop.f32.mrf.mxu1 }
 0x82c   :  { %v27480_v42 = vadd.f32 %v17777_v20, %v15016_v56 }
 0x82d   :  { %v17779_v30 = vpop.f32.mrf.mxu1 }
 0x82e   :  { %v17780_v29 = vadd.f32 %v17779_v30, %v17778_v1 }
 0x82f   :  { %v17781_v51 = vpop.f32.mrf.mxu1 }
 0x830   :  { %v27484_v37 = vadd.f32 %v17780_v29, %v15021_v53  ;;  %v20234_v53 = vld [vmem:[%s27635_s8] sm:$0xff]  }
 0x831   :  { %v17782_v24 = vpop.f32.mrf.mxu1  ;;  %18524 = vmatprep.mubr.bf16.mxu0 %v20234_v53 }
 0x832   :  { %v17783_v12 = vadd.f32 %v17782_v24, %v17781_v51 }
 0x833   :  { %v17784_v4 = vpop.f32.mrf.mxu1 }
 0x834   :  { %v27488_v60 = vadd.f32 %v17783_v12, %v15024_v44 }
 0x835   :  { %v17785_v46 = vpop.f32.mrf.mxu1 }
 0x836   :  { %v17786_v38 = vadd.f32 %v17785_v46, %v17784_v4 }
 0x837   :  { %v17787_v10 = vpop.f32.mrf.mxu1 }
 0x838   :  { %v27492_v55 = vadd.f32 %v17786_v38, %v15029_v0 }
 0x839   :  { %v17788_v26 = vpop.f32.mrf.mxu1 }
 0x83a   :  { %v17789_v3 = vadd.f32 %v17788_v26, %v17787_v10 }
 0x83b   :  { %v17790_v39 = vpop.f32.mrf.mxu1 }
 0x83c   :  { %v27496_v18 = vadd.f32 %v17789_v3, %v15032_v9 }
 0x83d   :  { %v17791_v16 = vpop.f32.mrf.mxu1 }
 0x83e   :  { %v17792_v2 = vadd.f32 %v17791_v16, %v17790_v39 }
 0x83f   :  { %v17793_v8 = vpop.f32.mrf.mxu1 }
 0x840   :  { %v27500_v59 = vadd.f32 %v17792_v2, %v15037_v43 }
 0x841   :  { %v17794_v22 = vpop.f32.mrf.mxu1 }
 0x842   :  { %v17795_v54 = vadd.f32 %v17794_v22, %v17793_v8 }
 0x843   :  { %v17796_v6 = vpop.f32.mrf.mxu1 }
 0x844   :  { %v27504_v47 = vadd.f32 %v17795_v54, %v15040_v15 }
 0x845   :  { %v17797_v62 = vpop.f32.mrf.mxu1 }
 0x846   :  { %v17798_v41 = vadd.f32 %v17797_v62, %v17796_v6 }
 0x847   :  { %v27522_v44 = vpop.f32.mrf.mxu1 }
 0x848   :  { %v27510_v28 = vadd.f32 %v17798_v41, %v15045_v17 }
 0x849   :  { %v27524_v4 = vpop.f32.mrf.mxu1 }
 0x84c   :  { %v17818_v21 = vpop.f32.mrf.mxu0 }
 0x84e   :  { %v17819_v48 = vpop.f32.mrf.mxu0 }
 0x84f   :  { %v17820_v13 = vadd.f32 %v17819_v48, %v17818_v21 }
 0x850   :  { %v17821_v25 = vpop.f32.mrf.mxu0 }
 0x851   :  { %v15183_v27 = vadd.f32 %v17820_v13, %v27459_v23 }
 0x852   :  { %v17822_v63 = vpop.f32.mrf.mxu0 }
 0x853   :  { %v17823_v45 = vadd.f32 %v17822_v63, %v17821_v25 }
 0x854   :  { %v17824_v14 = vpop.f32.mrf.mxu0 }
 0x855   :  { %v15186_v35 = vadd.f32 %v17823_v45, %v27462_v40 }
 0x856   :  { %v17825_v57 = vpop.f32.mrf.mxu0 }
 0x857   :  { %v17826_v7 = vadd.f32 %v17825_v57, %v17824_v14 }
 0x858   :  { %v17827_v36 = vpop.f32.mrf.mxu0 }
 0x859   :  { %v15191_v31 = vadd.f32 %v17826_v7, %v27465_v11 }
 0x85a   :  { %v17828_v5 = vpop.f32.mrf.mxu0 }
 0x85b   :  { %v17829_v61 = vadd.f32 %v17828_v5, %v17827_v36 }
 0x85c   :  { %v17830_v50 = vpop.f32.mrf.mxu0 }
 0x85d   :  { %v15194_v56 = vadd.f32 %v17829_v61, %v27468_v33 }
 0x85e   :  { %v17831_v20 = vpop.f32.mrf.mxu0 }
 0x85f   :  { %v17832_v1 = vadd.f32 %v17831_v20, %v17830_v50 }
 0x860   :  { %v17833_v23 = vpop.f32.mrf.mxu0 }
 0x861   :  { %v15199_v30 = vadd.f32 %v17832_v1, %v27471_v19 }
 0x862   :  { %v17834_v40 = vpop.f32.mrf.mxu0 }
 0x863   :  { %v17835_v63 = vadd.f32 %v17834_v40, %v17833_v23 }
 0x864   :  { %v17836_v29 = vpop.f32.mrf.mxu0 }
 0x866   :  { %v17837_v51 = vpop.f32.mrf.mxu0 }
 0x867   :  { %v17838_v53 = vadd.f32 %v17837_v51, %v17836_v29 }
 0x868   :  { %v17839_v24 = vpop.f32.mrf.mxu0 }
 0x86a   :  { %v17840_v11 = vpop.f32.mrf.mxu0 }
 0x86c   :  { %v17842_v12 = vpop.f32.mrf.mxu0 }
 0x86e   :  { %v17843_v33 = vpop.f32.mrf.mxu0 }
 0x86f   :  { %v17844_v29 = vadd.f32 %v17843_v33, %v17842_v12 }
 0x870   :  { %v17845_v38 = vpop.f32.mrf.mxu0 }
 0x872   :  { %v17846_v39 = vpop.f32.mrf.mxu0 }
 0x874   :  { %v17848_v54 = vpop.f32.mrf.mxu0 }
 0x876   :  { %v17849_v48 = vpop.f32.mrf.mxu0 }
 0x877   :  { %v17850_v12 = vadd.f32 %v17849_v48, %v17848_v54 }
 0x88b   :  { %v17882_v46 = vpop.f32.mrf.mxu1 }
 0x88d   :  { %v17883_v0 = vpop.f32.mrf.mxu1 }
 0x88e   :  { %v17884_v19 = vadd.f32 %v17883_v0, %v17882_v46 }
 0x88f   :  { %v17885_v10 = vpop.f32.mrf.mxu1 }
 0x890   :  { %v15280_v26 = vadd.f32 %v17884_v19, %v15183_v27 }
 0x891   :  { %v17886_v9 = vpop.f32.mrf.mxu1 }
 0x892   :  { %v17887_v3 = vadd.f32 %v17886_v9, %v17885_v10  ;;  %v15342_v8 = vmax.f32 %v15280_v26, 0.0  ;;  %v15207_v9 = vadd.f32 %v17838_v53, %v27477_v34  ;;  %v15215_v34 = vadd.f32 %v17844_v29, %v27484_v37 }
 0x893   :  { %v17888_v16 = vpop.f32.mrf.mxu1  ;;  %v15223_v37 = vadd.f32 %v17850_v12, %v27492_v55  ;;  %v15406_v12 = vpop.permute.xlu1 %15405 }
 0x894   :  { %v15283_v43 = vadd.f32 %v17887_v3, %v15186_v35  ;;  %v17851_v35 = vpop.f32.mrf.mxu0 }
 0x895   :  { %v17889_v2 = vpop.f32.mrf.mxu1 }
 0x896   :  { %v15343_v22 = vmax.f32 %v15283_v43, 0.0  ;;  %v17890_v15 = vadd.f32 %v17889_v2, %v17888_v16  ;;  %v17852_v20 = vpop.f32.mrf.mxu0 }
 0x897   :  { %v17891_v6 = vpop.f32.mrf.mxu1 }
 0x898   :  { %v15288_v62 = vadd.f32 %v17890_v15, %v15191_v31  ;;  %v27526_v17 = vpack.c.bf16 %v15343_v22, %v15342_v8  ;;  %v15202_v31 = vadd.f32 %v17835_v63, %v27474_v32  ;;  %v17854_v10 = vpop.f32.mrf.mxu0 }
 0x899   :  { %v17892_v41 = vpop.f32.mrf.mxu1 }
 0x89a   :  { %v17893_v21 = vadd.f32 %v17892_v41, %v17891_v6  ;;  %v15344_v45 = vmax.f32 %v15288_v62, 0.0  ;;  %v17855_v2 = vpop.f32.mrf.mxu0 }
 0x89b   :  { %v17894_v13 = vpop.f32.mrf.mxu1 }
 0x89c   :  { %v15291_v25 = vadd.f32 %v17893_v21, %v15194_v56  ;;  %v17841_v56 = vadd.f32 %v17840_v11, %v17839_v24  ;;  %v17847_v24 = vadd.f32 %v17846_v39, %v17845_v38  ;;  %v17857_v62 = vpop.f32.mrf.mxu0  ;;  %v17853_v38 = vadd.f32 %v17852_v20, %v17851_v35 }
 0x89d   :  { %v17895_v27 = vpop.f32.mrf.mxu1 }
 0x89e   :  { %v15345_v14 = vmax.f32 %v15291_v25, 0.0  ;;  %v17896_v57 = vadd.f32 %v17895_v27, %v17894_v13  ;;  %v15210_v16 = vadd.f32 %v17841_v56, %v27480_v42  ;;  %v15218_v42 = vadd.f32 %v17847_v24, %v27488_v60  ;;  %v17858_v63 = vpop.f32.mrf.mxu0 }
 0x89f   :  { %v17897_v7 = vpop.f32.mrf.mxu1  ;;  %v17856_v56 = vadd.f32 %v17855_v2, %v17854_v10 }
 0x8a0   :  { %v15296_v36 = vadd.f32 %v17896_v57, %v15199_v30  ;;  %v27528_v5 = vpack.c.bf16 %v15345_v14, %v15344_v45 }
 0x8a1   :  { %v17898_v61 = vpop.f32.mrf.mxu1 }
 0x8a2   :  { %v17899_v50 = vadd.f32 %v17898_v61, %v17897_v7  ;;  %v15346_v19 = vmax.f32 %v15296_v36, 0.0  ;;  %v17860_v36 = vpop.f32.mrf.mxu0 }
 0x8a3   :  { %v17900_v1 = vpop.f32.mrf.mxu1 }
 0x8a4   :  { %v15299_v46 = vadd.f32 %v17899_v50, %v15202_v31 }
 0x8a5   :  { %v17901_v0 = vpop.f32.mrf.mxu1 }
 0x8a6   :  { %v15347_v23 = vmax.f32 %v15299_v46, 0.0  ;;  %v17902_v40 = vadd.f32 %v17901_v0, %v17900_v1  ;;  %v15226_v1 = vadd.f32 %v17853_v38, %v27496_v18  ;;  %v17861_v46 = vpop.f32.mrf.mxu0 }
 0x8a7   :  { %v17903_v26 = vpop.f32.mrf.mxu1  ;;  %v17862_v29 = vadd.f32 %v17861_v46, %v17860_v36 }
 0x8a8   :  { %v27532_v30 = vpack.c.bf16 %v15347_v23, %v15346_v19  ;;  %v15304_v32 = vadd.f32 %v17902_v40, %v15207_v9  ;;  %v17859_v19 = vadd.f32 %v17858_v63, %v17857_v62  ;;  %v17863_v40 = vpop.f32.mrf.mxu0  ;;  %v15231_v9 = vadd.f32 %v17856_v56, %v27500_v59  ;;  %v20241_v63 = vld [vmem:[%s27635_s8 + $0x38] sm:$0xff]  }
 0x8a9   :  { %v17904_v3 = vpop.f32.mrf.mxu1 }
 0x8aa   :  { %v17905_v43 = vadd.f32 %v17904_v3, %v17903_v26  ;;  %v15348_v11 = vmax.f32 %v15304_v32, 0.0  ;;  %v17737_v3 = vadd.f32 %v27512_v58, %v27506_v52  ;;  %v17864_v10 = vpop.f32.mrf.mxu0 }
 0x8ab   :  { %v17906_v8 = vpop.f32.mrf.mxu1  ;;  %v17865_v59 = vadd.f32 %v17864_v10, %v17863_v40 }
 0x8ac   :  { %v15307_v51 = vadd.f32 %v17905_v43, %v15210_v16  ;;  %v15234_v16 = vadd.f32 %v17859_v19, %v27504_v47  ;;  %v15239_v47 = vadd.f32 %v17862_v29, %v27510_v28  ;;  %v20236_v28 = vld [vmem:[%s27635_s8 + $0x10] sm:$0xff]  }
 0x8ad   :  { %v17907_v22 = vpop.f32.mrf.mxu1 }
 0x8ae   :  { %v15349_v15 = vmax.f32 %v15307_v51, 0.0  ;;  %v17908_v6 = vadd.f32 %v17907_v22, %v17906_v8  ;;  %v17801_v8 = vadd.f32 %v27524_v4, %v27522_v44  ;;  %v15048_v22 = vadd.f32 %v17737_v3, %v27416_v49  ;;  %v20235_v49 = vld [vmem:[%s27635_s8 + $0x8] sm:$0xff]  }
 0x8af   :  { %v17909_v41 = vpop.f32.mrf.mxu1 }
 0x8b0   :  { %v27536_v21 = vpack.c.bf16 %v15349_v15, %v15348_v11  ;;  %v15312_v25 = vadd.f32 %v17908_v6, %v15215_v34  ;;  %v15145_v58 = vadd.f32 %v17801_v8, %v15048_v22 }
 0x8b1   :  { %v17910_v13 = vpop.f32.mrf.mxu1 }
 0x8b2   :  { %v17911_v27 = vadd.f32 %v17910_v13, %v17909_v41  ;;  %v15350_v39 = vmax.f32 %v15312_v25, 0.0  ;;  %v15242_v34 = vadd.f32 %v17865_v59, %v15145_v58 }
 0x8b3   :  { %v17912_v45 = vpop.f32.mrf.mxu1 }
 0x8b4   :  { %v15315_v33 = vadd.f32 %v17911_v27, %v15218_v42 }
 0x8b5   :  { %v17913_v14 = vpop.f32.mrf.mxu1 }
 0x8b6   :  { %v15351_v57 = vmax.f32 %v15315_v33, 0.0  ;;  %v17914_v7 = vadd.f32 %v17913_v14, %v17912_v45  ;;  %v15401_v45 = vpop.permute.xlu0 %15400  ;;  %v15416_v14 = vpop.permute.xlu1 %15415 }
 0x8b7   :  { %v17915_v61 = vpop.f32.mrf.mxu1 }
 0x8b8   :  { %v15378_v31 = vpack.c.bf16 %v15351_v57, %v15350_v39  ;;  %v15320_v60 = vadd.f32 %v17914_v7, %v15223_v37 }
 0x8b9   :  { %v17916_v50 = vpop.f32.mrf.mxu1 }
 0x8ba   :  { %v17917_v53 = vadd.f32 %v17916_v50, %v17915_v61  ;;  %v15352_v35 = vmax.f32 %v15320_v60, 0.0  ;;  %v15411_v33 = vpop.permute.xlu0 %15410  ;;  %v15426_v39 = vpop.permute.xlu1 %15425 }
 0x8bb   :  { %v17918_v0 = vpop.f32.mrf.mxu1 }
 0x8bc   :  { %v15323_v54 = vadd.f32 %v17917_v53, %v15226_v1 }
 0x8bd   :  { %v17919_v48 = vpop.f32.mrf.mxu1 }
 0x8be   :  { %v15353_v20 = vmax.f32 %v15323_v54, 0.0  ;;  %v17920_v23 = vadd.f32 %v17919_v48, %v17918_v0  ;;  %v15421_v38 = vpop.permute.xlu0 %15420 }
 0x8bf   :  { %v17921_v26 = vpop.f32.mrf.mxu1 }
 0x8c0   :  { %v15379_v55 = vpack.c.bf16 %v15353_v20, %v15352_v35  ;;  %v15328_v32 = vadd.f32 %v17920_v23, %v15231_v9 }
 0x8c1   :  { %v17922_v18 = vpop.f32.mrf.mxu1 }
 0x8c2   :  { %v17923_v43 = vadd.f32 %v17922_v18, %v17921_v26  ;;  %v15354_v11 = vmax.f32 %v15328_v32, 0.0  ;;  %v15431_v57 = vpop.permute.xlu0 %15430 }
 0x8c3   :  { %v17924_v2 = vpop.f32.mrf.mxu1 }
 0x8c4   :  { %v15331_v51 = vadd.f32 %v17923_v43, %v15234_v16 }
 0x8c5   :  { %v17925_v24 = vpop.f32.mrf.mxu1 }
 0x8c6   :  { %v15355_v15 = vmax.f32 %v15331_v51, 0.0  ;;  %v17926_v6 = vadd.f32 %v17925_v24, %v17924_v2  ;;  %v15441_v60 = vpop.permute.xlu0 %15440 }
 0x8c7   :  { %v17927_v52 = vpop.f32.mrf.mxu1 }
 0x8c8   :  { %v15380_v62 = vpack.c.bf16 %v15355_v15, %v15354_v11  ;;  %v15336_v13 = vadd.f32 %v17926_v6, %v15239_v47 }
 0x8c9   :  { %v17928_v41 = vpop.f32.mrf.mxu1 }
 0x8ca   :  { %v17929_v42 = vadd.f32 %v17928_v41, %v17927_v52  ;;  %v15356_v44 = vmax.f32 %v15336_v13, 0.0  ;;  %v15451_v35 = vpop.permute.xlu0 %15450 }
 0x8cc   :  { %v15339_v25 = vadd.f32 %v17929_v42, %v15242_v34 }
 0x8ce   :  { %v15357_v4 = vmax.f32 %v15339_v25, 0.0  ;;  %v15461_v18 = vpop.permute.xlu0 %15460 }
 0x8d0   :  { %v15381_v27 = vpack.c.bf16 %v15357_v4, %v15356_v44 }
 0x8d2   :  { %18508 = vmatprep.subr.bf16.mxu0 %v15381_v27  ;;  %v15471_v51 = vpop.permute.xlu0 %15470 }
 0x8d3   :  { %18509 = vmatpush3.bf16.msra.mxu0 %v15381_v27 }
 0x8d4   :  { %18510 = vmatprep.subr.bf16.mxu0 %v15380_v62 }
 0x8d7   :  { %18511 = vmatpush3.bf16.msra.mxu0 %v15380_v62 }
 0x8d8   :  { %18512 = vmatprep.subr.bf16.mxu0 %v15379_v55 }
 0x8db   :  { %18513 = vmatpush3.bf16.msra.mxu0 %v15379_v55 }
 0x8dc   :  { %18514 = vmatprep.subr.bf16.mxu0 %v15378_v31 }
 0x8df   :  { %18515 = vmatpush3.bf16.msra.mxu0 %v15378_v31  ;;  %v15436_v31 = vpop.permute.xlu1 %15435 }
 0x8e0   :  { %18516 = vmatprep.subr.bf16.mxu0 %v27536_v21 }
 0x8e3   :  { %18517 = vmatpush3.bf16.msra.mxu0 %v27536_v21  ;;  %v20240_v21 = vld [vmem:[%s27635_s8 + $0x30] sm:$0xff]   ;;  %v15446_v54 = vpop.permute.xlu1 %15445 }
 0x8e4   :  { %18518 = vmatprep.subr.bf16.mxu0 %v27532_v30 }
 0x8e7   :  { %18519 = vmatpush3.bf16.msra.mxu0 %v27532_v30  ;;  %v20237_v30 = vld [vmem:[%s27635_s8 + $0x18] sm:$0xff]   ;;  %v15456_v9 = vpop.permute.xlu1 %15455 }
 0x8e8   :  { %18520 = vmatprep.subr.bf16.mxu0 %v27528_v5 }
 0x8eb   :  { %18521 = vmatpush3.bf16.msra.mxu0 %v27528_v5  ;;  %v20238_v5 = vld [vmem:[%s27635_s8 + $0x20] sm:$0xff]   ;;  %v15466_v2 = vpop.permute.xlu1 %15465 }
 0x8ec   :  { %18522 = vmatprep.subr.bf16.mxu0 %v27526_v17 }
 0x8ef   :  { %18523 = vmatpush3.bf16.msra.mxu0 %v27526_v17  ;;  %v20239_v17 = vld [vmem:[%s27635_s8 + $0x28] sm:$0xff]   ;;  %v15476_v15 = vpop.permute.xlu1 %15475 }
 0x8f2   :  { %18525 = vmatmul.mubr.bf16.vlgmr.msra.gmra.mxu0 %v20235_v49 }
 0x8f3   :  { %18528 = vmatprep.mubr.bf16.mxu0 %v20236_v28 }
 0x8fa   :  { %18529 = vmatmul.mubr.bf16.gmra.mxu0 %v20237_v30 }
 0x8fb   :  { %18532 = vmatprep.mubr.bf16.mxu0 %v20238_v5 }
 0x902   :  { %18533 = vmatmul.mubr.bf16.gmra.mxu0 %v20239_v17 }
 0x903   :  { %18536 = vmatprep.mubr.bf16.mxu0 %v20240_v21 }
 0x90a   :  { %18537 = vmatmul.mubr.bf16.gmra.mxu0 %v20241_v63 }
 0x9b2   :  { %v18526_v7 = vpop.f32.mrf.mxu0 }
 0x9b3   :  { %v15569_v36 = vadd.f32 %v18526_v7, %v15411_v33 }
 0x9b4   :  { %v15560_v61 = vpop.f32.mrf.mxu0 }
 0x9b5   :  { %15625 = vst [vmem:[%s27636_s10 + $0x10] sm:$0xff] %v15569_v36  ;;  %v15561_v37 = vadd.f32 %v15560_v61, %v15401_v45 }
 0x9b6   :  { %v18527_v50 = vpop.f32.mrf.mxu0 }
 0x9b7   :  { %15623 = vst [vmem:[%s27636_s10] sm:$0xff] %v15561_v37  ;;  %v15572_v1 = vadd.f32 %v18527_v50, %v15416_v14 }
 0x9b8   :  { %v15563_v53 = vpop.f32.mrf.mxu0 }
 0x9b9   :  { %15626 = vst [vmem:[%s27636_s10 + $0x18] sm:$0xff] %v15572_v1  ;;  %v15564_v46 = vadd.f32 %v15563_v53, %v15406_v12 }
 0x9ba   :  { %v18530_v0 = vpop.f32.mrf.mxu0 }
 0x9bb   :  { %15624 = vst [vmem:[%s27636_s10 + $0x8] sm:$0xff] %v15564_v46  ;;  %v15585_v56 = vadd.f32 %v18530_v0, %v15431_v57 }
 0x9bc   :  { %v15576_v48 = vpop.f32.mrf.mxu0 }
 0x9bd   :  { %15629 = vst [vmem:[%s27636_s10 + $0x30] sm:$0xff] %v15585_v56  ;;  %v15577_v19 = vadd.f32 %v15576_v48, %v15421_v38 }
 0x9be   :  { %v18531_v20 = vpop.f32.mrf.mxu0 }
 0x9bf   :  { %15627 = vst [vmem:[%s27636_s10 + $0x20] sm:$0xff] %v15577_v19  ;;  %v15588_v23 = vadd.f32 %v18531_v20, %v15436_v31 }
 0x9c0   :  { %v15579_v40 = vpop.f32.mrf.mxu0 }
 0x9c1   :  { %15630 = vst [vmem:[%s27636_s10 + $0x38] sm:$0xff] %v15588_v23  ;;  %v15580_v26 = vadd.f32 %v15579_v40, %v15426_v39 }
 0x9c2   :  { %v18534_v55 = vpop.f32.mrf.mxu0 }
 0x9c3   :  { %15628 = vst [vmem:[%s27636_s10 + $0x28] sm:$0xff] %v15580_v26  ;;  %v15601_v3 = vadd.f32 %v18534_v55, %v15451_v35 }
 0x9c4   :  { %v15592_v16 = vpop.f32.mrf.mxu0 }
 0x9c5   :  { %15633 = vst [vmem:[%s27636_s10 + $0x50] sm:$0xff] %v15601_v3  ;;  %v15593_v32 = vadd.f32 %v15592_v16, %v15441_v60 }
 0x9c6   :  { %v18535_v43 = vpop.f32.mrf.mxu0 }
 0x9c7   :  { %15631 = vst [vmem:[%s27636_s10 + $0x40] sm:$0xff] %v15593_v32  ;;  %v15604_v10 = vadd.f32 %v18535_v43, %v15456_v9 }
 0x9c8   :  { %v15595_v8 = vpop.f32.mrf.mxu0 }
 0x9c9   :  { %15634 = vst [vmem:[%s27636_s10 + $0x58] sm:$0xff] %v15604_v10  ;;  %v15596_v29 = vadd.f32 %v15595_v8, %v15446_v54 }
 0x9ca   :  { %v18538_v22 = vpop.f32.mrf.mxu0 }
 0x9cb   :  { %15632 = vst [vmem:[%s27636_s10 + $0x48] sm:$0xff] %v15596_v29  ;;  %v15617_v24 = vadd.f32 %v18538_v22, %v15471_v51 }
 0x9cc   :  { %v15608_v59 = vpop.f32.mrf.mxu0 }
 0x9cd   :  { %15637 = vst [vmem:[%s27636_s10 + $0x70] sm:$0xff] %v15617_v24  ;;  %v15609_v11 = vadd.f32 %v15608_v59, %v15461_v18 }
 0x9ce   :  { %v18539_v6 = vpop.f32.mrf.mxu0 }
 0x9cf   :  { %15635 = vst [vmem:[%s27636_s10 + $0x60] sm:$0xff] %v15609_v11  ;;  %v15620_v52 = vadd.f32 %v18539_v6, %v15476_v15 }
 0x9d0   :  { %v15611_v58 = vpop.f32.mrf.mxu0 }
 0x9d1   :  { %15638 = vst [vmem:[%s27636_s10 + $0x78] sm:$0xff] %v15620_v52  ;;  %v15612_v47 = vadd.f32 %v15611_v58, %v15466_v2 }
 0x9d3   :  { %15636 = vst [vmem:[%s27636_s10 + $0x68] sm:$0xff] %v15612_v47 }

</bundles_post_ra>
